<compile_context>
chip_gen: v6e
topology: v6e:2x2x1
jax: 0.10.0
libtpu: 0.0.40
codegen_flags: <defaults>
</compile_context>

<pallas_src>
import math

import jax
import jax.numpy as jnp
from jax import lax
from jax.experimental import pallas as pl
from jax.experimental.pallas import tpu as pltpu

BAND_FEATURES = 64      # F
NUM_LSTM_LAYERS = 2


# ----------------------------- Pallas kernel ---------------------------------
def _make_kernel(TC, BBh, F):
    """Per-(batch-block, time-chunk) kernel. BBh sublane rows, 2 groups packed
    in lanes (each F wide)."""
    H = 2 * F          # packed hidden width  (two batch groups side by side)
    G = 8 * F          # packed gate width per layer (4 gates x 2 groups)
    unroll = True if TC <= 16 else (8 if BBh <= 16 else 4)

    def kernel(
        x_ref,                               # (TC*BBh, 2F) packed input chunk
        w0_ref, b0_ref,                      # (2F, 8F) bf16, (1, 8F) f32  fused fc_in+ih0
        wr_ref, b1_ref,                      # (4F, 16F) bf16, (1, 8F) f32 merged recurrent
        wfc_ref, bfc_ref,                    # (2F, 2F) bf16, (1, 2F) f32  fc (block-diag)
        out_ref,                             # (TC*BBh, 2F) packed output chunk
        gates_ref,                           # VMEM (TC*BBh, 8F) f32  L0 gate preacts
        seq_ref,                             # VMEM (TC*BBh, 2F) bf16 L1 outputs
        h0_ref, c0_ref, h1_ref, c1_ref,      # VMEM (BBh, 2F) f32 persistent state
    ):
        # Reset recurrent state at the first time-chunk of each batch block.
        @pl.when(pl.program_id(1) == 0)
        def _init():
            h0_ref[...] = jnp.zeros_like(h0_ref)
            c0_ref[...] = jnp.zeros_like(c0_ref)
            h1_ref[...] = jnp.zeros_like(h1_ref)
            c1_ref[...] = jnp.zeros_like(c1_ref)

        # ---- layer-0 input projection for the whole chunk (fc_in folded) ----
        gates_ref[...] = jnp.dot(
            x_ref[...].astype(jnp.bfloat16), w0_ref[...],
            preferred_element_type=jnp.float32) + b0_ref[...]

        # Hoisted: JAX does not CSE broadcast_in_dim, keep it out of the loop.
        b1_full = jnp.broadcast_to(b1_ref[...], (BBh, G))

        def cell(g, c):
            # packed gate columns: [i | f | o | g], each 2F (=128) lanes wide
            sig = jax.nn.sigmoid(g[:, :3 * H])
            gg = jnp.tanh(g[:, 3 * H:])
            c_new = sig[:, H:2 * H] * c + sig[:, :H] * gg
            h_new = sig[:, 2 * H:] * jnp.tanh(c_new)
            return h_new, c_new

        h0 = h0_ref[...]
        c0 = c0_ref[...]
        h1 = h1_ref[...]
        c1 = c1_ref[...]

        # ---- prologue: layer-0 @ t=0 (only the h0 rows / L0 cols of Wr) ----
        g0 = gates_ref[pl.ds(0, BBh), :] + jnp.dot(
            h0.astype(jnp.bfloat16), wr_ref[:H, :G],
            preferred_element_type=jnp.float32)
        h0, c0 = cell(g0, c0)

        # ---- wavefront over the chunk: iteration t = L0@t and L1@(t-1) ----
        def step(t, carry):
            h0, c0, h1, c1 = carry
            hcat = jnp.concatenate(
                [h0.astype(jnp.bfloat16), h1.astype(jnp.bfloat16)], axis=1)
            # one merged recurrent matmul: K = 4F, N = 16F
            r = jnp.dot(hcat, wr_ref[...], preferred_element_type=jnp.float32)
            g0 = gates_ref[pl.ds(pl.multiple_of(t * BBh, BBh), BBh), :] + r[:, :G]
            h0n, c0n = cell(g0, c0)                          # layer 0 @ t
            h1n, c1n = cell(r[:, G:] + b1_full, c1)          # layer 1 @ t-1
            seq_ref[pl.ds(pl.multiple_of((t - 1) * BBh, BBh), BBh), :] = (
                h1n.astype(seq_ref.dtype))
            return (h0n, c0n, h1n, c1n)

        h0, c0, h1, c1 = lax.fori_loop(1, TC, step, (h0, c0, h1, c1),
                                       unroll=unroll)

        # ---- epilogue: layer-1 @ t = TC-1 ----
        hcat = jnp.concatenate(
            [h0.astype(jnp.bfloat16), h1.astype(jnp.bfloat16)], axis=1)
        g1 = jnp.dot(hcat, wr_ref[:, G:],
                     preferred_element_type=jnp.float32) + b1_full
        h1, c1 = cell(g1, c1)
        seq_ref[pl.ds(pl.multiple_of((TC - 1) * BBh, BBh), BBh), :] = (
            h1.astype(seq_ref.dtype))

        # carry state to the next time-chunk
        h0_ref[...] = h0
        c0_ref[...] = c0
        h1_ref[...] = h1
        c1_ref[...] = c1

        # ---- fc + residual; everything here is 128-lane dense ----
        y = jnp.dot(seq_ref[...], wfc_ref[...],
                    preferred_element_type=jnp.float32) + bfc_ref[...]
        out_ref[...] = (y + x_ref[...].astype(jnp.float32)).astype(out_ref.dtype)

    return kernel


# ------------------------------ wrapper ---------------------------------------
def _perm_gates(a):
    """Reorder PyTorch LSTM gate blocks along axis 0: [i, f, g, o] -> [i, f, o, g]."""
    F = BAND_FEATURES
    return jnp.concatenate([a[:2 * F], a[3 * F:4 * F], a[2 * F:3 * F]], axis=0)


def _pack_gate_weight(w):
    """(K, 4F) gate-ordered [i,f,o,g] -> (2K, 8F) block-diagonal over the two
    batch groups packed in lanes; packed gate columns are [i0 i1 f0 f1 o0 o1 g0 g1]."""
    F = BAND_FEATURES
    K = w.shape[0]
    wp = jnp.zeros((2 * K, 8 * F), w.dtype)
    for q in range(4):
        blk = w[:, q * F:(q + 1) * F]
        wp = wp.at[:K, (2 * q) * F:(2 * q + 1) * F].set(blk)
        wp = wp.at[K:, (2 * q + 1) * F:(2 * q + 2) * F].set(blk)
    return wp


def _pack_gate_bias(b):
    """(4F,) gate-ordered [i,f,o,g] -> (8F,) with each gate duplicated per group."""
    F = BAND_FEATURES
    return jnp.concatenate(
        [jnp.concatenate([b[q * F:(q + 1) * F]] * 2) for q in range(4)])


def norm_rnn_residual(x, params, t_chunk=64):
    """x: (B, T, F) batch_first, like the PyTorch module."""
    B, T, F = x.shape
    assert F == BAND_FEATURES
    f32, bf16 = jnp.float32, jnp.bfloat16
    hp = lax.Precision.HIGHEST

    # ---- batch: pad to a multiple of 16, pack two groups per 128 lanes ----
    Bp = -(-B // 16) * 16
    BB = 16
    for cand in (64, 48, 32, 16):        # per-grid-block batch rows (vreg budget cap)
        if Bp % cand == 0:
            BB = cand
            break
    BBh = BB // 2                        # sublane rows per block (2 groups in lanes)
    NB = Bp // BB

    # ---- time chunking (state carried across chunks in persistent scratch) ----
    TC = T if T <= t_chunk else t_chunk
    num_chunks = -(-T // TC)
    Tpad = num_chunks * TC

    # ---- pack x: rows ordered (batch_block, t, r), lanes = [group0 | group1] ----
    x_p = jnp.pad(x.astype(f32), ((0, Bp - B), (0, Tpad - T), (0, 0)))
    x_pk = (x_p.reshape(NB, 2, BBh, Tpad, F)
               .transpose(0, 3, 2, 1, 4)
               .reshape(NB * Tpad * BBh, 2 * F))

    # ---- kernel-ready parameters (gate-permuted, fused, packed, bf16) ----
    w_ih0 = _perm_gates(params["w_ih0"])                     # (4F, F)
    w_hh0 = _perm_gates(params["w_hh0"])
    b0 = _perm_gates(params["b_ih0"]) + _perm_gates(params["b_hh0"])
    w_ih1 = _perm_gates(params["w_ih1"])
    w_hh1 = _perm_gates(params["w_hh1"])
    bb1 = _perm_gates(params["b_ih1"]) + _perm_gates(params["b_hh1"])

    # fold fc_in into layer-0's input projection
    w0_folded = jnp.dot(params["fc_in_w"].T, w_ih0.T, precision=hp)      # (F, 4F)
    b0_folded = jnp.dot(params["fc_in_b"], w_ih0.T, precision=hp) + b0   # (4F,)

    w0p = _pack_gate_weight(w0_folded).astype(bf16)                      # (2F, 8F)
    b0p = _pack_gate_bias(b0_folded).reshape(1, 8 * F).astype(f32)

    whh0_p = _pack_gate_weight(w_hh0.T)
    wih1_p = _pack_gate_weight(w_ih1.T)
    whh1_p = _pack_gate_weight(w_hh1.T)
    # merged recurrent weight: [h0_packed | h1_packed] @ Wr = [L0 gates | L1 gates]
    wr = jnp.concatenate(
        [jnp.concatenate([whh0_p, wih1_p], axis=1),
         jnp.concatenate([jnp.zeros_like(whh1_p), whh1_p], axis=1)],
        axis=0).astype(bf16)                                             # (4F, 16F)
    b1p = _pack_gate_bias(bb1).reshape(1, 8 * F).astype(f32)

    wfc = params["fc_w"].T                                               # (F, F)
    wfc_p = (jnp.zeros((2 * F, 2 * F), f32)
             .at[:F, :F].set(wfc).at[F:, F:].set(wfc)).astype(bf16)      # (2F, 2F)
    bfc_p = jnp.concatenate([params["fc_b"]] * 2).reshape(1, 2 * F).astype(f32)

    args = (x_pk, w0p, b0p, wr, b1p, wfc_p, bfc_p)

    def _const(a):
        return pl.BlockSpec(a.shape, lambda nb, tc: (0, 0))

    nc = num_chunks
    xo_spec = pl.BlockSpec((TC * BBh, 2 * F), lambda nb, tc: (nb * nc + tc, 0))

    # ---- VMEM budget (explicit, keeps default chunk inside v7x's 64 MiB) ----
    w_bytes = sum(int(a.size) * a.dtype.itemsize for a in args[1:])
    blk = TC * BBh
    vmem_est = (2 * 2 * blk * 2 * F * 4          # x + out blocks, double-buffered
                + blk * 8 * F * 4                # gates scratch (f32)
                + blk * 2 * F * 2                # seq scratch (bf16)
                + 4 * BBh * 2 * F * 4            # h/c state
                + 2 * w_bytes)                   # weights (conservatively x2)
    vmem_limit = int(min(max(2 * vmem_est + (4 << 20), 16 << 20), 48 << 20))

    out_pk = pl.pallas_call(
        _make_kernel(TC, BBh, F),
        out_shape=jax.ShapeDtypeStruct((NB * Tpad * BBh, 2 * F), x.dtype),
        grid_spec=pltpu.PrefetchScalarGridSpec(
            num_scalar_prefetch=0,
            grid=(NB, num_chunks),               # (batch blocks, time chunks)
            in_specs=[xo_spec] + [_const(a) for a in args[1:]],
            out_specs=xo_spec,
            scratch_shapes=[
                pltpu.VMEM((TC * BBh, 8 * F), jnp.float32),   # L0 gate preacts
                pltpu.VMEM((TC * BBh, 2 * F), jnp.bfloat16),  # L1 outputs (bf16)
                pltpu.VMEM((BBh, 2 * F), jnp.float32),        # h0
                pltpu.VMEM((BBh, 2 * F), jnp.float32),        # c0
                pltpu.VMEM((BBh, 2 * F), jnp.float32),        # h1
                pltpu.VMEM((BBh, 2 * F), jnp.float32),        # c1
            ],
        ),
        compiler_params=pltpu.CompilerParams(
            # batch blocks are independent -> "parallel" (v7x 2nd TC);
            # time chunks carry state in scratch -> must stay "arbitrary".
            dimension_semantics=("parallel", "arbitrary"),
            vmem_limit_bytes=vmem_limit),
    )(*args)

    out = (out_pk.reshape(NB, Tpad, BBh, 2, F)
                 .transpose(0, 3, 2, 1, 4)
                 .reshape(Bp, Tpad, F)[:B, :T])
    return out


# ---------------- deterministic parameter init (PyTorch-style) ----------------
def init_params(key):
    F = BAND_FEATURES
    ks = iter(jax.random.split(key, 32))

    def u(shape, fan_in):
        bound = 1.0 / math.sqrt(fan_in)
        return jax.random.uniform(next(ks), shape, jnp.float32, -bound, bound)

    p = {
        "fc_in_w": u((F, F), F), "fc_in_b": u((F,), F),
        "fc_w": u((F, F), F), "fc_b": u((F,), F),
    }
    for l in range(NUM_LSTM_LAYERS):
        p[f"w_ih{l}"] = u((4 * F, F), F)
        p[f"w_hh{l}"] = u((4 * F, F), F)
        p[f"b_ih{l}"] = u((4 * F,), F)
        p[f"b_hh{l}"] = u((4 * F,), F)
    return p


# ---------------- pure-JAX reference (mirrors the PyTorch forward) -------------
def reference_forward(x, p):
    F = BAND_FEATURES
    hp = lax.Precision.HIGHEST
    out = jnp.dot(x, p["fc_in_w"].T, precision=hp) + p["fc_in_b"]

    def lstm_layer(seq, w_ih, w_hh, b_ih, b_hh):
        B = seq.shape[0]

        def step(carry, x_t):
            h, c = carry
            g = (jnp.dot(x_t, w_ih.T, precision=hp) + b_ih
                 + jnp.dot(h, w_hh.T, precision=hp) + b_hh)
            i = jax.nn.sigmoid(g[:, 0:F])
            f = jax.nn.sigmoid(g[:, F:2 * F])
            gg = jnp.tanh(g[:, 2 * F:3 * F])
            o = jax.nn.sigmoid(g[:, 3 * F:4 * F])
            c = f * c + i * gg
            h = o * jnp.tanh(c)
            return (h, c), h

        init = (jnp.zeros((B, F), jnp.float32), jnp.zeros((B, F), jnp.float32))
        _, ys = lax.scan(step, init, jnp.transpose(seq, (1, 0, 2)))
        return jnp.transpose(ys, (1, 0, 2))

    for l in range(NUM_LSTM_LAYERS):
        out = lstm_layer(out, p[f"w_ih{l}"], p[f"w_hh{l}"],
                         p[f"b_ih{l}"], p[f"b_hh{l}"])
    out = jnp.dot(out, p["fc_w"].T, precision=hp) + p["fc_b"]
    return out + x


if __name__ == "__main__":
    key = jax.random.PRNGKey(0)
    k_x, k_p = jax.random.split(key)

    B, T, F = 2, 8, BAND_FEATURES          # (batch, seq, band_features)
    x = jax.random.normal(k_x, (B, T, F), jnp.float32)
    params = init_params(k_p)

    out = jax.block_until_ready(norm_rnn_residual(x, params))

    ref = reference_forward(x, params)
    assert out.shape == (B, T, F)
    assert bool(jnp.all(jnp.isfinite(out)))
    # bf16 MXU operands (f32 accumulation / state): allow bf16-level rounding.
    err = float(jnp.max(jnp.abs(out - ref)))
    assert jnp.allclose(out, ref, atol=2e-2, rtol=2e-2), err

    print("KERNEL_OK")
</pallas_src>

<mosaic_0001>
module attributes {stable_mosaic.version = 11 : i64} {
  func.func @kernel(%arg0: i32, %arg1: i32, %arg2: memref<64x128xf32, #tpu.memory_space<vmem>>, %arg3: memref<128x512xbf16, #tpu.memory_space<vmem>>, %arg4: memref<1x512xf32, #tpu.memory_space<vmem>>, %arg5: memref<256x1024xbf16, #tpu.memory_space<vmem>>, %arg6: memref<1x512xf32, #tpu.memory_space<vmem>>, %arg7: memref<128x128xbf16, #tpu.memory_space<vmem>>, %arg8: memref<1x128xf32, #tpu.memory_space<vmem>>, %arg9: memref<64x128xf32, #tpu.memory_space<vmem>>, %arg10: memref<64x512xf32, #tpu.memory_space<vmem>>, %arg11: memref<64x128xbf16, #tpu.memory_space<vmem>>, %arg12: memref<8x128xf32, #tpu.memory_space<vmem>>, %arg13: memref<8x128xf32, #tpu.memory_space<vmem>>, %arg14: memref<8x128xf32, #tpu.memory_space<vmem>>, %arg15: memref<8x128xf32, #tpu.memory_space<vmem>>) attributes {dimension_semantics = [#tpu.dimension_semantics<parallel>, #tpu.dimension_semantics<arbitrary>], iteration_bounds = array<i64: 1, 1>, scalar_prefetch = 0 : i64, scratch_operands = 6 : i64, tpu.core_type = #tpu.core_type<tc>, window_params = [{transform_indices = @transform_0, window_bounds = array<i64: 64, 128>}, {pipeline_mode = #tpu.pipeline_mode<synchronous>, transform_indices = @transform_1, window_bounds = array<i64: 128, 512>}, {pipeline_mode = #tpu.pipeline_mode<synchronous>, transform_indices = @transform_2, window_bounds = array<i64: 1, 512>}, {pipeline_mode = #tpu.pipeline_mode<synchronous>, transform_indices = @transform_3, window_bounds = array<i64: 256, 1024>}, {pipeline_mode = #tpu.pipeline_mode<synchronous>, transform_indices = @transform_4, window_bounds = array<i64: 1, 512>}, {pipeline_mode = #tpu.pipeline_mode<synchronous>, transform_indices = @transform_5, window_bounds = array<i64: 128, 128>}, {pipeline_mode = #tpu.pipeline_mode<synchronous>, transform_indices = @transform_6, window_bounds = array<i64: 1, 128>}, {transform_indices = @transform_7, window_bounds = array<i64: 64, 128>}]} {
    %c0_i32 = arith.constant 0 : i32
    %0 = arith.cmpi eq, %arg1, %c0_i32 : i32
    %1 = arith.extui %0 : i1 to i32
    %c0_i32_0 = arith.constant 0 : i32
    %2 = arith.cmpi ne, %1, %c0_i32_0 : i32
    scf.if %2 {
      %cst_117 = arith.constant 0.000000e+00 : f32
      %435 = vector.broadcast %cst_117 : f32 to vector<8x128xf32>
      %c0_118 = arith.constant 0 : index
      %c0_119 = arith.constant 0 : index
      %436 = vector.load %arg12[%c0_118, %c0_119] : memref<8x128xf32, #tpu.memory_space<vmem>>, vector<8x128xf32>
      tpu.vector_store %arg12[%c0_118, %c0_119], %435 {strides = array<i32>} : memref<8x128xf32, #tpu.memory_space<vmem>>, vector<8x128xf32>,
      %cst_120 = arith.constant 0.000000e+00 : f32
      %437 = vector.broadcast %cst_120 : f32 to vector<8x128xf32>
      %c0_121 = arith.constant 0 : index
      %c0_122 = arith.constant 0 : index
      %438 = vector.load %arg13[%c0_121, %c0_122] : memref<8x128xf32, #tpu.memory_space<vmem>>, vector<8x128xf32>
      tpu.vector_store %arg13[%c0_121, %c0_122], %437 {strides = array<i32>} : memref<8x128xf32, #tpu.memory_space<vmem>>, vector<8x128xf32>,
      %cst_123 = arith.constant 0.000000e+00 : f32
      %439 = vector.broadcast %cst_123 : f32 to vector<8x128xf32>
      %c0_124 = arith.constant 0 : index
      %c0_125 = arith.constant 0 : index
      %440 = vector.load %arg14[%c0_124, %c0_125] : memref<8x128xf32, #tpu.memory_space<vmem>>, vector<8x128xf32>
      tpu.vector_store %arg14[%c0_124, %c0_125], %439 {strides = array<i32>} : memref<8x128xf32, #tpu.memory_space<vmem>>, vector<8x128xf32>,
      %cst_126 = arith.constant 0.000000e+00 : f32
      %441 = vector.broadcast %cst_126 : f32 to vector<8x128xf32>
      %c0_127 = arith.constant 0 : index
      %c0_128 = arith.constant 0 : index
      %442 = vector.load %arg15[%c0_127, %c0_128] : memref<8x128xf32, #tpu.memory_space<vmem>>, vector<8x128xf32>
      tpu.vector_store %arg15[%c0_127, %c0_128], %441 {strides = array<i32>} : memref<8x128xf32, #tpu.memory_space<vmem>>, vector<8x128xf32>,
    } else {
    }
    %c0 = arith.constant 0 : index
    %c0_1 = arith.constant 0 : index
    %3 = vector.load %arg2[%c0, %c0_1] : memref<64x128xf32, #tpu.memory_space<vmem>>, vector<64x128xf32>
    %4 = arith.truncf %3 : vector<64x128xf32> to vector<64x128xbf16>
    %c0_2 = arith.constant 0 : index
    %c0_3 = arith.constant 0 : index
    %5 = vector.load %arg3[%c0_2, %c0_3] : memref<128x512xbf16, #tpu.memory_space<vmem>>, vector<128x512xbf16>
    %cst = arith.constant dense<0.000000e+00> : vector<64x512xf32>
    %6 = tpu.matmul %4, %5, %cst {dimension_numbers = #tpu.dot_dimension_numbers<[1], [0], [0], [1], [0, 0, 1, 1], [], []>} : vector<64x128xbf16>, vector<128x512xbf16>, vector<64x512xf32> -> vector<64x512xf32>
    %c0_4 = arith.constant 0 : index
    %c0_5 = arith.constant 0 : index
    %7 = vector.load %arg4[%c0_4, %c0_5] : memref<1x512xf32, #tpu.memory_space<vmem>>, vector<1x512xf32>
    %8 = vector.broadcast %7 : vector<1x512xf32> to vector<64x512xf32>
    %9 = arith.addf %6, %8 : vector<64x512xf32>
    %c0_6 = arith.constant 0 : index
    %c0_7 = arith.constant 0 : index
    %10 = vector.load %arg10[%c0_6, %c0_7] : memref<64x512xf32, #tpu.memory_space<vmem>>, vector<64x512xf32>
    tpu.vector_store %arg10[%c0_6, %c0_7], %9 {strides = array<i32>} : memref<64x512xf32, #tpu.memory_space<vmem>>, vector<64x512xf32>,
    %c0_8 = arith.constant 0 : index
    %c0_9 = arith.constant 0 : index
    %11 = vector.load %arg6[%c0_8, %c0_9] : memref<1x512xf32, #tpu.memory_space<vmem>>, vector<1x512xf32>
    %12 = vector.shape_cast %11 : vector<1x512xf32> to vector<1x512xf32>
    %13 = vector.broadcast %12 : vector<1x512xf32> to vector<8x512xf32>
    %c0_10 = arith.constant 0 : index
    %c0_11 = arith.constant 0 : index
    %14 = vector.load %arg12[%c0_10, %c0_11] : memref<8x128xf32, #tpu.memory_space<vmem>>, vector<8x128xf32>
    %c0_12 = arith.constant 0 : index
    %c0_13 = arith.constant 0 : index
    %15 = vector.load %arg13[%c0_12, %c0_13] : memref<8x128xf32, #tpu.memory_space<vmem>>, vector<8x128xf32>
    %c0_14 = arith.constant 0 : index
    %c0_15 = arith.constant 0 : index
    %16 = vector.load %arg14[%c0_14, %c0_15] : memref<8x128xf32, #tpu.memory_space<vmem>>, vector<8x128xf32>
    %c0_16 = arith.constant 0 : index
    %c0_17 = arith.constant 0 : index
    %17 = vector.load %arg15[%c0_16, %c0_17] : memref<8x128xf32, #tpu.memory_space<vmem>>, vector<8x128xf32>
    %c0_18 = arith.constant 0 : index
    %c0_19 = arith.constant 0 : index
    %18 = vector.load %arg10[%c0_18, %c0_19] : memref<64x512xf32, #tpu.memory_space<vmem>>, vector<8x512xf32>
    %19 = arith.truncf %14 : vector<8x128xf32> to vector<8x128xbf16>
    %c0_20 = arith.constant 0 : index
    %c0_21 = arith.constant 0 : index
    %20 = vector.load %arg5[%c0_20, %c0_21] : memref<256x1024xbf16, #tpu.memory_space<vmem>>, vector<128x512xbf16>
    %cst_22 = arith.constant dense<0.000000e+00> : vector<8x512xf32>
    %21 = tpu.matmul %19, %20, %cst_22 {dimension_numbers = #tpu.dot_dimension_numbers<[1], [0], [0], [1], [0, 0, 1, 1], [], []>} : vector<8x128xbf16>, vector<128x512xbf16>, vector<8x512xf32> -> vector<8x512xf32>
    %22 = arith.addf %18, %21 : vector<8x512xf32>
    %23 = vector.extract_strided_slice %22 {offsets = [0, 0], sizes = [8, 384], strides = [1, 1]} : vector<8x512xf32> to vector<8x384xf32>
    %24 = arith.negf %23 : vector<8x384xf32>
    %25 = math.exp %24 : vector<8x384xf32>
    %cst_23 = arith.constant 1.000000e+00 : f32
    %26 = vector.broadcast %cst_23 : f32 to vector<8x384xf32>
    %27 = arith.addf %26, %25 : vector<8x384xf32>
    %28 = arith.divf %26, %27 : vector<8x384xf32>
    %29 = vector.extract_strided_slice %22 {offsets = [0, 384], sizes = [8, 128], strides = [1, 1]} : vector<8x512xf32> to vector<8x128xf32>
    %30 = math.tanh %29 : vector<8x128xf32>
    %31 = vector.extract_strided_slice %28 {offsets = [0, 128], sizes = [8, 128], strides = [1, 1]} : vector<8x384xf32> to vector<8x128xf32>
    %32 = arith.mulf %31, %15 : vector<8x128xf32>
    %33 = vector.extract_strided_slice %28 {offsets = [0, 0], sizes = [8, 128], strides = [1, 1]} : vector<8x384xf32> to vector<8x128xf32>
    %34 = arith.mulf %33, %30 : vector<8x128xf32>
    %35 = arith.addf %32, %34 : vector<8x128xf32>
    %36 = vector.extract_strided_slice %28 {offsets = [0, 256], sizes = [8, 128], strides = [1, 1]} : vector<8x384xf32> to vector<8x128xf32>
    %37 = math.tanh %35 : vector<8x128xf32>
    %38 = arith.mulf %36, %37 : vector<8x128xf32>
    %c1_i32 = arith.constant 1 : i32
    %39 = arith.truncf %38 : vector<8x128xf32> to vector<8x128xbf16>
    %40 = arith.truncf %16 : vector<8x128xf32> to vector<8x128xbf16>
    %41 = tpu.concatenate %39, %40 in 1 : vector<8x128xbf16>, vector<8x128xbf16> -> vector<8x256xbf16>
    %c0_24 = arith.constant 0 : index
    %c0_25 = arith.constant 0 : index
    %42 = vector.load %arg5[%c0_24, %c0_25] : memref<256x1024xbf16, #tpu.memory_space<vmem>>, vector<256x1024xbf16>
    %cst_26 = arith.constant dense<0.000000e+00> : vector<8x1024xf32>
    %43 = tpu.matmul %41, %42, %cst_26 {dimension_numbers = #tpu.dot_dimension_numbers<[1], [0], [0], [1], [0, 0, 1, 1], [], []>} : vector<8x256xbf16>, vector<256x1024xbf16>, vector<8x1024xf32> -> vector<8x1024xf32>
    %c8_i32 = arith.constant 8 : i32
    %44 = arith.muli %c1_i32, %c8_i32 : i32
    %45 = tpu.assume_multiple %44, 8 : i32
    %46 = arith.index_cast %45 : i32 to index
    %c0_27 = arith.constant 0 : index
    %47 = vector.load %arg10[%46, %c0_27] : memref<64x512xf32, #tpu.memory_space<vmem>>, vector<8x512xf32>
    %48 = vector.extract_strided_slice %43 {offsets = [0, 0], sizes = [8, 512], strides = [1, 1]} : vector<8x1024xf32> to vector<8x512xf32>
    %49 = arith.addf %47, %48 : vector<8x512xf32>
    %50 = vector.extract_strided_slice %49 {offsets = [0, 0], sizes = [8, 384], strides = [1, 1]} : vector<8x512xf32> to vector<8x384xf32>
    %51 = arith.negf %50 : vector<8x384xf32>
    %52 = math.exp %51 : vector<8x384xf32>
    %cst_28 = arith.constant 1.000000e+00 : f32
    %53 = vector.broadcast %cst_28 : f32 to vector<8x384xf32>
    %54 = arith.addf %53, %52 : vector<8x384xf32>
    %55 = arith.divf %53, %54 : vector<8x384xf32>
    %56 = vector.extract_strided_slice %49 {offsets = [0, 384], sizes = [8, 128], strides = [1, 1]} : vector<8x512xf32> to vector<8x128xf32>
    %57 = math.tanh %56 : vector<8x128xf32>
    %58 = vector.extract_strided_slice %55 {offsets = [0, 128], sizes = [8, 128], strides = [1, 1]} : vector<8x384xf32> to vector<8x128xf32>
    %59 = arith.mulf %58, %35 : vector<8x128xf32>
    %60 = vector.extract_strided_slice %55 {offsets = [0, 0], sizes = [8, 128], strides = [1, 1]} : vector<8x384xf32> to vector<8x128xf32>
    %61 = arith.mulf %60, %57 : vector<8x128xf32>
    %62 = arith.addf %59, %61 : vector<8x128xf32>
    %63 = vector.extract_strided_slice %55 {offsets = [0, 256], sizes = [8, 128], strides = [1, 1]} : vector<8x384xf32> to vector<8x128xf32>
    %64 = math.tanh %62 : vector<8x128xf32>
    %65 = arith.mulf %63, %64 : vector<8x128xf32>
    %66 = vector.extract_strided_slice %43 {offsets = [0, 512], sizes = [8, 512], strides = [1, 1]} : vector<8x1024xf32> to vector<8x512xf32>
    %67 = arith.addf %66, %13 : vector<8x512xf32>
    %68 = vector.extract_strided_slice %67 {offsets = [0, 0], sizes = [8, 384], strides = [1, 1]} : vector<8x512xf32> to vector<8x384xf32>
    %69 = arith.negf %68 : vector<8x384xf32>
    %70 = math.exp %69 : vector<8x384xf32>
    %cst_29 = arith.constant 1.000000e+00 : f32
    %71 = vector.broadcast %cst_29 : f32 to vector<8x384xf32>
    %72 = arith.addf %71, %70 : vector<8x384xf32>
    %73 = arith.divf %71, %72 : vector<8x384xf32>
    %74 = vector.extract_strided_slice %67 {offsets = [0, 384], sizes = [8, 128], strides = [1, 1]} : vector<8x512xf32> to vector<8x128xf32>
    %75 = math.tanh %74 : vector<8x128xf32>
    %76 = vector.extract_strided_slice %73 {offsets = [0, 128], sizes = [8, 128], strides = [1, 1]} : vector<8x384xf32> to vector<8x128xf32>
    %77 = arith.mulf %76, %17 : vector<8x128xf32>
    %78 = vector.extract_strided_slice %73 {offsets = [0, 0], sizes = [8, 128], strides = [1, 1]} : vector<8x384xf32> to vector<8x128xf32>
    %79 = arith.mulf %78, %75 : vector<8x128xf32>
    %80 = arith.addf %77, %79 : vector<8x128xf32>
    %81 = vector.extract_strided_slice %73 {offsets = [0, 256], sizes = [8, 128], strides = [1, 1]} : vector<8x384xf32> to vector<8x128xf32>
    %82 = math.tanh %80 : vector<8x128xf32>
    %83 = arith.mulf %81, %82 : vector<8x128xf32>
    %84 = arith.truncf %83 : vector<8x128xf32> to vector<8x128xbf16>
    %c1_i32_30 = arith.constant 1 : i32
    %85 = arith.subi %c1_i32, %c1_i32_30 : i32
    %c8_i32_31 = arith.constant 8 : i32
    %86 = arith.muli %85, %c8_i32_31 : i32
    %87 = tpu.assume_multiple %86, 8 : i32
    %88 = arith.index_cast %87 : i32 to index
    %c0_32 = arith.constant 0 : index
    %89 = vector.load %arg11[%88, %c0_32] : memref<64x128xbf16, #tpu.memory_space<vmem>>, vector<8x128xbf16>
    tpu.vector_store %arg11[%88, %c0_32], %84 {strides = array<i32>} : memref<64x128xbf16, #tpu.memory_space<vmem>>, vector<8x128xbf16>,
    %c2_i32 = arith.constant 2 : i32
    %90 = arith.truncf %65 : vector<8x128xf32> to vector<8x128xbf16>
    %91 = arith.truncf %83 : vector<8x128xf32> to vector<8x128xbf16>
    %92 = tpu.concatenate %90, %91 in 1 : vector<8x128xbf16>, vector<8x128xbf16> -> vector<8x256xbf16>
    %c0_33 = arith.constant 0 : index
    %c0_34 = arith.constant 0 : index
    %93 = vector.load %arg5[%c0_33, %c0_34] : memref<256x1024xbf16, #tpu.memory_space<vmem>>, vector<256x1024xbf16>
    %cst_35 = arith.constant dense<0.000000e+00> : vector<8x1024xf32>
    %94 = tpu.matmul %92, %93, %cst_35 {dimension_numbers = #tpu.dot_dimension_numbers<[1], [0], [0], [1], [0, 0, 1, 1], [], []>} : vector<8x256xbf16>, vector<256x1024xbf16>, vector<8x1024xf32> -> vector<8x1024xf32>
    %c8_i32_36 = arith.constant 8 : i32
    %95 = arith.muli %c2_i32, %c8_i32_36 : i32
    %96 = tpu.assume_multiple %95, 8 : i32
    %97 = arith.index_cast %96 : i32 to index
    %c0_37 = arith.constant 0 : index
    %98 = vector.load %arg10[%97, %c0_37] : memref<64x512xf32, #tpu.memory_space<vmem>>, vector<8x512xf32>
    %99 = vector.extract_strided_slice %94 {offsets = [0, 0], sizes = [8, 512], strides = [1, 1]} : vector<8x1024xf32> to vector<8x512xf32>
    %100 = arith.addf %98, %99 : vector<8x512xf32>
    %101 = vector.extract_strided_slice %100 {offsets = [0, 0], sizes = [8, 384], strides = [1, 1]} : vector<8x512xf32> to vector<8x384xf32>
    %102 = arith.negf %101 : vector<8x384xf32>
    %103 = math.exp %102 : vector<8x384xf32>
    %cst_38 = arith.constant 1.000000e+00 : f32
    %104 = vector.broadcast %cst_38 : f32 to vector<8x384xf32>
    %105 = arith.addf %104, %103 : vector<8x384xf32>
    %106 = arith.divf %104, %105 : vector<8x384xf32>
    %107 = vector.extract_strided_slice %100 {offsets = [0, 384], sizes = [8, 128], strides = [1, 1]} : vector<8x512xf32> to vector<8x128xf32>
    %108 = math.tanh %107 : vector<8x128xf32>
    %109 = vector.extract_strided_slice %106 {offsets = [0, 128], sizes = [8, 128], strides = [1, 1]} : vector<8x384xf32> to vector<8x128xf32>
    %110 = arith.mulf %109, %62 : vector<8x128xf32>
    %111 = vector.extract_strided_slice %106 {offsets = [0, 0], sizes = [8, 128], strides = [1, 1]} : vector<8x384xf32> to vector<8x128xf32>
    %112 = arith.mulf %111, %108 : vector<8x128xf32>
    %113 = arith.addf %110, %112 : vector<8x128xf32>
    %114 = vector.extract_strided_slice %106 {offsets = [0, 256], sizes = [8, 128], strides = [1, 1]} : vector<8x384xf32> to vector<8x128xf32>
    %115 = math.tanh %113 : vector<8x128xf32>
    %116 = arith.mulf %114, %115 : vector<8x128xf32>
    %117 = vector.extract_strided_slice %94 {offsets = [0, 512], sizes = [8, 512], strides = [1, 1]} : vector<8x1024xf32> to vector<8x512xf32>
    %118 = arith.addf %117, %13 : vector<8x512xf32>
    %119 = vector.extract_strided_slice %118 {offsets = [0, 0], sizes = [8, 384], strides = [1, 1]} : vector<8x512xf32> to vector<8x384xf32>
    %120 = arith.negf %119 : vector<8x384xf32>
    %121 = math.exp %120 : vector<8x384xf32>
    %cst_39 = arith.constant 1.000000e+00 : f32
    %122 = vector.broadcast %cst_39 : f32 to vector<8x384xf32>
    %123 = arith.addf %122, %121 : vector<8x384xf32>
    %124 = arith.divf %122, %123 : vector<8x384xf32>
    %125 = vector.extract_strided_slice %118 {offsets = [0, 384], sizes = [8, 128], strides = [1, 1]} : vector<8x512xf32> to vector<8x128xf32>
    %126 = math.tanh %125 : vector<8x128xf32>
    %127 = vector.extract_strided_slice %124 {offsets = [0, 128], sizes = [8, 128], strides = [1, 1]} : vector<8x384xf32> to vector<8x128xf32>
    %128 = arith.mulf %127, %80 : vector<8x128xf32>
    %129 = vector.extract_strided_slice %124 {offsets = [0, 0], sizes = [8, 128], strides = [1, 1]} : vector<8x384xf32> to vector<8x128xf32>
    %130 = arith.mulf %129, %126 : vector<8x128xf32>
    %131 = arith.addf %128, %130 : vector<8x128xf32>
    %132 = vector.extract_strided_slice %124 {offsets = [0, 256], sizes = [8, 128], strides = [1, 1]} : vector<8x384xf32> to vector<8x128xf32>
    %133 = math.tanh %131 : vector<8x128xf32>
    %134 = arith.mulf %132, %133 : vector<8x128xf32>
    %135 = arith.truncf %134 : vector<8x128xf32> to vector<8x128xbf16>
    %c1_i32_40 = arith.constant 1 : i32
    %136 = arith.subi %c2_i32, %c1_i32_40 : i32
    %c8_i32_41 = arith.constant 8 : i32
    %137 = arith.muli %136, %c8_i32_41 : i32
    %138 = tpu.assume_multiple %137, 8 : i32
    %139 = arith.index_cast %138 : i32 to index
    %c0_42 = arith.constant 0 : index
    %140 = vector.load %arg11[%139, %c0_42] : memref<64x128xbf16, #tpu.memory_space<vmem>>, vector<8x128xbf16>
    tpu.vector_store %arg11[%139, %c0_42], %135 {strides = array<i32>} : memref<64x128xbf16, #tpu.memory_space<vmem>>, vector<8x128xbf16>,
    %c3_i32 = arith.constant 3 : i32
    %141 = arith.truncf %116 : vector<8x128xf32> to vector<8x128xbf16>
    %142 = arith.truncf %134 : vector<8x128xf32> to vector<8x128xbf16>
    %143 = tpu.concatenate %141, %142 in 1 : vector<8x128xbf16>, vector<8x128xbf16> -> vector<8x256xbf16>
    %c0_43 = arith.constant 0 : index
    %c0_44 = arith.constant 0 : index
    %144 = vector.load %arg5[%c0_43, %c0_44] : memref<256x1024xbf16, #tpu.memory_space<vmem>>, vector<256x1024xbf16>
    %cst_45 = arith.constant dense<0.000000e+00> : vector<8x1024xf32>
    %145 = tpu.matmul %143, %144, %cst_45 {dimension_numbers = #tpu.dot_dimension_numbers<[1], [0], [0], [1], [0, 0, 1, 1], [], []>} : vector<8x256xbf16>, vector<256x1024xbf16>, vector<8x1024xf32> -> vector<8x1024xf32>
    %c8_i32_46 = arith.constant 8 : i32
    %146 = arith.muli %c3_i32, %c8_i32_46 : i32
    %147 = tpu.assume_multiple %146, 8 : i32
    %148 = arith.index_cast %147 : i32 to index
    %c0_47 = arith.constant 0 : index
    %149 = vector.load %arg10[%148, %c0_47] : memref<64x512xf32, #tpu.memory_space<vmem>>, vector<8x512xf32>
    %150 = vector.extract_strided_slice %145 {offsets = [0, 0], sizes = [8, 512], strides = [1, 1]} : vector<8x1024xf32> to vector<8x512xf32>
    %151 = arith.addf %149, %150 : vector<8x512xf32>
    %152 = vector.extract_strided_slice %151 {offsets = [0, 0], sizes = [8, 384], strides = [1, 1]} : vector<8x512xf32> to vector<8x384xf32>
    %153 = arith.negf %152 : vector<8x384xf32>
    %154 = math.exp %153 : vector<8x384xf32>
    %cst_48 = arith.constant 1.000000e+00 : f32
    %155 = vector.broadcast %cst_48 : f32 to vector<8x384xf32>
    %156 = arith.addf %155, %154 : vector<8x384xf32>
    %157 = arith.divf %155, %156 : vector<8x384xf32>
    %158 = vector.extract_strided_slice %151 {offsets = [0, 384], sizes = [8, 128], strides = [1, 1]} : vector<8x512xf32> to vector<8x128xf32>
    %159 = math.tanh %158 : vector<8x128xf32>
    %160 = vector.extract_strided_slice %157 {offsets = [0, 128], sizes = [8, 128], strides = [1, 1]} : vector<8x384xf32> to vector<8x128xf32>
    %161 = arith.mulf %160, %113 : vector<8x128xf32>
    %162 = vector.extract_strided_slice %157 {offsets = [0, 0], sizes = [8, 128], strides = [1, 1]} : vector<8x384xf32> to vector<8x128xf32>
    %163 = arith.mulf %162, %159 : vector<8x128xf32>
    %164 = arith.addf %161, %163 : vector<8x128xf32>
    %165 = vector.extract_strided_slice %157 {offsets = [0, 256], sizes = [8, 128], strides = [1, 1]} : vector<8x384xf32> to vector<8x128xf32>
    %166 = math.tanh %164 : vector<8x128xf32>
    %167 = arith.mulf %165, %166 : vector<8x128xf32>
    %168 = vector.extract_strided_slice %145 {offsets = [0, 512], sizes = [8, 512], strides = [1, 1]} : vector<8x1024xf32> to vector<8x512xf32>
    %169 = arith.addf %168, %13 : vector<8x512xf32>
    %170 = vector.extract_strided_slice %169 {offsets = [0, 0], sizes = [8, 384], strides = [1, 1]} : vector<8x512xf32> to vector<8x384xf32>
    %171 = arith.negf %170 : vector<8x384xf32>
    %172 = math.exp %171 : vector<8x384xf32>
    %cst_49 = arith.constant 1.000000e+00 : f32
    %173 = vector.broadcast %cst_49 : f32 to vector<8x384xf32>
    %174 = arith.addf %173, %172 : vector<8x384xf32>
    %175 = arith.divf %173, %174 : vector<8x384xf32>
    %176 = vector.extract_strided_slice %169 {offsets = [0, 384], sizes = [8, 128], strides = [1, 1]} : vector<8x512xf32> to vector<8x128xf32>
    %177 = math.tanh %176 : vector<8x128xf32>
    %178 = vector.extract_strided_slice %175 {offsets = [0, 128], sizes = [8, 128], strides = [1, 1]} : vector<8x384xf32> to vector<8x128xf32>
    %179 = arith.mulf %178, %131 : vector<8x128xf32>
    %180 = vector.extract_strided_slice %175 {offsets = [0, 0], sizes = [8, 128], strides = [1, 1]} : vector<8x384xf32> to vector<8x128xf32>
    %181 = arith.mulf %180, %177 : vector<8x128xf32>
    %182 = arith.addf %179, %181 : vector<8x128xf32>
    %183 = vector.extract_strided_slice %175 {offsets = [0, 256], sizes = [8, 128], strides = [1, 1]} : vector<8x384xf32> to vector<8x128xf32>
    %184 = math.tanh %182 : vector<8x128xf32>
    %185 = arith.mulf %183, %184 : vector<8x128xf32>
    %186 = arith.truncf %185 : vector<8x128xf32> to vector<8x128xbf16>
    %c1_i32_50 = arith.constant 1 : i32
    %187 = arith.subi %c3_i32, %c1_i32_50 : i32
    %c8_i32_51 = arith.constant 8 : i32
    %188 = arith.muli %187, %c8_i32_51 : i32
    %189 = tpu.assume_multiple %188, 8 : i32
    %190 = arith.index_cast %189 : i32 to index
    %c0_52 = arith.constant 0 : index
    %191 = vector.load %arg11[%190, %c0_52] : memref<64x128xbf16, #tpu.memory_space<vmem>>, vector<8x128xbf16>
    tpu.vector_store %arg11[%190, %c0_52], %186 {strides = array<i32>} : memref<64x128xbf16, #tpu.memory_space<vmem>>, vector<8x128xbf16>,
    %c4_i32 = arith.constant 4 : i32
    %192 = arith.truncf %167 : vector<8x128xf32> to vector<8x128xbf16>
    %193 = arith.truncf %185 : vector<8x128xf32> to vector<8x128xbf16>
    %194 = tpu.concatenate %192, %193 in 1 : vector<8x128xbf16>, vector<8x128xbf16> -> vector<8x256xbf16>
    %c0_53 = arith.constant 0 : index
    %c0_54 = arith.constant 0 : index
    %195 = vector.load %arg5[%c0_53, %c0_54] : memref<256x1024xbf16, #tpu.memory_space<vmem>>, vector<256x1024xbf16>
    %cst_55 = arith.constant dense<0.000000e+00> : vector<8x1024xf32>
    %196 = tpu.matmul %194, %195, %cst_55 {dimension_numbers = #tpu.dot_dimension_numbers<[1], [0], [0], [1], [0, 0, 1, 1], [], []>} : vector<8x256xbf16>, vector<256x1024xbf16>, vector<8x1024xf32> -> vector<8x1024xf32>
    %c8_i32_56 = arith.constant 8 : i32
    %197 = arith.muli %c4_i32, %c8_i32_56 : i32
    %198 = tpu.assume_multiple %197, 8 : i32
    %199 = arith.index_cast %198 : i32 to index
    %c0_57 = arith.constant 0 : index
    %200 = vector.load %arg10[%199, %c0_57] : memref<64x512xf32, #tpu.memory_space<vmem>>, vector<8x512xf32>
    %201 = vector.extract_strided_slice %196 {offsets = [0, 0], sizes = [8, 512], strides = [1, 1]} : vector<8x1024xf32> to vector<8x512xf32>
    %202 = arith.addf %200, %201 : vector<8x512xf32>
    %203 = vector.extract_strided_slice %202 {offsets = [0, 0], sizes = [8, 384], strides = [1, 1]} : vector<8x512xf32> to vector<8x384xf32>
    %204 = arith.negf %203 : vector<8x384xf32>
    %205 = math.exp %204 : vector<8x384xf32>
    %cst_58 = arith.constant 1.000000e+00 : f32
    %206 = vector.broadcast %cst_58 : f32 to vector<8x384xf32>
    %207 = arith.addf %206, %205 : vector<8x384xf32>
    %208 = arith.divf %206, %207 : vector<8x384xf32>
    %209 = vector.extract_strided_slice %202 {offsets = [0, 384], sizes = [8, 128], strides = [1, 1]} : vector<8x512xf32> to vector<8x128xf32>
    %210 = math.tanh %209 : vector<8x128xf32>
    %211 = vector.extract_strided_slice %208 {offsets = [0, 128], sizes = [8, 128], strides = [1, 1]} : vector<8x384xf32> to vector<8x128xf32>
    %212 = arith.mulf %211, %164 : vector<8x128xf32>
    %213 = vector.extract_strided_slice %208 {offsets = [0, 0], sizes = [8, 128], strides = [1, 1]} : vector<8x384xf32> to vector<8x128xf32>
    %214 = arith.mulf %213, %210 : vector<8x128xf32>
    %215 = arith.addf %212, %214 : vector<8x128xf32>
    %216 = vector.extract_strided_slice %208 {offsets = [0, 256], sizes = [8, 128], strides = [1, 1]} : vector<8x384xf32> to vector<8x128xf32>
    %217 = math.tanh %215 : vector<8x128xf32>
    %218 = arith.mulf %216, %217 : vector<8x128xf32>
    %219 = vector.extract_strided_slice %196 {offsets = [0, 512], sizes = [8, 512], strides = [1, 1]} : vector<8x1024xf32> to vector<8x512xf32>
    %220 = arith.addf %219, %13 : vector<8x512xf32>
    %221 = vector.extract_strided_slice %220 {offsets = [0, 0], sizes = [8, 384], strides = [1, 1]} : vector<8x512xf32> to vector<8x384xf32>
    %222 = arith.negf %221 : vector<8x384xf32>
    %223 = math.exp %222 : vector<8x384xf32>
    %cst_59 = arith.constant 1.000000e+00 : f32
    %224 = vector.broadcast %cst_59 : f32 to vector<8x384xf32>
    %225 = arith.addf %224, %223 : vector<8x384xf32>
    %226 = arith.divf %224, %225 : vector<8x384xf32>
    %227 = vector.extract_strided_slice %220 {offsets = [0, 384], sizes = [8, 128], strides = [1, 1]} : vector<8x512xf32> to vector<8x128xf32>
    %228 = math.tanh %227 : vector<8x128xf32>
    %229 = vector.extract_strided_slice %226 {offsets = [0, 128], sizes = [8, 128], strides = [1, 1]} : vector<8x384xf32> to vector<8x128xf32>
    %230 = arith.mulf %229, %182 : vector<8x128xf32>
    %231 = vector.extract_strided_slice %226 {offsets = [0, 0], sizes = [8, 128], strides = [1, 1]} : vector<8x384xf32> to vector<8x128xf32>
    %232 = arith.mulf %231, %228 : vector<8x128xf32>
    %233 = arith.addf %230, %232 : vector<8x128xf32>
    %234 = vector.extract_strided_slice %226 {offsets = [0, 256], sizes = [8, 128], strides = [1, 1]} : vector<8x384xf32> to vector<8x128xf32>
    %235 = math.tanh %233 : vector<8x128xf32>
    %236 = arith.mulf %234, %235 : vector<8x128xf32>
    %237 = arith.truncf %236 : vector<8x128xf32> to vector<8x128xbf16>
    %c1_i32_60 = arith.constant 1 : i32
    %238 = arith.subi %c4_i32, %c1_i32_60 : i32
    %c8_i32_61 = arith.constant 8 : i32
    %239 = arith.muli %238, %c8_i32_61 : i32
    %240 = tpu.assume_multiple %239, 8 : i32
    %241 = arith.index_cast %240 : i32 to index
    %c0_62 = arith.constant 0 : index
    %242 = vector.load %arg11[%241, %c0_62] : memref<64x128xbf16, #tpu.memory_space<vmem>>, vector<8x128xbf16>
    tpu.vector_store %arg11[%241, %c0_62], %237 {strides = array<i32>} : memref<64x128xbf16, #tpu.memory_space<vmem>>, vector<8x128xbf16>,
    %c5_i32 = arith.constant 5 : i32
    %243 = arith.truncf %218 : vector<8x128xf32> to vector<8x128xbf16>
    %244 = arith.truncf %236 : vector<8x128xf32> to vector<8x128xbf16>
    %245 = tpu.concatenate %243, %244 in 1 : vector<8x128xbf16>, vector<8x128xbf16> -> vector<8x256xbf16>
    %c0_63 = arith.constant 0 : index
    %c0_64 = arith.constant 0 : index
    %246 = vector.load %arg5[%c0_63, %c0_64] : memref<256x1024xbf16, #tpu.memory_space<vmem>>, vector<256x1024xbf16>
    %cst_65 = arith.constant dense<0.000000e+00> : vector<8x1024xf32>
    %247 = tpu.matmul %245, %246, %cst_65 {dimension_numbers = #tpu.dot_dimension_numbers<[1], [0], [0], [1], [0, 0, 1, 1], [], []>} : vector<8x256xbf16>, vector<256x1024xbf16>, vector<8x1024xf32> -> vector<8x1024xf32>
    %c8_i32_66 = arith.constant 8 : i32
    %248 = arith.muli %c5_i32, %c8_i32_66 : i32
    %249 = tpu.assume_multiple %248, 8 : i32
    %250 = arith.index_cast %249 : i32 to index
    %c0_67 = arith.constant 0 : index
    %251 = vector.load %arg10[%250, %c0_67] : memref<64x512xf32, #tpu.memory_space<vmem>>, vector<8x512xf32>
    %252 = vector.extract_strided_slice %247 {offsets = [0, 0], sizes = [8, 512], strides = [1, 1]} : vector<8x1024xf32> to vector<8x512xf32>
    %253 = arith.addf %251, %252 : vector<8x512xf32>
    %254 = vector.extract_strided_slice %253 {offsets = [0, 0], sizes = [8, 384], strides = [1, 1]} : vector<8x512xf32> to vector<8x384xf32>
    %255 = arith.negf %254 : vector<8x384xf32>
    %256 = math.exp %255 : vector<8x384xf32>
    %cst_68 = arith.constant 1.000000e+00 : f32
    %257 = vector.broadcast %cst_68 : f32 to vector<8x384xf32>
    %258 = arith.addf %257, %256 : vector<8x384xf32>
    %259 = arith.divf %257, %258 : vector<8x384xf32>
    %260 = vector.extract_strided_slice %253 {offsets = [0, 384], sizes = [8, 128], strides = [1, 1]} : vector<8x512xf32> to vector<8x128xf32>
    %261 = math.tanh %260 : vector<8x128xf32>
    %262 = vector.extract_strided_slice %259 {offsets = [0, 128], sizes = [8, 128], strides = [1, 1]} : vector<8x384xf32> to vector<8x128xf32>
    %263 = arith.mulf %262, %215 : vector<8x128xf32>
    %264 = vector.extract_strided_slice %259 {offsets = [0, 0], sizes = [8, 128], strides = [1, 1]} : vector<8x384xf32> to vector<8x128xf32>
    %265 = arith.mulf %264, %261 : vector<8x128xf32>
    %266 = arith.addf %263, %265 : vector<8x128xf32>
    %267 = vector.extract_strided_slice %259 {offsets = [0, 256], sizes = [8, 128], strides = [1, 1]} : vector<8x384xf32> to vector<8x128xf32>
    %268 = math.tanh %266 : vector<8x128xf32>
    %269 = arith.mulf %267, %268 : vector<8x128xf32>
    %270 = vector.extract_strided_slice %247 {offsets = [0, 512], sizes = [8, 512], strides = [1, 1]} : vector<8x1024xf32> to vector<8x512xf32>
    %271 = arith.addf %270, %13 : vector<8x512xf32>
    %272 = vector.extract_strided_slice %271 {offsets = [0, 0], sizes = [8, 384], strides = [1, 1]} : vector<8x512xf32> to vector<8x384xf32>
    %273 = arith.negf %272 : vector<8x384xf32>
    %274 = math.exp %273 : vector<8x384xf32>
    %cst_69 = arith.constant 1.000000e+00 : f32
    %275 = vector.broadcast %cst_69 : f32 to vector<8x384xf32>
    %276 = arith.addf %275, %274 : vector<8x384xf32>
    %277 = arith.divf %275, %276 : vector<8x384xf32>
    %278 = vector.extract_strided_slice %271 {offsets = [0, 384], sizes = [8, 128], strides = [1, 1]} : vector<8x512xf32> to vector<8x128xf32>
    %279 = math.tanh %278 : vector<8x128xf32>
    %280 = vector.extract_strided_slice %277 {offsets = [0, 128], sizes = [8, 128], strides = [1, 1]} : vector<8x384xf32> to vector<8x128xf32>
    %281 = arith.mulf %280, %233 : vector<8x128xf32>
    %282 = vector.extract_strided_slice %277 {offsets = [0, 0], sizes = [8, 128], strides = [1, 1]} : vector<8x384xf32> to vector<8x128xf32>
    %283 = arith.mulf %282, %279 : vector<8x128xf32>
    %284 = arith.addf %281, %283 : vector<8x128xf32>
    %285 = vector.extract_strided_slice %277 {offsets = [0, 256], sizes = [8, 128], strides = [1, 1]} : vector<8x384xf32> to vector<8x128xf32>
    %286 = math.tanh %284 : vector<8x128xf32>
    %287 = arith.mulf %285, %286 : vector<8x128xf32>
    %288 = arith.truncf %287 : vector<8x128xf32> to vector<8x128xbf16>
    %c1_i32_70 = arith.constant 1 : i32
    %289 = arith.subi %c5_i32, %c1_i32_70 : i32
    %c8_i32_71 = arith.constant 8 : i32
    %290 = arith.muli %289, %c8_i32_71 : i32
    %291 = tpu.assume_multiple %290, 8 : i32
    %292 = arith.index_cast %291 : i32 to index
    %c0_72 = arith.constant 0 : index
    %293 = vector.load %arg11[%292, %c0_72] : memref<64x128xbf16, #tpu.memory_space<vmem>>, vector<8x128xbf16>
    tpu.vector_store %arg11[%292, %c0_72], %288 {strides = array<i32>} : memref<64x128xbf16, #tpu.memory_space<vmem>>, vector<8x128xbf16>,
    %c6_i32 = arith.constant 6 : i32
    %294 = arith.truncf %269 : vector<8x128xf32> to vector<8x128xbf16>
    %295 = arith.truncf %287 : vector<8x128xf32> to vector<8x128xbf16>
    %296 = tpu.concatenate %294, %295 in 1 : vector<8x128xbf16>, vector<8x128xbf16> -> vector<8x256xbf16>
    %c0_73 = arith.constant 0 : index
    %c0_74 = arith.constant 0 : index
    %297 = vector.load %arg5[%c0_73, %c0_74] : memref<256x1024xbf16, #tpu.memory_space<vmem>>, vector<256x1024xbf16>
    %cst_75 = arith.constant dense<0.000000e+00> : vector<8x1024xf32>
    %298 = tpu.matmul %296, %297, %cst_75 {dimension_numbers = #tpu.dot_dimension_numbers<[1], [0], [0], [1], [0, 0, 1, 1], [], []>} : vector<8x256xbf16>, vector<256x1024xbf16>, vector<8x1024xf32> -> vector<8x1024xf32>
    %c8_i32_76 = arith.constant 8 : i32
    %299 = arith.muli %c6_i32, %c8_i32_76 : i32
    %300 = tpu.assume_multiple %299, 8 : i32
    %301 = arith.index_cast %300 : i32 to index
    %c0_77 = arith.constant 0 : index
    %302 = vector.load %arg10[%301, %c0_77] : memref<64x512xf32, #tpu.memory_space<vmem>>, vector<8x512xf32>
    %303 = vector.extract_strided_slice %298 {offsets = [0, 0], sizes = [8, 512], strides = [1, 1]} : vector<8x1024xf32> to vector<8x512xf32>
    %304 = arith.addf %302, %303 : vector<8x512xf32>
    %305 = vector.extract_strided_slice %304 {offsets = [0, 0], sizes = [8, 384], strides = [1, 1]} : vector<8x512xf32> to vector<8x384xf32>
    %306 = arith.negf %305 : vector<8x384xf32>
    %307 = math.exp %306 : vector<8x384xf32>
    %cst_78 = arith.constant 1.000000e+00 : f32
    %308 = vector.broadcast %cst_78 : f32 to vector<8x384xf32>
    %309 = arith.addf %308, %307 : vector<8x384xf32>
    %310 = arith.divf %308, %309 : vector<8x384xf32>
    %311 = vector.extract_strided_slice %304 {offsets = [0, 384], sizes = [8, 128], strides = [1, 1]} : vector<8x512xf32> to vector<8x128xf32>
    %312 = math.tanh %311 : vector<8x128xf32>
    %313 = vector.extract_strided_slice %310 {offsets = [0, 128], sizes = [8, 128], strides = [1, 1]} : vector<8x384xf32> to vector<8x128xf32>
    %314 = arith.mulf %313, %266 : vector<8x128xf32>
    %315 = vector.extract_strided_slice %310 {offsets = [0, 0], sizes = [8, 128], strides = [1, 1]} : vector<8x384xf32> to vector<8x128xf32>
    %316 = arith.mulf %315, %312 : vector<8x128xf32>
    %317 = arith.addf %314, %316 : vector<8x128xf32>
    %318 = vector.extract_strided_slice %310 {offsets = [0, 256], sizes = [8, 128], strides = [1, 1]} : vector<8x384xf32> to vector<8x128xf32>
    %319 = math.tanh %317 : vector<8x128xf32>
    %320 = arith.mulf %318, %319 : vector<8x128xf32>
    %321 = vector.extract_strided_slice %298 {offsets = [0, 512], sizes = [8, 512], strides = [1, 1]} : vector<8x1024xf32> to vector<8x512xf32>
    %322 = arith.addf %321, %13 : vector<8x512xf32>
    %323 = vector.extract_strided_slice %322 {offsets = [0, 0], sizes = [8, 384], strides = [1, 1]} : vector<8x512xf32> to vector<8x384xf32>
    %324 = arith.negf %323 : vector<8x384xf32>
    %325 = math.exp %324 : vector<8x384xf32>
    %cst_79 = arith.constant 1.000000e+00 : f32
    %326 = vector.broadcast %cst_79 : f32 to vector<8x384xf32>
    %327 = arith.addf %326, %325 : vector<8x384xf32>
    %328 = arith.divf %326, %327 : vector<8x384xf32>
    %329 = vector.extract_strided_slice %322 {offsets = [0, 384], sizes = [8, 128], strides = [1, 1]} : vector<8x512xf32> to vector<8x128xf32>
    %330 = math.tanh %329 : vector<8x128xf32>
    %331 = vector.extract_strided_slice %328 {offsets = [0, 128], sizes = [8, 128], strides = [1, 1]} : vector<8x384xf32> to vector<8x128xf32>
    %332 = arith.mulf %331, %284 : vector<8x128xf32>
    %333 = vector.extract_strided_slice %328 {offsets = [0, 0], sizes = [8, 128], strides = [1, 1]} : vector<8x384xf32> to vector<8x128xf32>
    %334 = arith.mulf %333, %330 : vector<8x128xf32>
    %335 = arith.addf %332, %334 : vector<8x128xf32>
    %336 = vector.extract_strided_slice %328 {offsets = [0, 256], sizes = [8, 128], strides = [1, 1]} : vector<8x384xf32> to vector<8x128xf32>
    %337 = math.tanh %335 : vector<8x128xf32>
    %338 = arith.mulf %336, %337 : vector<8x128xf32>
    %339 = arith.truncf %338 : vector<8x128xf32> to vector<8x128xbf16>
    %c1_i32_80 = arith.constant 1 : i32
    %340 = arith.subi %c6_i32, %c1_i32_80 : i32
    %c8_i32_81 = arith.constant 8 : i32
    %341 = arith.muli %340, %c8_i32_81 : i32
    %342 = tpu.assume_multiple %341, 8 : i32
    %343 = arith.index_cast %342 : i32 to index
    %c0_82 = arith.constant 0 : index
    %344 = vector.load %arg11[%343, %c0_82] : memref<64x128xbf16, #tpu.memory_space<vmem>>, vector<8x128xbf16>
    tpu.vector_store %arg11[%343, %c0_82], %339 {strides = array<i32>} : memref<64x128xbf16, #tpu.memory_space<vmem>>, vector<8x128xbf16>,
    %c7_i32 = arith.constant 7 : i32
    %345 = arith.truncf %320 : vector<8x128xf32> to vector<8x128xbf16>
    %346 = arith.truncf %338 : vector<8x128xf32> to vector<8x128xbf16>
    %347 = tpu.concatenate %345, %346 in 1 : vector<8x128xbf16>, vector<8x128xbf16> -> vector<8x256xbf16>
    %c0_83 = arith.constant 0 : index
    %c0_84 = arith.constant 0 : index
    %348 = vector.load %arg5[%c0_83, %c0_84] : memref<256x1024xbf16, #tpu.memory_space<vmem>>, vector<256x1024xbf16>
    %cst_85 = arith.constant dense<0.000000e+00> : vector<8x1024xf32>
    %349 = tpu.matmul %347, %348, %cst_85 {dimension_numbers = #tpu.dot_dimension_numbers<[1], [0], [0], [1], [0, 0, 1, 1], [], []>} : vector<8x256xbf16>, vector<256x1024xbf16>, vector<8x1024xf32> -> vector<8x1024xf32>
    %c8_i32_86 = arith.constant 8 : i32
    %350 = arith.muli %c7_i32, %c8_i32_86 : i32
    %351 = tpu.assume_multiple %350, 8 : i32
    %352 = arith.index_cast %351 : i32 to index
    %c0_87 = arith.constant 0 : index
    %353 = vector.load %arg10[%352, %c0_87] : memref<64x512xf32, #tpu.memory_space<vmem>>, vector<8x512xf32>
    %354 = vector.extract_strided_slice %349 {offsets = [0, 0], sizes = [8, 512], strides = [1, 1]} : vector<8x1024xf32> to vector<8x512xf32>
    %355 = arith.addf %353, %354 : vector<8x512xf32>
    %356 = vector.extract_strided_slice %355 {offsets = [0, 0], sizes = [8, 384], strides = [1, 1]} : vector<8x512xf32> to vector<8x384xf32>
    %357 = arith.negf %356 : vector<8x384xf32>
    %358 = math.exp %357 : vector<8x384xf32>
    %cst_88 = arith.constant 1.000000e+00 : f32
    %359 = vector.broadcast %cst_88 : f32 to vector<8x384xf32>
    %360 = arith.addf %359, %358 : vector<8x384xf32>
    %361 = arith.divf %359, %360 : vector<8x384xf32>
    %362 = vector.extract_strided_slice %355 {offsets = [0, 384], sizes = [8, 128], strides = [1, 1]} : vector<8x512xf32> to vector<8x128xf32>
    %363 = math.tanh %362 : vector<8x128xf32>
    %364 = vector.extract_strided_slice %361 {offsets = [0, 128], sizes = [8, 128], strides = [1, 1]} : vector<8x384xf32> to vector<8x128xf32>
    %365 = arith.mulf %364, %317 : vector<8x128xf32>
    %366 = vector.extract_strided_slice %361 {offsets = [0, 0], sizes = [8, 128], strides = [1, 1]} : vector<8x384xf32> to vector<8x128xf32>
    %367 = arith.mulf %366, %363 : vector<8x128xf32>
    %368 = arith.addf %365, %367 : vector<8x128xf32>
    %369 = vector.extract_strided_slice %361 {offsets = [0, 256], sizes = [8, 128], strides = [1, 1]} : vector<8x384xf32> to vector<8x128xf32>
    %370 = math.tanh %368 : vector<8x128xf32>
    %371 = arith.mulf %369, %370 : vector<8x128xf32>
    %372 = vector.extract_strided_slice %349 {offsets = [0, 512], sizes = [8, 512], strides = [1, 1]} : vector<8x1024xf32> to vector<8x512xf32>
    %373 = arith.addf %372, %13 : vector<8x512xf32>
    %374 = vector.extract_strided_slice %373 {offsets = [0, 0], sizes = [8, 384], strides = [1, 1]} : vector<8x512xf32> to vector<8x384xf32>
    %375 = arith.negf %374 : vector<8x384xf32>
    %376 = math.exp %375 : vector<8x384xf32>
    %cst_89 = arith.constant 1.000000e+00 : f32
    %377 = vector.broadcast %cst_89 : f32 to vector<8x384xf32>
    %378 = arith.addf %377, %376 : vector<8x384xf32>
    %379 = arith.divf %377, %378 : vector<8x384xf32>
    %380 = vector.extract_strided_slice %373 {offsets = [0, 384], sizes = [8, 128], strides = [1, 1]} : vector<8x512xf32> to vector<8x128xf32>
    %381 = math.tanh %380 : vector<8x128xf32>
    %382 = vector.extract_strided_slice %379 {offsets = [0, 128], sizes = [8, 128], strides = [1, 1]} : vector<8x384xf32> to vector<8x128xf32>
    %383 = arith.mulf %382, %335 : vector<8x128xf32>
    %384 = vector.extract_strided_slice %379 {offsets = [0, 0], sizes = [8, 128], strides = [1, 1]} : vector<8x384xf32> to vector<8x128xf32>
    %385 = arith.mulf %384, %381 : vector<8x128xf32>
    %386 = arith.addf %383, %385 : vector<8x128xf32>
    %387 = vector.extract_strided_slice %379 {offsets = [0, 256], sizes = [8, 128], strides = [1, 1]} : vector<8x384xf32> to vector<8x128xf32>
    %388 = math.tanh %386 : vector<8x128xf32>
    %389 = arith.mulf %387, %388 : vector<8x128xf32>
    %390 = arith.truncf %389 : vector<8x128xf32> to vector<8x128xbf16>
    %c1_i32_90 = arith.constant 1 : i32
    %391 = arith.subi %c7_i32, %c1_i32_90 : i32
    %c8_i32_91 = arith.constant 8 : i32
    %392 = arith.muli %391, %c8_i32_91 : i32
    %393 = tpu.assume_multiple %392, 8 : i32
    %394 = arith.index_cast %393 : i32 to index
    %c0_92 = arith.constant 0 : index
    %395 = vector.load %arg11[%394, %c0_92] : memref<64x128xbf16, #tpu.memory_space<vmem>>, vector<8x128xbf16>
    tpu.vector_store %arg11[%394, %c0_92], %390 {strides = array<i32>} : memref<64x128xbf16, #tpu.memory_space<vmem>>, vector<8x128xbf16>,
    %c7_i32_93 = arith.constant 7 : i32
    %396 = arith.truncf %371 : vector<8x128xf32> to vector<8x128xbf16>
    %397 = arith.truncf %389 : vector<8x128xf32> to vector<8x128xbf16>
    %398 = tpu.concatenate %396, %397 in 1 : vector<8x128xbf16>, vector<8x128xbf16> -> vector<8x256xbf16>
    %c0_94 = arith.constant 0 : index
    %c512 = arith.constant 512 : index
    %399 = vector.load %arg5[%c0_94, %c512] : memref<256x1024xbf16, #tpu.memory_space<vmem>>, vector<256x512xbf16>
    %cst_95 = arith.constant dense<0.000000e+00> : vector<8x512xf32>
    %400 = tpu.matmul %398, %399, %cst_95 {dimension_numbers = #tpu.dot_dimension_numbers<[1], [0], [0], [1], [0, 0, 1, 1], [], []>} : vector<8x256xbf16>, vector<256x512xbf16>, vector<8x512xf32> -> vector<8x512xf32>
    %401 = arith.addf %400, %13 : vector<8x512xf32>
    %402 = vector.extract_strided_slice %401 {offsets = [0, 0], sizes = [8, 384], strides = [1, 1]} : vector<8x512xf32> to vector<8x384xf32>
    %403 = arith.negf %402 : vector<8x384xf32>
    %404 = math.exp %403 : vector<8x384xf32>
    %cst_96 = arith.constant 1.000000e+00 : f32
    %405 = vector.broadcast %cst_96 : f32 to vector<8x384xf32>
    %406 = arith.addf %405, %404 : vector<8x384xf32>
    %407 = arith.divf %405, %406 : vector<8x384xf32>
    %408 = vector.extract_strided_slice %401 {offsets = [0, 384], sizes = [8, 128], strides = [1, 1]} : vector<8x512xf32> to vector<8x128xf32>
    %409 = math.tanh %408 : vector<8x128xf32>
    %410 = vector.extract_strided_slice %407 {offsets = [0, 128], sizes = [8, 128], strides = [1, 1]} : vector<8x384xf32> to vector<8x128xf32>
    %411 = arith.mulf %410, %386 : vector<8x128xf32>
    %412 = vector.extract_strided_slice %407 {offsets = [0, 0], sizes = [8, 128], strides = [1, 1]} : vector<8x384xf32> to vector<8x128xf32>
    %413 = arith.mulf %412, %409 : vector<8x128xf32>
    %414 = arith.addf %411, %413 : vector<8x128xf32>
    %415 = vector.extract_strided_slice %407 {offsets = [0, 256], sizes = [8, 128], strides = [1, 1]} : vector<8x384xf32> to vector<8x128xf32>
    %416 = math.tanh %414 : vector<8x128xf32>
    %417 = arith.mulf %415, %416 : vector<8x128xf32>
    %418 = arith.truncf %417 : vector<8x128xf32> to vector<8x128xbf16>
    %c56_i32 = arith.constant 56 : i32
    %419 = tpu.assume_multiple %c56_i32, 8 : i32
    %420 = arith.index_cast %419 : i32 to index
    %c0_97 = arith.constant 0 : index
    %421 = vector.load %arg11[%420, %c0_97] : memref<64x128xbf16, #tpu.memory_space<vmem>>, vector<8x128xbf16>
    tpu.vector_store %arg11[%420, %c0_97], %418 {strides = array<i32>} : memref<64x128xbf16, #tpu.memory_space<vmem>>, vector<8x128xbf16>,
    %c0_98 = arith.constant 0 : index
    %c0_99 = arith.constant 0 : index
    %422 = vector.load %arg12[%c0_98, %c0_99] : memref<8x128xf32, #tpu.memory_space<vmem>>, vector<8x128xf32>
    tpu.vector_store %arg12[%c0_98, %c0_99], %371 {strides = array<i32>} : memref<8x128xf32, #tpu.memory_space<vmem>>, vector<8x128xf32>,
    %c0_100 = arith.constant 0 : index
    %c0_101 = arith.constant 0 : index
    %423 = vector.load %arg13[%c0_100, %c0_101] : memref<8x128xf32, #tpu.memory_space<vmem>>, vector<8x128xf32>
    tpu.vector_store %arg13[%c0_100, %c0_101], %368 {strides = array<i32>} : memref<8x128xf32, #tpu.memory_space<vmem>>, vector<8x128xf32>,
    %c0_102 = arith.constant 0 : index
    %c0_103 = arith.constant 0 : index
    %424 = vector.load %arg14[%c0_102, %c0_103] : memref<8x128xf32, #tpu.memory_space<vmem>>, vector<8x128xf32>
    tpu.vector_store %arg14[%c0_102, %c0_103], %417 {strides = array<i32>} : memref<8x128xf32, #tpu.memory_space<vmem>>, vector<8x128xf32>,
    %c0_104 = arith.constant 0 : index
    %c0_105 = arith.constant 0 : index
    %425 = vector.load %arg15[%c0_104, %c0_105] : memref<8x128xf32, #tpu.memory_space<vmem>>, vector<8x128xf32>
    tpu.vector_store %arg15[%c0_104, %c0_105], %414 {strides = array<i32>} : memref<8x128xf32, #tpu.memory_space<vmem>>, vector<8x128xf32>,
    %c0_106 = arith.constant 0 : index
    %c0_107 = arith.constant 0 : index
    %426 = vector.load %arg11[%c0_106, %c0_107] : memref<64x128xbf16, #tpu.memory_space<vmem>>, vector<64x128xbf16>
    %c0_108 = arith.constant 0 : index
    %c0_109 = arith.constant 0 : index
    %427 = vector.load %arg7[%c0_108, %c0_109] : memref<128x128xbf16, #tpu.memory_space<vmem>>, vector<128x128xbf16>
    %cst_110 = arith.constant dense<0.000000e+00> : vector<64x128xf32>
    %428 = tpu.matmul %426, %427, %cst_110 {dimension_numbers = #tpu.dot_dimension_numbers<[1], [0], [0], [1], [0, 0, 1, 1], [], []>} : vector<64x128xbf16>, vector<128x128xbf16>, vector<64x128xf32> -> vector<64x128xf32>
    %c0_111 = arith.constant 0 : index
    %c0_112 = arith.constant 0 : index
    %429 = vector.load %arg8[%c0_111, %c0_112] : memref<1x128xf32, #tpu.memory_space<vmem>>, vector<1x128xf32>
    %430 = vector.broadcast %429 : vector<1x128xf32> to vector<64x128xf32>
    %431 = arith.addf %428, %430 : vector<64x128xf32>
    %c0_113 = arith.constant 0 : index
    %c0_114 = arith.constant 0 : index
    %432 = vector.load %arg2[%c0_113, %c0_114] : memref<64x128xf32, #tpu.memory_space<vmem>>, vector<64x128xf32>
    %433 = arith.addf %431, %432 : vector<64x128xf32>
    %c0_115 = arith.constant 0 : index
    %c0_116 = arith.constant 0 : index
    %434 = vector.load %arg9[%c0_115, %c0_116] : memref<64x128xf32, #tpu.memory_space<vmem>>, vector<64x128xf32>
    tpu.vector_store %arg9[%c0_115, %c0_116], %433 {strides = array<i32>} : memref<64x128xf32, #tpu.memory_space<vmem>>, vector<64x128xf32>,
    return
  }
  func.func @transform_0(%arg0: i32, %arg1: i32) -> (i32, i32) {
    %c1_i32 = arith.constant 1 : i32
    %0 = arith.muli %arg0, %c1_i32 : i32
    %1 = arith.addi %0, %arg1 : i32
    %c0_i32 = arith.constant 0 : i32
    %c0_i32_0 = arith.constant 0 : i32
    return %1, %c0_i32 : i32, i32
  }
  func.func @transform_1(%arg0: i32, %arg1: i32) -> (i32, i32) {
    %c0_i32 = arith.constant 0 : i32
    %c0_i32_0 = arith.constant 0 : i32
    %c0_i32_1 = arith.constant 0 : i32
    return %c0_i32, %c0_i32_0 : i32, i32
  }
  func.func @transform_2(%arg0: i32, %arg1: i32) -> (i32, i32) {
    %c0_i32 = arith.constant 0 : i32
    %c0_i32_0 = arith.constant 0 : i32
    %c0_i32_1 = arith.constant 0 : i32
    return %c0_i32, %c0_i32_0 : i32, i32
  }
  func.func @transform_3(%arg0: i32, %arg1: i32) -> (i32, i32) {
    %c0_i32 = arith.constant 0 : i32
    %c0_i32_0 = arith.constant 0 : i32
    %c0_i32_1 = arith.constant 0 : i32
    return %c0_i32, %c0_i32_0 : i32, i32
  }
  func.func @transform_4(%arg0: i32, %arg1: i32) -> (i32, i32) {
    %c0_i32 = arith.constant 0 : i32
    %c0_i32_0 = arith.constant 0 : i32
    %c0_i32_1 = arith.constant 0 : i32
    return %c0_i32, %c0_i32_0 : i32, i32
  }
  func.func @transform_5(%arg0: i32, %arg1: i32) -> (i32, i32) {
    %c0_i32 = arith.constant 0 : i32
    %c0_i32_0 = arith.constant 0 : i32
    %c0_i32_1 = arith.constant 0 : i32
    return %c0_i32, %c0_i32_0 : i32, i32
  }
  func.func @transform_6(%arg0: i32, %arg1: i32) -> (i32, i32) {
    %c0_i32 = arith.constant 0 : i32
    %c0_i32_0 = arith.constant 0 : i32
    %c0_i32_1 = arith.constant 0 : i32
    return %c0_i32, %c0_i32_0 : i32, i32
  }
  func.func @transform_7(%arg0: i32, %arg1: i32) -> (i32, i32) {
    %c1_i32 = arith.constant 1 : i32
    %0 = arith.muli %arg0, %c1_i32 : i32
    %1 = arith.addi %0, %arg1 : i32
    %c0_i32 = arith.constant 0 : i32
    %c0_i32_0 = arith.constant 0 : i32
    return %1, %c0_i32 : i32, i32
  }
}

</mosaic_0001>

<bundles_post_ra>
// kernel: tpu_custom_call.1
= control target key start
LH: loop header
LB: loop body
LE: loop exit
PB: predicated region body
PF: predicated region fallthrough
CT: control target
= control target key end

     0   :  { %12 = vsyncpa [#allocation9], 0  ;;  %s12363_s0 = inlined_call_operand.hbm [shape: f32[64,128], index: 0, kind: input, shape index: {}]   ;;  %s12364_s1 = inlined_call_operand.hbm [shape: bf16[128,512], index: 1, kind: input, shape index: {}]   ;;  %s12365_s2 = inlined_call_operand.hbm [shape: f32[1,512], index: 2, kind: input, shape index: {}]   ;;  %s12366_s3 = inlined_call_operand.hbm [shape: bf16[256,1024], index: 3, kind: input, shape index: {}]   ;;  %s12367_s4 = inlined_call_operand.vmem [shape: f32[1,512], index: 4, kind: input, shape index: {}]   ;;  %s12368_s5 = inlined_call_operand.hbm [shape: bf16[128,128], index: 5, kind: input, shape index: {}]   ;;  %s12369_s6 = inlined_call_operand.vmem [shape: f32[1,128], index: 6, kind: input, shape index: {}]   ;;  %s12370_s7 = inlined_call_operand.hbm [shape: f32[64,128], index: 7, kind: output, shape index: {}]  }
   0x1   :  { %13 = vsyncpa [#allocation12], 0 }
   0x2   :  { %14 = vsyncpa [#allocation15], 0 }
   0x3   :  { %15 = vsyncpa [#allocation10], 0  ;;  %s10141_s24 = smov [#allocation11]  }
   0x4   :  { %s37_s25 = sshll.u32 %s10141_s24, 4  ;;  %s38_s25 = int_to_ptr.vmem [resolvable:$true] %s37_s25 }
   0x5   :  { %s10021_s26 = scalar_lea.vmem %s38_s25, 4096  ;;  %p10026_p1 = scmp.lt.s32.totalorder %s38_s25, %s38_s25 }
   0x6   :  { %p10022_p0 = scmp.ne.s32.totalorder %s38_s25, %s10021_s26  ;;  %p10027_p2 = scmp.lt.s32.totalorder %s10021_s26, %s10021_s26 }
   0x8   :  { %p10028_p3 = por %p10027_p2, %p10026_p1 }
   0xa   :  { %p10029_p4 = pnand %p10028_p3, %p10022_p0 }
   0xc   :  { %10032 = shalt.err (!%p10029_p4)
}
   0xd   :  { %s10142_s27 = smov 256   ;;  %s10143_s28 = smov 16  }
   0xe   :  { %43 = dma.hbm_to_vmem [thread:$0]  %s12364_s1, 4096, %s38_s25, [#allocation12], %s10142_s27, %s10142_s27, %s10143_s28  }
   0xf   :  { %s10144_s8 = smov [#allocation14]  }
  0x10   :  { %s59_s9 = sshll.u32 %s10144_s8, 4  ;;  %s60_s9 = int_to_ptr.vmem [resolvable:$true] %s59_s9 }
  0x11   :  { %s10041_s10 = scalar_lea.vmem %s60_s9, 16384  ;;  %p10046_p6 = scmp.lt.s32.totalorder %s60_s9, %s60_s9 }
  0x12   :  { %p10042_p5 = scmp.ne.s32.totalorder %s60_s9, %s10041_s10  ;;  %p10047_p7 = scmp.lt.s32.totalorder %s10041_s10, %s10041_s10 }
  0x14   :  { %p10048_p8 = por %p10047_p7, %p10046_p6 }
  0x16   :  { %p10049_p9 = pnand %p10048_p8, %p10042_p5 }
  0x18   :  { %10052 = shalt.err (!%p10049_p9)
}
  0x19   :  { %s10145_s11 = smov 512   ;;  %s10146_s12 = smov 32  }
  0x1a   :  { %65 = dma.hbm_to_vmem [thread:$0]  %s12366_s3, 16384, %s60_s9, [#allocation15], %s10145_s11, %s10145_s11, %s10146_s12  }
  0x1b   :  { %s10147_s15 = smov [#allocation8]  }
  0x1c   :  { %s25_s16 = sshll.u32 %s10147_s15, 4  ;;  %s26_s16 = int_to_ptr.vmem [resolvable:$true] %s25_s16 }
  0x1d   :  { %s10061_s1 = scalar_lea.vmem %s26_s16, 1024  ;;  %p10066_p11 = scmp.lt.s32.totalorder %s26_s16, %s26_s16 }
  0x1e   :  { %p10062_p10 = scmp.ne.s32.totalorder %s26_s16, %s10061_s1  ;;  %p10067_p12 = scmp.lt.s32.totalorder %s10061_s1, %s10061_s1 }
  0x20   :  { %p10068_p13 = por %p10067_p12, %p10066_p11 }
  0x22   :  { %p10069_p0 = pnand %p10068_p13, %p10062_p10 }
  0x24   :  { %10072 = shalt.err (!%p10069_p0)
}
  0x25   :  { %s10148_s17 = smov 128   ;;  %s10149_s18 = smov 8  }
  0x26   :  { %31 = dma.hbm_to_vmem [thread:$0]  %s12363_s0, 1024, %s26_s16, [#allocation9], %s10148_s17, %s10148_s17, %s10149_s18  }
  0x27   :  { %s10150_s3 = smov [#allocation13]   ;;  %s10151_s22 = smov [#allocation16]  }
  0x28   :  { %s50_s21 = sshll.u32 %s10150_s3, 4  ;;  %s73_s23 = sshll.u32 %s10151_s22, 4  ;;  %s51_s21 = int_to_ptr.vmem [resolvable:$true] %s50_s21  ;;  %s74_s23 = int_to_ptr.vmem [resolvable:$true] %s73_s23 }
  0x29   :  { %s10081_s24 = scalar_lea.vmem %s51_s21, 64  ;;  %p10086_p2 = scmp.lt.s32.totalorder %s51_s21, %s51_s21 }
  0x2a   :  { %p10082_p1 = scmp.ne.s32.totalorder %s51_s21, %s10081_s24  ;;  %p10087_p3 = scmp.lt.s32.totalorder %s10081_s24, %s10081_s24 }
  0x2c   :  { %p10088_p4 = por %p10087_p3, %p10086_p2 }
  0x2e   :  { %p10089_p5 = pnand %p10088_p4, %p10082_p1 }
  0x30   :  { %10092 = shalt.err (!%p10089_p5)
}
  0x31   :  { %53 = dma.hbm_to_vmem [thread:$0]  %s12365_s2, 64, %s51_s21, [#allocation12]  }
  0x32   :  { %s10101_s27 = scalar_lea.vmem %s74_s23, 1024  ;;  %p10106_p7 = scmp.lt.s32.totalorder %s74_s23, %s74_s23 }
  0x33   :  { %p10102_p6 = scmp.ne.s32.totalorder %s74_s23, %s10101_s27  ;;  %p10107_p8 = scmp.lt.s32.totalorder %s10101_s27, %s10101_s27 }
  0x35   :  { %p10108_p9 = por %p10107_p8, %p10106_p7 }
  0x37   :  { %p10109_p10 = pnand %p10108_p9, %p10102_p6 }
  0x39   :  { %10112 = shalt.err (!%p10109_p10)
}
  0x3a   :  { %s10152_s0 = smov 64   ;;  %s10153_s28 = smov 4  }
  0x3b   :  { %79 = dma.hbm_to_vmem [thread:$0]  %s12368_s5, 1024, %s74_s23, [#allocation15], %s10152_s0, %s10152_s0, %s10153_s28  }
  0x3c   :  { %10133 = dma.done.wait [#allocation9], 1024  }
  0x3d   :  { %10134 = vsyncadd [#allocation9], 4294966272 }
  0x3e   :  { %10135 = dma.done.wait [#allocation12], 4160  }
  0x3f   :  { %10136 = vsyncadd [#allocation12], 4294963136 }
  0x40   :  { %10137 = dma.done.wait [#allocation15], 17408  }
  0x41   :  { %10138 = vsyncadd [#allocation15], 4294949888  ;;  %v10154_v0 = vmov 0   ;;  %v9697_v1 = vld [vmem:[#allocation11 + $0xe4] ss:$16 sps:$4 sm:$0xff]   ;;  %v111_v49 = vld [vmem:[#allocation8 + $0x8] sm:$0xff] }
  0x42   :  { %368 = vmatprep.mubr.bf16.mxu1 %v10154_v0  ;;  %769 = vmatprep.mubr.bf16.mxu0 %v10154_v0  ;;  %v9699_v2 = vld [vmem:[#allocation11 + $0xe0] ss:$16 sps:$4 sm:$0xff]   ;;  %v573_v3 = vld [vmem:[#allocation14 + $0x1c0] sm:$0xff]  ;;  %v9723_v50 = vld [vmem:[#allocation11 + $0xec] ss:$16 sps:$4 sm:$0xff]   ;;  %v12373_v59 = vmov 0.0|0.0  }
  0x43   :  { %v575_v4 = vld [vmem:[#allocation14 + $0x1e0] sm:$0xff]  ;;  %336 = vmatprep.subr.bf16.mxu1 %v9697_v1  ;;  %v9702_v8 = vld [vmem:[#allocation11 + $0xc0] ss:$16 sps:$4 sm:$0xff]   ;;  %v9726_v54 = vld [vmem:[#allocation11 + $0xcc] ss:$16 sps:$4 sm:$0xff]  }
  0x44   :  { %v10217_v5 = vcombine.high %v573_v3, %v575_v4  ;;  %v10219_v6 = vcombine.low %v573_v3, %v575_v4  ;;  %v9700_v7 = vld [vmem:[#allocation11 + $0xc4] ss:$16 sps:$4 sm:$0xff]   ;;  %337 = vmatpush1.bf16.msra.mxu1 %v9699_v2  ;;  %v9705_v17 = vld [vmem:[#allocation11 + $0xa0] ss:$16 sps:$4 sm:$0xff]   ;;  %v9721_v53 = vld [vmem:[#allocation11 + $0xe8] ss:$16 sps:$4 sm:$0xff]  }
  0x45   :  { %v569_v9 = vld [vmem:[#allocation14 + $0x180] sm:$0xff]  ;;  %338 = vmatprep.subr.bf16.mxu1 %v9700_v7  ;;  %v9708_v23 = vld [vmem:[#allocation11 + $0x80] ss:$16 sps:$4 sm:$0xff]   ;;  %v113_v57 = vld [vmem:[#allocation8 + $0x18] sm:$0xff] }
  0x46   :  { %v571_v10 = vld [vmem:[#allocation14 + $0x1a0] sm:$0xff]  ;;  %737 = vmatprep.subr.bf16.mxu0 %v10217_v5  ;;  %v9711_v29 = vld [vmem:[#allocation11 + $0x60] ss:$16 sps:$4 sm:$0xff]   ;;  %v9729_v58 = vld [vmem:[#allocation11 + $0xac] ss:$16 sps:$4 sm:$0xff]  }
  0x47   :  { %v10222_v11 = vcombine.high %v569_v9, %v571_v10  ;;  %v9703_v12 = vld [vmem:[#allocation11 + $0xa4] ss:$16 sps:$4 sm:$0xff]   ;;  %738 = vmatpush1.bf16.msra.mxu0 %v10219_v6  ;;  %v10225_v13 = vcombine.low %v569_v9, %v571_v10  ;;  %v9714_v35 = vld [vmem:[#allocation11 + $0x40] ss:$16 sps:$4 sm:$0xff]   ;;  %v9724_v55 = vld [vmem:[#allocation11 + $0xc8] ss:$16 sps:$4 sm:$0xff]  }
  0x48   :  { %v565_v14 = vld [vmem:[#allocation14 + $0x140] sm:$0xff]  ;;  %339 = vmatpush1.bf16.msra.mxu1 %v9702_v8  ;;  %v9717_v40 = vld [vmem:[#allocation11 + $0x20] ss:$16 sps:$4 sm:$0xff]   ;;  %v9732_v62 = vld [vmem:[#allocation11 + $0x8c] ss:$16 sps:$4 sm:$0xff]  }
  0x49   :  { %v567_v15 = vld [vmem:[#allocation14 + $0x160] sm:$0xff]  ;;  %739 = vmatprep.subr.bf16.mxu0 %v10222_v11  ;;  %340 = vmatprep.subr.bf16.mxu1 %v9703_v12  ;;  %v9720_v46 = vld [vmem:[#allocation11] ss:$16 sps:$4 sm:$0xff]   ;;  %v9735_v3 = vld [vmem:[#allocation11 + $0x6c] ss:$16 sps:$4 sm:$0xff]  }
  0x4a   :  { %v10228_v16 = vcombine.high %v565_v14, %v567_v15  ;;  %v561_v18 = vld [vmem:[#allocation14 + $0x100] sm:$0xff]  ;;  %v10231_v21 = vcombine.low %v565_v14, %v567_v15  ;;  %v112_v56 = vld [vmem:[#allocation8 + $0x10] sm:$0xff]  ;;  %v117_v9 = vld [vmem:[#allocation8 + $0x38] sm:$0xff] }
  0x4b   :  { %v563_v19 = vld [vmem:[#allocation14 + $0x120] sm:$0xff]  ;;  %740 = vmatpush1.bf16.msra.mxu0 %v10225_v13  ;;  %v10272_v61 = vpack.c.bf16 %v113_v57, %v112_v56  ;;  %v116_v8 = vld [vmem:[#allocation8 + $0x30] sm:$0xff]  ;;  %v9741_v10 = vld [vmem:[#allocation11 + $0x2c] ss:$16 sps:$4 sm:$0xff]  }
  0x4c   :  { %v9706_v20 = vld [vmem:[#allocation11 + $0x84] ss:$16 sps:$4 sm:$0xff]   ;;  %741 = vmatprep.subr.bf16.mxu0 %v10228_v16  ;;  %v10234_v22 = vcombine.high %v561_v18, %v563_v19  ;;  %341 = vmatpush1.bf16.msra.mxu1 %v9705_v17  ;;  %v10237_v27 = vcombine.low %v561_v18, %v563_v19  ;;  %v9727_v60 = vld [vmem:[#allocation11 + $0xa8] ss:$16 sps:$4 sm:$0xff]   ;;  %v574_v14 = vld [vmem:[#allocation14 + $0x1c8] sm:$0xff] }
  0x4d   :  { %v557_v24 = vld [vmem:[#allocation14 + $0xc0] sm:$0xff]  ;;  %342 = vmatprep.subr.bf16.mxu1 %v9706_v20  ;;  %v576_v15 = vld [vmem:[#allocation14 + $0x1e8] sm:$0xff] }
  0x4e   :  { %v559_v25 = vld [vmem:[#allocation14 + $0xe0] sm:$0xff]  ;;  %v8623_v17 = vcombine.high %v574_v14, %v576_v15  ;;  %v570_v18 = vld [vmem:[#allocation14 + $0x188] sm:$0xff]  ;;  %v8622_v20 = vcombine.low %v574_v14, %v576_v15 }
  0x4f   :  { %v9709_v26 = vld [vmem:[#allocation11 + $0x64] ss:$16 sps:$4 sm:$0xff]   ;;  %742 = vmatpush1.bf16.msra.mxu0 %v10231_v21  ;;  %v10240_v28 = vcombine.high %v557_v24, %v559_v25  ;;  %v10243_v33 = vcombine.low %v557_v24, %v559_v25  ;;  %v9730_v63 = vld [vmem:[#allocation11 + $0x88] ss:$16 sps:$4 sm:$0xff]   ;;  %v572_v19 = vld [vmem:[#allocation14 + $0x1a8] sm:$0xff] }
  0x50   :  { %743 = vmatprep.subr.bf16.mxu0 %v10234_v22  ;;  %343 = vmatpush1.bf16.msra.mxu1 %v9708_v23  ;;  %v553_v30 = vld [vmem:[#allocation14 + $0x80] sm:$0xff]  ;;  %v568_v23 = vld [vmem:[#allocation14 + $0x168] sm:$0xff]  ;;  %v8618_v24 = vcombine.low %v570_v18, %v572_v19 }
  0x51   :  { %v555_v31 = vld [vmem:[#allocation14 + $0xa0] sm:$0xff]  ;;  %344 = vmatprep.subr.bf16.mxu1 %v9709_v26  ;;  %v562_v26 = vld [vmem:[#allocation14 + $0x108] sm:$0xff] }
  0x52   :  { %v9712_v32 = vld [vmem:[#allocation11 + $0x44] ss:$16 sps:$4 sm:$0xff]   ;;  %v10246_v34 = vcombine.high %v553_v30, %v555_v31  ;;  %v10249_v39 = vcombine.low %v553_v30, %v555_v31  ;;  %v115_v2 = vld [vmem:[#allocation8 + $0x28] sm:$0xff] }
  0x53   :  { %744 = vmatpush1.bf16.msra.mxu0 %v10237_v27  ;;  %v549_v36 = vld [vmem:[#allocation14 + $0x40] sm:$0xff]  ;;  %v558_v30 = vld [vmem:[#allocation14 + $0xc8] sm:$0xff] }
  0x54   :  { %745 = vmatprep.subr.bf16.mxu0 %v10240_v28  ;;  %345 = vmatpush1.bf16.msra.mxu1 %v9711_v29  ;;  %v551_v37 = vld [vmem:[#allocation14 + $0x60] sm:$0xff]  ;;  %v560_v31 = vld [vmem:[#allocation14 + $0xe8] sm:$0xff] }
  0x55   :  { %346 = vmatprep.subr.bf16.mxu1 %v9712_v32  ;;  %v9715_v38 = vld [vmem:[#allocation11 + $0x24] ss:$16 sps:$4 sm:$0xff]   ;;  %v10252_v41 = vcombine.high %v549_v36, %v551_v37  ;;  %v10255_v45 = vcombine.low %v549_v36, %v551_v37  ;;  %v9736_v7 = vld [vmem:[#allocation11 + $0x48] ss:$16 sps:$4 sm:$0xff]   ;;  %v8606_v36 = vcombine.low %v558_v30, %v560_v31  ;;  %v962_v56 = vld [vmem:[#allocation14 + $0x388] sm:$0xff] }
  0x56   :  { %v545_v42 = vld [vmem:[#allocation14] sm:$0xff] }
  0x57   :  { %746 = vmatpush1.bf16.msra.mxu0 %v10243_v33  ;;  %v547_v43 = vld [vmem:[#allocation14 + $0x20] sm:$0xff] }
  0x58   :  { %747 = vmatprep.subr.bf16.mxu0 %v10246_v34  ;;  %347 = vmatpush1.bf16.msra.mxu1 %v9714_v35  ;;  %v9718_v44 = vld [vmem:[#allocation11 + $0x4] ss:$16 sps:$4 sm:$0xff]   ;;  %v10258_v47 = vcombine.high %v545_v42, %v547_v43  ;;  %v10261_v51 = vcombine.low %v545_v42, %v547_v43  ;;  %v9739_v12 = vld [vmem:[#allocation11 + $0x28] ss:$16 sps:$4 sm:$0xff]   ;;  %v556_v35 = vld [vmem:[#allocation14 + $0xa8] sm:$0xff] }
  0x59   :  { %348 = vmatprep.subr.bf16.mxu1 %v9715_v38  ;;  %v110_v48 = vld [vmem:[#allocation8] sm:$0xff]  ;;  %v550_v38 = vld [vmem:[#allocation14 + $0x48] sm:$0xff] }
  0x5a   :  { %v10264_v52 = vpack.c.bf16 %v111_v49, %v110_v48  ;;  %v114_v1 = vld [vmem:[#allocation8 + $0x20] sm:$0xff]  ;;  %v546_v42 = vld [vmem:[#allocation14 + $0x8] sm:$0xff] }
  0x5b   :  { %748 = vmatpush1.bf16.msra.mxu0 %v10249_v39  ;;  %v10280_v4 = vpack.c.bf16 %v115_v2, %v114_v1  ;;  %v548_v43 = vld [vmem:[#allocation14 + $0x28] sm:$0xff]  ;;  %v957_v1 = vld [vmem:[#allocation14 + $0x360] sm:$0xff] }
  0x5c   :  { %749 = vmatprep.subr.bf16.mxu0 %v10252_v41  ;;  %349 = vmatpush1.bf16.msra.mxu1 %v9717_v40  ;;  %v970_v48 = vld [vmem:[#allocation14 + $0x3c8] sm:$0xff] }
  0x5d   :  { %350 = vmatprep.subr.bf16.mxu1 %v9718_v44  ;;  %v954_v2 = vld [vmem:[#allocation14 + $0x348] sm:$0xff] }
  0x5f   :  { %750 = vmatpush1.bf16.msra.mxu0 %v10255_v45 }
  0x60   :  { %751 = vmatprep.subr.bf16.mxu0 %v10258_v47  ;;  %351 = vmatpush1.bf16.msra.mxu1 %v9720_v46  ;;  %v8594_v46 = vcombine.low %v546_v42, %v548_v43 }
  0x61   :  { %409 = vmatprep.subr.bf16.mxu1 %v9723_v50  ;;  %v974_v50 = vld [vmem:[#allocation14 + $0x3e8] sm:$0xff] }
  0x63   :  { %752 = vmatpush1.bf16.msra.mxu0 %v10261_v51  ;;  %369 = vmatmul.mubr.bf16.vlgmr.msra.gmra.mxu1 %v10264_v52 }
  0x64   :  { %410 = vmatpush1.bf16.msra.mxu1 %v9721_v53  ;;  %378 = vmatprep.mubr.bf16.mxu1 %v10154_v0  ;;  %v10315_v53 = vcombine.high %v970_v48, %v974_v50 }
  0x65   :  { %411 = vmatprep.subr.bf16.mxu1 %v9726_v54  ;;  %1617 = vmatprep.subr.bf16.mxu0 %v10217_v5  ;;  %v9733_v5 = vld [vmem:[#allocation11 + $0x68] ss:$16 sps:$4 sm:$0xff]  }
  0x66   :  { %770 = vmatmul.mubr.bf16.vlgmr.msra.gmra.mxu0 %v12373_v59  ;;  %v961_v54 = vld [vmem:[#allocation14 + $0x380] sm:$0xff] }
  0x67   :  { %1649 = vmatprep.mubr.bf16.mxu0 %v12373_v59  ;;  %1618 = vmatpush1.bf16.msra.mxu0 %v10219_v6  ;;  %v9738_v6 = vld [vmem:[#allocation11 + $0x4c] ss:$16 sps:$4 sm:$0xff]  }
  0x68   :  { %412 = vmatpush1.bf16.msra.mxu1 %v9724_v55  ;;  %1619 = vmatprep.subr.bf16.mxu0 %v10222_v11  ;;  %v10288_v11 = vpack.c.bf16 %v117_v9, %v116_v8  ;;  %v965_v55 = vld [vmem:[#allocation14 + $0x3a0] sm:$0xff] }
  0x69   :  { %413 = vmatprep.subr.bf16.mxu1 %v9729_v58  ;;  %v10321_v57 = vcombine.high %v961_v54, %v965_v55  ;;  %v966_v58 = vld [vmem:[#allocation14 + $0x3a8] sm:$0xff]  ;;  %v945_v8 = vld [vmem:[#allocation14 + $0x300] sm:$0xff] }
  0x6a   :  { %v949_v9 = vld [vmem:[#allocation14 + $0x320] sm:$0xff] }
  0x6b   :  { %379 = vmatmul.mubr.bf16.gmra.mxu1 %v10272_v61  ;;  %1620 = vmatpush1.bf16.msra.mxu0 %v10225_v13  ;;  %v9744_v13 = vld [vmem:[#allocation11 + $0xc] ss:$16 sps:$4 sm:$0xff]  }
  0x6c   :  { %414 = vmatpush1.bf16.msra.mxu1 %v9727_v60  ;;  %388 = vmatprep.mubr.bf16.mxu1 %v10154_v0  ;;  %v10323_v60 = vcombine.low %v961_v54, %v965_v55 }
  0x6d   :  { %415 = vmatprep.subr.bf16.mxu1 %v9732_v62  ;;  %1621 = vmatprep.subr.bf16.mxu0 %v10228_v16  ;;  %v9742_v16 = vld [vmem:[#allocation11 + $0x8] ss:$16 sps:$4 sm:$0xff]   ;;  %v10327_v62 = vcombine.high %v962_v56, %v966_v58 }
  0x6f   :  { %1622 = vmatpush1.bf16.msra.mxu0 %v10231_v21  ;;  %v8619_v21 = vcombine.high %v570_v18, %v572_v19  ;;  %v938_v18 = vld [vmem:[#allocation14 + $0x2c8] sm:$0xff] }
  0x70   :  { %416 = vmatpush1.bf16.msra.mxu1 %v9730_v63  ;;  %1623 = vmatprep.subr.bf16.mxu0 %v10234_v22  ;;  %v566_v22 = vld [vmem:[#allocation14 + $0x148] sm:$0xff]  ;;  %v953_v63 = vld [vmem:[#allocation14 + $0x340] sm:$0xff] }
  0x71   :  { %417 = vmatprep.subr.bf16.mxu1 %v9735_v3  ;;  %v8615_v25 = vcombine.high %v566_v22, %v568_v23  ;;  %v10333_v3 = vcombine.high %v953_v63, %v957_v1 }
  0x73   :  { %389 = vmatmul.mubr.bf16.gmra.mxu1 %v10280_v4  ;;  %1624 = vmatpush1.bf16.msra.mxu0 %v10237_v27  ;;  %v564_v27 = vld [vmem:[#allocation14 + $0x128] sm:$0xff] }
  0x74   :  { %418 = vmatpush1.bf16.msra.mxu1 %v9733_v5  ;;  %398 = vmatprep.mubr.bf16.mxu1 %v10154_v0  ;;  %v8611_v29 = vcombine.high %v562_v26, %v564_v27  ;;  %v8610_v32 = vcombine.low %v562_v26, %v564_v27  ;;  %v10335_v5 = vcombine.low %v953_v63, %v957_v1  ;;  %v930_v26 = vld [vmem:[#allocation14 + $0x288] sm:$0xff]  ;;  %v156_v1 = vlaneseq }
  0x75   :  { %419 = vmatprep.subr.bf16.mxu1 %v9738_v6  ;;  %1625 = vmatprep.subr.bf16.mxu0 %v10240_v28  ;;  %v8614_v28 = vcombine.low %v566_v22, %v568_v23 }
  0x77   :  { %1626 = vmatpush1.bf16.msra.mxu0 %v10243_v33  ;;  %v8607_v33 = vcombine.high %v558_v30, %v560_v31  ;;  %v925_v30 = vld [vmem:[#allocation14 + $0x260] sm:$0xff] }
  0x78   :  { %420 = vmatpush1.bf16.msra.mxu1 %v9736_v7  ;;  %1627 = vmatprep.subr.bf16.mxu0 %v10246_v34  ;;  %v554_v34 = vld [vmem:[#allocation14 + $0x88] sm:$0xff] }
  0x79   :  { %421 = vmatprep.subr.bf16.mxu1 %v9741_v10  ;;  %v8603_v37 = vcombine.high %v554_v34, %v556_v35  ;;  %v8602_v40 = vcombine.low %v554_v34, %v556_v35  ;;  %v946_v10 = vld [vmem:[#allocation14 + $0x308] sm:$0xff] }
  0x7a   :  { %v926_v34 = vld [vmem:[#allocation14 + $0x268] sm:$0xff] }
  0x7b   :  { %399 = vmatmul.mubr.bf16.gmra.mxu1 %v10288_v11  ;;  %1628 = vmatpush1.bf16.msra.mxu0 %v10249_v39  ;;  %v552_v39 = vld [vmem:[#allocation14 + $0x68] sm:$0xff] }
  0x7c   :  { %422 = vmatpush1.bf16.msra.mxu1 %v9739_v12  ;;  %441 = vmatprep.mubr.bf16.mxu1 %v10154_v0  ;;  %v8598_v44 = vcombine.low %v550_v38, %v552_v39  ;;  %v950_v12 = vld [vmem:[#allocation14 + $0x328] sm:$0xff] }
  0x7d   :  { %423 = vmatprep.subr.bf16.mxu1 %v9744_v13  ;;  %1629 = vmatprep.subr.bf16.mxu0 %v10252_v41  ;;  %v8599_v41 = vcombine.high %v550_v38, %v552_v39  ;;  %v10347_v13 = vcombine.low %v945_v8, %v949_v9  ;;  %v10349_v14 = vcombine.low %v946_v10, %v950_v12  ;;  %v917_v38 = vld [vmem:[#allocation14 + $0x220] sm:$0xff] }
  0x7e   :  { %v10351_v15 = vcombine.high %v946_v10, %v950_v12 }
  0x7f   :  { %1630 = vmatpush1.bf16.msra.mxu0 %v10255_v45  ;;  %v8595_v45 = vcombine.high %v546_v42, %v548_v43  ;;  %v908_v42 = vld [vmem:[#allocation14 + $0x1d8] sm:$0xff]  ;;  %v914_v43 = vld [vmem:[#allocation14 + $0x208] sm:$0xff] }
  0x80   :  { %424 = vmatpush1.bf16.msra.mxu1 %v9742_v16  ;;  %1631 = vmatprep.subr.bf16.mxu0 %v10258_v47  ;;  %v973_v47 = vld [vmem:[#allocation14 + $0x3e0] sm:$0xff] }
  0x81   :  { %778 = vmatprep.subr.bf16.mxu1 %v8623_v17  ;;  %v937_v16 = vld [vmem:[#allocation14 + $0x2c0] sm:$0xff] }
  0x83   :  { %442 = vmatmul.mubr.bf16.vlgmr.msra.gmra.mxu1 %v10264_v52  ;;  %1632 = vmatpush1.bf16.msra.mxu0 %v10261_v51  ;;  %v10313_v52 = vcombine.low %v970_v48, %v974_v50 }
  0x84   :  { %779 = vmatpush1.bf16.msra.mxu1 %v8622_v20  ;;  %451 = vmatprep.mubr.bf16.mxu1 %v10154_v0 }
  0x85   :  { %780 = vmatprep.subr.bf16.mxu1 %v8619_v21 }
  0x88   :  { %781 = vmatpush1.bf16.msra.mxu1 %v8618_v24 }
  0x89   :  { %782 = vmatprep.subr.bf16.mxu1 %v8615_v25 }
  0x8b   :  { %452 = vmatmul.mubr.bf16.gmra.mxu1 %v10272_v61  ;;  %v10325_v61 = vcombine.low %v962_v56, %v966_v58 }
  0x8c   :  { %783 = vmatpush1.bf16.msra.mxu1 %v8614_v28  ;;  %461 = vmatprep.mubr.bf16.mxu1 %v10154_v0 }
  0x8d   :  { %784 = vmatprep.subr.bf16.mxu1 %v8611_v29 }
  0x90   :  { %785 = vmatpush1.bf16.msra.mxu1 %v8610_v32 }
  0x91   :  { %786 = vmatprep.subr.bf16.mxu1 %v8607_v33 }
  0x93   :  { %462 = vmatmul.mubr.bf16.gmra.mxu1 %v10280_v4  ;;  %v958_v4 = vld [vmem:[#allocation14 + $0x368] sm:$0xff] }
  0x94   :  { %787 = vmatpush1.bf16.msra.mxu1 %v8606_v36  ;;  %471 = vmatprep.mubr.bf16.mxu1 %v10154_v0  ;;  %v10337_v6 = vcombine.low %v954_v2, %v958_v4  ;;  %v10339_v7 = vcombine.high %v954_v2, %v958_v4  ;;  %v10415_v2 = vshrl.u32 %v156_v1, 7 }
  0x95   :  { %788 = vmatprep.subr.bf16.mxu1 %v8603_v37 }
  0x96   :  { %v12372_v4 = vsub.s32 0, %v10415_v2  ;;  %v12371_v10 = vsub.s32 1, %v10415_v2 }
  0x98   :  { %789 = vmatpush1.bf16.msra.mxu1 %v8602_v40 }
  0x99   :  { %790 = vmatprep.subr.bf16.mxu1 %v8599_v41 }
  0x9b   :  { %472 = vmatmul.mubr.bf16.gmra.mxu1 %v10288_v11  ;;  %v10345_v11 = vcombine.high %v945_v8, %v949_v9  ;;  %v154_v8 = vld [vmem:[#allocation13] sm:$0xf] }
  0x9c   :  { %791 = vmatpush1.bf16.msra.mxu1 %v8598_v44  ;;  %810 = vmatprep.mubr.bf16.mxu1 %v10154_v0  ;;  %v969_v0 = vld [vmem:[#allocation14 + $0x3c0] sm:$0xff] }
  0x9d   :  { %792 = vmatprep.subr.bf16.mxu1 %v8595_v45  ;;  %v10309_v49 = vcombine.high %v969_v0, %v973_v47  ;;  %v10311_v51 = vcombine.low %v969_v0, %v973_v47 }
  0x9f   :  { %1633 = vmatprep.subr.bf16.mxu0 %v10309_v49 }
  0xa0   :  { %793 = vmatpush1.bf16.msra.mxu1 %v8594_v46  ;;  %1634 = vmatpush2.bf16.msra.mxu0 %v10311_v51 }
  0xa1   :  { %1658 = vmatprep.subr.bf16.mxu1 %v8623_v17  ;;  %1635 = vmatprep.subr.bf16.mxu0 %v10321_v57  ;;  %v941_v17 = vld [vmem:[#allocation14 + $0x2e0] sm:$0xff] }
  0xa2   :  { %v10357_v19 = vcombine.high %v937_v16, %v941_v17 }
  0xa3   :  { %811 = vmatmul.mubr.bf16.vlgmr.msra.gmra.mxu1 %v12373_v59 }
  0xa4   :  { %1659 = vmatpush1.bf16.msra.mxu1 %v8622_v20  ;;  %1690 = vmatprep.mubr.bf16.mxu1 %v12373_v59  ;;  %v942_v20 = vld [vmem:[#allocation14 + $0x2e8] sm:$0xff] }
  0xa5   :  { %1660 = vmatprep.subr.bf16.mxu1 %v8619_v21  ;;  %1636 = vmatpush2.bf16.msra.mxu0 %v10323_v60  ;;  %v10359_v21 = vcombine.low %v937_v16, %v941_v17  ;;  %v10361_v22 = vcombine.low %v938_v18, %v942_v20  ;;  %v10363_v23 = vcombine.high %v938_v18, %v942_v20 }
  0xa6   :  { %1637 = vmatprep.subr.bf16.mxu0 %v10333_v3  ;;  %v159_v17 = vrot.slane %v154_v8, %v12372_v4 }
  0xa8   :  { %1661 = vmatpush1.bf16.msra.mxu1 %v8618_v24  ;;  %v929_v24 = vld [vmem:[#allocation14 + $0x280] sm:$0xff] }
  0xa9   :  { %1662 = vmatprep.subr.bf16.mxu1 %v8615_v25  ;;  %1638 = vmatpush2.bf16.msra.mxu0 %v10335_v5  ;;  %v933_v25 = vld [vmem:[#allocation14 + $0x2a0] sm:$0xff] }
  0xaa   :  { %1639 = vmatprep.subr.bf16.mxu0 %v10345_v11  ;;  %v10366_v27 = vcombine.high %v929_v24, %v933_v25  ;;  %v10370_v31 = vcombine.low %v929_v24, %v933_v25  ;;  %v163_v24 = vrot.slane %v154_v8, %v12371_v10 }
  0xac   :  { %1663 = vmatpush1.bf16.msra.mxu1 %v8614_v28  ;;  %v934_v28 = vld [vmem:[#allocation14 + $0x2a8] sm:$0xff] }
  0xad   :  { %1664 = vmatprep.subr.bf16.mxu1 %v8611_v29  ;;  %1640 = vmatpush2.bf16.msra.mxu0 %v10347_v13  ;;  %v921_v29 = vld [vmem:[#allocation14 + $0x240] sm:$0xff]  ;;  %v10376_v35 = vcombine.low %v930_v26, %v934_v28 }
  0xae   :  { %1641 = vmatprep.subr.bf16.mxu0 %v10357_v19  ;;  %v10386_v0 = vcombine.low %v921_v29, %v925_v30 }
  0xb0   :  { %1665 = vmatpush1.bf16.msra.mxu1 %v8610_v32  ;;  %v10372_v32 = vcombine.high %v930_v26, %v934_v28 }
  0xb1   :  { %1666 = vmatprep.subr.bf16.mxu1 %v8607_v33  ;;  %1642 = vmatpush2.bf16.msra.mxu0 %v10359_v21  ;;  %v922_v33 = vld [vmem:[#allocation14 + $0x248] sm:$0xff] }
  0xb2   :  { %1643 = vmatprep.subr.bf16.mxu0 %v10366_v27  ;;  %v10381_v39 = vcombine.high %v922_v33, %v926_v34  ;;  %v10392_v48 = vcombine.low %v922_v33, %v926_v34 }
  0xb4   :  { %1667 = vmatpush1.bf16.msra.mxu1 %v8606_v36  ;;  %v10378_v36 = vcombine.high %v921_v29, %v925_v30 }
  0xb5   :  { %1668 = vmatprep.subr.bf16.mxu1 %v8603_v37  ;;  %v913_v37 = vld [vmem:[#allocation14 + $0x200] sm:$0xff]  ;;  %1644 = vmatpush2.bf16.msra.mxu0 %v10370_v31 }
  0xb6   :  { %1645 = vmatprep.subr.bf16.mxu0 %v10378_v36  ;;  %v10394_v50 = vcombine.high %v913_v37, %v917_v38  ;;  %v10400_v55 = vcombine.low %v913_v37, %v917_v38 }
  0xb8   :  { %1669 = vmatpush1.bf16.msra.mxu1 %v8602_v40  ;;  %v907_v40 = vld [vmem:[#allocation14 + $0x1d0] sm:$0xff] }
  0xb9   :  { %1670 = vmatprep.subr.bf16.mxu1 %v8599_v41  ;;  %v911_v41 = vld [vmem:[#allocation14 + $0x1f0] sm:$0xff]  ;;  %1646 = vmatpush2.bf16.msra.mxu0 %v10386_v0 }
  0xba   :  { %1647 = vmatprep.subr.bf16.mxu0 %v10394_v50  ;;  %v10406_v58 = vcombine.high %v907_v40, %v911_v41 }
  0xbc   :  { %1671 = vmatpush1.bf16.msra.mxu1 %v8598_v44  ;;  %v918_v44 = vld [vmem:[#allocation14 + $0x228] sm:$0xff] }
  0xbd   :  { %1672 = vmatprep.subr.bf16.mxu1 %v8595_v45  ;;  %v10383_v45 = vcombine.low %v907_v40, %v911_v41  ;;  %v10397_v54 = vcombine.high %v914_v43, %v918_v44  ;;  %v10404_v56 = vcombine.low %v914_v43, %v918_v44  ;;  %1648 = vmatpush2.bf16.msra.mxu0 %v10400_v55 }
  0xbe   :  { %1699 = vmatprep.subr.bf16.mxu0 %v10406_v58 }
  0xc0   :  { %1673 = vmatpush1.bf16.msra.mxu1 %v8594_v46  ;;  %v912_v46 = vld [vmem:[#allocation14 + $0x1f8] sm:$0xff] }
  0xc1   :  { %1674 = vmatprep.subr.bf16.mxu1 %v10315_v53  ;;  %v10388_v47 = vcombine.low %v908_v42, %v912_v46  ;;  %v10409_v63 = vcombine.high %v908_v42, %v912_v46 }
  0xc4   :  { %1675 = vmatpush2.bf16.msra.mxu1 %v10313_v52 }
  0xc5   :  { %1676 = vmatprep.subr.bf16.mxu1 %v10327_v62 }
  0xc8   :  { %1677 = vmatpush2.bf16.msra.mxu1 %v10325_v61 }
  0xc9   :  { %1678 = vmatprep.subr.bf16.mxu1 %v10339_v7 }
  0xcc   :  { %1679 = vmatpush2.bf16.msra.mxu1 %v10337_v6 }
  0xcd   :  { %1680 = vmatprep.subr.bf16.mxu1 %v10351_v15 }
  0xd0   :  { %1681 = vmatpush2.bf16.msra.mxu1 %v10349_v14 }
  0xd1   :  { %1682 = vmatprep.subr.bf16.mxu1 %v10363_v23 }
  0xd4   :  { %1683 = vmatpush2.bf16.msra.mxu1 %v10361_v22 }
  0xd5   :  { %1684 = vmatprep.subr.bf16.mxu1 %v10372_v32 }
  0xd8   :  { %1685 = vmatpush2.bf16.msra.mxu1 %v10376_v35 }
  0xd9   :  { %1686 = vmatprep.subr.bf16.mxu1 %v10381_v39 }
  0xdc   :  { %1687 = vmatpush2.bf16.msra.mxu1 %v10392_v48 }
  0xdd   :  { %1688 = vmatprep.subr.bf16.mxu1 %v10397_v54 }
  0xe0   :  { %1689 = vmatpush2.bf16.msra.mxu1 %v10404_v56 }
  0xe1   :  { %1740 = vmatprep.subr.bf16.mxu1 %v10409_v63 }
 0x123   :  { %v370_v9 = vpop.f32.mrf.mxu1 }
 0x125   :  { %v372_v12 = vpop.f32.mrf.mxu1 }
 0x126   :  { %v771_v16 = vpop.f32.mrf.mxu0 }
 0x127   :  { %v374_v18 = vpop.f32.mrf.mxu1 }
 0x128   :  { %v773_v20 = vpop.f32.mrf.mxu0  ;;  %v10423_v25 = vadd.f32 %v374_v18, %v159_v17 }
 0x129   :  { %v376_v26 = vpop.f32.mrf.mxu1 }
 0x12a   :  { %v775_v28 = vpop.f32.mrf.mxu0  ;;  %v10425_v29 = vadd.f32 %v376_v26, %v163_v24 }
 0x12b   :  { %v380_v30 = vpop.f32.mrf.mxu1 }
 0x12c   :  { %v776_v33 = vpop.f32.mrf.mxu0  ;;  %v10427_v34 = vadd.f32 %v380_v30, %v159_v17 }
 0x12d   :  { %v382_v37 = vpop.f32.mrf.mxu1 }
 0x12e   :  { %12621 = vst [vmem:[#allocation22_spill] sm:$0xff] %v10427_v34  ;;  %v10429_v38 = vadd.f32 %v382_v37, %v163_v24 }
 0x12f   :  { %v384_v40 = vpop.f32.mrf.mxu1 }
 0x130   :  { %12622 = vst [vmem:[#allocation23_spill] sm:$0xff] %v10429_v38  ;;  %v10431_v41 = vadd.f32 %v384_v40, %v159_v17 }
 0x131   :  { %v386_v42 = vpop.f32.mrf.mxu1 }
 0x132   :  { %12623 = vst [vmem:[#allocation24_spill] sm:$0xff] %v10431_v41  ;;  %v10433_v43 = vadd.f32 %v386_v42, %v163_v24 }
 0x133   :  { %v390_v44 = vpop.f32.mrf.mxu1 }
 0x134   :  { %12624 = vst [vmem:[#allocation25_spill] sm:$0xff] %v10433_v43  ;;  %v10435_v46 = vadd.f32 %v390_v44, %v159_v17 }
 0x135   :  { %v392_v1 = vpop.f32.mrf.mxu1 }
 0x136   :  { %12625 = vst [vmem:[#allocation26_spill] sm:$0xff] %v10435_v46  ;;  %v10437_v18 = vadd.f32 %v392_v1, %v163_v24  ;;  %v12375_v1 = vsub.s32 2, %v10415_v2 }
 0x137   :  { %v394_v26 = vpop.f32.mrf.mxu1 }
 0x138   :  { %12626 = vst [vmem:[#allocation27_spill] sm:$0xff] %v10437_v18  ;;  %v10439_v28 = vadd.f32 %v394_v26, %v159_v17  ;;  %v12376_v26 = vsub.s32 3, %v10415_v2 }
 0x139   :  { %v396_v30 = vpop.f32.mrf.mxu1 }
 0x13a   :  { %12627 = vst [vmem:[#allocation28_spill] sm:$0xff] %v10439_v28  ;;  %v10441_v33 = vadd.f32 %v396_v30, %v163_v24  ;;  %v371_v30 = vadd.f32 %v370_v9, %v159_v17 }
 0x13b   :  { %v400_v37 = vpop.f32.mrf.mxu1 }
 0x13c   :  { %12628 = vst [vmem:[#allocation29_spill] sm:$0xff] %v10441_v33  ;;  %v10443_v10 = vadd.f32 %v400_v37, %v159_v17  ;;  %v167_v37 = vrot.slane %v154_v8, %v12375_v1 }
 0x13d   :  { %v402_v40 = vpop.f32.mrf.mxu1 }
 0x13e   :  { %12629 = vst [vmem:[#allocation30_spill] sm:$0xff] %v10443_v10  ;;  %v10445_v4 = vadd.f32 %v402_v40, %v163_v24  ;;  %v373_v10 = vadd.f32 %v372_v12, %v163_v24  ;;  %v171_v40 = vrot.slane %v154_v8, %v12376_v26 }
 0x13f   :  { %v404_v42 = vpop.f32.mrf.mxu1 }
 0x140   :  { %12630 = vst [vmem:[#allocation31_spill] sm:$0xff] %v10445_v4  ;;  %v10447_v59 = vadd.f32 %v404_v42, %v159_v17  ;;  %v820_v4 = vadd.f32 %v773_v20, %v373_v10 }
 0x141   :  { %v406_v44 = vpop.f32.mrf.mxu1 }
 0x142   :  { %12631 = vst [vmem:[#allocation32_spill] sm:$0xff] %v10447_v59  ;;  %v10449_v46 = vadd.f32 %v406_v44, %v163_v24  ;;  %v819_v44 = vadd.f32 %v771_v16, %v371_v30  ;;  %v8625_v1 = vmul.f32 -1.442695, %v820_v4 }
 0x143   :  { %v443_v18 = vpop.f32.mrf.mxu1 }
 0x144   :  { %12632 = vst [vmem:[#allocation33_spill] sm:$0xff] %v10449_v46  ;;  %v8624_v9 = vmul.f32 -1.442695, %v819_v44 }
 0x145   :  { %v445_v28 = vpop.f32.mrf.mxu1 }
 0x146   :  { %9757 = vpow2.f32 %v8624_v9 }
 0x147   :  { %v447_v33 = vpop.f32.mrf.mxu1  ;;  %9759 = vpow2.f32 %v8625_v1 }
 0x148   :  { %v10457_v42 = vadd.f32 %v447_v33, %v167_v37 }
 0x149   :  { %v449_v59 = vpop.f32.mrf.mxu1 }
 0x14a   :  { %v10459_v46 = vadd.f32 %v449_v59, %v171_v40 }
 0x14b   :  { %v453_v43 = vpop.f32.mrf.mxu1 }
 0x14c   :  { %v10461_v41 = vadd.f32 %v453_v43, %v167_v37 }
 0x14d   :  { %v455_v38 = vpop.f32.mrf.mxu1 }
 0x14e   :  { %12633 = vst [vmem:[#allocation34_spill] sm:$0xff] %v10461_v41  ;;  %v10463_v17 = vadd.f32 %v455_v38, %v171_v40  ;;  %v879_v41 = vld [vmem:[#allocation14 + $0xf0] sm:$0xff] }
 0x14f   :  { %v457_v12 = vpop.f32.mrf.mxu1 }
 0x150   :  { %12634 = vst [vmem:[#allocation35_spill] sm:$0xff] %v10463_v17  ;;  %v10465_v24 = vadd.f32 %v457_v12, %v167_v37 }
 0x151   :  { %v459_v34 = vpop.f32.mrf.mxu1 }
 0x152   :  { %12635 = vst [vmem:[#allocation36_spill] sm:$0xff] %v10465_v24  ;;  %v10467_v8 = vadd.f32 %v459_v34, %v171_v40 }
 0x153   :  { %v463_v16 = vpop.f32.mrf.mxu1  ;;  %v9758_v34 = vpop.eup %9757 }
 0x154   :  { %12636 = vst [vmem:[#allocation37_spill] sm:$0xff] %v10467_v8  ;;  %v10469_v59 = vadd.f32 %v463_v16, %v167_v37  ;;  %v9760_v26 = vpop.eup %9759 }
 0x155   :  { %v465_v10 = vpop.f32.mrf.mxu1 }
 0x156   :  { %12637 = vst [vmem:[#allocation38_spill] sm:$0xff] %v10469_v59  ;;  %v10471_v20 = vadd.f32 %v465_v10, %v171_v40  ;;  %v832_v10 = vadd.f32 1.0, %v9758_v34 }
 0x157   :  { %v467_v43 = vpop.f32.mrf.mxu1 }
 0x158   :  { %12638 = vst [vmem:[#allocation39_spill] sm:$0xff] %v10471_v20  ;;  %v10473_v33 = vadd.f32 %v467_v43, %v167_v37  ;;  %v444_v20 = vadd.f32 %v443_v18, %v167_v37  ;;  %v833_v43 = vadd.f32 1.0, %v9760_v26  ;;  %9761 = vrcp.f32 %v832_v10 }
 0x159   :  { %v469_v38 = vpop.f32.mrf.mxu1 }
 0x15a   :  { %12639 = vst [vmem:[#allocation40_spill] sm:$0xff] %v10473_v33  ;;  %v10475_v30 = vadd.f32 %v469_v38, %v171_v40  ;;  %v446_v38 = vadd.f32 %v445_v28, %v171_v40  ;;  %9763 = vrcp.f32 %v833_v43 }
 0x15b   :  { %v473_v4 = vpop.f32.mrf.mxu1 }
 0x15c   :  { %12640 = vst [vmem:[#allocation41_spill] sm:$0xff] %v10475_v30  ;;  %v10477_v44 = vadd.f32 %v473_v4, %v167_v37 }
 0x15d   :  { %v475_v12 = vpop.f32.mrf.mxu1 }
 0x15e   :  { %12641 = vst [vmem:[#allocation42_spill] sm:$0xff] %v10477_v44  ;;  %v10479_v9 = vadd.f32 %v475_v12, %v171_v40 }
 0x15f   :  { %v477_v1 = vpop.f32.mrf.mxu1 }
 0x160   :  { %12642 = vst [vmem:[#allocation43_spill] sm:$0xff] %v10479_v9  ;;  %v10481_v16 = vadd.f32 %v477_v1, %v167_v37 }
 0x161   :  { %v479_v59 = vpop.f32.mrf.mxu1 }
 0x162   :  { %12643 = vst [vmem:[#allocation44_spill] sm:$0xff] %v10481_v16  ;;  %v10483_v8 = vadd.f32 %v479_v59, %v171_v40  ;;  %v899_v40 = vld [vmem:[#allocation14 + $0x190] sm:$0xff] }
 0x163   :  { %v812_v33 = vpop.f32.mrf.mxu1 }
 0x164   :  { %12644 = vst [vmem:[#allocation45_spill] sm:$0xff] %v10483_v8  ;;  %v821_v30 = vadd.f32 %v812_v33, %v444_v20  ;;  %v903_v20 = vld [vmem:[#allocation14 + $0x1b0] sm:$0xff]  ;;  %v900_v33 = vld [vmem:[#allocation14 + $0x198] sm:$0xff] }
 0x165   :  { %v814_v24 = vpop.f32.mrf.mxu1  ;;  %v9762_v1 = vpop.eup %9761  ;;  %v10490_v10 = vcombine.high %v899_v40, %v903_v20  ;;  %v875_v8 = vld [vmem:[#allocation14 + $0xd0] sm:$0xff] }
 0x166   :  { %v8626_v4 = vmul.f32 -1.442695, %v821_v30  ;;  %v822_v44 = vadd.f32 %v814_v24, %v446_v38  ;;  %v904_v30 = vld [vmem:[#allocation14 + $0x1b8] sm:$0xff] }
 0x167   :  { %v816_v12 = vpop.f32.mrf.mxu1  ;;  %v9764_v16 = vpop.eup %9763  ;;  %v10492_v43 = vcombine.high %v900_v33, %v904_v30  ;;  %v892_v38 = vld [vmem:[#allocation14 + $0x158] sm:$0xff] }
 0x168   :  { %9765 = vpow2.f32 %v8626_v4  ;;  %v842_v37 = vmul.f32 0.0, %v9764_v16  ;;  %v895_v16 = vld [vmem:[#allocation14 + $0x170] sm:$0xff]  ;;  %v896_v4 = vld [vmem:[#allocation14 + $0x178] sm:$0xff]  ;;  %v10498_v12 = vcombine.low %v899_v40, %v903_v20 }
 0x169   :  { %9767 = vtanh.f32 %v822_v44  ;;  %v817_v9 = vpop.f32.mrf.mxu1  ;;  %12645 = vst [vmem:[#allocation46_spill] sm:$0xff] %v10492_v43  ;;  %v10514_v20 = vcombine.low %v892_v38, %v896_v4 }
 0x16a   :  { %12646 = vst [vmem:[#allocation47_spill] sm:$0xff] %v10498_v12 }
 0x16b   :  { %12652 = vst [vmem:[#allocation52_spill] sm:$0xff] %v10514_v20 }
 0x175   :  { %v9766_v17 = vpop.eup %9765 }
 0x176   :  { %v9768_v34 = vpop.eup %9767  ;;  %v834_v18 = vadd.f32 1.0, %v9766_v17  ;;  %v891_v17 = vld [vmem:[#allocation14 + $0x150] sm:$0xff] }
 0x177   :  { %v843_v59 = vmul.f32 %v9768_v34, %v9762_v1  ;;  %v10500_v1 = vcombine.low %v900_v33, %v904_v30  ;;  %v10504_v34 = vcombine.high %v891_v17, %v895_v16  ;;  %v10512_v40 = vcombine.low %v891_v17, %v895_v16 }
 0x178   :  { %9769 = vrcp.f32 %v834_v18  ;;  %v10506_v18 = vcombine.high %v892_v38, %v896_v4  ;;  %v10530_v38 = vcombine.high %v875_v8, %v879_v41 }
 0x179   :  { %v10485_v26 = vadd.f32 %v843_v59, %v842_v37  ;;  %12647 = vst [vmem:[#allocation48_spill] sm:$0xff] %v10500_v1  ;;  %12648 = vst [vmem:[#allocation49_spill] sm:$0xff] %v10504_v34  ;;  %v883_v37 = vld [vmem:[#allocation14 + $0x110] sm:$0xff] }
 0x17a   :  { %12649 = vst [vmem:[#allocation50_spill] sm:$0xff] %v10506_v18  ;;  %v887_v59 = vld [vmem:[#allocation14 + $0x130] sm:$0xff]  ;;  %12651 = vst [vmem:[#allocation51_spill] sm:$0xff] %v10512_v40 }
 0x17b   :  { %9771 = vtanh.f32 %v10485_v26  ;;  %v10518_v33 = vcombine.high %v883_v37, %v887_v59  ;;  %v10524_v17 = vcombine.low %v883_v37, %v887_v59  ;;  %12657 = vst [vmem:[#allocation57_spill] sm:$0xff] %v10530_v38  ;;  %v10536_v37 = vcombine.low %v875_v8, %v879_v41 }
 0x17d   :  { %12653 = vst [vmem:[#allocation53_spill] sm:$0xff] %v10518_v33  ;;  %12655 = vst [vmem:[#allocation55_spill] sm:$0xff] %v10524_v17 }
 0x17e   :  { %12659 = vst [vmem:[#allocation59_spill] sm:$0xff] %v10536_v37 }
 0x185   :  { %v9770_v28 = vpop.eup %9769 }
 0x188   :  { %v9772_v24 = vpop.eup %9771 }
 0x189   :  { %v846_v44 = vmul.f32 %v9772_v24, %v9770_v28  ;;  %v884_v28 = vld [vmem:[#allocation14 + $0x118] sm:$0xff] }
 0x18a   :  { %v888_v24 = vld [vmem:[#allocation14 + $0x138] sm:$0xff] }
 0x18b   :  { %v10488_v9 = vpack.c.bf16 %v846_v44, %v846_v44  ;;  %v12650_v44 = vmov 0.0|0.0   ;;  %v10520_v30 = vcombine.high %v884_v28, %v888_v24  ;;  %v10526_v16 = vcombine.low %v884_v28, %v888_v24 }
 0x18d   :  { %1650 = vmatmul.mubr.bf16.vlgmr.msra.gmra.mxu0 %v10488_v9  ;;  %1691 = vmatmul.mubr.bf16.vlgmr.msra.gmra.mxu1 %v10488_v9  ;;  %12654 = vst [vmem:[#allocation54_spill] sm:$0xff] %v10520_v30  ;;  %12656 = vst [vmem:[#allocation56_spill] sm:$0xff] %v10526_v16 }
 0x18e   :  { %1700 = vmatpush1.bf16.msra.mxu0 %v10383_v45  ;;  %1741 = vmatpush1.bf16.msra.mxu1 %v10388_v47 }
 0x18f   :  { %1701 = vmatprep.subr.bf16.mxu0 %v10490_v10  ;;  %1742 = vmatprep.subr.bf16.mxu1 %v10492_v43  ;;  %v876_v43 = vld [vmem:[#allocation14 + $0xd8] sm:$0xff] }
 0x190   :  { %1731 = vmatprep.mubr.bf16.mxu0 %v12650_v44  ;;  %1772 = vmatprep.mubr.bf16.mxu1 %v12650_v44  ;;  %v880_v44 = vld [vmem:[#allocation14 + $0xf8] sm:$0xff] }
 0x191   :  { %v10532_v4 = vcombine.high %v876_v43, %v880_v44  ;;  %v10538_v59 = vcombine.low %v876_v43, %v880_v44 }
 0x192   :  { %1702 = vmatpush1.bf16.msra.mxu0 %v10498_v12  ;;  %1743 = vmatpush1.bf16.msra.mxu1 %v10500_v1  ;;  %v868_v1 = vld [vmem:[#allocation14 + $0x98] sm:$0xff] }
 0x193   :  { %1703 = vmatprep.subr.bf16.mxu0 %v10504_v34  ;;  %1744 = vmatprep.subr.bf16.mxu1 %v10506_v18  ;;  %12658 = vst [vmem:[#allocation58_spill] sm:$0xff] %v10532_v4  ;;  %v867_v18 = vld [vmem:[#allocation14 + $0x90] sm:$0xff]  ;;  %v872_v12 = vld [vmem:[#allocation14 + $0xb8] sm:$0xff]  ;;  %12660 = vst [vmem:[#allocation60_spill] sm:$0xff] %v10538_v59 }
 0x194   :  { %v871_v34 = vld [vmem:[#allocation14 + $0xb0] sm:$0xff]  ;;  %v10544_v24 = vcombine.high %v868_v1, %v872_v12  ;;  %v10550_v8 = vcombine.low %v868_v1, %v872_v12 }
 0x195   :  { %v10542_v28 = vcombine.high %v867_v18, %v871_v34  ;;  %v10548_v41 = vcombine.low %v867_v18, %v871_v34 }
 0x196   :  { %1704 = vmatpush1.bf16.msra.mxu0 %v10512_v40  ;;  %1745 = vmatpush1.bf16.msra.mxu1 %v10514_v20  ;;  %12662 = vst [vmem:[#allocation62_spill] sm:$0xff] %v10544_v24  ;;  %v860_v20 = vld [vmem:[#allocation14 + $0x58] sm:$0xff]  ;;  %12664 = vst [vmem:[#allocation64_spill] sm:$0xff] %v10550_v8 }
 0x197   :  { %1705 = vmatprep.subr.bf16.mxu0 %v10518_v33  ;;  %1746 = vmatprep.subr.bf16.mxu1 %v10520_v30  ;;  %12661 = vst [vmem:[#allocation61_spill] sm:$0xff] %v10542_v28  ;;  %v859_v30 = vld [vmem:[#allocation14 + $0x50] sm:$0xff]  ;;  %v864_v40 = vld [vmem:[#allocation14 + $0x78] sm:$0xff]  ;;  %12663 = vst [vmem:[#allocation63_spill] sm:$0xff] %v10548_v41 }
 0x198   :  { %v863_v33 = vld [vmem:[#allocation14 + $0x70] sm:$0xff]  ;;  %v10556_v44 = vcombine.high %v860_v20, %v864_v40  ;;  %v10562_v12 = vcombine.low %v860_v20, %v864_v40 }
 0x199   :  { %v10554_v43 = vcombine.high %v859_v30, %v863_v33  ;;  %v10560_v34 = vcombine.low %v859_v30, %v863_v33 }
 0x19a   :  { %1706 = vmatpush1.bf16.msra.mxu0 %v10524_v17  ;;  %1747 = vmatpush1.bf16.msra.mxu1 %v10526_v16  ;;  %12666 = vst [vmem:[#allocation66_spill] sm:$0xff] %v10556_v44  ;;  %v852_v16 = vld [vmem:[#allocation14 + $0x18] sm:$0xff]  ;;  %12668 = vst [vmem:[#allocation68_spill] sm:$0xff] %v10562_v12 }
 0x19b   :  { %1707 = vmatprep.subr.bf16.mxu0 %v10530_v38  ;;  %1748 = vmatprep.subr.bf16.mxu1 %v10532_v4  ;;  %12665 = vst [vmem:[#allocation65_spill] sm:$0xff] %v10554_v43  ;;  %v851_v4 = vld [vmem:[#allocation14 + $0x10] sm:$0xff]  ;;  %v856_v17 = vld [vmem:[#allocation14 + $0x38] sm:$0xff]  ;;  %12667 = vst [vmem:[#allocation67_spill] sm:$0xff] %v10560_v34 }
 0x19c   :  { %v855_v38 = vld [vmem:[#allocation14 + $0x30] sm:$0xff]  ;;  %v10568_v18 = vcombine.high %v852_v16, %v856_v17  ;;  %v10574_v40 = vcombine.low %v852_v16, %v856_v17 }
 0x19d   :  { %v10566_v1 = vcombine.high %v851_v4, %v855_v38  ;;  %v10572_v33 = vcombine.low %v851_v4, %v855_v38 }
 0x19e   :  { %1708 = vmatpush1.bf16.msra.mxu0 %v10536_v37  ;;  %1749 = vmatpush1.bf16.msra.mxu1 %v10538_v59  ;;  %12670 = vst [vmem:[#allocation70_spill] sm:$0xff] %v10568_v18  ;;  %v972_v59 = vld [vmem:[#allocation14 + $0x3d8] sm:$0xff]  ;;  %12672 = vst [vmem:[#allocation72_spill] sm:$0xff] %v10574_v40 }
 0x19f   :  { %1709 = vmatprep.subr.bf16.mxu0 %v10542_v28  ;;  %1750 = vmatprep.subr.bf16.mxu1 %v10544_v24  ;;  %12669 = vst [vmem:[#allocation69_spill] sm:$0xff] %v10566_v1  ;;  %v971_v24 = vld [vmem:[#allocation14 + $0x3d0] sm:$0xff]  ;;  %v976_v37 = vld [vmem:[#allocation14 + $0x3f8] sm:$0xff]  ;;  %12671 = vst [vmem:[#allocation71_spill] sm:$0xff] %v10572_v33 }
 0x1a0   :  { %v975_v28 = vld [vmem:[#allocation14 + $0x3f0] sm:$0xff]  ;;  %v10580_v30 = vcombine.high %v972_v59, %v976_v37  ;;  %v10586_v17 = vcombine.low %v972_v59, %v976_v37 }
 0x1a1   :  { %v10578_v20 = vcombine.high %v971_v24, %v975_v28  ;;  %v10584_v38 = vcombine.low %v971_v24, %v975_v28 }
 0x1a2   :  { %1710 = vmatpush1.bf16.msra.mxu0 %v10548_v41  ;;  %1751 = vmatpush1.bf16.msra.mxu1 %v10550_v8  ;;  %12674 = vst [vmem:[#allocation74_spill] sm:$0xff] %v10580_v30  ;;  %v964_v8 = vld [vmem:[#allocation14 + $0x398] sm:$0xff]  ;;  %12676 = vst [vmem:[#allocation76_spill] sm:$0xff] %v10586_v17 }
 0x1a3   :  { %1711 = vmatprep.subr.bf16.mxu0 %v10554_v43  ;;  %1752 = vmatprep.subr.bf16.mxu1 %v10556_v44  ;;  %12673 = vst [vmem:[#allocation73_spill] sm:$0xff] %v10578_v20  ;;  %v963_v44 = vld [vmem:[#allocation14 + $0x390] sm:$0xff]  ;;  %v968_v41 = vld [vmem:[#allocation14 + $0x3b8] sm:$0xff]  ;;  %12675 = vst [vmem:[#allocation75_spill] sm:$0xff] %v10584_v38 }
 0x1a4   :  { %v967_v43 = vld [vmem:[#allocation14 + $0x3b0] sm:$0xff]  ;;  %v10592_v4 = vcombine.high %v964_v8, %v968_v41  ;;  %v10598_v37 = vcombine.low %v964_v8, %v968_v41 }
 0x1a5   :  { %v10590_v16 = vcombine.high %v963_v44, %v967_v43  ;;  %v10596_v28 = vcombine.low %v963_v44, %v967_v43 }
 0x1a6   :  { %1712 = vmatpush1.bf16.msra.mxu0 %v10560_v34  ;;  %1753 = vmatpush1.bf16.msra.mxu1 %v10562_v12  ;;  %12678 = vst [vmem:[#allocation78_spill] sm:$0xff] %v10592_v4  ;;  %v956_v12 = vld [vmem:[#allocation14 + $0x358] sm:$0xff]  ;;  %12680 = vst [vmem:[#allocation80_spill] sm:$0xff] %v10598_v37 }
 0x1a7   :  { %1713 = vmatprep.subr.bf16.mxu0 %v10566_v1  ;;  %1754 = vmatprep.subr.bf16.mxu1 %v10568_v18  ;;  %12677 = vst [vmem:[#allocation77_spill] sm:$0xff] %v10590_v16  ;;  %v955_v18 = vld [vmem:[#allocation14 + $0x350] sm:$0xff]  ;;  %v960_v34 = vld [vmem:[#allocation14 + $0x378] sm:$0xff]  ;;  %12679 = vst [vmem:[#allocation79_spill] sm:$0xff] %v10596_v28 }
 0x1a8   :  { %v959_v1 = vld [vmem:[#allocation14 + $0x370] sm:$0xff]  ;;  %v10604_v24 = vcombine.high %v956_v12, %v960_v34  ;;  %v10610_v41 = vcombine.low %v956_v12, %v960_v34 }
 0x1a9   :  { %v10602_v59 = vcombine.high %v955_v18, %v959_v1  ;;  %v10608_v43 = vcombine.low %v955_v18, %v959_v1 }
 0x1aa   :  { %1714 = vmatpush1.bf16.msra.mxu0 %v10572_v33  ;;  %1755 = vmatpush1.bf16.msra.mxu1 %v10574_v40  ;;  %12682 = vst [vmem:[#allocation82_spill] sm:$0xff] %v10604_v24  ;;  %v948_v40 = vld [vmem:[#allocation14 + $0x318] sm:$0xff]  ;;  %12684 = vst [vmem:[#allocation84_spill] sm:$0xff] %v10610_v41 }
 0x1ab   :  { %1715 = vmatprep.subr.bf16.mxu0 %v10578_v20  ;;  %1756 = vmatprep.subr.bf16.mxu1 %v10580_v30  ;;  %12681 = vst [vmem:[#allocation81_spill] sm:$0xff] %v10602_v59  ;;  %v947_v30 = vld [vmem:[#allocation14 + $0x310] sm:$0xff]  ;;  %v952_v33 = vld [vmem:[#allocation14 + $0x338] sm:$0xff]  ;;  %12683 = vst [vmem:[#allocation83_spill] sm:$0xff] %v10608_v43 }
 0x1ac   :  { %v951_v20 = vld [vmem:[#allocation14 + $0x330] sm:$0xff]  ;;  %v10616_v44 = vcombine.high %v948_v40, %v952_v33  ;;  %v10622_v34 = vcombine.low %v948_v40, %v952_v33 }
 0x1ad   :  { %v10614_v8 = vcombine.high %v947_v30, %v951_v20  ;;  %v10620_v1 = vcombine.low %v947_v30, %v951_v20 }
 0x1ae   :  { %1716 = vmatpush2.bf16.msra.mxu0 %v10584_v38  ;;  %1757 = vmatpush2.bf16.msra.mxu1 %v10586_v17  ;;  %12686 = vst [vmem:[#allocation86_spill] sm:$0xff] %v10616_v44  ;;  %v940_v17 = vld [vmem:[#allocation14 + $0x2d8] sm:$0xff]  ;;  %12688 = vst [vmem:[#allocation88_spill] sm:$0xff] %v10622_v34 }
 0x1af   :  { %1717 = vmatprep.subr.bf16.mxu0 %v10590_v16  ;;  %1758 = vmatprep.subr.bf16.mxu1 %v10592_v4  ;;  %12685 = vst [vmem:[#allocation85_spill] sm:$0xff] %v10614_v8  ;;  %v939_v4 = vld [vmem:[#allocation14 + $0x2d0] sm:$0xff]  ;;  %v944_v38 = vld [vmem:[#allocation14 + $0x2f8] sm:$0xff]  ;;  %12687 = vst [vmem:[#allocation87_spill] sm:$0xff] %v10620_v1 }
 0x1b0   :  { %v943_v16 = vld [vmem:[#allocation14 + $0x2f0] sm:$0xff]  ;;  %v10628_v18 = vcombine.high %v940_v17, %v944_v38  ;;  %v10634_v33 = vcombine.low %v940_v17, %v944_v38 }
 0x1b1   :  { %v10626_v12 = vcombine.high %v939_v4, %v943_v16  ;;  %v10632_v20 = vcombine.low %v939_v4, %v943_v16 }
 0x1b2   :  { %1718 = vmatpush2.bf16.msra.mxu0 %v10596_v28  ;;  %1759 = vmatpush2.bf16.msra.mxu1 %v10598_v37  ;;  %12690 = vst [vmem:[#allocation90_spill] sm:$0xff] %v10628_v18  ;;  %v932_v37 = vld [vmem:[#allocation14 + $0x298] sm:$0xff] }
 0x1b3   :  { %1719 = vmatprep.subr.bf16.mxu0 %v10602_v59  ;;  %1760 = vmatprep.subr.bf16.mxu1 %v10604_v24  ;;  %12689 = vst [vmem:[#allocation89_spill] sm:$0xff] %v10626_v12  ;;  %v931_v24 = vld [vmem:[#allocation14 + $0x290] sm:$0xff]  ;;  %v936_v28 = vld [vmem:[#allocation14 + $0x2b8] sm:$0xff] }
 0x1b4   :  { %v935_v59 = vld [vmem:[#allocation14 + $0x2b0] sm:$0xff]  ;;  %v10640_v30 = vcombine.high %v932_v37, %v936_v28  ;;  %v10646_v38 = vcombine.low %v932_v37, %v936_v28 }
 0x1b5   :  { %v10638_v40 = vcombine.high %v931_v24, %v935_v59  ;;  %v10644_v16 = vcombine.low %v931_v24, %v935_v59 }
 0x1b6   :  { %1720 = vmatpush2.bf16.msra.mxu0 %v10608_v43  ;;  %1761 = vmatpush2.bf16.msra.mxu1 %v10610_v41  ;;  %12691 = vst [vmem:[#allocation91_spill] sm:$0xff] %v10640_v30  ;;  %v924_v41 = vld [vmem:[#allocation14 + $0x258] sm:$0xff] }
 0x1b7   :  { %1721 = vmatprep.subr.bf16.mxu0 %v10614_v8  ;;  %1762 = vmatprep.subr.bf16.mxu1 %v10616_v44  ;;  %v923_v44 = vld [vmem:[#allocation14 + $0x250] sm:$0xff]  ;;  %v928_v43 = vld [vmem:[#allocation14 + $0x278] sm:$0xff]  ;;  %12692 = vst [vmem:[#allocation92_spill] sm:$0xff] %v10644_v16 }
 0x1b8   :  { %v927_v8 = vld [vmem:[#allocation14 + $0x270] sm:$0xff]  ;;  %v10652_v4 = vcombine.high %v924_v41, %v928_v43  ;;  %v10658_v28 = vcombine.low %v924_v41, %v928_v43  ;;  %v1903_v43 = vld [vmem:[#allocation14 + $0x1c0] sm:$0xff] }
 0x1b9   :  { %v10650_v17 = vcombine.high %v923_v44, %v927_v8  ;;  %v10656_v59 = vcombine.low %v923_v44, %v927_v8  ;;  %v1907_v41 = vld [vmem:[#allocation14 + $0x1e0] sm:$0xff]  ;;  %v1904_v8 = vld [vmem:[#allocation14 + $0x1c8] sm:$0xff] }
 0x1ba   :  { %1722 = vmatpush2.bf16.msra.mxu0 %v10620_v1  ;;  %1763 = vmatpush2.bf16.msra.mxu1 %v10622_v34  ;;  %v916_v34 = vld [vmem:[#allocation14 + $0x218] sm:$0xff]  ;;  %12693 = vst [vmem:[#allocation93_spill] sm:$0xff] %v10658_v28  ;;  %v10678_v44 = vcombine.low %v1903_v43, %v1907_v41 }
 0x1bb   :  { %1723 = vmatprep.subr.bf16.mxu0 %v10626_v12  ;;  %1764 = vmatprep.subr.bf16.mxu1 %v10628_v18  ;;  %v915_v18 = vld [vmem:[#allocation14 + $0x210] sm:$0xff]  ;;  %v920_v1 = vld [vmem:[#allocation14 + $0x238] sm:$0xff] }
 0x1bc   :  { %v919_v12 = vld [vmem:[#allocation14 + $0x230] sm:$0xff]  ;;  %v10664_v24 = vcombine.high %v916_v34, %v920_v1  ;;  %12698 = vst [vmem:[#allocation98_spill] sm:$0xff] %v10678_v44 }
 0x1bd   :  { %v10662_v37 = vcombine.high %v915_v18, %v919_v12 }
 0x1be   :  { %1724 = vmatpush2.bf16.msra.mxu0 %v10632_v20  ;;  %1765 = vmatpush2.bf16.msra.mxu1 %v10634_v33  ;;  %12695 = vst [vmem:[#allocation95_spill] sm:$0xff] %v10664_v24 }
 0x1bf   :  { %1725 = vmatprep.subr.bf16.mxu0 %v10638_v40  ;;  %1766 = vmatprep.subr.bf16.mxu1 %v10640_v30  ;;  %12694 = vst [vmem:[#allocation94_spill] sm:$0xff] %v10662_v37  ;;  %v10668_v30 = vcombine.low %v915_v18, %v919_v12  ;;  %v10680_v12 = vcombine.high %v1903_v43, %v1907_v41  ;;  %v1899_v18 = vld [vmem:[#allocation14 + $0x1a0] sm:$0xff] }
 0x1c1   :  { %12696 = vst [vmem:[#allocation96_spill] sm:$0xff] %v10668_v30  ;;  %12699 = vst [vmem:[#allocation99_spill] sm:$0xff] %v10680_v12 }
 0x1c2   :  { %1726 = vmatpush2.bf16.msra.mxu0 %v10644_v16  ;;  %1767 = vmatpush2.bf16.msra.mxu1 %v10646_v38  ;;  %v10670_v16 = vcombine.low %v916_v34, %v920_v1  ;;  %v1908_v1 = vld [vmem:[#allocation14 + $0x1e8] sm:$0xff]  ;;  %v1895_v34 = vld [vmem:[#allocation14 + $0x180] sm:$0xff] }
 0x1c3   :  { %1727 = vmatprep.subr.bf16.mxu0 %v10650_v17  ;;  %1768 = vmatprep.subr.bf16.mxu1 %v10652_v4  ;;  %v10693_v43 = vcombine.low %v1895_v34, %v1899_v18 }
 0x1c4   :  { %12697 = vst [vmem:[#allocation97_spill] sm:$0xff] %v10670_v16 }
 0x1c5   :  { %12703 = vst [vmem:[#allocation103_spill] sm:$0xff] %v10693_v43 }
 0x1c6   :  { %1728 = vmatpush2.bf16.msra.mxu0 %v10656_v59  ;;  %1769 = vmatpush2.bf16.msra.mxu1 %v10658_v28  ;;  %v1900_v28 = vld [vmem:[#allocation14 + $0x1a8] sm:$0xff] }
 0x1c7   :  { %1729 = vmatprep.subr.bf16.mxu0 %v10662_v37  ;;  %1770 = vmatprep.subr.bf16.mxu1 %v10664_v24  ;;  %v10682_v37 = vcombine.low %v1904_v8, %v1908_v1  ;;  %v10684_v24 = vcombine.high %v1904_v8, %v1908_v1  ;;  %v1887_v8 = vld [vmem:[#allocation14 + $0x140] sm:$0xff] }
 0x1c8   :  { %v1891_v1 = vld [vmem:[#allocation14 + $0x160] sm:$0xff] }
 0x1c9   :  { %12700 = vst [vmem:[#allocation100_spill] sm:$0xff] %v10682_v37  ;;  %12701 = vst [vmem:[#allocation101_spill] sm:$0xff] %v10684_v24 }
 0x1ca   :  { %1730 = vmatpush2.bf16.msra.mxu0 %v10668_v30  ;;  %1771 = vmatpush2.bf16.msra.mxu1 %v10670_v16  ;;  %v10686_v30 = vcombine.high %v1895_v34, %v1899_v18  ;;  %v1896_v16 = vld [vmem:[#allocation14 + $0x188] sm:$0xff]  ;;  %v10704_v34 = vcombine.low %v1887_v8, %v1891_v1 }
 0x1cb   :  { %2615 = vmatprep.subr.bf16.mxu0 %v10680_v12  ;;  %2656 = vmatprep.subr.bf16.mxu1 %v10684_v24  ;;  %v10697_v41 = vcombine.low %v1896_v16, %v1900_v28  ;;  %v1888_v12 = vld [vmem:[#allocation14 + $0x148] sm:$0xff]  ;;  %v10702_v24 = vcombine.high %v1887_v8, %v1891_v1 }
 0x1cc   :  { %12706 = vst [vmem:[#allocation106_spill] sm:$0xff] %v10704_v34 }
 0x1cd   :  { %1732 = vmatmul.mubr.bf16.vlgmr.msra.gmra.mxu0 %v10488_v9  ;;  %1773 = vmatmul.mubr.bf16.vlgmr.msra.gmra.mxu1 %v10488_v9  ;;  %v10689_v9 = vcombine.high %v1896_v16, %v1900_v28  ;;  %12704 = vst [vmem:[#allocation104_spill] sm:$0xff] %v10697_v41  ;;  %12705 = vst [vmem:[#allocation105_spill] sm:$0xff] %v10702_v24  ;;  %v1879_v16 = vld [vmem:[#allocation14 + $0x100] sm:$0xff] }
 0x1ce   :  { %2616 = vmatpush1.bf16.msra.mxu0 %v10678_v44  ;;  %2657 = vmatpush1.bf16.msra.mxu1 %v10682_v37  ;;  %v1892_v44 = vld [vmem:[#allocation14 + $0x168] sm:$0xff]  ;;  %v1883_v28 = vld [vmem:[#allocation14 + $0x120] sm:$0xff] }
 0x1cf   :  { %12702 = vst [vmem:[#allocation102_spill] sm:$0xff] %v10689_v9  ;;  %2617 = vmatprep.subr.bf16.mxu0 %v10686_v30  ;;  %2658 = vmatprep.subr.bf16.mxu1 %v10689_v9  ;;  %v10706_v18 = vcombine.low %v1888_v12, %v1892_v44  ;;  %v10708_v37 = vcombine.high %v1888_v12, %v1892_v44  ;;  %v1884_v9 = vld [vmem:[#allocation14 + $0x128] sm:$0xff]  ;;  %v1871_v12 = vld [vmem:[#allocation14 + $0xc0] sm:$0xff] }
 0x1d0   :  { %v10716_v8 = vcombine.low %v1879_v16, %v1883_v28 }
 0x1d1   :  { %12707 = vst [vmem:[#allocation107_spill] sm:$0xff] %v10706_v18  ;;  %12708 = vst [vmem:[#allocation108_spill] sm:$0xff] %v10708_v37 }
 0x1d2   :  { %2618 = vmatpush1.bf16.msra.mxu0 %v10693_v43  ;;  %2659 = vmatpush1.bf16.msra.mxu1 %v10697_v41  ;;  %v1880_v41 = vld [vmem:[#allocation14 + $0x108] sm:$0xff]  ;;  %v10714_v43 = vcombine.high %v1879_v16, %v1883_v28  ;;  %12710 = vst [vmem:[#allocation110_spill] sm:$0xff] %v10716_v8 }
 0x1d3   :  { %2619 = vmatprep.subr.bf16.mxu0 %v10702_v24  ;;  %2660 = vmatprep.subr.bf16.mxu1 %v10708_v37  ;;  %v10718_v1 = vcombine.low %v1880_v41, %v1884_v9  ;;  %v10720_v44 = vcombine.high %v1880_v41, %v1884_v9  ;;  %v1872_v37 = vld [vmem:[#allocation14 + $0xc8] sm:$0xff]  ;;  %v1863_v41 = vld [vmem:[#allocation14 + $0x80] sm:$0xff] }
 0x1d4   :  { %12709 = vst [vmem:[#allocation109_spill] sm:$0xff] %v10714_v43  ;;  %v1876_v24 = vld [vmem:[#allocation14 + $0xe8] sm:$0xff] }
 0x1d5   :  { %12711 = vst [vmem:[#allocation111_spill] sm:$0xff] %v10718_v1  ;;  %12712 = vst [vmem:[#allocation112_spill] sm:$0xff] %v10720_v44  ;;  %v10730_v28 = vcombine.low %v1872_v37, %v1876_v24  ;;  %v10732_v9 = vcombine.high %v1872_v37, %v1876_v24  ;;  %v1855_v24 = vld [vmem:[#allocation14 + $0x40] sm:$0xff] }
 0x1d6   :  { %2620 = vmatpush1.bf16.msra.mxu0 %v10704_v34  ;;  %2661 = vmatpush1.bf16.msra.mxu1 %v10706_v18  ;;  %v1875_v34 = vld [vmem:[#allocation14 + $0xe0] sm:$0xff] }
 0x1d7   :  { %2621 = vmatprep.subr.bf16.mxu0 %v10714_v43  ;;  %2662 = vmatprep.subr.bf16.mxu1 %v10720_v44  ;;  %v10726_v18 = vcombine.high %v1871_v12, %v1875_v34  ;;  %v10728_v16 = vcombine.low %v1871_v12, %v1875_v34  ;;  %12715 = vst [vmem:[#allocation115_spill] sm:$0xff] %v10730_v28  ;;  %12716 = vst [vmem:[#allocation116_spill] sm:$0xff] %v10732_v9  ;;  %v1864_v44 = vld [vmem:[#allocation14 + $0x88] sm:$0xff] }
 0x1d8   :  { %v1868_v43 = vld [vmem:[#allocation14 + $0xa8] sm:$0xff] }
 0x1d9   :  { %12713 = vst [vmem:[#allocation113_spill] sm:$0xff] %v10726_v18  ;;  %12714 = vst [vmem:[#allocation114_spill] sm:$0xff] %v10728_v16  ;;  %v10742_v12 = vcombine.low %v1864_v44, %v1868_v43  ;;  %v10744_v37 = vcombine.high %v1864_v44, %v1868_v43  ;;  %v1847_v44 = vld [vmem:[#allocation14] sm:$0xff] }
 0x1da   :  { %2622 = vmatpush1.bf16.msra.mxu0 %v10716_v8  ;;  %2663 = vmatpush1.bf16.msra.mxu1 %v10718_v1  ;;  %v1867_v8 = vld [vmem:[#allocation14 + $0xa0] sm:$0xff] }
 0x1db   :  { %2623 = vmatprep.subr.bf16.mxu0 %v10726_v18  ;;  %2664 = vmatprep.subr.bf16.mxu1 %v10732_v9  ;;  %v10738_v1 = vcombine.high %v1863_v41, %v1867_v8  ;;  %v10740_v34 = vcombine.low %v1863_v41, %v1867_v8  ;;  %12719 = vst [vmem:[#allocation119_spill] sm:$0xff] %v10742_v12  ;;  %12720 = vst [vmem:[#allocation120_spill] sm:$0xff] %v10744_v37  ;;  %v1856_v9 = vld [vmem:[#allocation14 + $0x48] sm:$0xff] }
 0x1dc   :  { %v1860_v18 = vld [vmem:[#allocation14 + $0x68] sm:$0xff] }
 0x1dd   :  { %12717 = vst [vmem:[#allocation117_spill] sm:$0xff] %v10738_v1  ;;  %12718 = vst [vmem:[#allocation118_spill] sm:$0xff] %v10740_v34  ;;  %v10754_v41 = vcombine.low %v1856_v9, %v1860_v18  ;;  %v10756_v43 = vcombine.high %v1856_v9, %v1860_v18 }
 0x1de   :  { %2624 = vmatpush1.bf16.msra.mxu0 %v10728_v16  ;;  %2665 = vmatpush1.bf16.msra.mxu1 %v10730_v28  ;;  %v1859_v16 = vld [vmem:[#allocation14 + $0x60] sm:$0xff] }
 0x1df   :  { %2625 = vmatprep.subr.bf16.mxu0 %v10738_v1  ;;  %2666 = vmatprep.subr.bf16.mxu1 %v10744_v37  ;;  %v10750_v28 = vcombine.high %v1855_v24, %v1859_v16  ;;  %v10752_v8 = vcombine.low %v1855_v24, %v1859_v16  ;;  %v1848_v37 = vld [vmem:[#allocation14 + $0x8] sm:$0xff] }
 0x1e0   :  { %v1852_v1 = vld [vmem:[#allocation14 + $0x28] sm:$0xff] }
 0x1e1   :  { %v10766_v24 = vcombine.low %v1848_v37, %v1852_v1  ;;  %v10768_v18 = vcombine.high %v1848_v37, %v1852_v1 }
 0x1e2   :  { %2626 = vmatpush1.bf16.msra.mxu0 %v10740_v34  ;;  %2667 = vmatpush1.bf16.msra.mxu1 %v10742_v12  ;;  %v1851_v34 = vld [vmem:[#allocation14 + $0x20] sm:$0xff] }
 0x1e3   :  { %2627 = vmatprep.subr.bf16.mxu0 %v10750_v28  ;;  %2668 = vmatprep.subr.bf16.mxu1 %v10756_v43  ;;  %v10762_v12 = vcombine.high %v1847_v44, %v1851_v34  ;;  %v10764_v16 = vcombine.low %v1847_v44, %v1851_v34  ;;  %v12725_v34 = vsub.s32 2, %v10415_v2 }
 0x1e6   :  { %2628 = vmatpush1.bf16.msra.mxu0 %v10752_v8  ;;  %2669 = vmatpush1.bf16.msra.mxu1 %v10754_v41 }
 0x1e7   :  { %2629 = vmatprep.subr.bf16.mxu0 %v10762_v12  ;;  %2670 = vmatprep.subr.bf16.mxu1 %v10768_v18 }
 0x1ea   :  { %2630 = vmatpush1.bf16.msra.mxu0 %v10764_v16  ;;  %2671 = vmatpush1.bf16.msra.mxu1 %v10766_v24 }
 0x1eb   :  { %2631 = vmatprep.subr.bf16.mxu0 %v10309_v49  ;;  %2672 = vmatprep.subr.bf16.mxu1 %v10315_v53 }
 0x1ee   :  { %2632 = vmatpush2.bf16.msra.mxu0 %v10311_v51  ;;  %2673 = vmatpush2.bf16.msra.mxu1 %v10313_v52 }
 0x1ef   :  { %2633 = vmatprep.subr.bf16.mxu0 %v10321_v57  ;;  %2674 = vmatprep.subr.bf16.mxu1 %v10327_v62 }
 0x1f2   :  { %2634 = vmatpush2.bf16.msra.mxu0 %v10323_v60  ;;  %2675 = vmatpush2.bf16.msra.mxu1 %v10325_v61 }
 0x1f3   :  { %2635 = vmatprep.subr.bf16.mxu0 %v10333_v3  ;;  %2676 = vmatprep.subr.bf16.mxu1 %v10339_v7 }
 0x1f6   :  { %2636 = vmatpush2.bf16.msra.mxu0 %v10335_v5  ;;  %2677 = vmatpush2.bf16.msra.mxu1 %v10337_v6 }
 0x1f7   :  { %2637 = vmatprep.subr.bf16.mxu0 %v10345_v11  ;;  %2678 = vmatprep.subr.bf16.mxu1 %v10351_v15 }
 0x1fa   :  { %2638 = vmatpush2.bf16.msra.mxu0 %v10347_v13  ;;  %2679 = vmatpush2.bf16.msra.mxu1 %v10349_v14 }
 0x1fb   :  { %2639 = vmatprep.subr.bf16.mxu0 %v10357_v19  ;;  %2680 = vmatprep.subr.bf16.mxu1 %v10363_v23 }
 0x1fe   :  { %2640 = vmatpush2.bf16.msra.mxu0 %v10359_v21  ;;  %2681 = vmatpush2.bf16.msra.mxu1 %v10361_v22 }
 0x1ff   :  { %2641 = vmatprep.subr.bf16.mxu0 %v10366_v27  ;;  %2682 = vmatprep.subr.bf16.mxu1 %v10372_v32 }
 0x202   :  { %2642 = vmatpush2.bf16.msra.mxu0 %v10370_v31  ;;  %2683 = vmatpush2.bf16.msra.mxu1 %v10376_v35 }
 0x203   :  { %2643 = vmatprep.subr.bf16.mxu0 %v10378_v36  ;;  %2684 = vmatprep.subr.bf16.mxu1 %v10381_v39  ;;  %v514_v36 = vld [vmem:[%s12367_s4] sm:$0xf]  ;;  %v12721_v39 = vsub.s32 0, %v10415_v2 }
 0x204   :  { %v10830_v37 = vrot.slane %v514_v36, %v12725_v34  ;;  %v12744_v34 = vld [vmem:[#allocation61_spill] sm:$0xff] }
 0x206   :  { %2644 = vmatpush2.bf16.msra.mxu0 %v10386_v0  ;;  %2685 = vmatpush2.bf16.msra.mxu1 %v10392_v48  ;;  %v10820_v0 = vrot.slane %v514_v36, %v12721_v39  ;;  %v12723_v48 = vsub.s32 1, %v10415_v2  ;;  %12726 = vst [vmem:[#allocation123_spill] sm:$0xff] %v10830_v37 }
 0x207   :  { %2645 = vmatprep.subr.bf16.mxu0 %v10394_v50  ;;  %2686 = vmatprep.subr.bf16.mxu1 %v10397_v54 }
 0x208   :  { %12722 = vst [vmem:[#allocation121_spill] sm:$0xff] %v10820_v0  ;;  %v10824_v50 = vrot.slane %v514_v36, %v12723_v48 }
 0x20a   :  { %2646 = vmatpush2.bf16.msra.mxu0 %v10400_v55  ;;  %2687 = vmatpush2.bf16.msra.mxu1 %v10404_v56  ;;  %12724 = vst [vmem:[#allocation122_spill] sm:$0xff] %v10824_v50 }
 0x20b   :  { %2697 = vmatprep.subr.bf16.mxu0 %v10406_v58  ;;  %2738 = vmatprep.subr.bf16.mxu1 %v10409_v63 }
 0x24d   :  { %v1651_v49 = vpop.f32.mrf.mxu0  ;;  %v1692_v51 = vpop.f32.mrf.mxu1 }
 0x24e   :  { %v1788_v52 = vadd.f32 %v1651_v49, %v10423_v25  ;;  %v1790_v53 = vadd.f32 %v1692_v51, %v10457_v42  ;;  %v12727_v49 = vsub.s32 3, %v10415_v2 }
 0x24f   :  { %v1653_v57 = vpop.f32.mrf.mxu0  ;;  %v1694_v60 = vpop.f32.mrf.mxu1 }
 0x250   :  { %v8755_v61 = vmul.f32 -1.442695, %v1788_v52  ;;  %v1789_v62 = vadd.f32 %v1653_v57, %v10425_v29  ;;  %v1791_v3 = vadd.f32 %v1694_v60, %v10459_v46  ;;  %v10835_v51 = vrot.slane %v514_v36, %v12727_v49  ;;  %v12746_v49 = vld [vmem:[#allocation63_spill] sm:$0xff] }
 0x251   :  { %v1655_v5 = vpop.f32.mrf.mxu0  ;;  %v1696_v6 = vpop.f32.mrf.mxu1  ;;  %v8757_v52 = vmul.f32 -1.442695, %v1790_v53 }
 0x252   :  { %9773 = vpow2.f32 %v8755_v61  ;;  %v8756_v7 = vmul.f32 -1.442695, %v1789_v62  ;;  %12728 = vst [vmem:[#allocation124_spill] sm:$0xff] %v10835_v51 }
 0x253   :  { %v1656_v11 = vpop.f32.mrf.mxu0  ;;  %v1697_v13 = vpop.f32.mrf.mxu1 }
 0x254   :  { %9775 = vpow2.f32 %v8756_v7 }
 0x255   :  { %9777 = vtanh.f32 %v1791_v3 }
 0x25f   :  { %v9774_v14 = vpop.eup %9773 }
 0x260   :  { %v1801_v15 = vadd.f32 1.0, %v9774_v14 }
 0x261   :  { %v9776_v19 = vpop.eup %9775 }
 0x262   :  { %9779 = vrcp.f32 %v1801_v15  ;;  %v1802_v21 = vadd.f32 1.0, %v9776_v19  ;;  %v9778_v22 = vpop.eup %9777 }
 0x264   :  { %9781 = vrcp.f32 %v1802_v21 }
 0x26f   :  { %v9780_v23 = vpop.eup %9779 }
 0x270   :  { %v1812_v27 = vmul.f32 %v9780_v23, %v9778_v22 }
 0x271   :  { %v9782_v31 = vpop.eup %9781 }
 0x272   :  { %v1811_v32 = vmul.f32 %v9782_v31, %v10485_v26 }
 0x274   :  { %v10813_v35 = vadd.f32 %v1812_v27, %v1811_v32 }
 0x28d   :  { %v1733_v54 = vpop.f32.mrf.mxu0  ;;  %v1774_v55 = vpop.f32.mrf.mxu1 }
 0x28e   :  { %v1816_v56 = vadd.f32 %v1733_v54, %v10820_v0  ;;  %v1818_v44 = vadd.f32 %v1774_v55, %v10830_v37  ;;  %v12729_v54 = vld [vmem:[#allocation46_spill] sm:$0xff]  ;;  %v12730_v55 = vld [vmem:[#allocation47_spill] sm:$0xff] }
 0x28f   :  { %v1735_v58 = vpop.f32.mrf.mxu0  ;;  %v1776_v63 = vpop.f32.mrf.mxu1 }
 0x290   :  { %v8758_v25 = vmul.f32 -1.442695, %v1816_v56  ;;  %v1817_v29 = vadd.f32 %v1735_v58, %v10824_v50  ;;  %v8760_v57 = vmul.f32 -1.442695, %v1818_v44  ;;  %v1819_v61 = vadd.f32 %v1776_v63, %v10835_v51  ;;  %v12731_v56 = vld [vmem:[#allocation48_spill] sm:$0xff]  ;;  %v12732_v58 = vld [vmem:[#allocation49_spill] sm:$0xff] }
 0x291   :  { %v1737_v46 = vpop.f32.mrf.mxu0  ;;  %v1778_v42 = vpop.f32.mrf.mxu1  ;;  %v12733_v63 = vld [vmem:[#allocation50_spill] sm:$0xff] }
 0x292   :  { %9783 = vpow2.f32 %v8758_v25  ;;  %v8759_v26 = vmul.f32 -1.442695, %v1817_v29  ;;  %v12734_v25 = vld [vmem:[#allocation51_spill] sm:$0xff]  ;;  %v12735_v29 = vld [vmem:[#allocation52_spill] sm:$0xff]  ;;  %v12740_v42 = vld [vmem:[#allocation57_spill] sm:$0xff] }
 0x293   :  { %v1738_v1 = vpop.f32.mrf.mxu0  ;;  %v1779_v9 = vpop.f32.mrf.mxu1  ;;  %v12738_v46 = vld [vmem:[#allocation55_spill] sm:$0xff]  ;;  %v12745_v44 = vld [vmem:[#allocation62_spill] sm:$0xff] }
 0x294   :  { %9785 = vpow2.f32 %v8759_v26  ;;  %v12741_v26 = vld [vmem:[#allocation58_spill] sm:$0xff]  ;;  %v12742_v1 = vld [vmem:[#allocation59_spill] sm:$0xff]  ;;  %v12743_v9 = vld [vmem:[#allocation60_spill] sm:$0xff] }
 0x295   :  { %9787 = vpow2.f32 %v8757_v52  ;;  %v12747_v52 = vld [vmem:[#allocation64_spill] sm:$0xff] }
 0x296   :  { %9789 = vpow2.f32 %v8760_v57  ;;  %v12748_v57 = vld [vmem:[#allocation65_spill] sm:$0xff] }
 0x29f   :  { %v9784_v60 = vpop.eup %9783 }
 0x2a0   :  { %v1829_v62 = vadd.f32 1.0, %v9784_v60  ;;  %v12749_v60 = vld [vmem:[#allocation66_spill] sm:$0xff] }
 0x2a1   :  { %v9786_v3 = vpop.eup %9785 }
 0x2a2   :  { %9791 = vrcp.f32 %v1829_v62  ;;  %v1830_v5 = vadd.f32 1.0, %v9786_v3  ;;  %v9788_v6 = vpop.eup %9787  ;;  %v12751_v62 = vld [vmem:[#allocation68_spill] sm:$0xff]  ;;  %v12752_v3 = vld [vmem:[#allocation69_spill] sm:$0xff] }
 0x2a3   :  { %9793 = vtanh.f32 %v1819_v61  ;;  %v9790_v7 = vpop.eup %9789  ;;  %v1803_v2 = vadd.f32 1.0, %v9788_v6  ;;  %v12750_v61 = vld [vmem:[#allocation67_spill] sm:$0xff] }
 0x2a4   :  { %9795 = vrcp.f32 %v1830_v5  ;;  %v1831_v15 = vadd.f32 1.0, %v9790_v7  ;;  %v12753_v5 = vld [vmem:[#allocation70_spill] sm:$0xff]  ;;  %v12754_v6 = vld [vmem:[#allocation71_spill] sm:$0xff]  ;;  %v12755_v7 = vld [vmem:[#allocation72_spill] sm:$0xff] }
 0x2a5   :  { %9797 = vtanh.f32 %v10813_v35 }
 0x2a6   :  { %9799 = vrcp.f32 %v1803_v2  ;;  %v12758_v2 = vld [vmem:[#allocation75_spill] sm:$0xff] }
 0x2a7   :  { %9801 = vrcp.f32 %v1831_v15  ;;  %v12760_v15 = vld [vmem:[#allocation77_spill] sm:$0xff] }
 0x2af   :  { %v9792_v11 = vpop.eup %9791 }
 0x2b0   :  { %v9794_v13 = vpop.eup %9793 }
 0x2b1   :  { %v9796_v14 = vpop.eup %9795  ;;  %v1840_v19 = vmul.f32 %v9794_v13, %v9792_v11  ;;  %v12756_v11 = vld [vmem:[#allocation73_spill] sm:$0xff]  ;;  %v12757_v13 = vld [vmem:[#allocation74_spill] sm:$0xff] }
 0x2b2   :  { %v1839_v53 = vmul.f32 0.0, %v9796_v14  ;;  %v9798_v22 = vpop.eup %9797  ;;  %v12759_v14 = vld [vmem:[#allocation76_spill] sm:$0xff] }
 0x2b3   :  { %v9800_v23 = vpop.eup %9799 }
 0x2b4   :  { %v10839_v21 = vadd.f32 %v1840_v19, %v1839_v53  ;;  %v9802_v27 = vpop.eup %9801  ;;  %v1815_v32 = vmul.f32 %v9800_v23, %v9798_v22  ;;  %v12761_v53 = vld [vmem:[#allocation78_spill] sm:$0xff]  ;;  %v12762_v19 = vld [vmem:[#allocation79_spill] sm:$0xff]  ;;  %v12763_v22 = vld [vmem:[#allocation80_spill] sm:$0xff] }
 0x2b5   :  { %v12764_v23 = vld [vmem:[#allocation81_spill] sm:$0xff] }
 0x2b6   :  { %9803 = vtanh.f32 %v10839_v21  ;;  %v10842_v48 = vpack.c.bf16 %v1815_v32, %v1815_v32  ;;  %v12767_v32 = vld [vmem:[#allocation84_spill] sm:$0xff] }
 0x2c3   :  { %v9804_v31 = vpop.eup %9803 }
 0x2c4   :  { %v1843_v36 = vmul.f32 %v9804_v31, %v9802_v27  ;;  %v12765_v27 = vld [vmem:[#allocation82_spill] sm:$0xff]  ;;  %v12766_v31 = vld [vmem:[#allocation83_spill] sm:$0xff] }
 0x2c6   :  { %v1844_v39 = vpack.c.bf16 %v1843_v36, %v1843_v36  ;;  %v12768_v36 = vld [vmem:[#allocation85_spill] sm:$0xff] }
 0x2c8   :  { %1845 = vst [vmem:[#allocation3] sm:$0xf] %v1844_v39  ;;  %2647 = vmatprep.mubr.bf16.mxu0 %v1844_v39  ;;  %2688 = vmatprep.mubr.bf16.mxu1 %v1844_v39 }
 0x2c9   :  { %2648 = vmatmul.mubr.bf16.vlgmr.msra.gmra.mxu0 %v10842_v48  ;;  %2689 = vmatmul.mubr.bf16.vlgmr.msra.gmra.mxu1 %v10842_v48 }
 0x2ca   :  { %2698 = vmatpush1.bf16.msra.mxu0 %v10383_v45  ;;  %2739 = vmatpush1.bf16.msra.mxu1 %v10388_v47  ;;  %v12736_v45 = vld [vmem:[#allocation53_spill] sm:$0xff]  ;;  %v12737_v47 = vld [vmem:[#allocation54_spill] sm:$0xff] }
 0x2cb   :  { %2729 = vmatprep.mubr.bf16.mxu0 %v1844_v39  ;;  %2770 = vmatprep.mubr.bf16.mxu1 %v1844_v39  ;;  %v12769_v39 = vld [vmem:[#allocation86_spill] sm:$0xff] }
 0x2cc   :  { %2699 = vmatprep.subr.bf16.mxu0 %v10490_v10  ;;  %2740 = vmatprep.subr.bf16.mxu1 %v12729_v54  ;;  %v12739_v10 = vld [vmem:[#allocation56_spill] sm:$0xff]  ;;  %v12770_v54 = vld [vmem:[#allocation87_spill] sm:$0xff] }
 0x2ce   :  { %2700 = vmatpush1.bf16.msra.mxu0 %v12730_v55  ;;  %2741 = vmatpush1.bf16.msra.mxu1 %v12731_v56  ;;  %v12771_v55 = vld [vmem:[#allocation88_spill] sm:$0xff]  ;;  %v12772_v56 = vld [vmem:[#allocation89_spill] sm:$0xff] }
 0x2cf   :  { %2701 = vmatprep.subr.bf16.mxu0 %v12732_v58  ;;  %2742 = vmatprep.subr.bf16.mxu1 %v12733_v63  ;;  %v12773_v58 = vld [vmem:[#allocation90_spill] sm:$0xff]  ;;  %v12774_v63 = vld [vmem:[#allocation91_spill] sm:$0xff] }
 0x2d2   :  { %2702 = vmatpush1.bf16.msra.mxu0 %v12734_v25  ;;  %2743 = vmatpush1.bf16.msra.mxu1 %v12735_v29  ;;  %v12775_v25 = vld [vmem:[#allocation92_spill] sm:$0xff]  ;;  %v12776_v29 = vld [vmem:[#allocation93_spill] sm:$0xff] }
 0x2d3   :  { %2703 = vmatprep.subr.bf16.mxu0 %v12736_v45  ;;  %2744 = vmatprep.subr.bf16.mxu1 %v12737_v47  ;;  %v12777_v45 = vld [vmem:[#allocation94_spill] sm:$0xff]  ;;  %v12781_v47 = vld [vmem:[#allocation99_spill] sm:$0xff] }
 0x2d6   :  { %2704 = vmatpush1.bf16.msra.mxu0 %v12738_v46  ;;  %2745 = vmatpush1.bf16.msra.mxu1 %v12739_v10  ;;  %v12782_v46 = vld [vmem:[#allocation101_spill] sm:$0xff]  ;;  %v12787_v10 = vld [vmem:[#allocation104_spill] sm:$0xff] }
 0x2d7   :  { %2705 = vmatprep.subr.bf16.mxu0 %v12740_v42  ;;  %2746 = vmatprep.subr.bf16.mxu1 %v12741_v26  ;;  %v12788_v42 = vld [vmem:[#allocation105_spill] sm:$0xff]  ;;  %v12789_v26 = vld [vmem:[#allocation108_spill] sm:$0xff] }
 0x2da   :  { %2706 = vmatpush1.bf16.msra.mxu0 %v12742_v1  ;;  %2747 = vmatpush1.bf16.msra.mxu1 %v12743_v9  ;;  %v12790_v1 = vld [vmem:[#allocation106_spill] sm:$0xff]  ;;  %v12791_v9 = vld [vmem:[#allocation107_spill] sm:$0xff] }
 0x2db   :  { %2707 = vmatprep.subr.bf16.mxu0 %v12744_v34  ;;  %2748 = vmatprep.subr.bf16.mxu1 %v12745_v44  ;;  %v12793_v34 = vld [vmem:[#allocation112_spill] sm:$0xff]  ;;  %v12794_v44 = vld [vmem:[#allocation110_spill] sm:$0xff] }
 0x2de   :  { %2708 = vmatpush1.bf16.msra.mxu0 %v12746_v49  ;;  %2749 = vmatpush1.bf16.msra.mxu1 %v12747_v52  ;;  %v12796_v49 = vld [vmem:[#allocation113_spill] sm:$0xff]  ;;  %v12797_v52 = vld [vmem:[#allocation116_spill] sm:$0xff] }
 0x2df   :  { %2709 = vmatprep.subr.bf16.mxu0 %v12748_v57  ;;  %2750 = vmatprep.subr.bf16.mxu1 %v12749_v60  ;;  %v12798_v57 = vld [vmem:[#allocation114_spill] sm:$0xff]  ;;  %v12799_v60 = vld [vmem:[#allocation115_spill] sm:$0xff] }
 0x2e2   :  { %2710 = vmatpush1.bf16.msra.mxu0 %v12750_v61  ;;  %2751 = vmatpush1.bf16.msra.mxu1 %v12751_v62  ;;  %v12800_v61 = vld [vmem:[#allocation117_spill] sm:$0xff]  ;;  %v12801_v62 = vld [vmem:[#allocation120_spill] sm:$0xff] }
 0x2e3   :  { %2711 = vmatprep.subr.bf16.mxu0 %v12752_v3  ;;  %2752 = vmatprep.subr.bf16.mxu1 %v12753_v5  ;;  %v12802_v3 = vld [vmem:[#allocation118_spill] sm:$0xff]  ;;  %v12803_v5 = vld [vmem:[#allocation119_spill] sm:$0xff] }
 0x2e6   :  { %2712 = vmatpush1.bf16.msra.mxu0 %v12754_v6  ;;  %2753 = vmatpush1.bf16.msra.mxu1 %v12755_v7  ;;  %v2966_v6 = vld [vmem:[#allocation14 + $0x3c0] sm:$0xff] }
 0x2e7   :  { %2713 = vmatprep.subr.bf16.mxu0 %v12756_v11  ;;  %2754 = vmatprep.subr.bf16.mxu1 %v12757_v13  ;;  %v2970_v7 = vld [vmem:[#allocation14 + $0x3e0] sm:$0xff]  ;;  %v2967_v11 = vld [vmem:[#allocation14 + $0x3c8] sm:$0xff] }
 0x2e8   :  { %v10942_v13 = vcombine.high %v2966_v6, %v2970_v7 }
 0x2ea   :  { %2714 = vmatpush2.bf16.msra.mxu0 %v12758_v2  ;;  %2755 = vmatpush2.bf16.msra.mxu1 %v12759_v14  ;;  %v10944_v2 = vcombine.low %v2966_v6, %v2970_v7 }
 0x2eb   :  { %2715 = vmatprep.subr.bf16.mxu0 %v12760_v15  ;;  %2756 = vmatprep.subr.bf16.mxu1 %v12761_v53 }
 0x2ee   :  { %2716 = vmatpush2.bf16.msra.mxu0 %v12762_v19  ;;  %2757 = vmatpush2.bf16.msra.mxu1 %v12763_v22  ;;  %v2950_v19 = vld [vmem:[#allocation14 + $0x340] sm:$0xff] }
 0x2ef   :  { %2717 = vmatprep.subr.bf16.mxu0 %v12764_v23  ;;  %2758 = vmatprep.subr.bf16.mxu1 %v12765_v27  ;;  %v2954_v22 = vld [vmem:[#allocation14 + $0x360] sm:$0xff]  ;;  %v2951_v23 = vld [vmem:[#allocation14 + $0x348] sm:$0xff] }
 0x2f0   :  { %v10966_v27 = vcombine.high %v2950_v19, %v2954_v22 }
 0x2f2   :  { %2718 = vmatpush2.bf16.msra.mxu0 %v12766_v31  ;;  %2759 = vmatpush2.bf16.msra.mxu1 %v12767_v32  ;;  %v2955_v31 = vld [vmem:[#allocation14 + $0x368] sm:$0xff]  ;;  %v10968_v32 = vcombine.low %v2950_v19, %v2954_v22  ;;  %v2905_v19 = vld [vmem:[#allocation14 + $0x1d8] sm:$0xff] }
 0x2f3   :  { %2719 = vmatprep.subr.bf16.mxu0 %v12768_v36  ;;  %2760 = vmatprep.subr.bf16.mxu1 %v12769_v39  ;;  %v10970_v36 = vcombine.low %v2951_v23, %v2955_v31  ;;  %v10972_v39 = vcombine.high %v2951_v23, %v2955_v31  ;;  %v2909_v31 = vld [vmem:[#allocation14 + $0x1f8] sm:$0xff] }
 0x2f6   :  { %2720 = vmatpush2.bf16.msra.mxu0 %v12770_v54  ;;  %2761 = vmatpush2.bf16.msra.mxu1 %v12771_v55  ;;  %v2942_v54 = vld [vmem:[#allocation14 + $0x300] sm:$0xff] }
 0x2f7   :  { %2721 = vmatprep.subr.bf16.mxu0 %v12772_v56  ;;  %2762 = vmatprep.subr.bf16.mxu1 %v12773_v58  ;;  %v2946_v55 = vld [vmem:[#allocation14 + $0x320] sm:$0xff]  ;;  %v2943_v56 = vld [vmem:[#allocation14 + $0x308] sm:$0xff] }
 0x2f8   :  { %v10978_v58 = vcombine.high %v2942_v54, %v2946_v55 }
 0x2fa   :  { %2722 = vmatpush2.bf16.msra.mxu0 %v10632_v20  ;;  %2763 = vmatpush2.bf16.msra.mxu1 %v10634_v33  ;;  %v12778_v20 = vld [vmem:[#allocation95_spill] sm:$0xff]  ;;  %v12779_v33 = vld [vmem:[#allocation96_spill] sm:$0xff] }
 0x2fb   :  { %2723 = vmatprep.subr.bf16.mxu0 %v10638_v40  ;;  %2764 = vmatprep.subr.bf16.mxu1 %v12774_v63  ;;  %v12780_v40 = vld [vmem:[#allocation97_spill] sm:$0xff]  ;;  %v2947_v63 = vld [vmem:[#allocation14 + $0x328] sm:$0xff] }
 0x2fe   :  { %2724 = vmatpush2.bf16.msra.mxu0 %v12775_v25  ;;  %2765 = vmatpush2.bf16.msra.mxu1 %v10646_v38  ;;  %v12783_v38 = vld [vmem:[#allocation98_spill] sm:$0xff]  ;;  %v10980_v25 = vcombine.low %v2942_v54, %v2946_v55  ;;  %v11042_v54 = vcombine.low %v2905_v19, %v2909_v31  ;;  %v11044_v55 = vcombine.high %v2905_v19, %v2909_v31 }
 0x2ff   :  { %2725 = vmatprep.subr.bf16.mxu0 %v10650_v17  ;;  %2766 = vmatprep.subr.bf16.mxu1 %v10652_v4  ;;  %v12784_v17 = vld [vmem:[#allocation100_spill] sm:$0xff]  ;;  %v12785_v4 = vld [vmem:[#allocation102_spill] sm:$0xff] }
 0x302   :  { %2726 = vmatpush2.bf16.msra.mxu0 %v10656_v59  ;;  %2767 = vmatpush2.bf16.msra.mxu1 %v12776_v29  ;;  %v12786_v59 = vld [vmem:[#allocation103_spill] sm:$0xff]  ;;  %v10982_v29 = vcombine.low %v2943_v56, %v2947_v63 }
 0x303   :  { %2727 = vmatprep.subr.bf16.mxu0 %v12777_v45  ;;  %2768 = vmatprep.subr.bf16.mxu1 %v12778_v20  ;;  %v10984_v45 = vcombine.high %v2943_v56, %v2947_v63  ;;  %v2934_v20 = vld [vmem:[#allocation14 + $0x2c0] sm:$0xff] }
 0x306   :  { %2728 = vmatpush2.bf16.msra.mxu0 %v12779_v33  ;;  %2769 = vmatpush2.bf16.msra.mxu1 %v12780_v40  ;;  %v2938_v33 = vld [vmem:[#allocation14 + $0x2e0] sm:$0xff]  ;;  %v2935_v40 = vld [vmem:[#allocation14 + $0x2c8] sm:$0xff] }
 0x307   :  { %3614 = vmatprep.subr.bf16.mxu0 %v12781_v47  ;;  %3655 = vmatprep.subr.bf16.mxu1 %v12782_v46  ;;  %v10987_v47 = vcombine.high %v2934_v20, %v2938_v33  ;;  %v2939_v46 = vld [vmem:[#allocation14 + $0x2e8] sm:$0xff] }
 0x309   :  { %2730 = vmatmul.mubr.bf16.vlgmr.msra.gmra.mxu0 %v10842_v48  ;;  %2771 = vmatmul.mubr.bf16.vlgmr.msra.gmra.mxu1 %v10842_v48  ;;  %v12792_v48 = vld [vmem:[#allocation109_spill] sm:$0xff] }
 0x30a   :  { %3615 = vmatpush1.bf16.msra.mxu0 %v12783_v38  ;;  %3656 = vmatpush1.bf16.msra.mxu1 %v12784_v17  ;;  %v2926_v38 = vld [vmem:[#allocation14 + $0x280] sm:$0xff] }
 0x30b   :  { %3616 = vmatprep.subr.bf16.mxu0 %v10686_v30  ;;  %3657 = vmatprep.subr.bf16.mxu1 %v12785_v4  ;;  %v12795_v30 = vld [vmem:[#allocation111_spill] sm:$0xff]  ;;  %v2930_v17 = vld [vmem:[#allocation14 + $0x2a0] sm:$0xff]  ;;  %v10991_v4 = vcombine.low %v2934_v20, %v2938_v33 }
 0x30c   :  { %v12804_v20 = vld [vmem:[#allocation22_spill] sm:$0xff] }
 0x30e   :  { %3617 = vmatpush1.bf16.msra.mxu0 %v12786_v59  ;;  %3658 = vmatpush1.bf16.msra.mxu1 %v12787_v10  ;;  %v10993_v59 = vcombine.high %v2935_v40, %v2939_v46  ;;  %v2927_v10 = vld [vmem:[#allocation14 + $0x288] sm:$0xff] }
 0x30f   :  { %3618 = vmatprep.subr.bf16.mxu0 %v12788_v42  ;;  %3659 = vmatprep.subr.bf16.mxu1 %v12789_v26  ;;  %v2931_v42 = vld [vmem:[#allocation14 + $0x2a8] sm:$0xff]  ;;  %v10997_v26 = vcombine.low %v2935_v40, %v2939_v46  ;;  %v12805_v40 = vld [vmem:[#allocation34_spill] sm:$0xff] }
 0x312   :  { %3619 = vmatpush1.bf16.msra.mxu0 %v12790_v1  ;;  %3660 = vmatpush1.bf16.msra.mxu1 %v12791_v9  ;;  %v10999_v1 = vcombine.high %v2926_v38, %v2930_v17  ;;  %v11002_v9 = vcombine.high %v2927_v10, %v2931_v42 }
 0x313   :  { %3620 = vmatprep.subr.bf16.mxu0 %v12792_v48  ;;  %3661 = vmatprep.subr.bf16.mxu1 %v12793_v34  ;;  %v2918_v48 = vld [vmem:[#allocation14 + $0x240] sm:$0xff] }
 0x314   :  { %v2922_v34 = vld [vmem:[#allocation14 + $0x260] sm:$0xff] }
 0x315   :  { %v11017_v6 = vcombine.low %v2918_v48, %v2922_v34 }
 0x316   :  { %3621 = vmatpush1.bf16.msra.mxu0 %v12794_v44  ;;  %3662 = vmatpush1.bf16.msra.mxu1 %v12795_v30  ;;  %v2919_v44 = vld [vmem:[#allocation14 + $0x248] sm:$0xff] }
 0x317   :  { %3622 = vmatprep.subr.bf16.mxu0 %v12796_v49  ;;  %3663 = vmatprep.subr.bf16.mxu1 %v12797_v52  ;;  %v2923_v30 = vld [vmem:[#allocation14 + $0x268] sm:$0xff]  ;;  %v11005_v49 = vcombine.low %v2926_v38, %v2930_v17  ;;  %v11009_v52 = vcombine.low %v2927_v10, %v2931_v42 }
 0x318   :  { %v11021_v7 = vcombine.low %v2919_v44, %v2923_v30  ;;  %v12806_v42 = vld [vmem:[#allocation23_spill] sm:$0xff] }
 0x31a   :  { %3623 = vmatpush1.bf16.msra.mxu0 %v12798_v57  ;;  %3664 = vmatpush1.bf16.msra.mxu1 %v12799_v60  ;;  %v11011_v57 = vcombine.high %v2918_v48, %v2922_v34  ;;  %v11014_v60 = vcombine.high %v2919_v44, %v2923_v30  ;;  %v12807_v34 = vld [vmem:[#allocation35_spill] sm:$0xff] }
 0x31b   :  { %3624 = vmatprep.subr.bf16.mxu0 %v12800_v61  ;;  %3665 = vmatprep.subr.bf16.mxu1 %v12801_v62  ;;  %v2910_v61 = vld [vmem:[#allocation14 + $0x200] sm:$0xff] }
 0x31c   :  { %v2914_v62 = vld [vmem:[#allocation14 + $0x220] sm:$0xff] }
 0x31e   :  { %3625 = vmatpush1.bf16.msra.mxu0 %v12802_v3  ;;  %3666 = vmatpush1.bf16.msra.mxu1 %v12803_v5  ;;  %v2911_v3 = vld [vmem:[#allocation14 + $0x208] sm:$0xff] }
 0x31f   :  { %3626 = vmatprep.subr.bf16.mxu0 %v10750_v28  ;;  %3667 = vmatprep.subr.bf16.mxu1 %v10756_v43  ;;  %v2971_v28 = vld [vmem:[#allocation14 + $0x3e8] sm:$0xff] }
 0x320   :  { %v10946_v43 = vcombine.low %v2967_v11, %v2971_v28  ;;  %v2915_v5 = vld [vmem:[#allocation14 + $0x228] sm:$0xff] }
 0x322   :  { %3627 = vmatpush1.bf16.msra.mxu0 %v10752_v8  ;;  %3668 = vmatpush1.bf16.msra.mxu1 %v10754_v41  ;;  %v10948_v8 = vcombine.high %v2967_v11, %v2971_v28  ;;  %v2962_v41 = vld [vmem:[#allocation14 + $0x3a0] sm:$0xff]  ;;  %v11023_v11 = vcombine.high %v2910_v61, %v2914_v62  ;;  %v11026_v28 = vcombine.high %v2911_v3, %v2915_v5 }
 0x323   :  { %3628 = vmatprep.subr.bf16.mxu0 %v10762_v12  ;;  %3669 = vmatprep.subr.bf16.mxu1 %v10768_v18  ;;  %v2958_v12 = vld [vmem:[#allocation14 + $0x380] sm:$0xff]  ;;  %v2963_v18 = vld [vmem:[#allocation14 + $0x3a8] sm:$0xff] }
 0x324   :  { %v10956_v14 = vcombine.low %v2958_v12, %v2962_v41 }
 0x326   :  { %3629 = vmatpush1.bf16.msra.mxu0 %v10764_v16  ;;  %3670 = vmatpush1.bf16.msra.mxu1 %v10766_v24  ;;  %v2959_v16 = vld [vmem:[#allocation14 + $0x388] sm:$0xff]  ;;  %v10954_v24 = vcombine.high %v2958_v12, %v2962_v41  ;;  %v11029_v12 = vcombine.low %v2910_v61, %v2914_v62  ;;  %v11033_v41 = vcombine.low %v2911_v3, %v2915_v5 }
 0x327   :  { %3630 = vmatprep.subr.bf16.mxu0 %v10942_v13  ;;  %3671 = vmatprep.subr.bf16.mxu1 %v10948_v8  ;;  %v10958_v15 = vcombine.low %v2959_v16, %v2963_v18  ;;  %v10960_v53 = vcombine.high %v2959_v16, %v2963_v18  ;;  %v2904_v16 = vld [vmem:[#allocation14 + $0x1d0] sm:$0xff] }
 0x328   :  { %v2908_v18 = vld [vmem:[#allocation14 + $0x1f0] sm:$0xff] }
 0x329   :  { %v11038_v22 = vcombine.low %v2904_v16, %v2908_v18  ;;  %v11040_v23 = vcombine.high %v2904_v16, %v2908_v18 }
 0x32a   :  { %3631 = vmatpush2.bf16.msra.mxu0 %v10944_v2  ;;  %3672 = vmatpush2.bf16.msra.mxu1 %v10946_v43 }
 0x32b   :  { %3632 = vmatprep.subr.bf16.mxu0 %v10954_v24  ;;  %3673 = vmatprep.subr.bf16.mxu1 %v10960_v53 }
 0x32e   :  { %3633 = vmatpush2.bf16.msra.mxu0 %v10956_v14  ;;  %3674 = vmatpush2.bf16.msra.mxu1 %v10958_v15 }
 0x32f   :  { %3634 = vmatprep.subr.bf16.mxu0 %v10966_v27  ;;  %3675 = vmatprep.subr.bf16.mxu1 %v10972_v39 }
 0x332   :  { %3635 = vmatpush2.bf16.msra.mxu0 %v10968_v32  ;;  %3676 = vmatpush2.bf16.msra.mxu1 %v10970_v36 }
 0x333   :  { %3636 = vmatprep.subr.bf16.mxu0 %v10978_v58  ;;  %3677 = vmatprep.subr.bf16.mxu1 %v10984_v45 }
 0x336   :  { %3637 = vmatpush2.bf16.msra.mxu0 %v10980_v25  ;;  %3678 = vmatpush2.bf16.msra.mxu1 %v10982_v29 }
 0x337   :  { %3638 = vmatprep.subr.bf16.mxu0 %v10987_v47  ;;  %3679 = vmatprep.subr.bf16.mxu1 %v10993_v59 }
 0x33a   :  { %3639 = vmatpush2.bf16.msra.mxu0 %v10991_v4  ;;  %3680 = vmatpush2.bf16.msra.mxu1 %v10997_v26 }
 0x33b   :  { %3640 = vmatprep.subr.bf16.mxu0 %v10999_v1  ;;  %3681 = vmatprep.subr.bf16.mxu1 %v11002_v9 }
 0x33e   :  { %3641 = vmatpush2.bf16.msra.mxu0 %v11005_v49  ;;  %3682 = vmatpush2.bf16.msra.mxu1 %v11009_v52 }
 0x33f   :  { %3642 = vmatprep.subr.bf16.mxu0 %v11011_v57  ;;  %3683 = vmatprep.subr.bf16.mxu1 %v11014_v60 }
 0x342   :  { %3643 = vmatpush2.bf16.msra.mxu0 %v11017_v6  ;;  %3684 = vmatpush2.bf16.msra.mxu1 %v11021_v7 }
 0x343   :  { %3644 = vmatprep.subr.bf16.mxu0 %v11023_v11  ;;  %3685 = vmatprep.subr.bf16.mxu1 %v11026_v28 }
 0x346   :  { %3645 = vmatpush2.bf16.msra.mxu0 %v11029_v12  ;;  %3686 = vmatpush2.bf16.msra.mxu1 %v11033_v41 }
 0x347   :  { %3696 = vmatprep.subr.bf16.mxu0 %v11040_v23  ;;  %3737 = vmatprep.subr.bf16.mxu1 %v11044_v55 }
 0x389   :  { %v2649_v56 = vpop.f32.mrf.mxu0  ;;  %v2690_v63 = vpop.f32.mrf.mxu1 }
 0x38a   :  { %v2786_v33 = vadd.f32 %v2649_v56, %v12804_v20  ;;  %v2788_v46 = vadd.f32 %v2690_v63, %v12805_v40 }
 0x38b   :  { %v2651_v38 = vpop.f32.mrf.mxu0  ;;  %v2692_v17 = vpop.f32.mrf.mxu1 }
 0x38c   :  { %v8889_v10 = vmul.f32 -1.442695, %v2786_v33  ;;  %v2787_v48 = vadd.f32 %v2651_v38, %v12806_v42  ;;  %v2789_v44 = vadd.f32 %v2692_v17, %v12807_v34 }
 0x38d   :  { %v2653_v30 = vpop.f32.mrf.mxu0  ;;  %v2694_v61 = vpop.f32.mrf.mxu1 }
 0x38e   :  { %9805 = vpow2.f32 %v8889_v10  ;;  %v8890_v62 = vmul.f32 -1.442695, %v2787_v48 }
 0x38f   :  { %v2654_v3 = vpop.f32.mrf.mxu0  ;;  %v2695_v5 = vpop.f32.mrf.mxu1 }
 0x390   :  { %9807 = vpow2.f32 %v8890_v62 }
 0x391   :  { %9809 = vtanh.f32 %v2789_v44 }
 0x39b   :  { %v9806_v16 = vpop.eup %9805 }
 0x39c   :  { %v2799_v18 = vadd.f32 1.0, %v9806_v16 }
 0x39d   :  { %v9808_v19 = vpop.eup %9807 }
 0x39e   :  { %9811 = vrcp.f32 %v2799_v18  ;;  %v2800_v31 = vadd.f32 1.0, %v9808_v19  ;;  %v9810_v56 = vpop.eup %9809  ;;  %v8891_v18 = vmul.f32 -1.442695, %v2788_v46 }
 0x3a0   :  { %9813 = vrcp.f32 %v2800_v31 }
 0x3ab   :  { %v9812_v63 = vpop.eup %9811 }
 0x3ac   :  { %v2810_v20 = vmul.f32 %v9812_v63, %v9810_v56 }
 0x3ad   :  { %v9814_v33 = vpop.eup %9813 }
 0x3ae   :  { %v2809_v40 = vmul.f32 %v9814_v33, %v10813_v35 }
 0x3b0   :  { %v11053_v38 = vadd.f32 %v2810_v20, %v2809_v40 }
 0x3c9   :  { %v2731_v17 = vpop.f32.mrf.mxu0  ;;  %v2772_v10 = vpop.f32.mrf.mxu1 }
 0x3ca   :  { %v2814_v42 = vadd.f32 %v2731_v17, %v10820_v0  ;;  %v2816_v35 = vadd.f32 %v2772_v10, %v10830_v37 }
 0x3cb   :  { %v2733_v48 = vpop.f32.mrf.mxu0  ;;  %v2774_v34 = vpop.f32.mrf.mxu1 }
 0x3cc   :  { %v8892_v30 = vmul.f32 -1.442695, %v2814_v42  ;;  %v2815_v44 = vadd.f32 %v2733_v48, %v10824_v50  ;;  %v8894_v19 = vmul.f32 -1.442695, %v2816_v35  ;;  %v2817_v56 = vadd.f32 %v2774_v34, %v10835_v51 }
 0x3cd   :  { %v2735_v61 = vpop.f32.mrf.mxu0  ;;  %v2776_v62 = vpop.f32.mrf.mxu1 }
 0x3ce   :  { %9815 = vpow2.f32 %v8892_v30  ;;  %v8893_v3 = vmul.f32 -1.442695, %v2815_v44 }
 0x3cf   :  { %v2736_v5 = vpop.f32.mrf.mxu0  ;;  %v2777_v16 = vpop.f32.mrf.mxu1 }
 0x3d0   :  { %9817 = vpow2.f32 %v8893_v3 }
 0x3d1   :  { %9819 = vpow2.f32 %v8891_v18 }
 0x3d2   :  { %9821 = vpow2.f32 %v8894_v19  ;;  %v2896_v19 = vld [vmem:[#allocation14 + $0x190] sm:$0xff] }
 0x3db   :  { %v9816_v31 = vpop.eup %9815 }
 0x3dc   :  { %v2827_v63 = vadd.f32 1.0, %v9816_v31  ;;  %v2900_v31 = vld [vmem:[#allocation14 + $0x1b0] sm:$0xff] }
 0x3dd   :  { %v9818_v20 = vpop.eup %9817 }
 0x3de   :  { %9823 = vrcp.f32 %v2827_v63  ;;  %v2828_v33 = vadd.f32 1.0, %v9818_v20  ;;  %v9820_v40 = vpop.eup %9819  ;;  %v2901_v63 = vld [vmem:[#allocation14 + $0x1b8] sm:$0xff] }
 0x3df   :  { %9825 = vtanh.f32 %v2817_v56  ;;  %v9822_v17 = vpop.eup %9821  ;;  %v2801_v30 = vadd.f32 1.0, %v9820_v40  ;;  %v2897_v56 = vld [vmem:[#allocation14 + $0x198] sm:$0xff]  ;;  %v11066_v40 = vcombine.high %v2896_v19, %v2900_v31 }
 0x3e0   :  { %9827 = vrcp.f32 %v2828_v33  ;;  %v2829_v10 = vadd.f32 1.0, %v9822_v17  ;;  %v2888_v33 = vld [vmem:[#allocation14 + $0x150] sm:$0xff]  ;;  %v11068_v17 = vcombine.high %v2897_v56, %v2901_v63 }
 0x3e1   :  { %9829 = vtanh.f32 %v11053_v38 }
 0x3e2   :  { %9831 = vrcp.f32 %v2801_v30  ;;  %12808 = vst [vmem:[#allocation46_spill] sm:$0xff] %v11068_v17  ;;  %v2893_v30 = vld [vmem:[#allocation14 + $0x178] sm:$0xff] }
 0x3e3   :  { %9833 = vrcp.f32 %v2829_v10  ;;  %v11076_v10 = vcombine.low %v2897_v56, %v2901_v63  ;;  %v2872_v56 = vld [vmem:[#allocation14 + $0xd0] sm:$0xff] }
 0x3e4   :  { %v2876_v63 = vld [vmem:[#allocation14 + $0xf0] sm:$0xff] }
 0x3e5   :  { %12810 = vst [vmem:[#allocation48_spill] sm:$0xff] %v11076_v10 }
 0x3eb   :  { %v9824_v42 = vpop.eup %9823 }
 0x3ec   :  { %v9826_v48 = vpop.eup %9825 }
 0x3ed   :  { %v9828_v44 = vpop.eup %9827  ;;  %v2838_v61 = vmul.f32 %v9826_v48, %v9824_v42  ;;  %v2892_v42 = vld [vmem:[#allocation14 + $0x170] sm:$0xff]  ;;  %v2889_v48 = vld [vmem:[#allocation14 + $0x158] sm:$0xff] }
 0x3ee   :  { %v2837_v46 = vmul.f32 %v9828_v44, %v10839_v21  ;;  %v9830_v62 = vpop.eup %9829  ;;  %v11074_v44 = vcombine.low %v2896_v19, %v2900_v31 }
 0x3ef   :  { %v9832_v3 = vpop.eup %9831 }
 0x3f0   :  { %v11061_v34 = vadd.f32 %v2838_v61, %v2837_v46  ;;  %v9834_v5 = vpop.eup %9833  ;;  %v2813_v35 = vmul.f32 %v9832_v3, %v9830_v62  ;;  %12809 = vst [vmem:[#allocation47_spill] sm:$0xff] %v11074_v44  ;;  %v11078_v46 = vcombine.high %v2888_v33, %v2892_v42  ;;  %v11080_v61 = vcombine.high %v2889_v48, %v2893_v30  ;;  %v2880_v62 = vld [vmem:[#allocation14 + $0x110] sm:$0xff] }
 0x3f1   :  { %v2884_v3 = vld [vmem:[#allocation14 + $0x130] sm:$0xff] }
 0x3f2   :  { %9835 = vtanh.f32 %v11061_v34  ;;  %v11064_v20 = vpack.c.bf16 %v2813_v35, %v2813_v35  ;;  %12811 = vst [vmem:[#allocation49_spill] sm:$0xff] %v11078_v46  ;;  %12812 = vst [vmem:[#allocation50_spill] sm:$0xff] %v11080_v61  ;;  %v11086_v35 = vcombine.low %v2888_v33, %v2892_v42  ;;  %v11092_v19 = vcombine.high %v2880_v62, %v2884_v3 }
 0x3f3   :  { %v11098_v33 = vcombine.low %v2880_v62, %v2884_v3  ;;  %v11110_v62 = vcombine.low %v2872_v56, %v2876_v63 }
 0x3f4   :  { %12813 = vst [vmem:[#allocation51_spill] sm:$0xff] %v11086_v35  ;;  %12815 = vst [vmem:[#allocation53_spill] sm:$0xff] %v11092_v19 }
 0x3f5   :  { %12817 = vst [vmem:[#allocation55_spill] sm:$0xff] %v11098_v33  ;;  %12821 = vst [vmem:[#allocation59_spill] sm:$0xff] %v11110_v62 }
 0x3ff   :  { %v9836_v16 = vpop.eup %9835 }
 0x400   :  { %v2841_v18 = vmul.f32 %v9836_v16, %v9834_v5  ;;  %v2881_v5 = vld [vmem:[#allocation14 + $0x118] sm:$0xff] }
 0x401   :  { %v2885_v16 = vld [vmem:[#allocation14 + $0x138] sm:$0xff] }
 0x402   :  { %v2842_v21 = vpack.c.bf16 %v2841_v18, %v2841_v18  ;;  %v11088_v18 = vcombine.low %v2889_v48, %v2893_v30  ;;  %v11094_v31 = vcombine.high %v2881_v5, %v2885_v16  ;;  %v11100_v42 = vcombine.low %v2881_v5, %v2885_v16 }
 0x403   :  { %v11104_v48 = vcombine.high %v2872_v56, %v2876_v63 }
 0x404   :  { %2844 = vst [vmem:[#allocation3 + $0x4] sm:$0xf] %v2842_v21  ;;  %3646 = vmatprep.mubr.bf16.mxu0 %v2842_v21  ;;  %3687 = vmatprep.mubr.bf16.mxu1 %v2842_v21  ;;  %12814 = vst [vmem:[#allocation52_spill] sm:$0xff] %v11088_v18 }
 0x405   :  { %3647 = vmatmul.mubr.bf16.vlgmr.msra.gmra.mxu0 %v11064_v20  ;;  %3688 = vmatmul.mubr.bf16.vlgmr.msra.gmra.mxu1 %v11064_v20  ;;  %12816 = vst [vmem:[#allocation54_spill] sm:$0xff] %v11094_v31  ;;  %12818 = vst [vmem:[#allocation56_spill] sm:$0xff] %v11100_v42 }
 0x406   :  { %3697 = vmatpush1.bf16.msra.mxu0 %v11038_v22  ;;  %3738 = vmatpush1.bf16.msra.mxu1 %v11042_v54  ;;  %12819 = vst [vmem:[#allocation57_spill] sm:$0xff] %v11104_v48 }
 0x407   :  { %3728 = vmatprep.mubr.bf16.mxu0 %v2842_v21  ;;  %3769 = vmatprep.mubr.bf16.mxu1 %v2842_v21  ;;  %v2873_v21 = vld [vmem:[#allocation14 + $0xd8] sm:$0xff] }
 0x408   :  { %3698 = vmatprep.subr.bf16.mxu0 %v11066_v40  ;;  %3739 = vmatprep.subr.bf16.mxu1 %v11068_v17  ;;  %v2877_v17 = vld [vmem:[#allocation14 + $0xf8] sm:$0xff] }
 0x409   :  { %v11106_v30 = vcombine.high %v2873_v21, %v2877_v17  ;;  %v11112_v3 = vcombine.low %v2873_v21, %v2877_v17 }
 0x40a   :  { %3699 = vmatpush1.bf16.msra.mxu0 %v11074_v44  ;;  %3740 = vmatpush1.bf16.msra.mxu1 %v11076_v10  ;;  %v2865_v10 = vld [vmem:[#allocation14 + $0x98] sm:$0xff] }
 0x40b   :  { %3700 = vmatprep.subr.bf16.mxu0 %v11078_v46  ;;  %3741 = vmatprep.subr.bf16.mxu1 %v11080_v61  ;;  %12820 = vst [vmem:[#allocation58_spill] sm:$0xff] %v11106_v30  ;;  %v2864_v61 = vld [vmem:[#allocation14 + $0x90] sm:$0xff]  ;;  %v2869_v44 = vld [vmem:[#allocation14 + $0xb8] sm:$0xff]  ;;  %12822 = vst [vmem:[#allocation60_spill] sm:$0xff] %v11112_v3 }
 0x40c   :  { %v2868_v46 = vld [vmem:[#allocation14 + $0xb0] sm:$0xff]  ;;  %v11118_v16 = vcombine.high %v2865_v10, %v2869_v44  ;;  %v11124_v17 = vcombine.low %v2865_v10, %v2869_v44 }
 0x40d   :  { %v11116_v5 = vcombine.high %v2864_v61, %v2868_v46  ;;  %v11122_v56 = vcombine.low %v2864_v61, %v2868_v46 }
 0x40e   :  { %3701 = vmatpush1.bf16.msra.mxu0 %v11086_v35  ;;  %3742 = vmatpush1.bf16.msra.mxu1 %v11088_v18  ;;  %12824 = vst [vmem:[#allocation62_spill] sm:$0xff] %v11118_v16  ;;  %v2857_v18 = vld [vmem:[#allocation14 + $0x58] sm:$0xff]  ;;  %12826 = vst [vmem:[#allocation64_spill] sm:$0xff] %v11124_v17 }
 0x40f   :  { %3702 = vmatprep.subr.bf16.mxu0 %v11092_v19  ;;  %3743 = vmatprep.subr.bf16.mxu1 %v11094_v31  ;;  %12823 = vst [vmem:[#allocation61_spill] sm:$0xff] %v11116_v5  ;;  %v2856_v31 = vld [vmem:[#allocation14 + $0x50] sm:$0xff]  ;;  %v2861_v35 = vld [vmem:[#allocation14 + $0x78] sm:$0xff]  ;;  %12825 = vst [vmem:[#allocation63_spill] sm:$0xff] %v11122_v56 }
 0x410   :  { %v2860_v19 = vld [vmem:[#allocation14 + $0x70] sm:$0xff]  ;;  %v11130_v21 = vcombine.high %v2857_v18, %v2861_v35  ;;  %v11136_v44 = vcombine.low %v2857_v18, %v2861_v35 }
 0x411   :  { %v11128_v63 = vcombine.high %v2856_v31, %v2860_v19  ;;  %v11134_v46 = vcombine.low %v2856_v31, %v2860_v19 }
 0x412   :  { %3703 = vmatpush1.bf16.msra.mxu0 %v11098_v33  ;;  %3744 = vmatpush1.bf16.msra.mxu1 %v11100_v42  ;;  %12828 = vst [vmem:[#allocation66_spill] sm:$0xff] %v11130_v21  ;;  %v2849_v42 = vld [vmem:[#allocation14 + $0x18] sm:$0xff]  ;;  %12830 = vst [vmem:[#allocation68_spill] sm:$0xff] %v11136_v44 }
 0x413   :  { %3704 = vmatprep.subr.bf16.mxu0 %v11104_v48  ;;  %3745 = vmatprep.subr.bf16.mxu1 %v11106_v30  ;;  %12827 = vst [vmem:[#allocation65_spill] sm:$0xff] %v11128_v63  ;;  %v2848_v30 = vld [vmem:[#allocation14 + $0x10] sm:$0xff]  ;;  %v2853_v33 = vld [vmem:[#allocation14 + $0x38] sm:$0xff]  ;;  %12829 = vst [vmem:[#allocation67_spill] sm:$0xff] %v11134_v46 }
 0x414   :  { %v2852_v48 = vld [vmem:[#allocation14 + $0x30] sm:$0xff]  ;;  %v11142_v61 = vcombine.high %v2849_v42, %v2853_v33  ;;  %v11148_v35 = vcombine.low %v2849_v42, %v2853_v33 }
 0x415   :  { %v11140_v10 = vcombine.high %v2848_v30, %v2852_v48  ;;  %v11146_v19 = vcombine.low %v2848_v30, %v2852_v48 }
 0x416   :  { %3705 = vmatpush1.bf16.msra.mxu0 %v11110_v62  ;;  %3746 = vmatpush1.bf16.msra.mxu1 %v11112_v3  ;;  %12832 = vst [vmem:[#allocation70_spill] sm:$0xff] %v11142_v61  ;;  %v2969_v3 = vld [vmem:[#allocation14 + $0x3d8] sm:$0xff]  ;;  %12834 = vst [vmem:[#allocation72_spill] sm:$0xff] %v11148_v35 }
 0x417   :  { %3706 = vmatprep.subr.bf16.mxu0 %v11116_v5  ;;  %3747 = vmatprep.subr.bf16.mxu1 %v11118_v16  ;;  %12831 = vst [vmem:[#allocation69_spill] sm:$0xff] %v11140_v10  ;;  %v2968_v16 = vld [vmem:[#allocation14 + $0x3d0] sm:$0xff]  ;;  %v2973_v62 = vld [vmem:[#allocation14 + $0x3f8] sm:$0xff]  ;;  %12833 = vst [vmem:[#allocation71_spill] sm:$0xff] %v11146_v19 }
 0x418   :  { %v2972_v5 = vld [vmem:[#allocation14 + $0x3f0] sm:$0xff]  ;;  %v11154_v31 = vcombine.high %v2969_v3, %v2973_v62  ;;  %v11160_v33 = vcombine.low %v2969_v3, %v2973_v62 }
 0x419   :  { %v11152_v18 = vcombine.high %v2968_v16, %v2972_v5  ;;  %v11158_v48 = vcombine.low %v2968_v16, %v2972_v5 }
 0x41a   :  { %3707 = vmatpush1.bf16.msra.mxu0 %v11122_v56  ;;  %3748 = vmatpush1.bf16.msra.mxu1 %v11124_v17  ;;  %12836 = vst [vmem:[#allocation74_spill] sm:$0xff] %v11154_v31  ;;  %v2961_v17 = vld [vmem:[#allocation14 + $0x398] sm:$0xff]  ;;  %12838 = vst [vmem:[#allocation76_spill] sm:$0xff] %v11160_v33 }
 0x41b   :  { %3708 = vmatprep.subr.bf16.mxu0 %v11128_v63  ;;  %3749 = vmatprep.subr.bf16.mxu1 %v11130_v21  ;;  %12835 = vst [vmem:[#allocation73_spill] sm:$0xff] %v11152_v18  ;;  %v2960_v21 = vld [vmem:[#allocation14 + $0x390] sm:$0xff]  ;;  %v2965_v56 = vld [vmem:[#allocation14 + $0x3b8] sm:$0xff]  ;;  %12837 = vst [vmem:[#allocation75_spill] sm:$0xff] %v11158_v48 }
 0x41c   :  { %v2964_v63 = vld [vmem:[#allocation14 + $0x3b0] sm:$0xff]  ;;  %v11166_v30 = vcombine.high %v2961_v17, %v2965_v56  ;;  %v11172_v62 = vcombine.low %v2961_v17, %v2965_v56 }
 0x41d   :  { %v11164_v42 = vcombine.high %v2960_v21, %v2964_v63  ;;  %v11170_v5 = vcombine.low %v2960_v21, %v2964_v63 }
 0x41e   :  { %3709 = vmatpush1.bf16.msra.mxu0 %v11134_v46  ;;  %3750 = vmatpush1.bf16.msra.mxu1 %v11136_v44  ;;  %12840 = vst [vmem:[#allocation78_spill] sm:$0xff] %v11166_v30  ;;  %v2953_v44 = vld [vmem:[#allocation14 + $0x358] sm:$0xff]  ;;  %12842 = vst [vmem:[#allocation80_spill] sm:$0xff] %v11172_v62 }
 0x41f   :  { %3710 = vmatprep.subr.bf16.mxu0 %v11140_v10  ;;  %3751 = vmatprep.subr.bf16.mxu1 %v11142_v61  ;;  %12839 = vst [vmem:[#allocation77_spill] sm:$0xff] %v11164_v42  ;;  %v2952_v61 = vld [vmem:[#allocation14 + $0x350] sm:$0xff]  ;;  %v2957_v46 = vld [vmem:[#allocation14 + $0x378] sm:$0xff]  ;;  %12841 = vst [vmem:[#allocation79_spill] sm:$0xff] %v11170_v5 }
 0x420   :  { %v2956_v10 = vld [vmem:[#allocation14 + $0x370] sm:$0xff]  ;;  %v11178_v16 = vcombine.high %v2953_v44, %v2957_v46  ;;  %v11184_v56 = vcombine.low %v2953_v44, %v2957_v46 }
 0x421   :  { %v11176_v3 = vcombine.high %v2952_v61, %v2956_v10  ;;  %v11182_v63 = vcombine.low %v2952_v61, %v2956_v10 }
 0x422   :  { %3711 = vmatpush1.bf16.msra.mxu0 %v11146_v19  ;;  %3752 = vmatpush1.bf16.msra.mxu1 %v11148_v35  ;;  %12844 = vst [vmem:[#allocation82_spill] sm:$0xff] %v11178_v16  ;;  %v2945_v35 = vld [vmem:[#allocation14 + $0x318] sm:$0xff]  ;;  %12846 = vst [vmem:[#allocation84_spill] sm:$0xff] %v11184_v56 }
 0x423   :  { %3712 = vmatprep.subr.bf16.mxu0 %v11152_v18  ;;  %3753 = vmatprep.subr.bf16.mxu1 %v11154_v31  ;;  %12843 = vst [vmem:[#allocation81_spill] sm:$0xff] %v11176_v3  ;;  %v2944_v31 = vld [vmem:[#allocation14 + $0x310] sm:$0xff]  ;;  %v2949_v19 = vld [vmem:[#allocation14 + $0x338] sm:$0xff]  ;;  %12845 = vst [vmem:[#allocation83_spill] sm:$0xff] %v11182_v63 }
 0x424   :  { %v2948_v18 = vld [vmem:[#allocation14 + $0x330] sm:$0xff]  ;;  %v11190_v21 = vcombine.high %v2945_v35, %v2949_v19  ;;  %v11196_v46 = vcombine.low %v2945_v35, %v2949_v19 }
 0x425   :  { %v11188_v17 = vcombine.high %v2944_v31, %v2948_v18  ;;  %v11194_v10 = vcombine.low %v2944_v31, %v2948_v18 }
 0x426   :  { %3713 = vmatpush2.bf16.msra.mxu0 %v11158_v48  ;;  %3754 = vmatpush2.bf16.msra.mxu1 %v11160_v33  ;;  %12848 = vst [vmem:[#allocation86_spill] sm:$0xff] %v11190_v21  ;;  %v2937_v33 = vld [vmem:[#allocation14 + $0x2d8] sm:$0xff]  ;;  %12850 = vst [vmem:[#allocation88_spill] sm:$0xff] %v11196_v46 }
 0x427   :  { %3714 = vmatprep.subr.bf16.mxu0 %v11164_v42  ;;  %3755 = vmatprep.subr.bf16.mxu1 %v11166_v30  ;;  %12847 = vst [vmem:[#allocation85_spill] sm:$0xff] %v11188_v17  ;;  %v2936_v30 = vld [vmem:[#allocation14 + $0x2d0] sm:$0xff]  ;;  %v2941_v48 = vld [vmem:[#allocation14 + $0x2f8] sm:$0xff]  ;;  %12849 = vst [vmem:[#allocation87_spill] sm:$0xff] %v11194_v10 }
 0x428   :  { %v2940_v42 = vld [vmem:[#allocation14 + $0x2f0] sm:$0xff]  ;;  %v11202_v61 = vcombine.high %v2937_v33, %v2941_v48  ;;  %v11208_v19 = vcombine.low %v2937_v33, %v2941_v48 }
 0x429   :  { %v11200_v44 = vcombine.high %v2936_v30, %v2940_v42  ;;  %v11206_v18 = vcombine.low %v2936_v30, %v2940_v42 }
 0x42a   :  { %3715 = vmatpush2.bf16.msra.mxu0 %v11170_v5  ;;  %3756 = vmatpush2.bf16.msra.mxu1 %v11172_v62  ;;  %12852 = vst [vmem:[#allocation90_spill] sm:$0xff] %v11202_v61  ;;  %v2929_v62 = vld [vmem:[#allocation14 + $0x298] sm:$0xff] }
 0x42b   :  { %3716 = vmatprep.subr.bf16.mxu0 %v11176_v3  ;;  %3757 = vmatprep.subr.bf16.mxu1 %v11178_v16  ;;  %12851 = vst [vmem:[#allocation89_spill] sm:$0xff] %v11200_v44  ;;  %v2928_v16 = vld [vmem:[#allocation14 + $0x290] sm:$0xff]  ;;  %v2933_v5 = vld [vmem:[#allocation14 + $0x2b8] sm:$0xff] }
 0x42c   :  { %v2932_v3 = vld [vmem:[#allocation14 + $0x2b0] sm:$0xff]  ;;  %v11214_v31 = vcombine.high %v2929_v62, %v2933_v5  ;;  %v11220_v48 = vcombine.low %v2929_v62, %v2933_v5 }
 0x42d   :  { %v11212_v35 = vcombine.high %v2928_v16, %v2932_v3  ;;  %v11218_v42 = vcombine.low %v2928_v16, %v2932_v3 }
 0x42e   :  { %3717 = vmatpush2.bf16.msra.mxu0 %v11182_v63  ;;  %3758 = vmatpush2.bf16.msra.mxu1 %v11184_v56  ;;  %12853 = vst [vmem:[#allocation91_spill] sm:$0xff] %v11214_v31  ;;  %v2921_v56 = vld [vmem:[#allocation14 + $0x258] sm:$0xff] }
 0x42f   :  { %3718 = vmatprep.subr.bf16.mxu0 %v11188_v17  ;;  %3759 = vmatprep.subr.bf16.mxu1 %v11190_v21  ;;  %v2920_v21 = vld [vmem:[#allocation14 + $0x250] sm:$0xff]  ;;  %v2925_v63 = vld [vmem:[#allocation14 + $0x278] sm:$0xff]  ;;  %12854 = vst [vmem:[#allocation92_spill] sm:$0xff] %v11218_v42 }
 0x430   :  { %v2924_v17 = vld [vmem:[#allocation14 + $0x270] sm:$0xff]  ;;  %v11226_v30 = vcombine.high %v2921_v56, %v2925_v63  ;;  %v11232_v5 = vcombine.low %v2921_v56, %v2925_v63  ;;  %v3901_v63 = vld [vmem:[#allocation14 + $0x1c0] sm:$0xff] }
 0x431   :  { %v11224_v33 = vcombine.high %v2920_v21, %v2924_v17  ;;  %v11230_v3 = vcombine.low %v2920_v21, %v2924_v17  ;;  %v3905_v56 = vld [vmem:[#allocation14 + $0x1e0] sm:$0xff]  ;;  %v3902_v17 = vld [vmem:[#allocation14 + $0x1c8] sm:$0xff] }
 0x432   :  { %3719 = vmatpush2.bf16.msra.mxu0 %v11194_v10  ;;  %3760 = vmatpush2.bf16.msra.mxu1 %v11196_v46  ;;  %v2913_v46 = vld [vmem:[#allocation14 + $0x218] sm:$0xff]  ;;  %12855 = vst [vmem:[#allocation93_spill] sm:$0xff] %v11232_v5  ;;  %v11252_v21 = vcombine.low %v3901_v63, %v3905_v56 }
 0x433   :  { %3720 = vmatprep.subr.bf16.mxu0 %v11200_v44  ;;  %3761 = vmatprep.subr.bf16.mxu1 %v11202_v61  ;;  %v2912_v61 = vld [vmem:[#allocation14 + $0x210] sm:$0xff]  ;;  %v2917_v10 = vld [vmem:[#allocation14 + $0x238] sm:$0xff] }
 0x434   :  { %v2916_v44 = vld [vmem:[#allocation14 + $0x230] sm:$0xff]  ;;  %v11238_v16 = vcombine.high %v2913_v46, %v2917_v10  ;;  %12860 = vst [vmem:[#allocation99_spill] sm:$0xff] %v11252_v21 }
 0x435   :  { %v11236_v62 = vcombine.high %v2912_v61, %v2916_v44 }
 0x436   :  { %3721 = vmatpush2.bf16.msra.mxu0 %v11206_v18  ;;  %3762 = vmatpush2.bf16.msra.mxu1 %v11208_v19  ;;  %12857 = vst [vmem:[#allocation95_spill] sm:$0xff] %v11238_v16 }
 0x437   :  { %3722 = vmatprep.subr.bf16.mxu0 %v11212_v35  ;;  %3763 = vmatprep.subr.bf16.mxu1 %v11214_v31  ;;  %12856 = vst [vmem:[#allocation94_spill] sm:$0xff] %v11236_v62  ;;  %v11242_v31 = vcombine.low %v2912_v61, %v2916_v44  ;;  %v11254_v44 = vcombine.high %v3901_v63, %v3905_v56  ;;  %v3897_v61 = vld [vmem:[#allocation14 + $0x1a0] sm:$0xff] }
 0x439   :  { %12858 = vst [vmem:[#allocation96_spill] sm:$0xff] %v11242_v31  ;;  %12861 = vst [vmem:[#allocation101_spill] sm:$0xff] %v11254_v44 }
 0x43a   :  { %3723 = vmatpush2.bf16.msra.mxu0 %v11218_v42  ;;  %3764 = vmatpush2.bf16.msra.mxu1 %v11220_v48  ;;  %v11244_v42 = vcombine.low %v2913_v46, %v2917_v10  ;;  %v3906_v10 = vld [vmem:[#allocation14 + $0x1e8] sm:$0xff]  ;;  %v3893_v46 = vld [vmem:[#allocation14 + $0x180] sm:$0xff] }
 0x43b   :  { %3724 = vmatprep.subr.bf16.mxu0 %v11224_v33  ;;  %3765 = vmatprep.subr.bf16.mxu1 %v11226_v30  ;;  %v11267_v63 = vcombine.low %v3893_v46, %v3897_v61 }
 0x43c   :  { %12859 = vst [vmem:[#allocation97_spill] sm:$0xff] %v11244_v42 }
 0x43d   :  { %12865 = vst [vmem:[#allocation103_spill] sm:$0xff] %v11267_v63 }
 0x43e   :  { %3725 = vmatpush2.bf16.msra.mxu0 %v11230_v3  ;;  %3766 = vmatpush2.bf16.msra.mxu1 %v11232_v5  ;;  %v3898_v5 = vld [vmem:[#allocation14 + $0x1a8] sm:$0xff] }
 0x43f   :  { %3726 = vmatprep.subr.bf16.mxu0 %v11236_v62  ;;  %3767 = vmatprep.subr.bf16.mxu1 %v11238_v16  ;;  %v11256_v62 = vcombine.low %v3902_v17, %v3906_v10  ;;  %v11258_v16 = vcombine.high %v3902_v17, %v3906_v10  ;;  %v3885_v17 = vld [vmem:[#allocation14 + $0x140] sm:$0xff] }
 0x440   :  { %v3889_v10 = vld [vmem:[#allocation14 + $0x160] sm:$0xff] }
 0x441   :  { %12862 = vst [vmem:[#allocation98_spill] sm:$0xff] %v11256_v62  ;;  %12863 = vst [vmem:[#allocation100_spill] sm:$0xff] %v11258_v16 }
 0x442   :  { %3727 = vmatpush2.bf16.msra.mxu0 %v11242_v31  ;;  %3768 = vmatpush2.bf16.msra.mxu1 %v11244_v42  ;;  %v11260_v31 = vcombine.high %v3893_v46, %v3897_v61  ;;  %v3894_v42 = vld [vmem:[#allocation14 + $0x188] sm:$0xff]  ;;  %v11278_v46 = vcombine.low %v3885_v17, %v3889_v10 }
 0x443   :  { %4613 = vmatprep.subr.bf16.mxu0 %v11254_v44  ;;  %4654 = vmatprep.subr.bf16.mxu1 %v11258_v16  ;;  %v11271_v56 = vcombine.low %v3894_v42, %v3898_v5  ;;  %v3886_v44 = vld [vmem:[#allocation14 + $0x148] sm:$0xff]  ;;  %v11276_v16 = vcombine.high %v3885_v17, %v3889_v10 }
 0x444   :  { %12868 = vst [vmem:[#allocation108_spill] sm:$0xff] %v11278_v46 }
 0x445   :  { %3729 = vmatmul.mubr.bf16.vlgmr.msra.gmra.mxu0 %v11064_v20  ;;  %3770 = vmatmul.mubr.bf16.vlgmr.msra.gmra.mxu1 %v11064_v20  ;;  %v11263_v20 = vcombine.high %v3894_v42, %v3898_v5  ;;  %12866 = vst [vmem:[#allocation104_spill] sm:$0xff] %v11271_v56  ;;  %12867 = vst [vmem:[#allocation105_spill] sm:$0xff] %v11276_v16  ;;  %v3877_v42 = vld [vmem:[#allocation14 + $0x100] sm:$0xff] }
 0x446   :  { %4614 = vmatpush1.bf16.msra.mxu0 %v11252_v21  ;;  %4655 = vmatpush1.bf16.msra.mxu1 %v11256_v62  ;;  %v3890_v21 = vld [vmem:[#allocation14 + $0x168] sm:$0xff]  ;;  %v3881_v5 = vld [vmem:[#allocation14 + $0x120] sm:$0xff] }
 0x447   :  { %12864 = vst [vmem:[#allocation102_spill] sm:$0xff] %v11263_v20  ;;  %4615 = vmatprep.subr.bf16.mxu0 %v11260_v31  ;;  %4656 = vmatprep.subr.bf16.mxu1 %v11263_v20  ;;  %v11280_v61 = vcombine.low %v3886_v44, %v3890_v21  ;;  %v11282_v62 = vcombine.high %v3886_v44, %v3890_v21  ;;  %v3882_v20 = vld [vmem:[#allocation14 + $0x128] sm:$0xff]  ;;  %v3869_v44 = vld [vmem:[#allocation14 + $0xc0] sm:$0xff] }
 0x448   :  { %v11290_v17 = vcombine.low %v3877_v42, %v3881_v5 }
 0x449   :  { %12869 = vst [vmem:[#allocation106_spill] sm:$0xff] %v11280_v61  ;;  %12870 = vst [vmem:[#allocation107_spill] sm:$0xff] %v11282_v62 }
 0x44a   :  { %4616 = vmatpush1.bf16.msra.mxu0 %v11267_v63  ;;  %4657 = vmatpush1.bf16.msra.mxu1 %v11271_v56  ;;  %v3878_v56 = vld [vmem:[#allocation14 + $0x108] sm:$0xff]  ;;  %v11288_v63 = vcombine.high %v3877_v42, %v3881_v5  ;;  %12872 = vst [vmem:[#allocation112_spill] sm:$0xff] %v11290_v17 }
 0x44b   :  { %4617 = vmatprep.subr.bf16.mxu0 %v11276_v16  ;;  %4658 = vmatprep.subr.bf16.mxu1 %v11282_v62  ;;  %v11292_v10 = vcombine.low %v3878_v56, %v3882_v20  ;;  %v11294_v21 = vcombine.high %v3878_v56, %v3882_v20  ;;  %v3870_v62 = vld [vmem:[#allocation14 + $0xc8] sm:$0xff]  ;;  %v3861_v56 = vld [vmem:[#allocation14 + $0x80] sm:$0xff] }
 0x44c   :  { %12871 = vst [vmem:[#allocation109_spill] sm:$0xff] %v11288_v63  ;;  %v3874_v16 = vld [vmem:[#allocation14 + $0xe8] sm:$0xff] }
 0x44d   :  { %12873 = vst [vmem:[#allocation110_spill] sm:$0xff] %v11292_v10  ;;  %12874 = vst [vmem:[#allocation111_spill] sm:$0xff] %v11294_v21  ;;  %v11304_v5 = vcombine.low %v3870_v62, %v3874_v16  ;;  %v11306_v20 = vcombine.high %v3870_v62, %v3874_v16  ;;  %v3853_v16 = vld [vmem:[#allocation14 + $0x40] sm:$0xff] }
 0x44e   :  { %4618 = vmatpush1.bf16.msra.mxu0 %v11278_v46  ;;  %4659 = vmatpush1.bf16.msra.mxu1 %v11280_v61  ;;  %v3873_v46 = vld [vmem:[#allocation14 + $0xe0] sm:$0xff] }
 0x44f   :  { %4619 = vmatprep.subr.bf16.mxu0 %v11288_v63  ;;  %4660 = vmatprep.subr.bf16.mxu1 %v11294_v21  ;;  %v11300_v61 = vcombine.high %v3869_v44, %v3873_v46  ;;  %v11302_v42 = vcombine.low %v3869_v44, %v3873_v46  ;;  %12877 = vst [vmem:[#allocation114_spill] sm:$0xff] %v11304_v5  ;;  %12878 = vst [vmem:[#allocation115_spill] sm:$0xff] %v11306_v20  ;;  %v3862_v21 = vld [vmem:[#allocation14 + $0x88] sm:$0xff] }
 0x450   :  { %v3866_v63 = vld [vmem:[#allocation14 + $0xa8] sm:$0xff] }
 0x451   :  { %12875 = vst [vmem:[#allocation113_spill] sm:$0xff] %v11300_v61  ;;  %12876 = vst [vmem:[#allocation116_spill] sm:$0xff] %v11302_v42  ;;  %v11316_v44 = vcombine.low %v3862_v21, %v3866_v63  ;;  %v11318_v62 = vcombine.high %v3862_v21, %v3866_v63  ;;  %v3845_v21 = vld [vmem:[#allocation14] sm:$0xff] }
 0x452   :  { %4620 = vmatpush1.bf16.msra.mxu0 %v11290_v17  ;;  %4661 = vmatpush1.bf16.msra.mxu1 %v11292_v10  ;;  %v3865_v17 = vld [vmem:[#allocation14 + $0xa0] sm:$0xff] }
 0x453   :  { %4621 = vmatprep.subr.bf16.mxu0 %v11300_v61  ;;  %4662 = vmatprep.subr.bf16.mxu1 %v11306_v20  ;;  %v11312_v10 = vcombine.high %v3861_v56, %v3865_v17  ;;  %v11314_v46 = vcombine.low %v3861_v56, %v3865_v17  ;;  %12881 = vst [vmem:[#allocation118_spill] sm:$0xff] %v11316_v44  ;;  %12882 = vst [vmem:[#allocation119_spill] sm:$0xff] %v11318_v62  ;;  %v3854_v20 = vld [vmem:[#allocation14 + $0x48] sm:$0xff] }
 0x454   :  { %v3858_v61 = vld [vmem:[#allocation14 + $0x68] sm:$0xff] }
 0x455   :  { %12879 = vst [vmem:[#allocation117_spill] sm:$0xff] %v11312_v10  ;;  %12880 = vst [vmem:[#allocation120_spill] sm:$0xff] %v11314_v46  ;;  %v11328_v56 = vcombine.low %v3854_v20, %v3858_v61  ;;  %v11330_v63 = vcombine.high %v3854_v20, %v3858_v61 }
 0x456   :  { %4622 = vmatpush1.bf16.msra.mxu0 %v11302_v42  ;;  %4663 = vmatpush1.bf16.msra.mxu1 %v11304_v5  ;;  %v3857_v42 = vld [vmem:[#allocation14 + $0x60] sm:$0xff] }
 0x457   :  { %4623 = vmatprep.subr.bf16.mxu0 %v11312_v10  ;;  %4664 = vmatprep.subr.bf16.mxu1 %v11318_v62  ;;  %v11324_v5 = vcombine.high %v3853_v16, %v3857_v42  ;;  %v11326_v17 = vcombine.low %v3853_v16, %v3857_v42  ;;  %v3846_v62 = vld [vmem:[#allocation14 + $0x8] sm:$0xff] }
 0x458   :  { %v3850_v10 = vld [vmem:[#allocation14 + $0x28] sm:$0xff] }
 0x459   :  { %v11340_v16 = vcombine.low %v3846_v62, %v3850_v10  ;;  %v11342_v61 = vcombine.high %v3846_v62, %v3850_v10 }
 0x45a   :  { %4624 = vmatpush1.bf16.msra.mxu0 %v11314_v46  ;;  %4665 = vmatpush1.bf16.msra.mxu1 %v11316_v44  ;;  %v3849_v46 = vld [vmem:[#allocation14 + $0x20] sm:$0xff] }
 0x45b   :  { %4625 = vmatprep.subr.bf16.mxu0 %v11324_v5  ;;  %4666 = vmatprep.subr.bf16.mxu1 %v11330_v63  ;;  %v11336_v44 = vcombine.high %v3845_v21, %v3849_v46  ;;  %v11338_v42 = vcombine.low %v3845_v21, %v3849_v46 }
 0x45e   :  { %4626 = vmatpush1.bf16.msra.mxu0 %v11326_v17  ;;  %4667 = vmatpush1.bf16.msra.mxu1 %v11328_v56 }
 0x45f   :  { %4627 = vmatprep.subr.bf16.mxu0 %v11336_v44  ;;  %4668 = vmatprep.subr.bf16.mxu1 %v11342_v61 }
 0x462   :  { %4628 = vmatpush1.bf16.msra.mxu0 %v11338_v42  ;;  %4669 = vmatpush1.bf16.msra.mxu1 %v11340_v16 }
 0x463   :  { %4629 = vmatprep.subr.bf16.mxu0 %v10942_v13  ;;  %4670 = vmatprep.subr.bf16.mxu1 %v10948_v8 }
 0x466   :  { %4630 = vmatpush2.bf16.msra.mxu0 %v10944_v2  ;;  %4671 = vmatpush2.bf16.msra.mxu1 %v10946_v43  ;;  %v12883_v43 = vld [vmem:[#allocation24_spill] sm:$0xff] }
 0x467   :  { %4631 = vmatprep.subr.bf16.mxu0 %v10954_v24  ;;  %4672 = vmatprep.subr.bf16.mxu1 %v10960_v53  ;;  %v12884_v24 = vld [vmem:[#allocation36_spill] sm:$0xff] }
 0x46a   :  { %4632 = vmatpush2.bf16.msra.mxu0 %v10956_v14  ;;  %4673 = vmatpush2.bf16.msra.mxu1 %v10958_v15 }
 0x46b   :  { %4633 = vmatprep.subr.bf16.mxu0 %v10966_v27  ;;  %4674 = vmatprep.subr.bf16.mxu1 %v10972_v39  ;;  %v12886_v39 = vld [vmem:[#allocation37_spill] sm:$0xff] }
 0x46e   :  { %4634 = vmatpush2.bf16.msra.mxu0 %v10968_v32  ;;  %4675 = vmatpush2.bf16.msra.mxu1 %v10970_v36  ;;  %v12885_v32 = vld [vmem:[#allocation25_spill] sm:$0xff] }
 0x46f   :  { %4635 = vmatprep.subr.bf16.mxu0 %v10978_v58  ;;  %4676 = vmatprep.subr.bf16.mxu1 %v10984_v45 }
 0x472   :  { %4636 = vmatpush2.bf16.msra.mxu0 %v10980_v25  ;;  %4677 = vmatpush2.bf16.msra.mxu1 %v10982_v29 }
 0x473   :  { %4637 = vmatprep.subr.bf16.mxu0 %v10987_v47  ;;  %4678 = vmatprep.subr.bf16.mxu1 %v10993_v59 }
 0x476   :  { %4638 = vmatpush2.bf16.msra.mxu0 %v10991_v4  ;;  %4679 = vmatpush2.bf16.msra.mxu1 %v10997_v26 }
 0x477   :  { %4639 = vmatprep.subr.bf16.mxu0 %v10999_v1  ;;  %4680 = vmatprep.subr.bf16.mxu1 %v11002_v9 }
 0x47a   :  { %4640 = vmatpush2.bf16.msra.mxu0 %v11005_v49  ;;  %4681 = vmatpush2.bf16.msra.mxu1 %v11009_v52 }
 0x47b   :  { %4641 = vmatprep.subr.bf16.mxu0 %v11011_v57  ;;  %4682 = vmatprep.subr.bf16.mxu1 %v11014_v60 }
 0x47e   :  { %4642 = vmatpush2.bf16.msra.mxu0 %v11017_v6  ;;  %4683 = vmatpush2.bf16.msra.mxu1 %v11021_v7 }
 0x47f   :  { %4643 = vmatprep.subr.bf16.mxu0 %v11023_v11  ;;  %4684 = vmatprep.subr.bf16.mxu1 %v11026_v28 }
 0x482   :  { %4644 = vmatpush2.bf16.msra.mxu0 %v11029_v12  ;;  %4685 = vmatpush2.bf16.msra.mxu1 %v11033_v41 }
 0x483   :  { %4695 = vmatprep.subr.bf16.mxu0 %v11040_v23  ;;  %4736 = vmatprep.subr.bf16.mxu1 %v11044_v55 }
 0x4c5   :  { %v3648_v13 = vpop.f32.mrf.mxu0  ;;  %v3689_v2 = vpop.f32.mrf.mxu1 }
 0x4c6   :  { %v3785_v8 = vadd.f32 %v3648_v13, %v12883_v43  ;;  %v3787_v14 = vadd.f32 %v3689_v2, %v12884_v24 }
 0x4c7   :  { %v3650_v15 = vpop.f32.mrf.mxu0  ;;  %v3691_v53 = vpop.f32.mrf.mxu1 }
 0x4c8   :  { %v9023_v27 = vmul.f32 -1.442695, %v3785_v8  ;;  %v3786_v36 = vadd.f32 %v3650_v15, %v12885_v32  ;;  %v3788_v58 = vadd.f32 %v3691_v53, %v12886_v39  ;;  %v9025_v2 = vmul.f32 -1.442695, %v3787_v14 }
 0x4c9   :  { %v3652_v25 = vpop.f32.mrf.mxu0  ;;  %v3693_v29 = vpop.f32.mrf.mxu1 }
 0x4ca   :  { %9837 = vpow2.f32 %v9023_v27  ;;  %v9024_v45 = vmul.f32 -1.442695, %v3786_v36 }
 0x4cb   :  { %v3653_v47 = vpop.f32.mrf.mxu0  ;;  %v3694_v4 = vpop.f32.mrf.mxu1 }
 0x4cc   :  { %9839 = vpow2.f32 %v9024_v45 }
 0x4cd   :  { %9841 = vtanh.f32 %v3788_v58 }
 0x4d7   :  { %v9838_v59 = vpop.eup %9837 }
 0x4d8   :  { %v3798_v26 = vadd.f32 1.0, %v9838_v59 }
 0x4d9   :  { %v9840_v1 = vpop.eup %9839 }
 0x4da   :  { %9843 = vrcp.f32 %v3798_v26  ;;  %v3799_v9 = vadd.f32 1.0, %v9840_v1  ;;  %v9842_v49 = vpop.eup %9841 }
 0x4dc   :  { %9845 = vrcp.f32 %v3799_v9 }
 0x4e7   :  { %v9844_v52 = vpop.eup %9843 }
 0x4e8   :  { %v3809_v57 = vmul.f32 %v9844_v52, %v9842_v49 }
 0x4e9   :  { %v9846_v60 = vpop.eup %9845 }
 0x4ea   :  { %v3808_v6 = vmul.f32 %v9846_v60, %v11053_v38 }
 0x4ec   :  { %v11387_v7 = vadd.f32 %v3809_v57, %v3808_v6  ;;  %v12888_v6 = vld [vmem:[#allocation47_spill] sm:$0xff] }
 0x505   :  { %v3730_v11 = vpop.f32.mrf.mxu0  ;;  %v3771_v28 = vpop.f32.mrf.mxu1 }
 0x506   :  { %v3813_v12 = vadd.f32 %v3730_v11, %v10820_v0  ;;  %v3815_v38 = vadd.f32 %v3771_v28, %v10830_v37  ;;  %v12889_v11 = vld [vmem:[#allocation48_spill] sm:$0xff]  ;;  %v12890_v28 = vld [vmem:[#allocation49_spill] sm:$0xff] }
 0x507   :  { %v3732_v41 = vpop.f32.mrf.mxu0  ;;  %v3773_v23 = vpop.f32.mrf.mxu1 }
 0x508   :  { %v9026_v55 = vmul.f32 -1.442695, %v3813_v12  ;;  %v3814_v10 = vadd.f32 %v3732_v41, %v10824_v50  ;;  %v9028_v43 = vmul.f32 -1.442695, %v3815_v38  ;;  %v3816_v24 = vadd.f32 %v3773_v23, %v10835_v51  ;;  %v12891_v12 = vld [vmem:[#allocation50_spill] sm:$0xff]  ;;  %v12892_v41 = vld [vmem:[#allocation51_spill] sm:$0xff] }
 0x509   :  { %v3734_v20 = vpop.f32.mrf.mxu0  ;;  %v3775_v46 = vpop.f32.mrf.mxu1  ;;  %v12893_v23 = vld [vmem:[#allocation52_spill] sm:$0xff]  ;;  %v12904_v38 = vld [vmem:[#allocation63_spill] sm:$0xff] }
 0x50a   :  { %9847 = vpow2.f32 %v9026_v55  ;;  %v9027_v62 = vmul.f32 -1.442695, %v3814_v10  ;;  %v12896_v55 = vld [vmem:[#allocation55_spill] sm:$0xff]  ;;  %v12898_v10 = vld [vmem:[#allocation57_spill] sm:$0xff]  ;;  %v12899_v20 = vld [vmem:[#allocation58_spill] sm:$0xff] }
 0x50b   :  { %v3735_v21 = vpop.f32.mrf.mxu0  ;;  %v3776_v13 = vpop.f32.mrf.mxu1  ;;  %v12900_v46 = vld [vmem:[#allocation59_spill] sm:$0xff] }
 0x50c   :  { %9849 = vpow2.f32 %v9027_v62  ;;  %v12901_v62 = vld [vmem:[#allocation60_spill] sm:$0xff]  ;;  %v12902_v21 = vld [vmem:[#allocation61_spill] sm:$0xff]  ;;  %v12903_v13 = vld [vmem:[#allocation62_spill] sm:$0xff] }
 0x50d   :  { %9851 = vpow2.f32 %v9025_v2  ;;  %v12905_v2 = vld [vmem:[#allocation64_spill] sm:$0xff] }
 0x50e   :  { %9853 = vpow2.f32 %v9028_v43  ;;  %v12906_v43 = vld [vmem:[#allocation65_spill] sm:$0xff] }
 0x517   :  { %v9848_v8 = vpop.eup %9847 }
 0x518   :  { %v3826_v15 = vadd.f32 1.0, %v9848_v8  ;;  %v12907_v8 = vld [vmem:[#allocation66_spill] sm:$0xff] }
 0x519   :  { %v9850_v53 = vpop.eup %9849 }
 0x51a   :  { %9855 = vrcp.f32 %v3826_v15  ;;  %v3827_v27 = vadd.f32 1.0, %v9850_v53  ;;  %v9852_v32 = vpop.eup %9851  ;;  %v12909_v15 = vld [vmem:[#allocation68_spill] sm:$0xff]  ;;  %v12910_v53 = vld [vmem:[#allocation69_spill] sm:$0xff] }
 0x51b   :  { %9857 = vtanh.f32 %v3816_v24  ;;  %v9854_v36 = vpop.eup %9853  ;;  %v3800_v25 = vadd.f32 1.0, %v9852_v32  ;;  %v12908_v24 = vld [vmem:[#allocation67_spill] sm:$0xff] }
 0x51c   :  { %9859 = vrcp.f32 %v3827_v27  ;;  %v3828_v45 = vadd.f32 1.0, %v9854_v36  ;;  %v12911_v27 = vld [vmem:[#allocation70_spill] sm:$0xff]  ;;  %v12912_v32 = vld [vmem:[#allocation71_spill] sm:$0xff]  ;;  %v12913_v36 = vld [vmem:[#allocation72_spill] sm:$0xff] }
 0x51d   :  { %9861 = vtanh.f32 %v11387_v7 }
 0x51e   :  { %9863 = vrcp.f32 %v3800_v25  ;;  %v12916_v25 = vld [vmem:[#allocation75_spill] sm:$0xff] }
 0x51f   :  { %9865 = vrcp.f32 %v3828_v45  ;;  %v12918_v45 = vld [vmem:[#allocation77_spill] sm:$0xff] }
 0x527   :  { %v9856_v39 = vpop.eup %9855 }
 0x528   :  { %v9858_v58 = vpop.eup %9857 }
 0x529   :  { %v9860_v29 = vpop.eup %9859  ;;  %v3837_v47 = vmul.f32 %v9858_v58, %v9856_v39  ;;  %v12914_v39 = vld [vmem:[#allocation73_spill] sm:$0xff]  ;;  %v12915_v58 = vld [vmem:[#allocation74_spill] sm:$0xff] }
 0x52a   :  { %v3836_v14 = vmul.f32 %v9860_v29, %v11061_v34  ;;  %v9862_v59 = vpop.eup %9861  ;;  %v12887_v34 = vld [vmem:[#allocation46_spill] sm:$0xff]  ;;  %v12917_v29 = vld [vmem:[#allocation76_spill] sm:$0xff] }
 0x52b   :  { %v9864_v26 = vpop.eup %9863 }
 0x52c   :  { %v11395_v4 = vadd.f32 %v3837_v47, %v3836_v14  ;;  %v9866_v1 = vpop.eup %9865  ;;  %v3812_v49 = vmul.f32 %v9864_v26, %v9862_v59  ;;  %v12919_v14 = vld [vmem:[#allocation78_spill] sm:$0xff]  ;;  %v12920_v47 = vld [vmem:[#allocation79_spill] sm:$0xff]  ;;  %v12921_v59 = vld [vmem:[#allocation80_spill] sm:$0xff] }
 0x52d   :  { %v12922_v26 = vld [vmem:[#allocation81_spill] sm:$0xff] }
 0x52e   :  { %9867 = vtanh.f32 %v11395_v4  ;;  %v11398_v60 = vpack.c.bf16 %v3812_v49, %v3812_v49  ;;  %v12925_v49 = vld [vmem:[#allocation84_spill] sm:$0xff] }
 0x53b   :  { %v9868_v9 = vpop.eup %9867 }
 0x53c   :  { %v3840_v52 = vmul.f32 %v9868_v9, %v9866_v1  ;;  %v12923_v1 = vld [vmem:[#allocation82_spill] sm:$0xff]  ;;  %v12924_v9 = vld [vmem:[#allocation83_spill] sm:$0xff] }
 0x53e   :  { %v3841_v57 = vpack.c.bf16 %v3840_v52, %v3840_v52  ;;  %v12926_v52 = vld [vmem:[#allocation85_spill] sm:$0xff] }
 0x540   :  { %3843 = vst [vmem:[#allocation3 + $0x8] sm:$0xf] %v3841_v57  ;;  %4645 = vmatprep.mubr.bf16.mxu0 %v3841_v57  ;;  %4686 = vmatprep.mubr.bf16.mxu1 %v3841_v57 }
 0x541   :  { %4646 = vmatmul.mubr.bf16.vlgmr.msra.gmra.mxu0 %v11398_v60  ;;  %4687 = vmatmul.mubr.bf16.vlgmr.msra.gmra.mxu1 %v11398_v60 }
 0x542   :  { %4696 = vmatpush1.bf16.msra.mxu0 %v11038_v22  ;;  %4737 = vmatpush1.bf16.msra.mxu1 %v11042_v54  ;;  %v12894_v22 = vld [vmem:[#allocation53_spill] sm:$0xff]  ;;  %v12895_v54 = vld [vmem:[#allocation54_spill] sm:$0xff] }
 0x543   :  { %4727 = vmatprep.mubr.bf16.mxu0 %v3841_v57  ;;  %4768 = vmatprep.mubr.bf16.mxu1 %v3841_v57  ;;  %v12927_v57 = vld [vmem:[#allocation86_spill] sm:$0xff] }
 0x544   :  { %4697 = vmatprep.subr.bf16.mxu0 %v11066_v40  ;;  %4738 = vmatprep.subr.bf16.mxu1 %v12887_v34  ;;  %v12897_v40 = vld [vmem:[#allocation56_spill] sm:$0xff]  ;;  %v12928_v34 = vld [vmem:[#allocation87_spill] sm:$0xff] }
 0x546   :  { %4698 = vmatpush1.bf16.msra.mxu0 %v12888_v6  ;;  %4739 = vmatpush1.bf16.msra.mxu1 %v12889_v11  ;;  %v12929_v6 = vld [vmem:[#allocation88_spill] sm:$0xff]  ;;  %v12930_v11 = vld [vmem:[#allocation89_spill] sm:$0xff] }
 0x547   :  { %4699 = vmatprep.subr.bf16.mxu0 %v12890_v28  ;;  %4740 = vmatprep.subr.bf16.mxu1 %v12891_v12  ;;  %v12931_v28 = vld [vmem:[#allocation90_spill] sm:$0xff]  ;;  %v12932_v12 = vld [vmem:[#allocation91_spill] sm:$0xff] }
 0x54a   :  { %4700 = vmatpush1.bf16.msra.mxu0 %v12892_v41  ;;  %4741 = vmatpush1.bf16.msra.mxu1 %v12893_v23  ;;  %v12933_v41 = vld [vmem:[#allocation92_spill] sm:$0xff]  ;;  %v12934_v23 = vld [vmem:[#allocation93_spill] sm:$0xff] }
 0x54b   :  { %4701 = vmatprep.subr.bf16.mxu0 %v12894_v22  ;;  %4742 = vmatprep.subr.bf16.mxu1 %v12895_v54  ;;  %v12935_v22 = vld [vmem:[#allocation94_spill] sm:$0xff]  ;;  %v12939_v54 = vld [vmem:[#allocation101_spill] sm:$0xff] }
 0x54e   :  { %4702 = vmatpush1.bf16.msra.mxu0 %v12896_v55  ;;  %4743 = vmatpush1.bf16.msra.mxu1 %v12897_v40  ;;  %v12940_v55 = vld [vmem:[#allocation100_spill] sm:$0xff] }
 0x54f   :  { %4703 = vmatprep.subr.bf16.mxu0 %v12898_v10  ;;  %4744 = vmatprep.subr.bf16.mxu1 %v12899_v20  ;;  %v12945_v40 = vld [vmem:[#allocation104_spill] sm:$0xff]  ;;  %v12946_v10 = vld [vmem:[#allocation105_spill] sm:$0xff]  ;;  %v12947_v20 = vld [vmem:[#allocation107_spill] sm:$0xff] }
 0x552   :  { %4704 = vmatpush1.bf16.msra.mxu0 %v12900_v46  ;;  %4745 = vmatpush1.bf16.msra.mxu1 %v12901_v62  ;;  %v12948_v46 = vld [vmem:[#allocation108_spill] sm:$0xff]  ;;  %v12949_v62 = vld [vmem:[#allocation106_spill] sm:$0xff] }
 0x553   :  { %4705 = vmatprep.subr.bf16.mxu0 %v12902_v21  ;;  %4746 = vmatprep.subr.bf16.mxu1 %v12903_v13  ;;  %v12951_v21 = vld [vmem:[#allocation111_spill] sm:$0xff]  ;;  %v12952_v13 = vld [vmem:[#allocation112_spill] sm:$0xff] }
 0x556   :  { %4706 = vmatpush1.bf16.msra.mxu0 %v12904_v38  ;;  %4747 = vmatpush1.bf16.msra.mxu1 %v12905_v2  ;;  %v12954_v38 = vld [vmem:[#allocation113_spill] sm:$0xff]  ;;  %v12955_v2 = vld [vmem:[#allocation115_spill] sm:$0xff] }
 0x557   :  { %4707 = vmatprep.subr.bf16.mxu0 %v12906_v43  ;;  %4748 = vmatprep.subr.bf16.mxu1 %v12907_v8  ;;  %v12956_v43 = vld [vmem:[#allocation116_spill] sm:$0xff]  ;;  %v12957_v8 = vld [vmem:[#allocation114_spill] sm:$0xff] }
 0x55a   :  { %4708 = vmatpush1.bf16.msra.mxu0 %v12908_v24  ;;  %4749 = vmatpush1.bf16.msra.mxu1 %v12909_v15  ;;  %v12958_v24 = vld [vmem:[#allocation117_spill] sm:$0xff]  ;;  %v12959_v15 = vld [vmem:[#allocation119_spill] sm:$0xff] }
 0x55b   :  { %4709 = vmatprep.subr.bf16.mxu0 %v12910_v53  ;;  %4750 = vmatprep.subr.bf16.mxu1 %v12911_v27  ;;  %v12960_v53 = vld [vmem:[#allocation120_spill] sm:$0xff]  ;;  %v12961_v27 = vld [vmem:[#allocation118_spill] sm:$0xff] }
 0x55e   :  { %4710 = vmatpush1.bf16.msra.mxu0 %v12912_v32  ;;  %4751 = vmatpush1.bf16.msra.mxu1 %v12913_v36  ;;  %v4964_v32 = vld [vmem:[#allocation14 + $0x3c0] sm:$0xff] }
 0x55f   :  { %4711 = vmatprep.subr.bf16.mxu0 %v12914_v39  ;;  %4752 = vmatprep.subr.bf16.mxu1 %v12915_v58  ;;  %v4968_v36 = vld [vmem:[#allocation14 + $0x3e0] sm:$0xff]  ;;  %v4965_v39 = vld [vmem:[#allocation14 + $0x3c8] sm:$0xff] }
 0x560   :  { %v11498_v58 = vcombine.high %v4964_v32, %v4968_v36 }
 0x562   :  { %4712 = vmatpush2.bf16.msra.mxu0 %v12916_v25  ;;  %4753 = vmatpush2.bf16.msra.mxu1 %v12917_v29  ;;  %v11500_v25 = vcombine.low %v4964_v32, %v4968_v36 }
 0x563   :  { %4713 = vmatprep.subr.bf16.mxu0 %v12918_v45  ;;  %4754 = vmatprep.subr.bf16.mxu1 %v12919_v14 }
 0x566   :  { %4714 = vmatpush2.bf16.msra.mxu0 %v12920_v47  ;;  %4755 = vmatpush2.bf16.msra.mxu1 %v12921_v59  ;;  %v4948_v47 = vld [vmem:[#allocation14 + $0x340] sm:$0xff] }
 0x567   :  { %4715 = vmatprep.subr.bf16.mxu0 %v12922_v26  ;;  %4756 = vmatprep.subr.bf16.mxu1 %v12923_v1  ;;  %v4952_v59 = vld [vmem:[#allocation14 + $0x360] sm:$0xff]  ;;  %v4949_v26 = vld [vmem:[#allocation14 + $0x348] sm:$0xff] }
 0x568   :  { %v11522_v1 = vcombine.high %v4948_v47, %v4952_v59 }
 0x56a   :  { %4716 = vmatpush2.bf16.msra.mxu0 %v12924_v9  ;;  %4757 = vmatpush2.bf16.msra.mxu1 %v12925_v49  ;;  %v4953_v9 = vld [vmem:[#allocation14 + $0x368] sm:$0xff]  ;;  %v11524_v49 = vcombine.low %v4948_v47, %v4952_v59  ;;  %v4903_v47 = vld [vmem:[#allocation14 + $0x1d8] sm:$0xff] }
 0x56b   :  { %4717 = vmatprep.subr.bf16.mxu0 %v12926_v52  ;;  %4758 = vmatprep.subr.bf16.mxu1 %v12927_v57  ;;  %v11526_v52 = vcombine.low %v4949_v26, %v4953_v9  ;;  %v11528_v57 = vcombine.high %v4949_v26, %v4953_v9  ;;  %v4907_v9 = vld [vmem:[#allocation14 + $0x1f8] sm:$0xff] }
 0x56e   :  { %4718 = vmatpush2.bf16.msra.mxu0 %v12928_v34  ;;  %4759 = vmatpush2.bf16.msra.mxu1 %v12929_v6  ;;  %v4940_v34 = vld [vmem:[#allocation14 + $0x300] sm:$0xff] }
 0x56f   :  { %4719 = vmatprep.subr.bf16.mxu0 %v12930_v11  ;;  %4760 = vmatprep.subr.bf16.mxu1 %v12931_v28  ;;  %v4944_v6 = vld [vmem:[#allocation14 + $0x320] sm:$0xff]  ;;  %v4941_v11 = vld [vmem:[#allocation14 + $0x308] sm:$0xff] }
 0x570   :  { %v11534_v28 = vcombine.high %v4940_v34, %v4944_v6 }
 0x572   :  { %4720 = vmatpush2.bf16.msra.mxu0 %v11206_v18  ;;  %4761 = vmatpush2.bf16.msra.mxu1 %v11208_v19  ;;  %v12936_v18 = vld [vmem:[#allocation95_spill] sm:$0xff]  ;;  %v12937_v19 = vld [vmem:[#allocation96_spill] sm:$0xff] }
 0x573   :  { %4721 = vmatprep.subr.bf16.mxu0 %v11212_v35  ;;  %4762 = vmatprep.subr.bf16.mxu1 %v12932_v12  ;;  %v12938_v35 = vld [vmem:[#allocation97_spill] sm:$0xff]  ;;  %v4945_v12 = vld [vmem:[#allocation14 + $0x328] sm:$0xff] }
 0x576   :  { %4722 = vmatpush2.bf16.msra.mxu0 %v12933_v41  ;;  %4763 = vmatpush2.bf16.msra.mxu1 %v11220_v48  ;;  %v12941_v48 = vld [vmem:[#allocation99_spill] sm:$0xff]  ;;  %v11536_v41 = vcombine.low %v4940_v34, %v4944_v6  ;;  %v11598_v34 = vcombine.low %v4903_v47, %v4907_v9  ;;  %v11600_v6 = vcombine.high %v4903_v47, %v4907_v9 }
 0x577   :  { %4723 = vmatprep.subr.bf16.mxu0 %v11224_v33  ;;  %4764 = vmatprep.subr.bf16.mxu1 %v11226_v30  ;;  %v12942_v33 = vld [vmem:[#allocation98_spill] sm:$0xff] }
 0x578   :  { %v12943_v30 = vld [vmem:[#allocation102_spill] sm:$0xff] }
 0x57a   :  { %4724 = vmatpush2.bf16.msra.mxu0 %v11230_v3  ;;  %4765 = vmatpush2.bf16.msra.mxu1 %v12934_v23  ;;  %v12944_v3 = vld [vmem:[#allocation103_spill] sm:$0xff]  ;;  %v11538_v23 = vcombine.low %v4941_v11, %v4945_v12 }
 0x57b   :  { %4725 = vmatprep.subr.bf16.mxu0 %v12935_v22  ;;  %4766 = vmatprep.subr.bf16.mxu1 %v12936_v18  ;;  %v11540_v22 = vcombine.high %v4941_v11, %v4945_v12  ;;  %v4932_v18 = vld [vmem:[#allocation14 + $0x2c0] sm:$0xff] }
 0x57e   :  { %4726 = vmatpush2.bf16.msra.mxu0 %v12937_v19  ;;  %4767 = vmatpush2.bf16.msra.mxu1 %v12938_v35  ;;  %v4936_v19 = vld [vmem:[#allocation14 + $0x2e0] sm:$0xff]  ;;  %v4933_v35 = vld [vmem:[#allocation14 + $0x2c8] sm:$0xff] }
 0x57f   :  { %5612 = vmatprep.subr.bf16.mxu0 %v12939_v54  ;;  %5653 = vmatprep.subr.bf16.mxu1 %v12940_v55  ;;  %v11543_v54 = vcombine.high %v4932_v18, %v4936_v19  ;;  %v4937_v55 = vld [vmem:[#allocation14 + $0x2e8] sm:$0xff] }
 0x581   :  { %4728 = vmatmul.mubr.bf16.vlgmr.msra.gmra.mxu0 %v11398_v60  ;;  %4769 = vmatmul.mubr.bf16.vlgmr.msra.gmra.mxu1 %v11398_v60  ;;  %v12950_v60 = vld [vmem:[#allocation109_spill] sm:$0xff] }
 0x582   :  { %5613 = vmatpush1.bf16.msra.mxu0 %v12941_v48  ;;  %5654 = vmatpush1.bf16.msra.mxu1 %v12942_v33  ;;  %v4924_v48 = vld [vmem:[#allocation14 + $0x280] sm:$0xff] }
 0x583   :  { %5614 = vmatprep.subr.bf16.mxu0 %v11260_v31  ;;  %5655 = vmatprep.subr.bf16.mxu1 %v12943_v30  ;;  %v12953_v31 = vld [vmem:[#allocation110_spill] sm:$0xff]  ;;  %v11547_v30 = vcombine.low %v4932_v18, %v4936_v19 }
 0x584   :  { %v4928_v33 = vld [vmem:[#allocation14 + $0x2a0] sm:$0xff] }
 0x585   :  { %v12962_v18 = vld [vmem:[#allocation26_spill] sm:$0xff] }
 0x586   :  { %5615 = vmatpush1.bf16.msra.mxu0 %v12944_v3  ;;  %5656 = vmatpush1.bf16.msra.mxu1 %v12945_v40  ;;  %v11549_v3 = vcombine.high %v4933_v35, %v4937_v55  ;;  %v4925_v40 = vld [vmem:[#allocation14 + $0x288] sm:$0xff] }
 0x587   :  { %5616 = vmatprep.subr.bf16.mxu0 %v12946_v10  ;;  %5657 = vmatprep.subr.bf16.mxu1 %v12947_v20  ;;  %v4929_v10 = vld [vmem:[#allocation14 + $0x2a8] sm:$0xff]  ;;  %v11553_v20 = vcombine.low %v4933_v35, %v4937_v55  ;;  %v12963_v35 = vld [vmem:[#allocation38_spill] sm:$0xff] }
 0x58a   :  { %5617 = vmatpush1.bf16.msra.mxu0 %v12948_v46  ;;  %5658 = vmatpush1.bf16.msra.mxu1 %v12949_v62  ;;  %v11555_v46 = vcombine.high %v4924_v48, %v4928_v33  ;;  %v11558_v62 = vcombine.high %v4925_v40, %v4929_v10 }
 0x58b   :  { %5618 = vmatprep.subr.bf16.mxu0 %v12950_v60  ;;  %5659 = vmatprep.subr.bf16.mxu1 %v12951_v21  ;;  %v4916_v60 = vld [vmem:[#allocation14 + $0x240] sm:$0xff] }
 0x58c   :  { %v4920_v21 = vld [vmem:[#allocation14 + $0x260] sm:$0xff] }
 0x58d   :  { %v11573_v32 = vcombine.low %v4916_v60, %v4920_v21 }
 0x58e   :  { %5619 = vmatpush1.bf16.msra.mxu0 %v12952_v13  ;;  %5660 = vmatpush1.bf16.msra.mxu1 %v12953_v31  ;;  %v4917_v13 = vld [vmem:[#allocation14 + $0x248] sm:$0xff] }
 0x58f   :  { %5620 = vmatprep.subr.bf16.mxu0 %v12954_v38  ;;  %5661 = vmatprep.subr.bf16.mxu1 %v12955_v2  ;;  %v4921_v31 = vld [vmem:[#allocation14 + $0x268] sm:$0xff]  ;;  %v11561_v38 = vcombine.low %v4924_v48, %v4928_v33  ;;  %v11565_v2 = vcombine.low %v4925_v40, %v4929_v10 }
 0x590   :  { %v11577_v36 = vcombine.low %v4917_v13, %v4921_v31  ;;  %v12964_v10 = vld [vmem:[#allocation27_spill] sm:$0xff] }
 0x592   :  { %5621 = vmatpush1.bf16.msra.mxu0 %v12956_v43  ;;  %5662 = vmatpush1.bf16.msra.mxu1 %v12957_v8  ;;  %v11567_v43 = vcombine.high %v4916_v60, %v4920_v21  ;;  %v11570_v8 = vcombine.high %v4917_v13, %v4921_v31  ;;  %v12965_v21 = vld [vmem:[#allocation39_spill] sm:$0xff] }
 0x593   :  { %5622 = vmatprep.subr.bf16.mxu0 %v12958_v24  ;;  %5663 = vmatprep.subr.bf16.mxu1 %v12959_v15  ;;  %v4908_v24 = vld [vmem:[#allocation14 + $0x200] sm:$0xff] }
 0x594   :  { %v4912_v15 = vld [vmem:[#allocation14 + $0x220] sm:$0xff] }
 0x596   :  { %5623 = vmatpush1.bf16.msra.mxu0 %v12960_v53  ;;  %5664 = vmatpush1.bf16.msra.mxu1 %v12961_v27  ;;  %v4909_v53 = vld [vmem:[#allocation14 + $0x208] sm:$0xff] }
 0x597   :  { %5624 = vmatprep.subr.bf16.mxu0 %v11324_v5  ;;  %5665 = vmatprep.subr.bf16.mxu1 %v11330_v63  ;;  %v4969_v5 = vld [vmem:[#allocation14 + $0x3e8] sm:$0xff] }
 0x598   :  { %v11502_v63 = vcombine.low %v4965_v39, %v4969_v5  ;;  %v4913_v27 = vld [vmem:[#allocation14 + $0x228] sm:$0xff] }
 0x59a   :  { %5625 = vmatpush1.bf16.msra.mxu0 %v11326_v17  ;;  %5666 = vmatpush1.bf16.msra.mxu1 %v11328_v56  ;;  %v11504_v17 = vcombine.high %v4965_v39, %v4969_v5  ;;  %v4960_v56 = vld [vmem:[#allocation14 + $0x3a0] sm:$0xff]  ;;  %v11579_v39 = vcombine.high %v4908_v24, %v4912_v15  ;;  %v11582_v5 = vcombine.high %v4909_v53, %v4913_v27 }
 0x59b   :  { %5626 = vmatprep.subr.bf16.mxu0 %v11336_v44  ;;  %5667 = vmatprep.subr.bf16.mxu1 %v11342_v61  ;;  %v4956_v44 = vld [vmem:[#allocation14 + $0x380] sm:$0xff]  ;;  %v4961_v61 = vld [vmem:[#allocation14 + $0x3a8] sm:$0xff] }
 0x59c   :  { %v11512_v29 = vcombine.low %v4956_v44, %v4960_v56 }
 0x59e   :  { %5627 = vmatpush1.bf16.msra.mxu0 %v11338_v42  ;;  %5668 = vmatpush1.bf16.msra.mxu1 %v11340_v16  ;;  %v4957_v42 = vld [vmem:[#allocation14 + $0x388] sm:$0xff]  ;;  %v11510_v16 = vcombine.high %v4956_v44, %v4960_v56  ;;  %v11585_v44 = vcombine.low %v4908_v24, %v4912_v15  ;;  %v11589_v56 = vcombine.low %v4909_v53, %v4913_v27 }
 0x59f   :  { %5628 = vmatprep.subr.bf16.mxu0 %v11498_v58  ;;  %5669 = vmatprep.subr.bf16.mxu1 %v11504_v17  ;;  %v11514_v45 = vcombine.low %v4957_v42, %v4961_v61  ;;  %v11516_v14 = vcombine.high %v4957_v42, %v4961_v61  ;;  %v4902_v42 = vld [vmem:[#allocation14 + $0x1d0] sm:$0xff] }
 0x5a0   :  { %v4906_v61 = vld [vmem:[#allocation14 + $0x1f0] sm:$0xff] }
 0x5a1   :  { %v11594_v59 = vcombine.low %v4902_v42, %v4906_v61  ;;  %v11596_v26 = vcombine.high %v4902_v42, %v4906_v61 }
 0x5a2   :  { %5629 = vmatpush2.bf16.msra.mxu0 %v11500_v25  ;;  %5670 = vmatpush2.bf16.msra.mxu1 %v11502_v63 }
 0x5a3   :  { %5630 = vmatprep.subr.bf16.mxu0 %v11510_v16  ;;  %5671 = vmatprep.subr.bf16.mxu1 %v11516_v14 }
 0x5a6   :  { %5631 = vmatpush2.bf16.msra.mxu0 %v11512_v29  ;;  %5672 = vmatpush2.bf16.msra.mxu1 %v11514_v45 }
 0x5a7   :  { %5632 = vmatprep.subr.bf16.mxu0 %v11522_v1  ;;  %5673 = vmatprep.subr.bf16.mxu1 %v11528_v57 }
 0x5aa   :  { %5633 = vmatpush2.bf16.msra.mxu0 %v11524_v49  ;;  %5674 = vmatpush2.bf16.msra.mxu1 %v11526_v52 }
 0x5ab   :  { %5634 = vmatprep.subr.bf16.mxu0 %v11534_v28  ;;  %5675 = vmatprep.subr.bf16.mxu1 %v11540_v22 }
 0x5ae   :  { %5635 = vmatpush2.bf16.msra.mxu0 %v11536_v41  ;;  %5676 = vmatpush2.bf16.msra.mxu1 %v11538_v23 }
 0x5af   :  { %5636 = vmatprep.subr.bf16.mxu0 %v11543_v54  ;;  %5677 = vmatprep.subr.bf16.mxu1 %v11549_v3 }
 0x5b2   :  { %5637 = vmatpush2.bf16.msra.mxu0 %v11547_v30  ;;  %5678 = vmatpush2.bf16.msra.mxu1 %v11553_v20 }
 0x5b3   :  { %5638 = vmatprep.subr.bf16.mxu0 %v11555_v46  ;;  %5679 = vmatprep.subr.bf16.mxu1 %v11558_v62 }
 0x5b6   :  { %5639 = vmatpush2.bf16.msra.mxu0 %v11561_v38  ;;  %5680 = vmatpush2.bf16.msra.mxu1 %v11565_v2 }
 0x5b7   :  { %5640 = vmatprep.subr.bf16.mxu0 %v11567_v43  ;;  %5681 = vmatprep.subr.bf16.mxu1 %v11570_v8 }
 0x5ba   :  { %5641 = vmatpush2.bf16.msra.mxu0 %v11573_v32  ;;  %5682 = vmatpush2.bf16.msra.mxu1 %v11577_v36 }
 0x5bb   :  { %5642 = vmatprep.subr.bf16.mxu0 %v11579_v39  ;;  %5683 = vmatprep.subr.bf16.mxu1 %v11582_v5 }
 0x5be   :  { %5643 = vmatpush2.bf16.msra.mxu0 %v11585_v44  ;;  %5684 = vmatpush2.bf16.msra.mxu1 %v11589_v56 }
 0x5bf   :  { %5694 = vmatprep.subr.bf16.mxu0 %v11596_v26  ;;  %5735 = vmatprep.subr.bf16.mxu1 %v11600_v6 }
 0x601   :  { %v4647_v11 = vpop.f32.mrf.mxu0  ;;  %v4688_v12 = vpop.f32.mrf.mxu1 }
 0x602   :  { %v4784_v19 = vadd.f32 %v4647_v11, %v12962_v18  ;;  %v4786_v55 = vadd.f32 %v4688_v12, %v12963_v35 }
 0x603   :  { %v4649_v48 = vpop.f32.mrf.mxu0  ;;  %v4690_v33 = vpop.f32.mrf.mxu1 }
 0x604   :  { %v9157_v40 = vmul.f32 -1.442695, %v4784_v19  ;;  %v4785_v60 = vadd.f32 %v4649_v48, %v12964_v10  ;;  %v4787_v13 = vadd.f32 %v4690_v33, %v12965_v21 }
 0x605   :  { %v4651_v31 = vpop.f32.mrf.mxu0  ;;  %v4692_v24 = vpop.f32.mrf.mxu1 }
 0x606   :  { %9869 = vpow2.f32 %v9157_v40  ;;  %v9158_v15 = vmul.f32 -1.442695, %v4785_v60 }
 0x607   :  { %v4652_v53 = vpop.f32.mrf.mxu0  ;;  %v4693_v27 = vpop.f32.mrf.mxu1 }
 0x608   :  { %9871 = vpow2.f32 %v9158_v15 }
 0x609   :  { %9873 = vtanh.f32 %v4787_v13 }
 0x613   :  { %v9870_v42 = vpop.eup %9869 }
 0x614   :  { %v4797_v61 = vadd.f32 1.0, %v9870_v42 }
 0x615   :  { %v9872_v47 = vpop.eup %9871 }
 0x616   :  { %9875 = vrcp.f32 %v4797_v61  ;;  %v4798_v9 = vadd.f32 1.0, %v9872_v47  ;;  %v9874_v11 = vpop.eup %9873  ;;  %v9159_v61 = vmul.f32 -1.442695, %v4786_v55 }
 0x618   :  { %9877 = vrcp.f32 %v4798_v9 }
 0x623   :  { %v9876_v12 = vpop.eup %9875 }
 0x624   :  { %v4808_v18 = vmul.f32 %v9876_v12, %v9874_v11 }
 0x625   :  { %v9878_v19 = vpop.eup %9877 }
 0x626   :  { %v4807_v35 = vmul.f32 %v9878_v19, %v11387_v7 }
 0x628   :  { %v11609_v48 = vadd.f32 %v4808_v18, %v4807_v35 }
 0x641   :  { %v4729_v33 = vpop.f32.mrf.mxu0  ;;  %v4770_v40 = vpop.f32.mrf.mxu1 }
 0x642   :  { %v4812_v10 = vadd.f32 %v4729_v33, %v10820_v0  ;;  %v4814_v7 = vadd.f32 %v4770_v40, %v10830_v37 }
 0x643   :  { %v4731_v60 = vpop.f32.mrf.mxu0  ;;  %v4772_v21 = vpop.f32.mrf.mxu1 }
 0x644   :  { %v9160_v31 = vmul.f32 -1.442695, %v4812_v10  ;;  %v4813_v13 = vadd.f32 %v4731_v60, %v10824_v50  ;;  %v9162_v47 = vmul.f32 -1.442695, %v4814_v7  ;;  %v4815_v11 = vadd.f32 %v4772_v21, %v10835_v51 }
 0x645   :  { %v4733_v24 = vpop.f32.mrf.mxu0  ;;  %v4774_v15 = vpop.f32.mrf.mxu1 }
 0x646   :  { %9879 = vpow2.f32 %v9160_v31  ;;  %v9161_v53 = vmul.f32 -1.442695, %v4813_v13 }
 0x647   :  { %v4734_v27 = vpop.f32.mrf.mxu0  ;;  %v4775_v42 = vpop.f32.mrf.mxu1 }
 0x648   :  { %9881 = vpow2.f32 %v9161_v53 }
 0x649   :  { %9883 = vpow2.f32 %v9159_v61 }
 0x64a   :  { %9885 = vpow2.f32 %v9162_v47  ;;  %v4894_v47 = vld [vmem:[#allocation14 + $0x190] sm:$0xff] }
 0x653   :  { %v9880_v9 = vpop.eup %9879 }
 0x654   :  { %v4825_v12 = vadd.f32 1.0, %v9880_v9  ;;  %v4898_v9 = vld [vmem:[#allocation14 + $0x1b0] sm:$0xff] }
 0x655   :  { %v9882_v18 = vpop.eup %9881 }
 0x656   :  { %9887 = vrcp.f32 %v4825_v12  ;;  %v4826_v19 = vadd.f32 1.0, %v9882_v18  ;;  %v9884_v35 = vpop.eup %9883  ;;  %v4899_v12 = vld [vmem:[#allocation14 + $0x1b8] sm:$0xff] }
 0x657   :  { %9889 = vtanh.f32 %v4815_v11  ;;  %v9886_v33 = vpop.eup %9885  ;;  %v4799_v31 = vadd.f32 1.0, %v9884_v35  ;;  %v4895_v11 = vld [vmem:[#allocation14 + $0x198] sm:$0xff]  ;;  %v11622_v35 = vcombine.high %v4894_v47, %v4898_v9 }
 0x658   :  { %9891 = vrcp.f32 %v4826_v19  ;;  %v4827_v40 = vadd.f32 1.0, %v9886_v33  ;;  %v4886_v19 = vld [vmem:[#allocation14 + $0x150] sm:$0xff]  ;;  %v11624_v33 = vcombine.high %v4895_v11, %v4899_v12 }
 0x659   :  { %9893 = vtanh.f32 %v11609_v48 }
 0x65a   :  { %9895 = vrcp.f32 %v4799_v31  ;;  %12966 = vst [vmem:[#allocation22_spill] sm:$0xff] %v11624_v33  ;;  %v4891_v31 = vld [vmem:[#allocation14 + $0x178] sm:$0xff] }
 0x65b   :  { %9897 = vrcp.f32 %v4827_v40  ;;  %v11632_v40 = vcombine.low %v4895_v11, %v4899_v12  ;;  %v4870_v11 = vld [vmem:[#allocation14 + $0xd0] sm:$0xff] }
 0x65c   :  { %v4874_v12 = vld [vmem:[#allocation14 + $0xf0] sm:$0xff] }
 0x65d   :  { %12968 = vst [vmem:[#allocation23_spill] sm:$0xff] %v11632_v40 }
 0x663   :  { %v9888_v10 = vpop.eup %9887 }
 0x664   :  { %v9890_v60 = vpop.eup %9889 }
 0x665   :  { %v9892_v13 = vpop.eup %9891  ;;  %v4836_v24 = vmul.f32 %v9890_v60, %v9888_v10  ;;  %v4890_v10 = vld [vmem:[#allocation14 + $0x170] sm:$0xff]  ;;  %v4887_v60 = vld [vmem:[#allocation14 + $0x158] sm:$0xff] }
 0x666   :  { %v4835_v55 = vmul.f32 %v9892_v13, %v11395_v4  ;;  %v9894_v15 = vpop.eup %9893  ;;  %v11630_v13 = vcombine.low %v4894_v47, %v4898_v9 }
 0x667   :  { %v9896_v53 = vpop.eup %9895 }
 0x668   :  { %v11617_v21 = vadd.f32 %v4836_v24, %v4835_v55  ;;  %v9898_v27 = vpop.eup %9897  ;;  %v4811_v7 = vmul.f32 %v9896_v53, %v9894_v15  ;;  %12967 = vst [vmem:[#allocation34_spill] sm:$0xff] %v11630_v13  ;;  %v11634_v55 = vcombine.high %v4886_v19, %v4890_v10  ;;  %v11636_v24 = vcombine.high %v4887_v60, %v4891_v31  ;;  %v4878_v15 = vld [vmem:[#allocation14 + $0x110] sm:$0xff] }
 0x669   :  { %v4882_v53 = vld [vmem:[#allocation14 + $0x130] sm:$0xff] }
 0x66a   :  { %9899 = vtanh.f32 %v11617_v21  ;;  %v11620_v18 = vpack.c.bf16 %v4811_v7, %v4811_v7  ;;  %12969 = vst [vmem:[#allocation35_spill] sm:$0xff] %v11634_v55  ;;  %12970 = vst [vmem:[#allocation24_spill] sm:$0xff] %v11636_v24  ;;  %v11642_v7 = vcombine.low %v4886_v19, %v4890_v10  ;;  %v11648_v47 = vcombine.high %v4878_v15, %v4882_v53 }
 0x66b   :  { %v11654_v19 = vcombine.low %v4878_v15, %v4882_v53  ;;  %v11666_v15 = vcombine.low %v4870_v11, %v4874_v12 }
 0x66c   :  { %12971 = vst [vmem:[#allocation36_spill] sm:$0xff] %v11642_v7  ;;  %12973 = vst [vmem:[#allocation37_spill] sm:$0xff] %v11648_v47 }
 0x66d   :  { %12975 = vst [vmem:[#allocation47_spill] sm:$0xff] %v11654_v19  ;;  %12979 = vst [vmem:[#allocation51_spill] sm:$0xff] %v11666_v15 }
 0x677   :  { %v9900_v42 = vpop.eup %9899 }
 0x678   :  { %v4839_v61 = vmul.f32 %v9900_v42, %v9898_v27  ;;  %v4879_v27 = vld [vmem:[#allocation14 + $0x118] sm:$0xff] }
 0x679   :  { %v4883_v42 = vld [vmem:[#allocation14 + $0x138] sm:$0xff] }
 0x67a   :  { %v4840_v4 = vpack.c.bf16 %v4839_v61, %v4839_v61  ;;  %v11644_v61 = vcombine.low %v4887_v60, %v4891_v31  ;;  %v11650_v9 = vcombine.high %v4879_v27, %v4883_v42  ;;  %v11656_v10 = vcombine.low %v4879_v27, %v4883_v42 }
 0x67b   :  { %v11660_v60 = vcombine.high %v4870_v11, %v4874_v12 }
 0x67c   :  { %4842 = vst [vmem:[#allocation3 + $0xc] sm:$0xf] %v4840_v4  ;;  %5644 = vmatprep.mubr.bf16.mxu0 %v4840_v4  ;;  %5685 = vmatprep.mubr.bf16.mxu1 %v4840_v4  ;;  %12972 = vst [vmem:[#allocation25_spill] sm:$0xff] %v11644_v61 }
 0x67d   :  { %5645 = vmatmul.mubr.bf16.vlgmr.msra.gmra.mxu0 %v11620_v18  ;;  %5686 = vmatmul.mubr.bf16.vlgmr.msra.gmra.mxu1 %v11620_v18  ;;  %12974 = vst [vmem:[#allocation46_spill] sm:$0xff] %v11650_v9  ;;  %12976 = vst [vmem:[#allocation48_spill] sm:$0xff] %v11656_v10 }
 0x67e   :  { %5695 = vmatpush1.bf16.msra.mxu0 %v11594_v59  ;;  %5736 = vmatpush1.bf16.msra.mxu1 %v11598_v34  ;;  %12977 = vst [vmem:[#allocation49_spill] sm:$0xff] %v11660_v60 }
 0x67f   :  { %5726 = vmatprep.mubr.bf16.mxu0 %v4840_v4  ;;  %5767 = vmatprep.mubr.bf16.mxu1 %v4840_v4  ;;  %v4871_v4 = vld [vmem:[#allocation14 + $0xd8] sm:$0xff] }
 0x680   :  { %5696 = vmatprep.subr.bf16.mxu0 %v11622_v35  ;;  %5737 = vmatprep.subr.bf16.mxu1 %v11624_v33  ;;  %v4875_v33 = vld [vmem:[#allocation14 + $0xf8] sm:$0xff] }
 0x681   :  { %v11662_v31 = vcombine.high %v4871_v4, %v4875_v33  ;;  %v11668_v53 = vcombine.low %v4871_v4, %v4875_v33 }
 0x682   :  { %5697 = vmatpush1.bf16.msra.mxu0 %v11630_v13  ;;  %5738 = vmatpush1.bf16.msra.mxu1 %v11632_v40  ;;  %v4863_v40 = vld [vmem:[#allocation14 + $0x98] sm:$0xff] }
 0x683   :  { %5698 = vmatprep.subr.bf16.mxu0 %v11634_v55  ;;  %5739 = vmatprep.subr.bf16.mxu1 %v11636_v24  ;;  %12978 = vst [vmem:[#allocation50_spill] sm:$0xff] %v11662_v31  ;;  %v4862_v24 = vld [vmem:[#allocation14 + $0x90] sm:$0xff]  ;;  %v4867_v13 = vld [vmem:[#allocation14 + $0xb8] sm:$0xff]  ;;  %12980 = vst [vmem:[#allocation52_spill] sm:$0xff] %v11668_v53 }
 0x684   :  { %v4866_v55 = vld [vmem:[#allocation14 + $0xb0] sm:$0xff]  ;;  %v11674_v42 = vcombine.high %v4863_v40, %v4867_v13  ;;  %v11680_v33 = vcombine.low %v4863_v40, %v4867_v13 }
 0x685   :  { %v11672_v27 = vcombine.high %v4862_v24, %v4866_v55  ;;  %v11678_v11 = vcombine.low %v4862_v24, %v4866_v55 }
 0x686   :  { %5699 = vmatpush1.bf16.msra.mxu0 %v11642_v7  ;;  %5740 = vmatpush1.bf16.msra.mxu1 %v11644_v61  ;;  %12982 = vst [vmem:[#allocation54_spill] sm:$0xff] %v11674_v42  ;;  %v4855_v61 = vld [vmem:[#allocation14 + $0x58] sm:$0xff]  ;;  %12984 = vst [vmem:[#allocation56_spill] sm:$0xff] %v11680_v33 }
 0x687   :  { %5700 = vmatprep.subr.bf16.mxu0 %v11648_v47  ;;  %5741 = vmatprep.subr.bf16.mxu1 %v11650_v9  ;;  %12981 = vst [vmem:[#allocation53_spill] sm:$0xff] %v11672_v27  ;;  %v4854_v9 = vld [vmem:[#allocation14 + $0x50] sm:$0xff]  ;;  %v4859_v7 = vld [vmem:[#allocation14 + $0x78] sm:$0xff]  ;;  %12983 = vst [vmem:[#allocation55_spill] sm:$0xff] %v11678_v11 }
 0x688   :  { %v4858_v47 = vld [vmem:[#allocation14 + $0x70] sm:$0xff]  ;;  %v11686_v4 = vcombine.high %v4855_v61, %v4859_v7  ;;  %v11692_v13 = vcombine.low %v4855_v61, %v4859_v7 }
 0x689   :  { %v11684_v12 = vcombine.high %v4854_v9, %v4858_v47  ;;  %v11690_v55 = vcombine.low %v4854_v9, %v4858_v47 }
 0x68a   :  { %5701 = vmatpush1.bf16.msra.mxu0 %v11654_v19  ;;  %5742 = vmatpush1.bf16.msra.mxu1 %v11656_v10  ;;  %12986 = vst [vmem:[#allocation58_spill] sm:$0xff] %v11686_v4  ;;  %v4847_v10 = vld [vmem:[#allocation14 + $0x18] sm:$0xff]  ;;  %12988 = vst [vmem:[#allocation60_spill] sm:$0xff] %v11692_v13 }
 0x68b   :  { %5702 = vmatprep.subr.bf16.mxu0 %v11660_v60  ;;  %5743 = vmatprep.subr.bf16.mxu1 %v11662_v31  ;;  %12985 = vst [vmem:[#allocation57_spill] sm:$0xff] %v11684_v12  ;;  %v4846_v31 = vld [vmem:[#allocation14 + $0x10] sm:$0xff]  ;;  %v4851_v19 = vld [vmem:[#allocation14 + $0x38] sm:$0xff]  ;;  %12987 = vst [vmem:[#allocation59_spill] sm:$0xff] %v11690_v55 }
 0x68c   :  { %v4850_v60 = vld [vmem:[#allocation14 + $0x30] sm:$0xff]  ;;  %v11698_v24 = vcombine.high %v4847_v10, %v4851_v19  ;;  %v11704_v7 = vcombine.low %v4847_v10, %v4851_v19 }
 0x68d   :  { %v11696_v40 = vcombine.high %v4846_v31, %v4850_v60  ;;  %v11702_v47 = vcombine.low %v4846_v31, %v4850_v60 }
 0x68e   :  { %5703 = vmatpush1.bf16.msra.mxu0 %v11666_v15  ;;  %5744 = vmatpush1.bf16.msra.mxu1 %v11668_v53  ;;  %12990 = vst [vmem:[#allocation62_spill] sm:$0xff] %v11698_v24  ;;  %v4967_v53 = vld [vmem:[#allocation14 + $0x3d8] sm:$0xff]  ;;  %12992 = vst [vmem:[#allocation64_spill] sm:$0xff] %v11704_v7 }
 0x68f   :  { %5704 = vmatprep.subr.bf16.mxu0 %v11672_v27  ;;  %5745 = vmatprep.subr.bf16.mxu1 %v11674_v42  ;;  %12989 = vst [vmem:[#allocation61_spill] sm:$0xff] %v11696_v40  ;;  %v4966_v42 = vld [vmem:[#allocation14 + $0x3d0] sm:$0xff]  ;;  %v4971_v15 = vld [vmem:[#allocation14 + $0x3f8] sm:$0xff]  ;;  %12991 = vst [vmem:[#allocation63_spill] sm:$0xff] %v11702_v47 }
 0x690   :  { %v4970_v27 = vld [vmem:[#allocation14 + $0x3f0] sm:$0xff]  ;;  %v11710_v9 = vcombine.high %v4967_v53, %v4971_v15  ;;  %v11716_v19 = vcombine.low %v4967_v53, %v4971_v15 }
 0x691   :  { %v11708_v61 = vcombine.high %v4966_v42, %v4970_v27  ;;  %v11714_v60 = vcombine.low %v4966_v42, %v4970_v27 }
 0x692   :  { %5705 = vmatpush1.bf16.msra.mxu0 %v11678_v11  ;;  %5746 = vmatpush1.bf16.msra.mxu1 %v11680_v33  ;;  %12994 = vst [vmem:[#allocation66_spill] sm:$0xff] %v11710_v9  ;;  %v4959_v33 = vld [vmem:[#allocation14 + $0x398] sm:$0xff]  ;;  %12996 = vst [vmem:[#allocation68_spill] sm:$0xff] %v11716_v19 }
 0x693   :  { %5706 = vmatprep.subr.bf16.mxu0 %v11684_v12  ;;  %5747 = vmatprep.subr.bf16.mxu1 %v11686_v4  ;;  %12993 = vst [vmem:[#allocation65_spill] sm:$0xff] %v11708_v61  ;;  %v4958_v4 = vld [vmem:[#allocation14 + $0x390] sm:$0xff]  ;;  %v4963_v11 = vld [vmem:[#allocation14 + $0x3b8] sm:$0xff]  ;;  %12995 = vst [vmem:[#allocation67_spill] sm:$0xff] %v11714_v60 }
 0x694   :  { %v4962_v12 = vld [vmem:[#allocation14 + $0x3b0] sm:$0xff]  ;;  %v11722_v31 = vcombine.high %v4959_v33, %v4963_v11  ;;  %v11728_v15 = vcombine.low %v4959_v33, %v4963_v11 }
 0x695   :  { %v11720_v10 = vcombine.high %v4958_v4, %v4962_v12  ;;  %v11726_v27 = vcombine.low %v4958_v4, %v4962_v12 }
 0x696   :  { %5707 = vmatpush1.bf16.msra.mxu0 %v11690_v55  ;;  %5748 = vmatpush1.bf16.msra.mxu1 %v11692_v13  ;;  %12998 = vst [vmem:[#allocation70_spill] sm:$0xff] %v11722_v31  ;;  %v4951_v13 = vld [vmem:[#allocation14 + $0x358] sm:$0xff]  ;;  %13000 = vst [vmem:[#allocation72_spill] sm:$0xff] %v11728_v15 }
 0x697   :  { %5708 = vmatprep.subr.bf16.mxu0 %v11696_v40  ;;  %5749 = vmatprep.subr.bf16.mxu1 %v11698_v24  ;;  %12997 = vst [vmem:[#allocation69_spill] sm:$0xff] %v11720_v10  ;;  %v4950_v24 = vld [vmem:[#allocation14 + $0x350] sm:$0xff]  ;;  %v4955_v55 = vld [vmem:[#allocation14 + $0x378] sm:$0xff]  ;;  %12999 = vst [vmem:[#allocation71_spill] sm:$0xff] %v11726_v27 }
 0x698   :  { %v4954_v40 = vld [vmem:[#allocation14 + $0x370] sm:$0xff]  ;;  %v11734_v42 = vcombine.high %v4951_v13, %v4955_v55  ;;  %v11740_v11 = vcombine.low %v4951_v13, %v4955_v55 }
 0x699   :  { %v11732_v53 = vcombine.high %v4950_v24, %v4954_v40  ;;  %v11738_v12 = vcombine.low %v4950_v24, %v4954_v40 }
 0x69a   :  { %5709 = vmatpush1.bf16.msra.mxu0 %v11702_v47  ;;  %5750 = vmatpush1.bf16.msra.mxu1 %v11704_v7  ;;  %13002 = vst [vmem:[#allocation74_spill] sm:$0xff] %v11734_v42  ;;  %v4943_v7 = vld [vmem:[#allocation14 + $0x318] sm:$0xff]  ;;  %13004 = vst [vmem:[#allocation76_spill] sm:$0xff] %v11740_v11 }
 0x69b   :  { %5710 = vmatprep.subr.bf16.mxu0 %v11708_v61  ;;  %5751 = vmatprep.subr.bf16.mxu1 %v11710_v9  ;;  %13001 = vst [vmem:[#allocation73_spill] sm:$0xff] %v11732_v53  ;;  %v4942_v9 = vld [vmem:[#allocation14 + $0x310] sm:$0xff]  ;;  %v4947_v47 = vld [vmem:[#allocation14 + $0x338] sm:$0xff]  ;;  %13003 = vst [vmem:[#allocation75_spill] sm:$0xff] %v11738_v12 }
 0x69c   :  { %v4946_v61 = vld [vmem:[#allocation14 + $0x330] sm:$0xff]  ;;  %v11746_v4 = vcombine.high %v4943_v7, %v4947_v47  ;;  %v11752_v55 = vcombine.low %v4943_v7, %v4947_v47 }
 0x69d   :  { %v11744_v33 = vcombine.high %v4942_v9, %v4946_v61  ;;  %v11750_v40 = vcombine.low %v4942_v9, %v4946_v61 }
 0x69e   :  { %5711 = vmatpush2.bf16.msra.mxu0 %v11714_v60  ;;  %5752 = vmatpush2.bf16.msra.mxu1 %v11716_v19  ;;  %13006 = vst [vmem:[#allocation78_spill] sm:$0xff] %v11746_v4  ;;  %v4935_v19 = vld [vmem:[#allocation14 + $0x2d8] sm:$0xff]  ;;  %13008 = vst [vmem:[#allocation80_spill] sm:$0xff] %v11752_v55 }
 0x69f   :  { %5712 = vmatprep.subr.bf16.mxu0 %v11720_v10  ;;  %5753 = vmatprep.subr.bf16.mxu1 %v11722_v31  ;;  %13005 = vst [vmem:[#allocation77_spill] sm:$0xff] %v11744_v33  ;;  %v4934_v31 = vld [vmem:[#allocation14 + $0x2d0] sm:$0xff]  ;;  %v4939_v60 = vld [vmem:[#allocation14 + $0x2f8] sm:$0xff]  ;;  %13007 = vst [vmem:[#allocation79_spill] sm:$0xff] %v11750_v40 }
 0x6a0   :  { %v4938_v10 = vld [vmem:[#allocation14 + $0x2f0] sm:$0xff]  ;;  %v11758_v24 = vcombine.high %v4935_v19, %v4939_v60  ;;  %v11764_v47 = vcombine.low %v4935_v19, %v4939_v60 }
 0x6a1   :  { %v11756_v13 = vcombine.high %v4934_v31, %v4938_v10  ;;  %v11762_v61 = vcombine.low %v4934_v31, %v4938_v10 }
 0x6a2   :  { %5713 = vmatpush2.bf16.msra.mxu0 %v11726_v27  ;;  %5754 = vmatpush2.bf16.msra.mxu1 %v11728_v15  ;;  %13010 = vst [vmem:[#allocation82_spill] sm:$0xff] %v11758_v24  ;;  %v4927_v15 = vld [vmem:[#allocation14 + $0x298] sm:$0xff] }
 0x6a3   :  { %5714 = vmatprep.subr.bf16.mxu0 %v11732_v53  ;;  %5755 = vmatprep.subr.bf16.mxu1 %v11734_v42  ;;  %13009 = vst [vmem:[#allocation81_spill] sm:$0xff] %v11756_v13  ;;  %v4926_v42 = vld [vmem:[#allocation14 + $0x290] sm:$0xff]  ;;  %v4931_v27 = vld [vmem:[#allocation14 + $0x2b8] sm:$0xff] }
 0x6a4   :  { %v4930_v53 = vld [vmem:[#allocation14 + $0x2b0] sm:$0xff]  ;;  %v11770_v9 = vcombine.high %v4927_v15, %v4931_v27  ;;  %v11776_v60 = vcombine.low %v4927_v15, %v4931_v27 }
 0x6a5   :  { %v11768_v7 = vcombine.high %v4926_v42, %v4930_v53  ;;  %v11774_v10 = vcombine.low %v4926_v42, %v4930_v53 }
 0x6a6   :  { %5715 = vmatpush2.bf16.msra.mxu0 %v11738_v12  ;;  %5756 = vmatpush2.bf16.msra.mxu1 %v11740_v11  ;;  %13011 = vst [vmem:[#allocation83_spill] sm:$0xff] %v11770_v9  ;;  %v4919_v11 = vld [vmem:[#allocation14 + $0x258] sm:$0xff] }
 0x6a7   :  { %5716 = vmatprep.subr.bf16.mxu0 %v11744_v33  ;;  %5757 = vmatprep.subr.bf16.mxu1 %v11746_v4  ;;  %v4918_v4 = vld [vmem:[#allocation14 + $0x250] sm:$0xff]  ;;  %v4923_v12 = vld [vmem:[#allocation14 + $0x278] sm:$0xff]  ;;  %13012 = vst [vmem:[#allocation84_spill] sm:$0xff] %v11774_v10 }
 0x6a8   :  { %v4922_v33 = vld [vmem:[#allocation14 + $0x270] sm:$0xff]  ;;  %v11782_v31 = vcombine.high %v4919_v11, %v4923_v12  ;;  %v11788_v27 = vcombine.low %v4919_v11, %v4923_v12  ;;  %v5899_v12 = vld [vmem:[#allocation14 + $0x1c0] sm:$0xff] }
 0x6a9   :  { %v11780_v19 = vcombine.high %v4918_v4, %v4922_v33  ;;  %v11786_v53 = vcombine.low %v4918_v4, %v4922_v33  ;;  %v5903_v11 = vld [vmem:[#allocation14 + $0x1e0] sm:$0xff]  ;;  %v5900_v33 = vld [vmem:[#allocation14 + $0x1c8] sm:$0xff] }
 0x6aa   :  { %5717 = vmatpush2.bf16.msra.mxu0 %v11750_v40  ;;  %5758 = vmatpush2.bf16.msra.mxu1 %v11752_v55  ;;  %v4911_v55 = vld [vmem:[#allocation14 + $0x218] sm:$0xff]  ;;  %13013 = vst [vmem:[#allocation85_spill] sm:$0xff] %v11788_v27  ;;  %v11808_v4 = vcombine.low %v5899_v12, %v5903_v11 }
 0x6ab   :  { %5718 = vmatprep.subr.bf16.mxu0 %v11756_v13  ;;  %5759 = vmatprep.subr.bf16.mxu1 %v11758_v24  ;;  %v4910_v24 = vld [vmem:[#allocation14 + $0x210] sm:$0xff]  ;;  %v4915_v40 = vld [vmem:[#allocation14 + $0x238] sm:$0xff] }
 0x6ac   :  { %v4914_v13 = vld [vmem:[#allocation14 + $0x230] sm:$0xff]  ;;  %v11794_v42 = vcombine.high %v4911_v55, %v4915_v40  ;;  %13018 = vst [vmem:[#allocation90_spill] sm:$0xff] %v11808_v4 }
 0x6ad   :  { %v11792_v15 = vcombine.high %v4910_v24, %v4914_v13 }
 0x6ae   :  { %5719 = vmatpush2.bf16.msra.mxu0 %v11762_v61  ;;  %5760 = vmatpush2.bf16.msra.mxu1 %v11764_v47  ;;  %13015 = vst [vmem:[#allocation87_spill] sm:$0xff] %v11794_v42 }
 0x6af   :  { %5720 = vmatprep.subr.bf16.mxu0 %v11768_v7  ;;  %5761 = vmatprep.subr.bf16.mxu1 %v11770_v9  ;;  %13014 = vst [vmem:[#allocation86_spill] sm:$0xff] %v11792_v15  ;;  %v11798_v9 = vcombine.low %v4910_v24, %v4914_v13  ;;  %v11810_v13 = vcombine.high %v5899_v12, %v5903_v11  ;;  %v5895_v24 = vld [vmem:[#allocation14 + $0x1a0] sm:$0xff] }
 0x6b1   :  { %13016 = vst [vmem:[#allocation88_spill] sm:$0xff] %v11798_v9  ;;  %13019 = vst [vmem:[#allocation91_spill] sm:$0xff] %v11810_v13 }
 0x6b2   :  { %5721 = vmatpush2.bf16.msra.mxu0 %v11774_v10  ;;  %5762 = vmatpush2.bf16.msra.mxu1 %v11776_v60  ;;  %v11800_v10 = vcombine.low %v4911_v55, %v4915_v40  ;;  %v5904_v40 = vld [vmem:[#allocation14 + $0x1e8] sm:$0xff]  ;;  %v5891_v55 = vld [vmem:[#allocation14 + $0x180] sm:$0xff] }
 0x6b3   :  { %5722 = vmatprep.subr.bf16.mxu0 %v11780_v19  ;;  %5763 = vmatprep.subr.bf16.mxu1 %v11782_v31  ;;  %v11823_v12 = vcombine.low %v5891_v55, %v5895_v24 }
 0x6b4   :  { %13017 = vst [vmem:[#allocation89_spill] sm:$0xff] %v11800_v10 }
 0x6b5   :  { %13023 = vst [vmem:[#allocation95_spill] sm:$0xff] %v11823_v12 }
 0x6b6   :  { %5723 = vmatpush2.bf16.msra.mxu0 %v11786_v53  ;;  %5764 = vmatpush2.bf16.msra.mxu1 %v11788_v27  ;;  %v5896_v27 = vld [vmem:[#allocation14 + $0x1a8] sm:$0xff] }
 0x6b7   :  { %5724 = vmatprep.subr.bf16.mxu0 %v11792_v15  ;;  %5765 = vmatprep.subr.bf16.mxu1 %v11794_v42  ;;  %v11812_v15 = vcombine.low %v5900_v33, %v5904_v40  ;;  %v11814_v42 = vcombine.high %v5900_v33, %v5904_v40  ;;  %v5883_v33 = vld [vmem:[#allocation14 + $0x140] sm:$0xff] }
 0x6b8   :  { %v5887_v40 = vld [vmem:[#allocation14 + $0x160] sm:$0xff] }
 0x6b9   :  { %13020 = vst [vmem:[#allocation92_spill] sm:$0xff] %v11812_v15  ;;  %13021 = vst [vmem:[#allocation93_spill] sm:$0xff] %v11814_v42 }
 0x6ba   :  { %5725 = vmatpush2.bf16.msra.mxu0 %v11798_v9  ;;  %5766 = vmatpush2.bf16.msra.mxu1 %v11800_v10  ;;  %v11816_v9 = vcombine.high %v5891_v55, %v5895_v24  ;;  %v5892_v10 = vld [vmem:[#allocation14 + $0x188] sm:$0xff]  ;;  %v11834_v55 = vcombine.low %v5883_v33, %v5887_v40 }
 0x6bb   :  { %6611 = vmatprep.subr.bf16.mxu0 %v11810_v13  ;;  %6652 = vmatprep.subr.bf16.mxu1 %v11814_v42  ;;  %v11827_v11 = vcombine.low %v5892_v10, %v5896_v27  ;;  %v5884_v13 = vld [vmem:[#allocation14 + $0x148] sm:$0xff]  ;;  %v11832_v42 = vcombine.high %v5883_v33, %v5887_v40 }
 0x6bc   :  { %13026 = vst [vmem:[#allocation101_spill] sm:$0xff] %v11834_v55 }
 0x6bd   :  { %5727 = vmatmul.mubr.bf16.vlgmr.msra.gmra.mxu0 %v11620_v18  ;;  %5768 = vmatmul.mubr.bf16.vlgmr.msra.gmra.mxu1 %v11620_v18  ;;  %v11819_v18 = vcombine.high %v5892_v10, %v5896_v27  ;;  %13024 = vst [vmem:[#allocation96_spill] sm:$0xff] %v11827_v11  ;;  %13025 = vst [vmem:[#allocation97_spill] sm:$0xff] %v11832_v42  ;;  %v5875_v10 = vld [vmem:[#allocation14 + $0x100] sm:$0xff] }
 0x6be   :  { %6612 = vmatpush1.bf16.msra.mxu0 %v11808_v4  ;;  %6653 = vmatpush1.bf16.msra.mxu1 %v11812_v15  ;;  %v5888_v4 = vld [vmem:[#allocation14 + $0x168] sm:$0xff]  ;;  %v5879_v27 = vld [vmem:[#allocation14 + $0x120] sm:$0xff] }
 0x6bf   :  { %13022 = vst [vmem:[#allocation94_spill] sm:$0xff] %v11819_v18  ;;  %6613 = vmatprep.subr.bf16.mxu0 %v11816_v9  ;;  %6654 = vmatprep.subr.bf16.mxu1 %v11819_v18  ;;  %v11836_v24 = vcombine.low %v5884_v13, %v5888_v4  ;;  %v11838_v15 = vcombine.high %v5884_v13, %v5888_v4  ;;  %v5880_v18 = vld [vmem:[#allocation14 + $0x128] sm:$0xff]  ;;  %v5867_v13 = vld [vmem:[#allocation14 + $0xc0] sm:$0xff] }
 0x6c0   :  { %v11846_v33 = vcombine.low %v5875_v10, %v5879_v27 }
 0x6c1   :  { %13027 = vst [vmem:[#allocation100_spill] sm:$0xff] %v11836_v24  ;;  %13028 = vst [vmem:[#allocation99_spill] sm:$0xff] %v11838_v15 }
 0x6c2   :  { %6614 = vmatpush1.bf16.msra.mxu0 %v11823_v12  ;;  %6655 = vmatpush1.bf16.msra.mxu1 %v11827_v11  ;;  %v5876_v11 = vld [vmem:[#allocation14 + $0x108] sm:$0xff]  ;;  %v11844_v12 = vcombine.high %v5875_v10, %v5879_v27  ;;  %13030 = vst [vmem:[#allocation102_spill] sm:$0xff] %v11846_v33 }
 0x6c3   :  { %6615 = vmatprep.subr.bf16.mxu0 %v11832_v42  ;;  %6656 = vmatprep.subr.bf16.mxu1 %v11838_v15  ;;  %v11848_v40 = vcombine.low %v5876_v11, %v5880_v18  ;;  %v11850_v4 = vcombine.high %v5876_v11, %v5880_v18  ;;  %v5868_v15 = vld [vmem:[#allocation14 + $0xc8] sm:$0xff]  ;;  %v5859_v11 = vld [vmem:[#allocation14 + $0x80] sm:$0xff] }
 0x6c4   :  { %13029 = vst [vmem:[#allocation98_spill] sm:$0xff] %v11844_v12  ;;  %v5872_v42 = vld [vmem:[#allocation14 + $0xe8] sm:$0xff] }
 0x6c5   :  { %13031 = vst [vmem:[#allocation103_spill] sm:$0xff] %v11848_v40  ;;  %13032 = vst [vmem:[#allocation104_spill] sm:$0xff] %v11850_v4  ;;  %v11860_v27 = vcombine.low %v5868_v15, %v5872_v42  ;;  %v11862_v18 = vcombine.high %v5868_v15, %v5872_v42  ;;  %v5851_v42 = vld [vmem:[#allocation14 + $0x40] sm:$0xff] }
 0x6c6   :  { %6616 = vmatpush1.bf16.msra.mxu0 %v11834_v55  ;;  %6657 = vmatpush1.bf16.msra.mxu1 %v11836_v24  ;;  %v5871_v55 = vld [vmem:[#allocation14 + $0xe0] sm:$0xff] }
 0x6c7   :  { %6617 = vmatprep.subr.bf16.mxu0 %v11844_v12  ;;  %6658 = vmatprep.subr.bf16.mxu1 %v11850_v4  ;;  %v11856_v24 = vcombine.high %v5867_v13, %v5871_v55  ;;  %v11858_v10 = vcombine.low %v5867_v13, %v5871_v55  ;;  %13035 = vst [vmem:[#allocation108_spill] sm:$0xff] %v11860_v27  ;;  %13036 = vst [vmem:[#allocation106_spill] sm:$0xff] %v11862_v18  ;;  %v5860_v4 = vld [vmem:[#allocation14 + $0x88] sm:$0xff] }
 0x6c8   :  { %v5864_v12 = vld [vmem:[#allocation14 + $0xa8] sm:$0xff] }
 0x6c9   :  { %13033 = vst [vmem:[#allocation105_spill] sm:$0xff] %v11856_v24  ;;  %13034 = vst [vmem:[#allocation107_spill] sm:$0xff] %v11858_v10  ;;  %v11872_v13 = vcombine.low %v5860_v4, %v5864_v12  ;;  %v11874_v15 = vcombine.high %v5860_v4, %v5864_v12  ;;  %v5843_v4 = vld [vmem:[#allocation14] sm:$0xff] }
 0x6ca   :  { %6618 = vmatpush1.bf16.msra.mxu0 %v11846_v33  ;;  %6659 = vmatpush1.bf16.msra.mxu1 %v11848_v40  ;;  %v5863_v33 = vld [vmem:[#allocation14 + $0xa0] sm:$0xff] }
 0x6cb   :  { %6619 = vmatprep.subr.bf16.mxu0 %v11856_v24  ;;  %6660 = vmatprep.subr.bf16.mxu1 %v11862_v18  ;;  %v11868_v40 = vcombine.high %v5859_v11, %v5863_v33  ;;  %v11870_v55 = vcombine.low %v5859_v11, %v5863_v33  ;;  %13039 = vst [vmem:[#allocation112_spill] sm:$0xff] %v11872_v13  ;;  %13040 = vst [vmem:[#allocation110_spill] sm:$0xff] %v11874_v15  ;;  %v5852_v18 = vld [vmem:[#allocation14 + $0x48] sm:$0xff] }
 0x6cc   :  { %v5856_v24 = vld [vmem:[#allocation14 + $0x68] sm:$0xff] }
 0x6cd   :  { %13037 = vst [vmem:[#allocation109_spill] sm:$0xff] %v11868_v40  ;;  %13038 = vst [vmem:[#allocation111_spill] sm:$0xff] %v11870_v55  ;;  %v11884_v11 = vcombine.low %v5852_v18, %v5856_v24  ;;  %v11886_v12 = vcombine.high %v5852_v18, %v5856_v24 }
 0x6ce   :  { %6620 = vmatpush1.bf16.msra.mxu0 %v11858_v10  ;;  %6661 = vmatpush1.bf16.msra.mxu1 %v11860_v27  ;;  %v5855_v10 = vld [vmem:[#allocation14 + $0x60] sm:$0xff] }
 0x6cf   :  { %6621 = vmatprep.subr.bf16.mxu0 %v11868_v40  ;;  %6662 = vmatprep.subr.bf16.mxu1 %v11874_v15  ;;  %v11880_v27 = vcombine.high %v5851_v42, %v5855_v10  ;;  %v11882_v33 = vcombine.low %v5851_v42, %v5855_v10  ;;  %v5844_v15 = vld [vmem:[#allocation14 + $0x8] sm:$0xff] }
 0x6d0   :  { %v5848_v40 = vld [vmem:[#allocation14 + $0x28] sm:$0xff] }
 0x6d1   :  { %v11896_v42 = vcombine.low %v5844_v15, %v5848_v40  ;;  %v11898_v24 = vcombine.high %v5844_v15, %v5848_v40 }
 0x6d2   :  { %6622 = vmatpush1.bf16.msra.mxu0 %v11870_v55  ;;  %6663 = vmatpush1.bf16.msra.mxu1 %v11872_v13  ;;  %v5847_v55 = vld [vmem:[#allocation14 + $0x20] sm:$0xff] }
 0x6d3   :  { %6623 = vmatprep.subr.bf16.mxu0 %v11880_v27  ;;  %6664 = vmatprep.subr.bf16.mxu1 %v11886_v12  ;;  %v11892_v13 = vcombine.high %v5843_v4, %v5847_v55  ;;  %v11894_v10 = vcombine.low %v5843_v4, %v5847_v55 }
 0x6d6   :  { %6624 = vmatpush1.bf16.msra.mxu0 %v11882_v33  ;;  %6665 = vmatpush1.bf16.msra.mxu1 %v11884_v11 }
 0x6d7   :  { %6625 = vmatprep.subr.bf16.mxu0 %v11892_v13  ;;  %6666 = vmatprep.subr.bf16.mxu1 %v11898_v24 }
 0x6da   :  { %6626 = vmatpush1.bf16.msra.mxu0 %v11894_v10  ;;  %6667 = vmatpush1.bf16.msra.mxu1 %v11896_v42 }
 0x6db   :  { %6627 = vmatprep.subr.bf16.mxu0 %v11498_v58  ;;  %6668 = vmatprep.subr.bf16.mxu1 %v11504_v17 }
 0x6de   :  { %6628 = vmatpush2.bf16.msra.mxu0 %v11500_v25  ;;  %6669 = vmatpush2.bf16.msra.mxu1 %v11502_v63  ;;  %v13041_v63 = vld [vmem:[#allocation28_spill] sm:$0xff] }
 0x6df   :  { %6629 = vmatprep.subr.bf16.mxu0 %v11510_v16  ;;  %6670 = vmatprep.subr.bf16.mxu1 %v11516_v14  ;;  %v13042_v16 = vld [vmem:[#allocation40_spill] sm:$0xff] }
 0x6e2   :  { %6630 = vmatpush2.bf16.msra.mxu0 %v11512_v29  ;;  %6671 = vmatpush2.bf16.msra.mxu1 %v11514_v45 }
 0x6e3   :  { %6631 = vmatprep.subr.bf16.mxu0 %v11522_v1  ;;  %6672 = vmatprep.subr.bf16.mxu1 %v11528_v57  ;;  %v13044_v57 = vld [vmem:[#allocation41_spill] sm:$0xff] }
 0x6e6   :  { %6632 = vmatpush2.bf16.msra.mxu0 %v11524_v49  ;;  %6673 = vmatpush2.bf16.msra.mxu1 %v11526_v52  ;;  %v13043_v49 = vld [vmem:[#allocation29_spill] sm:$0xff] }
 0x6e7   :  { %6633 = vmatprep.subr.bf16.mxu0 %v11534_v28  ;;  %6674 = vmatprep.subr.bf16.mxu1 %v11540_v22 }
 0x6ea   :  { %6634 = vmatpush2.bf16.msra.mxu0 %v11536_v41  ;;  %6675 = vmatpush2.bf16.msra.mxu1 %v11538_v23 }
 0x6eb   :  { %6635 = vmatprep.subr.bf16.mxu0 %v11543_v54  ;;  %6676 = vmatprep.subr.bf16.mxu1 %v11549_v3 }
 0x6ee   :  { %6636 = vmatpush2.bf16.msra.mxu0 %v11547_v30  ;;  %6677 = vmatpush2.bf16.msra.mxu1 %v11553_v20 }
 0x6ef   :  { %6637 = vmatprep.subr.bf16.mxu0 %v11555_v46  ;;  %6678 = vmatprep.subr.bf16.mxu1 %v11558_v62 }
 0x6f2   :  { %6638 = vmatpush2.bf16.msra.mxu0 %v11561_v38  ;;  %6679 = vmatpush2.bf16.msra.mxu1 %v11565_v2 }
 0x6f3   :  { %6639 = vmatprep.subr.bf16.mxu0 %v11567_v43  ;;  %6680 = vmatprep.subr.bf16.mxu1 %v11570_v8 }
 0x6f6   :  { %6640 = vmatpush2.bf16.msra.mxu0 %v11573_v32  ;;  %6681 = vmatpush2.bf16.msra.mxu1 %v11577_v36 }
 0x6f7   :  { %6641 = vmatprep.subr.bf16.mxu0 %v11579_v39  ;;  %6682 = vmatprep.subr.bf16.mxu1 %v11582_v5 }
 0x6fa   :  { %6642 = vmatpush2.bf16.msra.mxu0 %v11585_v44  ;;  %6683 = vmatpush2.bf16.msra.mxu1 %v11589_v56 }
 0x6fb   :  { %6693 = vmatprep.subr.bf16.mxu0 %v11596_v26  ;;  %6734 = vmatprep.subr.bf16.mxu1 %v11600_v6 }
 0x73d   :  { %v5646_v58 = vpop.f32.mrf.mxu0  ;;  %v5687_v25 = vpop.f32.mrf.mxu1 }
 0x73e   :  { %v5783_v17 = vadd.f32 %v5646_v58, %v13041_v63  ;;  %v5785_v29 = vadd.f32 %v5687_v25, %v13042_v16 }
 0x73f   :  { %v5648_v45 = vpop.f32.mrf.mxu0  ;;  %v5689_v14 = vpop.f32.mrf.mxu1 }
 0x740   :  { %v9291_v1 = vmul.f32 -1.442695, %v5783_v17  ;;  %v5784_v52 = vadd.f32 %v5648_v45, %v13043_v49  ;;  %v5786_v28 = vadd.f32 %v5689_v14, %v13044_v57  ;;  %v9293_v25 = vmul.f32 -1.442695, %v5785_v29 }
 0x741   :  { %v5650_v41 = vpop.f32.mrf.mxu0  ;;  %v5691_v23 = vpop.f32.mrf.mxu1 }
 0x742   :  { %9901 = vpow2.f32 %v9291_v1  ;;  %v9292_v22 = vmul.f32 -1.442695, %v5784_v52 }
 0x743   :  { %v5651_v54 = vpop.f32.mrf.mxu0  ;;  %v5692_v30 = vpop.f32.mrf.mxu1 }
 0x744   :  { %9903 = vpow2.f32 %v9292_v22 }
 0x745   :  { %9905 = vtanh.f32 %v5786_v28 }
 0x74f   :  { %v9902_v3 = vpop.eup %9901 }
 0x750   :  { %v5796_v20 = vadd.f32 1.0, %v9902_v3 }
 0x751   :  { %v9904_v46 = vpop.eup %9903 }
 0x752   :  { %9907 = vrcp.f32 %v5796_v20  ;;  %v5797_v62 = vadd.f32 1.0, %v9904_v46  ;;  %v9906_v38 = vpop.eup %9905 }
 0x754   :  { %9909 = vrcp.f32 %v5797_v62 }
 0x75f   :  { %v9908_v2 = vpop.eup %9907 }
 0x760   :  { %v5807_v43 = vmul.f32 %v9908_v2, %v9906_v38 }
 0x761   :  { %v9910_v8 = vpop.eup %9909 }
 0x762   :  { %v5806_v32 = vmul.f32 %v9910_v8, %v11609_v48 }
 0x764   :  { %v11943_v36 = vadd.f32 %v5807_v43, %v5806_v32  ;;  %v13046_v32 = vld [vmem:[#allocation34_spill] sm:$0xff] }
 0x77d   :  { %v5728_v39 = vpop.f32.mrf.mxu0  ;;  %v5769_v5 = vpop.f32.mrf.mxu1 }
 0x77e   :  { %v5811_v44 = vadd.f32 %v5728_v39, %v10820_v0  ;;  %v5813_v48 = vadd.f32 %v5769_v5, %v10830_v37  ;;  %v13047_v39 = vld [vmem:[#allocation23_spill] sm:$0xff] }
 0x77f   :  { %v5730_v56 = vpop.f32.mrf.mxu0  ;;  %v5771_v26 = vpop.f32.mrf.mxu1  ;;  %v13048_v5 = vld [vmem:[#allocation35_spill] sm:$0xff] }
 0x780   :  { %v9294_v6 = vmul.f32 -1.442695, %v5811_v44  ;;  %v5812_v40 = vadd.f32 %v5730_v56, %v10824_v50  ;;  %v9296_v63 = vmul.f32 -1.442695, %v5813_v48  ;;  %v5814_v16 = vadd.f32 %v5771_v26, %v10835_v51  ;;  %v13049_v44 = vld [vmem:[#allocation24_spill] sm:$0xff]  ;;  %v13051_v26 = vld [vmem:[#allocation25_spill] sm:$0xff] }
 0x781   :  { %v5732_v18 = vpop.f32.mrf.mxu0  ;;  %v5773_v55 = vpop.f32.mrf.mxu1  ;;  %v13050_v56 = vld [vmem:[#allocation36_spill] sm:$0xff]  ;;  %v13062_v48 = vld [vmem:[#allocation55_spill] sm:$0xff] }
 0x782   :  { %9911 = vpow2.f32 %v9294_v6  ;;  %v9295_v15 = vmul.f32 -1.442695, %v5812_v40  ;;  %v13054_v6 = vld [vmem:[#allocation47_spill] sm:$0xff]  ;;  %v13056_v40 = vld [vmem:[#allocation49_spill] sm:$0xff]  ;;  %v13057_v18 = vld [vmem:[#allocation50_spill] sm:$0xff] }
 0x783   :  { %v5733_v4 = vpop.f32.mrf.mxu0  ;;  %v5774_v58 = vpop.f32.mrf.mxu1  ;;  %v13058_v55 = vld [vmem:[#allocation51_spill] sm:$0xff] }
 0x784   :  { %9913 = vpow2.f32 %v9295_v15  ;;  %v13059_v15 = vld [vmem:[#allocation52_spill] sm:$0xff]  ;;  %v13060_v4 = vld [vmem:[#allocation53_spill] sm:$0xff]  ;;  %v13061_v58 = vld [vmem:[#allocation54_spill] sm:$0xff] }
 0x785   :  { %9915 = vpow2.f32 %v9293_v25  ;;  %v13063_v25 = vld [vmem:[#allocation56_spill] sm:$0xff] }
 0x786   :  { %9917 = vpow2.f32 %v9296_v63  ;;  %v13064_v63 = vld [vmem:[#allocation57_spill] sm:$0xff] }
 0x78f   :  { %v9912_v17 = vpop.eup %9911 }
 0x790   :  { %v5824_v45 = vadd.f32 1.0, %v9912_v17  ;;  %v13065_v17 = vld [vmem:[#allocation58_spill] sm:$0xff] }
 0x791   :  { %v9914_v14 = vpop.eup %9913 }
 0x792   :  { %9919 = vrcp.f32 %v5824_v45  ;;  %v5825_v1 = vadd.f32 1.0, %v9914_v14  ;;  %v9916_v49 = vpop.eup %9915  ;;  %v13067_v45 = vld [vmem:[#allocation60_spill] sm:$0xff]  ;;  %v13068_v14 = vld [vmem:[#allocation61_spill] sm:$0xff] }
 0x793   :  { %9921 = vtanh.f32 %v5814_v16  ;;  %v9918_v52 = vpop.eup %9917  ;;  %v5798_v41 = vadd.f32 1.0, %v9916_v49  ;;  %v13066_v16 = vld [vmem:[#allocation59_spill] sm:$0xff] }
 0x794   :  { %9923 = vrcp.f32 %v5825_v1  ;;  %v5826_v22 = vadd.f32 1.0, %v9918_v52  ;;  %v13069_v1 = vld [vmem:[#allocation62_spill] sm:$0xff]  ;;  %v13070_v49 = vld [vmem:[#allocation63_spill] sm:$0xff]  ;;  %v13071_v52 = vld [vmem:[#allocation64_spill] sm:$0xff] }
 0x795   :  { %9925 = vtanh.f32 %v11943_v36 }
 0x796   :  { %9927 = vrcp.f32 %v5798_v41  ;;  %v13074_v41 = vld [vmem:[#allocation67_spill] sm:$0xff] }
 0x797   :  { %9929 = vrcp.f32 %v5826_v22  ;;  %v13076_v22 = vld [vmem:[#allocation69_spill] sm:$0xff] }
 0x79f   :  { %v9920_v57 = vpop.eup %9919 }
 0x7a0   :  { %v9922_v28 = vpop.eup %9921 }
 0x7a1   :  { %v9924_v23 = vpop.eup %9923  ;;  %v5835_v54 = vmul.f32 %v9922_v28, %v9920_v57  ;;  %v13072_v57 = vld [vmem:[#allocation65_spill] sm:$0xff]  ;;  %v13073_v28 = vld [vmem:[#allocation66_spill] sm:$0xff] }
 0x7a2   :  { %v5834_v29 = vmul.f32 %v9924_v23, %v11617_v21  ;;  %v9926_v3 = vpop.eup %9925  ;;  %v13045_v21 = vld [vmem:[#allocation22_spill] sm:$0xff]  ;;  %v13075_v23 = vld [vmem:[#allocation68_spill] sm:$0xff] }
 0x7a3   :  { %v9928_v20 = vpop.eup %9927 }
 0x7a4   :  { %v11951_v30 = vadd.f32 %v5835_v54, %v5834_v29  ;;  %v9930_v46 = vpop.eup %9929  ;;  %v5810_v38 = vmul.f32 %v9928_v20, %v9926_v3  ;;  %v13077_v29 = vld [vmem:[#allocation70_spill] sm:$0xff]  ;;  %v13078_v54 = vld [vmem:[#allocation71_spill] sm:$0xff]  ;;  %v13079_v3 = vld [vmem:[#allocation72_spill] sm:$0xff] }
 0x7a5   :  { %v13080_v20 = vld [vmem:[#allocation73_spill] sm:$0xff] }
 0x7a6   :  { %9931 = vtanh.f32 %v11951_v30  ;;  %v11954_v8 = vpack.c.bf16 %v5810_v38, %v5810_v38  ;;  %v13083_v38 = vld [vmem:[#allocation76_spill] sm:$0xff] }
 0x7b3   :  { %v9932_v62 = vpop.eup %9931 }
 0x7b4   :  { %v5838_v2 = vmul.f32 %v9932_v62, %v9930_v46  ;;  %v13081_v46 = vld [vmem:[#allocation74_spill] sm:$0xff]  ;;  %v13082_v62 = vld [vmem:[#allocation75_spill] sm:$0xff] }
 0x7b6   :  { %v5839_v43 = vpack.c.bf16 %v5838_v2, %v5838_v2  ;;  %v13084_v2 = vld [vmem:[#allocation77_spill] sm:$0xff] }
 0x7b8   :  { %5841 = vst [vmem:[#allocation3 + $0x10] sm:$0xf] %v5839_v43  ;;  %6643 = vmatprep.mubr.bf16.mxu0 %v5839_v43  ;;  %6684 = vmatprep.mubr.bf16.mxu1 %v5839_v43 }
 0x7b9   :  { %6644 = vmatmul.mubr.bf16.vlgmr.msra.gmra.mxu0 %v11954_v8  ;;  %6685 = vmatmul.mubr.bf16.vlgmr.msra.gmra.mxu1 %v11954_v8 }
 0x7ba   :  { %6694 = vmatpush1.bf16.msra.mxu0 %v11594_v59  ;;  %6735 = vmatpush1.bf16.msra.mxu1 %v11598_v34  ;;  %v13052_v59 = vld [vmem:[#allocation37_spill] sm:$0xff]  ;;  %v13053_v34 = vld [vmem:[#allocation46_spill] sm:$0xff] }
 0x7bb   :  { %6725 = vmatprep.mubr.bf16.mxu0 %v5839_v43  ;;  %6766 = vmatprep.mubr.bf16.mxu1 %v5839_v43  ;;  %v13085_v43 = vld [vmem:[#allocation78_spill] sm:$0xff] }
 0x7bc   :  { %6695 = vmatprep.subr.bf16.mxu0 %v11622_v35  ;;  %6736 = vmatprep.subr.bf16.mxu1 %v13045_v21  ;;  %v13055_v35 = vld [vmem:[#allocation48_spill] sm:$0xff]  ;;  %v13086_v21 = vld [vmem:[#allocation79_spill] sm:$0xff] }
 0x7be   :  { %6696 = vmatpush1.bf16.msra.mxu0 %v13046_v32  ;;  %6737 = vmatpush1.bf16.msra.mxu1 %v13047_v39  ;;  %v13087_v32 = vld [vmem:[#allocation80_spill] sm:$0xff]  ;;  %v13088_v39 = vld [vmem:[#allocation81_spill] sm:$0xff] }
 0x7bf   :  { %6697 = vmatprep.subr.bf16.mxu0 %v13048_v5  ;;  %6738 = vmatprep.subr.bf16.mxu1 %v13049_v44  ;;  %v13089_v5 = vld [vmem:[#allocation82_spill] sm:$0xff]  ;;  %v13090_v44 = vld [vmem:[#allocation83_spill] sm:$0xff] }
 0x7c2   :  { %6698 = vmatpush1.bf16.msra.mxu0 %v13050_v56  ;;  %6739 = vmatpush1.bf16.msra.mxu1 %v13051_v26  ;;  %v13091_v56 = vld [vmem:[#allocation84_spill] sm:$0xff]  ;;  %v13092_v26 = vld [vmem:[#allocation85_spill] sm:$0xff] }
 0x7c3   :  { %6699 = vmatprep.subr.bf16.mxu0 %v13052_v59  ;;  %6740 = vmatprep.subr.bf16.mxu1 %v13053_v34  ;;  %v13093_v59 = vld [vmem:[#allocation86_spill] sm:$0xff]  ;;  %v13097_v34 = vld [vmem:[#allocation91_spill] sm:$0xff] }
 0x7c6   :  { %6700 = vmatpush1.bf16.msra.mxu0 %v13054_v6  ;;  %6741 = vmatpush1.bf16.msra.mxu1 %v13055_v35  ;;  %v13098_v6 = vld [vmem:[#allocation93_spill] sm:$0xff]  ;;  %v13103_v35 = vld [vmem:[#allocation96_spill] sm:$0xff] }
 0x7c7   :  { %6701 = vmatprep.subr.bf16.mxu0 %v13056_v40  ;;  %6742 = vmatprep.subr.bf16.mxu1 %v13057_v18  ;;  %v13104_v40 = vld [vmem:[#allocation97_spill] sm:$0xff]  ;;  %v13105_v18 = vld [vmem:[#allocation99_spill] sm:$0xff] }
 0x7ca   :  { %6702 = vmatpush1.bf16.msra.mxu0 %v13058_v55  ;;  %6743 = vmatpush1.bf16.msra.mxu1 %v13059_v15  ;;  %v13106_v55 = vld [vmem:[#allocation101_spill] sm:$0xff]  ;;  %v13107_v15 = vld [vmem:[#allocation100_spill] sm:$0xff] }
 0x7cb   :  { %6703 = vmatprep.subr.bf16.mxu0 %v13060_v4  ;;  %6744 = vmatprep.subr.bf16.mxu1 %v13061_v58  ;;  %v13109_v4 = vld [vmem:[#allocation104_spill] sm:$0xff]  ;;  %v13110_v58 = vld [vmem:[#allocation102_spill] sm:$0xff] }
 0x7ce   :  { %6704 = vmatpush1.bf16.msra.mxu0 %v13062_v48  ;;  %6745 = vmatpush1.bf16.msra.mxu1 %v13063_v25  ;;  %v13112_v48 = vld [vmem:[#allocation105_spill] sm:$0xff]  ;;  %v13113_v25 = vld [vmem:[#allocation106_spill] sm:$0xff] }
 0x7cf   :  { %6705 = vmatprep.subr.bf16.mxu0 %v13064_v63  ;;  %6746 = vmatprep.subr.bf16.mxu1 %v13065_v17  ;;  %v13114_v63 = vld [vmem:[#allocation107_spill] sm:$0xff]  ;;  %v13115_v17 = vld [vmem:[#allocation108_spill] sm:$0xff] }
 0x7d2   :  { %6706 = vmatpush1.bf16.msra.mxu0 %v13066_v16  ;;  %6747 = vmatpush1.bf16.msra.mxu1 %v13067_v45  ;;  %v13116_v16 = vld [vmem:[#allocation109_spill] sm:$0xff]  ;;  %v13117_v45 = vld [vmem:[#allocation110_spill] sm:$0xff] }
 0x7d3   :  { %6707 = vmatprep.subr.bf16.mxu0 %v13068_v14  ;;  %6748 = vmatprep.subr.bf16.mxu1 %v13069_v1  ;;  %v13118_v14 = vld [vmem:[#allocation111_spill] sm:$0xff]  ;;  %v13119_v1 = vld [vmem:[#allocation112_spill] sm:$0xff] }
 0x7d6   :  { %6708 = vmatpush1.bf16.msra.mxu0 %v13070_v49  ;;  %6749 = vmatpush1.bf16.msra.mxu1 %v13071_v52  ;;  %v6962_v49 = vld [vmem:[#allocation14 + $0x3c0] sm:$0xff] }
 0x7d7   :  { %6709 = vmatprep.subr.bf16.mxu0 %v13072_v57  ;;  %6750 = vmatprep.subr.bf16.mxu1 %v13073_v28  ;;  %v6966_v52 = vld [vmem:[#allocation14 + $0x3e0] sm:$0xff]  ;;  %v6963_v57 = vld [vmem:[#allocation14 + $0x3c8] sm:$0xff] }
 0x7d8   :  { %v9552_v28 = vcombine.high %v6962_v49, %v6966_v52 }
 0x7da   :  { %6710 = vmatpush2.bf16.msra.mxu0 %v13074_v41  ;;  %6751 = vmatpush2.bf16.msra.mxu1 %v13075_v23  ;;  %v6967_v41 = vld [vmem:[#allocation14 + $0x3e8] sm:$0xff] }
 0x7db   :  { %6711 = vmatprep.subr.bf16.mxu0 %v13076_v22  ;;  %6752 = vmatprep.subr.bf16.mxu1 %v13077_v29  ;;  %v9553_v23 = vcombine.low %v6963_v57, %v6967_v41  ;;  %v6959_v22 = vld [vmem:[#allocation14 + $0x3a8] sm:$0xff] }
 0x7de   :  { %6712 = vmatpush2.bf16.msra.mxu0 %v13078_v54  ;;  %6753 = vmatpush2.bf16.msra.mxu1 %v13079_v3  ;;  %v6946_v54 = vld [vmem:[#allocation14 + $0x340] sm:$0xff] }
 0x7df   :  { %6713 = vmatprep.subr.bf16.mxu0 %v13080_v20  ;;  %6754 = vmatprep.subr.bf16.mxu1 %v13081_v46  ;;  %v6950_v3 = vld [vmem:[#allocation14 + $0x360] sm:$0xff]  ;;  %v6947_v20 = vld [vmem:[#allocation14 + $0x348] sm:$0xff] }
 0x7e0   :  { %v9536_v46 = vcombine.high %v6946_v54, %v6950_v3 }
 0x7e2   :  { %6714 = vmatpush2.bf16.msra.mxu0 %v13082_v62  ;;  %6755 = vmatpush2.bf16.msra.mxu1 %v13083_v38  ;;  %v6951_v62 = vld [vmem:[#allocation14 + $0x368] sm:$0xff]  ;;  %v9535_v38 = vcombine.low %v6946_v54, %v6950_v3  ;;  %v13120_v54 = vld [vmem:[#allocation30_spill] sm:$0xff] }
 0x7e3   :  { %6715 = vmatprep.subr.bf16.mxu0 %v13084_v2  ;;  %6756 = vmatprep.subr.bf16.mxu1 %v13085_v43  ;;  %v9537_v2 = vcombine.low %v6947_v20, %v6951_v62  ;;  %v9538_v43 = vcombine.high %v6947_v20, %v6951_v62  ;;  %v13121_v20 = vld [vmem:[#allocation42_spill] sm:$0xff] }
 0x7e6   :  { %6716 = vmatpush2.bf16.msra.mxu0 %v13086_v21  ;;  %6757 = vmatpush2.bf16.msra.mxu1 %v13087_v32  ;;  %v6938_v21 = vld [vmem:[#allocation14 + $0x300] sm:$0xff] }
 0x7e7   :  { %6717 = vmatprep.subr.bf16.mxu0 %v13088_v39  ;;  %6758 = vmatprep.subr.bf16.mxu1 %v13089_v5  ;;  %v6942_v32 = vld [vmem:[#allocation14 + $0x320] sm:$0xff]  ;;  %v6939_v39 = vld [vmem:[#allocation14 + $0x308] sm:$0xff] }
 0x7e8   :  { %v9528_v5 = vcombine.high %v6938_v21, %v6942_v32 }
 0x7ea   :  { %6718 = vmatpush2.bf16.msra.mxu0 %v11762_v61  ;;  %6759 = vmatpush2.bf16.msra.mxu1 %v11764_v47  ;;  %v13094_v61 = vld [vmem:[#allocation87_spill] sm:$0xff]  ;;  %v13095_v47 = vld [vmem:[#allocation88_spill] sm:$0xff] }
 0x7eb   :  { %6719 = vmatprep.subr.bf16.mxu0 %v11768_v7  ;;  %6760 = vmatprep.subr.bf16.mxu1 %v13090_v44  ;;  %v13096_v7 = vld [vmem:[#allocation89_spill] sm:$0xff]  ;;  %v6943_v44 = vld [vmem:[#allocation14 + $0x328] sm:$0xff] }
 0x7ee   :  { %6720 = vmatpush2.bf16.msra.mxu0 %v13091_v56  ;;  %6761 = vmatpush2.bf16.msra.mxu1 %v11776_v60  ;;  %v13099_v60 = vld [vmem:[#allocation90_spill] sm:$0xff]  ;;  %v9527_v56 = vcombine.low %v6938_v21, %v6942_v32  ;;  %v13123_v32 = vld [vmem:[#allocation43_spill] sm:$0xff] }
 0x7ef   :  { %6721 = vmatprep.subr.bf16.mxu0 %v11780_v19  ;;  %6762 = vmatprep.subr.bf16.mxu1 %v11782_v31  ;;  %v13100_v19 = vld [vmem:[#allocation92_spill] sm:$0xff]  ;;  %v13101_v31 = vld [vmem:[#allocation94_spill] sm:$0xff] }
 0x7f2   :  { %6722 = vmatpush2.bf16.msra.mxu0 %v11786_v53  ;;  %6763 = vmatpush2.bf16.msra.mxu1 %v13092_v26  ;;  %v13102_v53 = vld [vmem:[#allocation95_spill] sm:$0xff]  ;;  %v9529_v26 = vcombine.low %v6939_v39, %v6943_v44 }
 0x7f3   :  { %6723 = vmatprep.subr.bf16.mxu0 %v13093_v59  ;;  %6764 = vmatprep.subr.bf16.mxu1 %v13094_v61  ;;  %v9530_v59 = vcombine.high %v6939_v39, %v6943_v44  ;;  %v6930_v61 = vld [vmem:[#allocation14 + $0x2c0] sm:$0xff] }
 0x7f6   :  { %6724 = vmatpush2.bf16.msra.mxu0 %v13095_v47  ;;  %6765 = vmatpush2.bf16.msra.mxu1 %v13096_v7  ;;  %v6934_v47 = vld [vmem:[#allocation14 + $0x2e0] sm:$0xff]  ;;  %v6931_v7 = vld [vmem:[#allocation14 + $0x2c8] sm:$0xff] }
 0x7f7   :  { %7610 = vmatprep.subr.bf16.mxu0 %v13097_v34  ;;  %7651 = vmatprep.subr.bf16.mxu1 %v13098_v6  ;;  %v9520_v34 = vcombine.high %v6930_v61, %v6934_v47  ;;  %v6935_v6 = vld [vmem:[#allocation14 + $0x2e8] sm:$0xff] }
 0x7f9   :  { %6726 = vmatmul.mubr.bf16.vlgmr.msra.gmra.mxu0 %v11954_v8  ;;  %6767 = vmatmul.mubr.bf16.vlgmr.msra.gmra.mxu1 %v11954_v8  ;;  %v13108_v8 = vld [vmem:[#allocation98_spill] sm:$0xff] }
 0x7fa   :  { %7611 = vmatpush1.bf16.msra.mxu0 %v13099_v60  ;;  %7652 = vmatpush1.bf16.msra.mxu1 %v13100_v19  ;;  %v6922_v60 = vld [vmem:[#allocation14 + $0x280] sm:$0xff] }
 0x7fb   :  { %7612 = vmatprep.subr.bf16.mxu0 %v11816_v9  ;;  %7653 = vmatprep.subr.bf16.mxu1 %v13101_v31  ;;  %v13111_v9 = vld [vmem:[#allocation103_spill] sm:$0xff]  ;;  %v6926_v19 = vld [vmem:[#allocation14 + $0x2a0] sm:$0xff]  ;;  %v9519_v31 = vcombine.low %v6930_v61, %v6934_v47 }
 0x7fe   :  { %7613 = vmatpush1.bf16.msra.mxu0 %v13102_v53  ;;  %7654 = vmatpush1.bf16.msra.mxu1 %v13103_v35  ;;  %v9522_v53 = vcombine.high %v6931_v7, %v6935_v6  ;;  %v6923_v35 = vld [vmem:[#allocation14 + $0x288] sm:$0xff] }
 0x7ff   :  { %7614 = vmatprep.subr.bf16.mxu0 %v13104_v40  ;;  %7655 = vmatprep.subr.bf16.mxu1 %v13105_v18  ;;  %v6927_v40 = vld [vmem:[#allocation14 + $0x2a8] sm:$0xff]  ;;  %v9521_v18 = vcombine.low %v6931_v7, %v6935_v6 }
 0x802   :  { %7615 = vmatpush1.bf16.msra.mxu0 %v13106_v55  ;;  %7656 = vmatpush1.bf16.msra.mxu1 %v13107_v15  ;;  %v9512_v55 = vcombine.high %v6922_v60, %v6926_v19  ;;  %v9514_v15 = vcombine.high %v6923_v35, %v6927_v40 }
 0x803   :  { %7616 = vmatprep.subr.bf16.mxu0 %v13108_v8  ;;  %7657 = vmatprep.subr.bf16.mxu1 %v13109_v4  ;;  %v6914_v8 = vld [vmem:[#allocation14 + $0x240] sm:$0xff] }
 0x804   :  { %v6918_v4 = vld [vmem:[#allocation14 + $0x260] sm:$0xff] }
 0x806   :  { %7617 = vmatpush1.bf16.msra.mxu0 %v13110_v58  ;;  %7658 = vmatpush1.bf16.msra.mxu1 %v13111_v9  ;;  %v6915_v58 = vld [vmem:[#allocation14 + $0x248] sm:$0xff] }
 0x807   :  { %7618 = vmatprep.subr.bf16.mxu0 %v13112_v48  ;;  %7659 = vmatprep.subr.bf16.mxu1 %v13113_v25  ;;  %v6919_v9 = vld [vmem:[#allocation14 + $0x268] sm:$0xff]  ;;  %v9511_v48 = vcombine.low %v6922_v60, %v6926_v19  ;;  %v9513_v25 = vcombine.low %v6923_v35, %v6927_v40 }
 0x80a   :  { %7619 = vmatpush1.bf16.msra.mxu0 %v13114_v63  ;;  %7660 = vmatpush1.bf16.msra.mxu1 %v13115_v17  ;;  %v9504_v63 = vcombine.high %v6914_v8, %v6918_v4  ;;  %v9506_v17 = vcombine.high %v6915_v58, %v6919_v9 }
 0x80b   :  { %7620 = vmatprep.subr.bf16.mxu0 %v13116_v16  ;;  %7661 = vmatprep.subr.bf16.mxu1 %v13117_v45  ;;  %v6906_v16 = vld [vmem:[#allocation14 + $0x200] sm:$0xff] }
 0x80c   :  { %v6910_v45 = vld [vmem:[#allocation14 + $0x220] sm:$0xff] }
 0x80e   :  { %7621 = vmatpush1.bf16.msra.mxu0 %v13118_v14  ;;  %7662 = vmatpush1.bf16.msra.mxu1 %v13119_v1  ;;  %v6907_v14 = vld [vmem:[#allocation14 + $0x208] sm:$0xff] }
 0x80f   :  { %7622 = vmatprep.subr.bf16.mxu0 %v11880_v27  ;;  %7663 = vmatprep.subr.bf16.mxu1 %v11886_v12  ;;  %v9551_v27 = vcombine.low %v6962_v49, %v6966_v52  ;;  %v9554_v12 = vcombine.high %v6963_v57, %v6967_v41  ;;  %v6911_v1 = vld [vmem:[#allocation14 + $0x228] sm:$0xff]  ;;  %v9503_v49 = vcombine.low %v6914_v8, %v6918_v4 }
 0x810   :  { %v9505_v52 = vcombine.low %v6915_v58, %v6919_v9  ;;  %v9496_v57 = vcombine.high %v6906_v16, %v6910_v45  ;;  %v9495_v41 = vcombine.low %v6906_v16, %v6910_v45 }
 0x812   :  { %7623 = vmatpush1.bf16.msra.mxu0 %v11882_v33  ;;  %7664 = vmatpush1.bf16.msra.mxu1 %v11884_v11  ;;  %v6954_v33 = vld [vmem:[#allocation14 + $0x380] sm:$0xff] }
 0x813   :  { %7624 = vmatprep.subr.bf16.mxu0 %v11892_v13  ;;  %7665 = vmatprep.subr.bf16.mxu1 %v11898_v24  ;;  %v6958_v11 = vld [vmem:[#allocation14 + $0x3a0] sm:$0xff]  ;;  %v6955_v13 = vld [vmem:[#allocation14 + $0x388] sm:$0xff] }
 0x814   :  { %v9544_v24 = vcombine.high %v6954_v33, %v6958_v11  ;;  %v9545_v29 = vcombine.low %v6955_v13, %v6959_v22 }
 0x816   :  { %7625 = vmatpush1.bf16.msra.mxu0 %v11894_v10  ;;  %7666 = vmatpush1.bf16.msra.mxu1 %v11896_v42  ;;  %v9543_v10 = vcombine.low %v6954_v33, %v6958_v11  ;;  %v9546_v42 = vcombine.high %v6955_v13, %v6959_v22  ;;  %v6901_v33 = vld [vmem:[#allocation14 + $0x1d8] sm:$0xff] }
 0x817   :  { %7626 = vmatprep.subr.bf16.mxu0 %v9552_v28  ;;  %7667 = vmatprep.subr.bf16.mxu1 %v9554_v12  ;;  %v9498_v28 = vcombine.high %v6907_v14, %v6911_v1  ;;  %v6904_v12 = vld [vmem:[#allocation14 + $0x1f0] sm:$0xff] }
 0x81a   :  { %7627 = vmatpush2.bf16.msra.mxu0 %v9551_v27  ;;  %7668 = vmatpush2.bf16.msra.mxu1 %v9553_v23  ;;  %v9497_v27 = vcombine.low %v6907_v14, %v6911_v1  ;;  %v6900_v23 = vld [vmem:[#allocation14 + $0x1d0] sm:$0xff] }
 0x81b   :  { %7628 = vmatprep.subr.bf16.mxu0 %v9544_v24  ;;  %7669 = vmatprep.subr.bf16.mxu1 %v9546_v42  ;;  %v12054_v11 = vcombine.low %v6900_v23, %v6904_v12  ;;  %v12056_v13 = vcombine.high %v6900_v23, %v6904_v12  ;;  %v6905_v24 = vld [vmem:[#allocation14 + $0x1f8] sm:$0xff] }
 0x81c   :  { %v12058_v22 = vcombine.low %v6901_v33, %v6905_v24 }
 0x81e   :  { %7629 = vmatpush2.bf16.msra.mxu0 %v9543_v10  ;;  %7670 = vmatpush2.bf16.msra.mxu1 %v9545_v29  ;;  %v12060_v10 = vcombine.high %v6901_v33, %v6905_v24 }
 0x81f   :  { %7630 = vmatprep.subr.bf16.mxu0 %v9536_v46  ;;  %7671 = vmatprep.subr.bf16.mxu1 %v9538_v43  ;;  %v13122_v43 = vld [vmem:[#allocation31_spill] sm:$0xff] }
 0x822   :  { %7631 = vmatpush2.bf16.msra.mxu0 %v9535_v38  ;;  %7672 = vmatpush2.bf16.msra.mxu1 %v9537_v2 }
 0x823   :  { %7632 = vmatprep.subr.bf16.mxu0 %v9528_v5  ;;  %7673 = vmatprep.subr.bf16.mxu1 %v9530_v59 }
 0x826   :  { %7633 = vmatpush2.bf16.msra.mxu0 %v9527_v56  ;;  %7674 = vmatpush2.bf16.msra.mxu1 %v9529_v26 }
 0x827   :  { %7634 = vmatprep.subr.bf16.mxu0 %v9520_v34  ;;  %7675 = vmatprep.subr.bf16.mxu1 %v9522_v53 }
 0x82a   :  { %7635 = vmatpush2.bf16.msra.mxu0 %v9519_v31  ;;  %7676 = vmatpush2.bf16.msra.mxu1 %v9521_v18 }
 0x82b   :  { %7636 = vmatprep.subr.bf16.mxu0 %v9512_v55  ;;  %7677 = vmatprep.subr.bf16.mxu1 %v9514_v15 }
 0x82e   :  { %7637 = vmatpush2.bf16.msra.mxu0 %v9511_v48  ;;  %7678 = vmatpush2.bf16.msra.mxu1 %v9513_v25 }
 0x82f   :  { %7638 = vmatprep.subr.bf16.mxu0 %v9504_v63  ;;  %7679 = vmatprep.subr.bf16.mxu1 %v9506_v17 }
 0x832   :  { %7639 = vmatpush2.bf16.msra.mxu0 %v9503_v49  ;;  %7680 = vmatpush2.bf16.msra.mxu1 %v9505_v52 }
 0x833   :  { %7640 = vmatprep.subr.bf16.mxu0 %v9496_v57  ;;  %7681 = vmatprep.subr.bf16.mxu1 %v9498_v28 }
 0x836   :  { %7641 = vmatpush2.bf16.msra.mxu0 %v9495_v41  ;;  %7682 = vmatpush2.bf16.msra.mxu1 %v9497_v27 }
 0x837   :  { %7692 = vmatprep.subr.bf16.mxu0 %v12056_v13  ;;  %7733 = vmatprep.subr.bf16.mxu1 %v12060_v10 }
 0x879   :  { %v6645_v29 = vpop.f32.mrf.mxu0  ;;  %v6686_v42 = vpop.f32.mrf.mxu1 }
 0x87a   :  { %v6782_v3 = vadd.f32 %v6645_v29, %v13120_v54  ;;  %v6784_v46 = vadd.f32 %v6686_v42, %v13121_v20 }
 0x87b   :  { %v6647_v62 = vpop.f32.mrf.mxu0  ;;  %v6688_v38 = vpop.f32.mrf.mxu1 }
 0x87c   :  { %v9425_v2 = vmul.f32 -1.442695, %v6782_v3  ;;  %v6783_v21 = vadd.f32 %v6647_v62, %v13122_v43  ;;  %v6785_v39 = vadd.f32 %v6688_v38, %v13123_v32  ;;  %v9427_v16 = vmul.f32 -1.442695, %v6784_v46  ;;  %v6892_v43 = vld [vmem:[#allocation14 + $0x190] sm:$0xff]  ;;  %v6893_v32 = vld [vmem:[#allocation14 + $0x198] sm:$0xff] }
 0x87d   :  { %v6649_v5 = vpop.f32.mrf.mxu0  ;;  %v6690_v44 = vpop.f32.mrf.mxu1 }
 0x87e   :  { %9933 = vpow2.f32 %v9425_v2  ;;  %v9426_v56 = vmul.f32 -1.442695, %v6783_v21  ;;  %v6896_v21 = vld [vmem:[#allocation14 + $0x1b0] sm:$0xff] }
 0x87f   :  { %v6650_v26 = vpop.f32.mrf.mxu0  ;;  %v6691_v59 = vpop.f32.mrf.mxu1  ;;  %v6884_v44 = vld [vmem:[#allocation14 + $0x150] sm:$0xff] }
 0x880   :  { %9935 = vpow2.f32 %v9426_v56  ;;  %v12082_v56 = vcombine.high %v6892_v43, %v6896_v21  ;;  %v6888_v59 = vld [vmem:[#allocation14 + $0x170] sm:$0xff] }
 0x881   :  { %9937 = vtanh.f32 %v6785_v39  ;;  %v6897_v39 = vld [vmem:[#allocation14 + $0x1b8] sm:$0xff] }
 0x882   :  { %v12084_v26 = vcombine.high %v6893_v32, %v6897_v39 }
 0x88b   :  { %v9934_v61 = vpop.eup %9933 }
 0x88c   :  { %v6795_v47 = vadd.f32 1.0, %v9934_v61  ;;  %v6885_v61 = vld [vmem:[#allocation14 + $0x158] sm:$0xff] }
 0x88d   :  { %v9936_v7 = vpop.eup %9935 }
 0x88e   :  { %9939 = vrcp.f32 %v6795_v47  ;;  %v6796_v34 = vadd.f32 1.0, %v9936_v7  ;;  %v9938_v6 = vpop.eup %9937  ;;  %v6889_v47 = vld [vmem:[#allocation14 + $0x178] sm:$0xff]  ;;  %v12090_v7 = vcombine.low %v6892_v43, %v6896_v21 }
 0x890   :  { %9941 = vrcp.f32 %v6796_v34  ;;  %v12092_v34 = vcombine.low %v6893_v32, %v6897_v39  ;;  %v6964_v32 = vld [vmem:[#allocation14 + $0x3d0] sm:$0xff] }
 0x891   :  { %v6968_v39 = vld [vmem:[#allocation14 + $0x3f0] sm:$0xff] }
 0x89b   :  { %v9940_v60 = vpop.eup %9939 }
 0x89c   :  { %v6806_v19 = vmul.f32 %v9940_v60, %v9938_v6  ;;  %v12094_v6 = vcombine.high %v6884_v44, %v6888_v59  ;;  %v12096_v60 = vcombine.high %v6885_v61, %v6889_v47 }
 0x89d   :  { %v9942_v31 = vpop.eup %9941 }
 0x89e   :  { %v6805_v53 = vmul.f32 %v9942_v31, %v11943_v36  ;;  %v6880_v31 = vld [vmem:[#allocation14 + $0x130] sm:$0xff] }
 0x8a0   :  { %v12069_v35 = vadd.f32 %v6806_v19, %v6805_v53  ;;  %v6876_v19 = vld [vmem:[#allocation14 + $0x110] sm:$0xff]  ;;  %v6877_v53 = vld [vmem:[#allocation14 + $0x118] sm:$0xff] }
 0x8a2   :  { %13124 = vst [vmem:[#allocation113_spill] sm:$0xff] %v12069_v35 }
 0x8b9   :  { %v6727_v40 = vpop.f32.mrf.mxu0  ;;  %v6768_v18 = vpop.f32.mrf.mxu1 }
 0x8ba   :  { %v6810_v55 = vadd.f32 %v6727_v40, %v10820_v0  ;;  %v6812_v36 = vadd.f32 %v6768_v18, %v10830_v37  ;;  %v6881_v40 = vld [vmem:[#allocation14 + $0x138] sm:$0xff]  ;;  %v12102_v18 = vcombine.low %v6884_v44, %v6888_v59  ;;  %v6928_v37 = vld [vmem:[#allocation14 + $0x2b0] sm:$0xff] }
 0x8bb   :  { %v6729_v15 = vpop.f32.mrf.mxu0  ;;  %v6770_v8 = vpop.f32.mrf.mxu1  ;;  %v6969_v44 = vld [vmem:[#allocation14 + $0x3f8] sm:$0xff] }
 0x8bc   :  { %v9428_v4 = vmul.f32 -1.442695, %v6810_v55  ;;  %v6811_v58 = vadd.f32 %v6729_v15, %v10824_v50  ;;  %v9430_v45 = vmul.f32 -1.442695, %v6812_v36  ;;  %v6813_v1 = vadd.f32 %v6770_v8, %v10835_v51  ;;  %v6924_v51 = vld [vmem:[#allocation14 + $0x290] sm:$0xff]  ;;  %v6925_v50 = vld [vmem:[#allocation14 + $0x298] sm:$0xff] }
 0x8bd   :  { %v6731_v9 = vpop.f32.mrf.mxu0  ;;  %v6772_v48 = vpop.f32.mrf.mxu1  ;;  %v12104_v55 = vcombine.low %v6885_v61, %v6889_v47  ;;  %v12108_v15 = vcombine.high %v6876_v19, %v6880_v31  ;;  %v12110_v8 = vcombine.high %v6877_v53, %v6881_v40  ;;  %v12168_v47 = vcombine.high %v6964_v32, %v6968_v39  ;;  %v6929_v0 = vld [vmem:[#allocation14 + $0x2b8] sm:$0xff] }
 0x8be   :  { %9943 = vpow2.f32 %v9428_v4  ;;  %v9429_v25 = vmul.f32 -1.442695, %v6811_v58  ;;  %v6868_v4 = vld [vmem:[#allocation14 + $0xd0] sm:$0xff]  ;;  %v6869_v9 = vld [vmem:[#allocation14 + $0xd8] sm:$0xff] }
 0x8bf   :  { %v6732_v63 = vpop.f32.mrf.mxu0  ;;  %v6773_v17 = vpop.f32.mrf.mxu1  ;;  %v6872_v58 = vld [vmem:[#allocation14 + $0xf0] sm:$0xff]  ;;  %v6873_v48 = vld [vmem:[#allocation14 + $0xf8] sm:$0xff] }
 0x8c0   :  { %9945 = vpow2.f32 %v9429_v25  ;;  %v12114_v25 = vcombine.low %v6876_v19, %v6880_v31  ;;  %v12116_v63 = vcombine.low %v6877_v53, %v6881_v40  ;;  %v12120_v17 = vcombine.high %v6868_v4, %v6872_v58  ;;  %v6956_v31 = vld [vmem:[#allocation14 + $0x390] sm:$0xff]  ;;  %v6957_v40 = vld [vmem:[#allocation14 + $0x398] sm:$0xff] }
 0x8c1   :  { %9947 = vpow2.f32 %v9427_v16  ;;  %v12122_v36 = vcombine.high %v6869_v9, %v6873_v48  ;;  %v6860_v16 = vld [vmem:[#allocation14 + $0x90] sm:$0xff] }
 0x8c2   :  { %9949 = vpow2.f32 %v9430_v45  ;;  %v6864_v45 = vld [vmem:[#allocation14 + $0xb0] sm:$0xff] }
 0x8c3   :  { %v6960_v53 = vld [vmem:[#allocation14 + $0x3b0] sm:$0xff] }
 0x8cb   :  { %v9944_v14 = vpop.eup %9943 }
 0x8cc   :  { %v6823_v49 = vadd.f32 1.0, %v9944_v14  ;;  %v6861_v14 = vld [vmem:[#allocation14 + $0x98] sm:$0xff] }
 0x8cd   :  { %v9946_v52 = vpop.eup %9945 }
 0x8ce   :  { %9951 = vrcp.f32 %v6823_v49  ;;  %v6824_v57 = vadd.f32 1.0, %v9946_v52  ;;  %v9948_v28 = vpop.eup %9947  ;;  %v12126_v49 = vcombine.low %v6868_v4, %v6872_v58  ;;  %v12128_v52 = vcombine.low %v6869_v9, %v6873_v48  ;;  %v6961_v4 = vld [vmem:[#allocation14 + $0x3b8] sm:$0xff] }
 0x8cf   :  { %9953 = vtanh.f32 %v6813_v1  ;;  %v9950_v41 = vpop.eup %9949  ;;  %v6797_v12 = vadd.f32 1.0, %v9948_v28  ;;  %v6865_v1 = vld [vmem:[#allocation14 + $0xb8] sm:$0xff]  ;;  %v12174_v58 = vcombine.low %v6964_v32, %v6968_v39  ;;  %v12180_v48 = vcombine.high %v6956_v31, %v6960_v53 }
 0x8d0   :  { %9955 = vrcp.f32 %v6824_v57  ;;  %v6825_v24 = vadd.f32 1.0, %v9950_v41  ;;  %v12132_v57 = vcombine.high %v6860_v16, %v6864_v45  ;;  %v12134_v28 = vcombine.high %v6861_v14, %v6865_v1  ;;  %v6852_v41 = vld [vmem:[#allocation14 + $0x50] sm:$0xff]  ;;  %v6945_v32 = vld [vmem:[#allocation14 + $0x338] sm:$0xff] }
 0x8d1   :  { %9957 = vtanh.f32 %v12069_v35  ;;  %v6916_v35 = vld [vmem:[#allocation14 + $0x250] sm:$0xff] }
 0x8d2   :  { %9959 = vrcp.f32 %v6797_v12  ;;  %v6857_v12 = vld [vmem:[#allocation14 + $0x78] sm:$0xff] }
 0x8d3   :  { %9961 = vrcp.f32 %v6825_v24  ;;  %v12140_v24 = vcombine.low %v6861_v14, %v6865_v1  ;;  %v6952_v14 = vld [vmem:[#allocation14 + $0x370] sm:$0xff]  ;;  %v6949_v1 = vld [vmem:[#allocation14 + $0x358] sm:$0xff] }
 0x8db   :  { %v9952_v27 = vpop.eup %9951 }
 0x8dc   :  { %v9954_v23 = vpop.eup %9953 }
 0x8dd   :  { %v9956_v33 = vpop.eup %9955  ;;  %v6834_v42 = vmul.f32 %v9954_v23, %v9952_v27  ;;  %v6856_v27 = vld [vmem:[#allocation14 + $0x70] sm:$0xff]  ;;  %v6853_v23 = vld [vmem:[#allocation14 + $0x58] sm:$0xff] }
 0x8de   :  { %v6833_v29 = vmul.f32 %v9956_v33, %v11951_v30  ;;  %v9958_v3 = vpop.eup %9957  ;;  %v12138_v33 = vcombine.low %v6860_v16, %v6864_v45  ;;  %v12182_v16 = vcombine.high %v6957_v40, %v6961_v4  ;;  %v6948_v45 = vld [vmem:[#allocation14 + $0x350] sm:$0xff] }
 0x8df   :  { %v9960_v20 = vpop.eup %9959  ;;  %v12198_v39 = vcombine.low %v6948_v45, %v6952_v14 }
 0x8e0   :  { %v12077_v54 = vadd.f32 %v6834_v42, %v6833_v29  ;;  %v9962_v46 = vpop.eup %9961  ;;  %v6809_v38 = vmul.f32 %v9960_v20, %v9958_v3  ;;  %v12144_v29 = vcombine.high %v6852_v41, %v6856_v27  ;;  %v12146_v42 = vcombine.high %v6853_v23, %v6857_v12  ;;  %v6844_v3 = vld [vmem:[#allocation14 + $0x10] sm:$0xff] }
 0x8e1   :  { %v6848_v20 = vld [vmem:[#allocation14 + $0x30] sm:$0xff] }
 0x8e2   :  { %13125 = vst [vmem:[#allocation115_spill] sm:$0xff] %v12077_v54  ;;  %9963 = vtanh.f32 %v12077_v54  ;;  %v12080_v5 = vpack.c.bf16 %v6809_v38, %v6809_v38  ;;  %v12150_v38 = vcombine.low %v6852_v41, %v6856_v27  ;;  %v12156_v43 = vcombine.high %v6844_v3, %v6848_v20  ;;  %v6953_v41 = vld [vmem:[#allocation14 + $0x378] sm:$0xff] }
 0x8e3   :  { %v12162_v59 = vcombine.low %v6844_v3, %v6848_v20  ;;  %v12186_v27 = vcombine.low %v6956_v31, %v6960_v53  ;;  %v12194_v3 = vcombine.high %v6949_v1, %v6953_v41  ;;  %v6940_v20 = vld [vmem:[#allocation14 + $0x310] sm:$0xff]  ;;  %v6937_v54 = vld [vmem:[#allocation14 + $0x2f8] sm:$0xff] }
 0x8e4   :  { %v6932_v53 = vld [vmem:[#allocation14 + $0x2d0] sm:$0xff] }
 0x8ef   :  { %v9964_v62 = vpop.eup %9963 }
 0x8f0   :  { %v6837_v2 = vmul.f32 %v9964_v62, %v9962_v46  ;;  %v6845_v46 = vld [vmem:[#allocation14 + $0x18] sm:$0xff] }
 0x8f1   :  { %v6849_v62 = vld [vmem:[#allocation14 + $0x38] sm:$0xff] }
 0x8f2   :  { %v6838_v30 = vpack.c.bf16 %v6837_v2, %v6837_v2  ;;  %v12152_v2 = vcombine.low %v6853_v23, %v6857_v12  ;;  %v12158_v21 = vcombine.high %v6845_v46, %v6849_v62  ;;  %v12164_v61 = vcombine.low %v6845_v46, %v6849_v62  ;;  %v6944_v46 = vld [vmem:[#allocation14 + $0x330] sm:$0xff]  ;;  %v6941_v62 = vld [vmem:[#allocation14 + $0x318] sm:$0xff] }
 0x8f3   :  { %v12188_v23 = vcombine.low %v6957_v40, %v6961_v4  ;;  %v12192_v12 = vcombine.high %v6948_v45, %v6952_v14  ;;  %v12206_v31 = vcombine.high %v6941_v62, %v6945_v32  ;;  %v6936_v40 = vld [vmem:[#allocation14 + $0x2f0] sm:$0xff]  ;;  %v6933_v4 = vld [vmem:[#allocation14 + $0x2d8] sm:$0xff]  ;;  %v12210_v45 = vcombine.low %v6940_v20, %v6944_v46 }
 0x8f4   :  { %6840 = vst [vmem:[#allocation3 + $0x14] sm:$0xf] %v6838_v30  ;;  %7642 = vmatprep.mubr.bf16.mxu0 %v6838_v30  ;;  %7683 = vmatprep.mubr.bf16.mxu1 %v6838_v30  ;;  %v12212_v14 = vcombine.low %v6941_v62, %v6945_v32  ;;  %v12228_v62 = vcombine.high %v6924_v51, %v6928_v37 }
 0x8f5   :  { %7643 = vmatmul.mubr.bf16.vlgmr.msra.gmra.mxu0 %v12080_v5  ;;  %7684 = vmatmul.mubr.bf16.vlgmr.msra.gmra.mxu1 %v12080_v5  ;;  %13128 = vst [vmem:[#allocation117_spill] sm:$0xff] %v12206_v31  ;;  %13129 = vst [vmem:[#allocation119_spill] sm:$0xff] %v12210_v45  ;;  %v12230_v32 = vcombine.high %v6925_v50, %v6929_v0 }
 0x8f6   :  { %7693 = vmatpush1.bf16.msra.mxu0 %v12054_v11  ;;  %7734 = vmatpush1.bf16.msra.mxu1 %v12058_v22  ;;  %13130 = vst [vmem:[#allocation120_spill] sm:$0xff] %v12212_v14 }
 0x8f7   :  { %7724 = vmatprep.mubr.bf16.mxu0 %v6838_v30  ;;  %7765 = vmatprep.mubr.bf16.mxu1 %v6838_v30  ;;  %v6965_v30 = vld [vmem:[#allocation14 + $0x3d8] sm:$0xff]  ;;  %13133 = vst [vmem:[#allocation38_spill] sm:$0xff] %v12230_v32 }
 0x8f8   :  { %7694 = vmatprep.subr.bf16.mxu0 %v12082_v56  ;;  %7735 = vmatprep.subr.bf16.mxu1 %v12084_v26  ;;  %v12170_v19 = vcombine.high %v6965_v30, %v6969_v44  ;;  %v12176_v9 = vcombine.low %v6965_v30, %v6969_v44  ;;  %v12200_v30 = vcombine.low %v6949_v1, %v6953_v41 }
 0x8f9   :  { %v12204_v44 = vcombine.high %v6940_v20, %v6944_v46  ;;  %v12216_v1 = vcombine.high %v6932_v53, %v6936_v40  ;;  %v12218_v41 = vcombine.high %v6933_v4, %v6937_v54  ;;  %v12222_v20 = vcombine.low %v6932_v53, %v6936_v40 }
 0x8fa   :  { %7695 = vmatpush1.bf16.msra.mxu0 %v12090_v7  ;;  %7736 = vmatpush1.bf16.msra.mxu1 %v12092_v34  ;;  %13126 = vst [vmem:[#allocation116_spill] sm:$0xff] %v12200_v30  ;;  %v12224_v46 = vcombine.low %v6933_v4, %v6937_v54  ;;  %v12234_v53 = vcombine.low %v6924_v51, %v6928_v37 }
 0x8fb   :  { %7696 = vmatprep.subr.bf16.mxu0 %v12094_v6  ;;  %7737 = vmatprep.subr.bf16.mxu1 %v12096_v60  ;;  %13127 = vst [vmem:[#allocation114_spill] sm:$0xff] %v12204_v44  ;;  %13131 = vst [vmem:[#allocation118_spill] sm:$0xff] %v12216_v1  ;;  %v12236_v54 = vcombine.low %v6925_v50, %v6929_v0 }
 0x8fc   :  { %13132 = vst [vmem:[#allocation26_spill] sm:$0xff] %v12218_v41  ;;  %13134 = vst [vmem:[#allocation27_spill] sm:$0xff] %v12234_v53 }
 0x8fe   :  { %7697 = vmatpush1.bf16.msra.mxu0 %v12102_v18  ;;  %7738 = vmatpush1.bf16.msra.mxu1 %v12104_v55 }
 0x8ff   :  { %7698 = vmatprep.subr.bf16.mxu0 %v12108_v15  ;;  %7739 = vmatprep.subr.bf16.mxu1 %v12110_v8 }
 0x902   :  { %7699 = vmatpush1.bf16.msra.mxu0 %v12114_v25  ;;  %7740 = vmatpush1.bf16.msra.mxu1 %v12116_v63 }
 0x903   :  { %7700 = vmatprep.subr.bf16.mxu0 %v12120_v17  ;;  %7741 = vmatprep.subr.bf16.mxu1 %v12122_v36 }
 0x906   :  { %7701 = vmatpush1.bf16.msra.mxu0 %v12126_v49  ;;  %7742 = vmatpush1.bf16.msra.mxu1 %v12128_v52 }
 0x907   :  { %7702 = vmatprep.subr.bf16.mxu0 %v12132_v57  ;;  %7743 = vmatprep.subr.bf16.mxu1 %v12134_v28 }
 0x90a   :  { %7703 = vmatpush1.bf16.msra.mxu0 %v12138_v33  ;;  %7744 = vmatpush1.bf16.msra.mxu1 %v12140_v24 }
 0x90b   :  { %7704 = vmatprep.subr.bf16.mxu0 %v12144_v29  ;;  %7745 = vmatprep.subr.bf16.mxu1 %v12146_v42 }
 0x90e   :  { %7705 = vmatpush1.bf16.msra.mxu0 %v12150_v38  ;;  %7746 = vmatpush1.bf16.msra.mxu1 %v12152_v2 }
 0x90f   :  { %7706 = vmatprep.subr.bf16.mxu0 %v12156_v43  ;;  %7747 = vmatprep.subr.bf16.mxu1 %v12158_v21 }
 0x912   :  { %7707 = vmatpush1.bf16.msra.mxu0 %v12162_v59  ;;  %7748 = vmatpush1.bf16.msra.mxu1 %v12164_v61 }
 0x913   :  { %7708 = vmatprep.subr.bf16.mxu0 %v12168_v47  ;;  %7749 = vmatprep.subr.bf16.mxu1 %v12170_v19 }
 0x916   :  { %7709 = vmatpush2.bf16.msra.mxu0 %v12174_v58  ;;  %7750 = vmatpush2.bf16.msra.mxu1 %v12176_v9 }
 0x917   :  { %7710 = vmatprep.subr.bf16.mxu0 %v12180_v48  ;;  %7751 = vmatprep.subr.bf16.mxu1 %v12182_v16 }
 0x91a   :  { %7711 = vmatpush2.bf16.msra.mxu0 %v12186_v27  ;;  %7752 = vmatpush2.bf16.msra.mxu1 %v12188_v23 }
 0x91b   :  { %7712 = vmatprep.subr.bf16.mxu0 %v12192_v12  ;;  %7753 = vmatprep.subr.bf16.mxu1 %v12194_v3 }
 0x91e   :  { %7713 = vmatpush2.bf16.msra.mxu0 %v12198_v39  ;;  %7754 = vmatpush2.bf16.msra.mxu1 %v12200_v30  ;;  %v6921_v30 = vld [vmem:[#allocation14 + $0x278] sm:$0xff] }
 0x91f   :  { %7714 = vmatprep.subr.bf16.mxu0 %v12204_v44  ;;  %7755 = vmatprep.subr.bf16.mxu1 %v12206_v31  ;;  %v6920_v31 = vld [vmem:[#allocation14 + $0x270] sm:$0xff]  ;;  %v6917_v44 = vld [vmem:[#allocation14 + $0x258] sm:$0xff] }
 0x920   :  { %v12240_v40 = vcombine.high %v6916_v35, %v6920_v31  ;;  %v12242_v4 = vcombine.high %v6917_v44, %v6921_v30  ;;  %v12246_v37 = vcombine.low %v6916_v35, %v6920_v31  ;;  %v12248_v0 = vcombine.low %v6917_v44, %v6921_v30  ;;  %v13139_v35 = vld [vmem:[#allocation120_spill] sm:$0xff]  ;;  %v13149_v31 = vld [vmem:[#allocation121_spill] sm:$0xff] }
 0x922   :  { %7715 = vmatpush2.bf16.msra.mxu0 %v12210_v45  ;;  %7756 = vmatpush2.bf16.msra.mxu1 %v12212_v14  ;;  %v6909_v14 = vld [vmem:[#allocation14 + $0x218] sm:$0xff] }
 0x923   :  { %7716 = vmatprep.subr.bf16.mxu0 %v12216_v1  ;;  %7757 = vmatprep.subr.bf16.mxu1 %v12218_v41  ;;  %v6908_v41 = vld [vmem:[#allocation14 + $0x210] sm:$0xff]  ;;  %v6913_v45 = vld [vmem:[#allocation14 + $0x238] sm:$0xff] }
 0x924   :  { %v6912_v1 = vld [vmem:[#allocation14 + $0x230] sm:$0xff]  ;;  %v12254_v51 = vcombine.high %v6909_v14, %v6913_v45 }
 0x925   :  { %v12252_v50 = vcombine.high %v6908_v41, %v6912_v1 }
 0x926   :  { %7717 = vmatpush2.bf16.msra.mxu0 %v12222_v20  ;;  %7758 = vmatpush2.bf16.msra.mxu1 %v12224_v46 }
 0x927   :  { %7718 = vmatprep.subr.bf16.mxu0 %v12228_v62  ;;  %7759 = vmatprep.subr.bf16.mxu1 %v12230_v32  ;;  %v12258_v32 = vcombine.low %v6908_v41, %v6912_v1 }
 0x92a   :  { %7719 = vmatpush2.bf16.msra.mxu0 %v12234_v53  ;;  %7760 = vmatpush2.bf16.msra.mxu1 %v12236_v54  ;;  %v12260_v53 = vcombine.low %v6909_v14, %v6913_v45 }
 0x92b   :  { %7720 = vmatprep.subr.bf16.mxu0 %v12240_v40  ;;  %7761 = vmatprep.subr.bf16.mxu1 %v12242_v4 }
 0x92e   :  { %7721 = vmatpush2.bf16.msra.mxu0 %v12246_v37  ;;  %7762 = vmatpush2.bf16.msra.mxu1 %v12248_v0 }
 0x92f   :  { %7722 = vmatprep.subr.bf16.mxu0 %v12252_v50  ;;  %7763 = vmatprep.subr.bf16.mxu1 %v12254_v51 }
 0x932   :  { %7723 = vmatpush2.bf16.msra.mxu0 %v12258_v32  ;;  %7764 = vmatpush2.bf16.msra.mxu1 %v12260_v53 }
 0x933   :  { %8225 = vmatprep.subr.bf16.mxu0 %v12056_v13  ;;  %8266 = vmatprep.subr.bf16.mxu1 %v12060_v10  ;;  %v13136_v13 = vld [vmem:[#allocation114_spill] sm:$0xff]  ;;  %v13138_v10 = vld [vmem:[#allocation119_spill] sm:$0xff] }
 0x935   :  { %7725 = vmatmul.mubr.bf16.vlgmr.msra.gmra.mxu0 %v12080_v5  ;;  %7766 = vmatmul.mubr.bf16.vlgmr.msra.gmra.mxu1 %v12080_v5  ;;  %v13140_v5 = vld [vmem:[#allocation118_spill] sm:$0xff] }
 0x936   :  { %8226 = vmatpush1.bf16.msra.mxu0 %v12054_v11  ;;  %8267 = vmatpush1.bf16.msra.mxu1 %v12058_v22  ;;  %v13135_v11 = vld [vmem:[#allocation116_spill] sm:$0xff]  ;;  %v13137_v22 = vld [vmem:[#allocation117_spill] sm:$0xff] }
 0x937   :  { %8227 = vmatprep.subr.bf16.mxu0 %v12082_v56  ;;  %8268 = vmatprep.subr.bf16.mxu1 %v12084_v26  ;;  %v13141_v56 = vld [vmem:[#allocation26_spill] sm:$0xff] }
 0x938   :  { %v13142_v26 = vld [vmem:[#allocation38_spill] sm:$0xff] }
 0x93a   :  { %8228 = vmatpush1.bf16.msra.mxu0 %v12090_v7  ;;  %8269 = vmatpush1.bf16.msra.mxu1 %v12092_v34  ;;  %v13143_v7 = vld [vmem:[#allocation27_spill] sm:$0xff]  ;;  %v12332_v34 = vld [vmem:[#allocation16 + $0x38] sm:$0xff]  }
 0x93b   :  { %8229 = vmatprep.subr.bf16.mxu0 %v12094_v6  ;;  %8270 = vmatprep.subr.bf16.mxu1 %v12096_v60 }
 0x93e   :  { %8230 = vmatpush1.bf16.msra.mxu0 %v12102_v18  ;;  %8271 = vmatpush1.bf16.msra.mxu1 %v12104_v55  ;;  %v13144_v18 = vld [vmem:[#allocation32_spill] sm:$0xff] }
 0x93f   :  { %8231 = vmatprep.subr.bf16.mxu0 %v12108_v15  ;;  %8272 = vmatprep.subr.bf16.mxu1 %v12110_v8  ;;  %v13145_v15 = vld [vmem:[#allocation44_spill] sm:$0xff] }
 0x942   :  { %8232 = vmatpush1.bf16.msra.mxu0 %v12114_v25  ;;  %8273 = vmatpush1.bf16.msra.mxu1 %v12116_v63 }
 0x943   :  { %8233 = vmatprep.subr.bf16.mxu0 %v12120_v17  ;;  %8274 = vmatprep.subr.bf16.mxu1 %v12122_v36  ;;  %v13146_v36 = vld [vmem:[#allocation33_spill] sm:$0xff] }
 0x946   :  { %8234 = vmatpush1.bf16.msra.mxu0 %v12126_v49  ;;  %8275 = vmatpush1.bf16.msra.mxu1 %v12128_v52  ;;  %v13147_v52 = vld [vmem:[#allocation45_spill] sm:$0xff] }
 0x947   :  { %8235 = vmatprep.subr.bf16.mxu0 %v12132_v57  ;;  %8276 = vmatprep.subr.bf16.mxu1 %v12134_v28 }
 0x94a   :  { %8236 = vmatpush1.bf16.msra.mxu0 %v12138_v33  ;;  %8277 = vmatpush1.bf16.msra.mxu1 %v12140_v24 }
 0x94b   :  { %8237 = vmatprep.subr.bf16.mxu0 %v12144_v29  ;;  %8278 = vmatprep.subr.bf16.mxu1 %v12146_v42 }
 0x94e   :  { %8238 = vmatpush1.bf16.msra.mxu0 %v12150_v38  ;;  %8279 = vmatpush1.bf16.msra.mxu1 %v12152_v2 }
 0x94f   :  { %8239 = vmatprep.subr.bf16.mxu0 %v12156_v43  ;;  %8280 = vmatprep.subr.bf16.mxu1 %v12158_v21 }
 0x952   :  { %8240 = vmatpush1.bf16.msra.mxu0 %v12162_v59  ;;  %8281 = vmatpush1.bf16.msra.mxu1 %v12164_v61 }
 0x953   :  { %8241 = vmatprep.subr.bf16.mxu0 %v12168_v47  ;;  %8282 = vmatprep.subr.bf16.mxu1 %v12170_v19 }
 0x956   :  { %8242 = vmatpush2.bf16.msra.mxu0 %v12174_v58  ;;  %8283 = vmatpush2.bf16.msra.mxu1 %v12176_v9 }
 0x957   :  { %8243 = vmatprep.subr.bf16.mxu0 %v12180_v48  ;;  %8284 = vmatprep.subr.bf16.mxu1 %v12182_v16  ;;  %v13148_v16 = vld [vmem:[#allocation113_spill] sm:$0xff] }
 0x95a   :  { %8244 = vmatpush2.bf16.msra.mxu0 %v12186_v27  ;;  %8285 = vmatpush2.bf16.msra.mxu1 %v12188_v23 }
 0x95b   :  { %8245 = vmatprep.subr.bf16.mxu0 %v12192_v12  ;;  %8286 = vmatprep.subr.bf16.mxu1 %v12194_v3 }
 0x95e   :  { %8246 = vmatpush2.bf16.msra.mxu0 %v12198_v39  ;;  %8287 = vmatpush2.bf16.msra.mxu1 %v13135_v11 }
 0x95f   :  { %8247 = vmatprep.subr.bf16.mxu0 %v13136_v13  ;;  %8288 = vmatprep.subr.bf16.mxu1 %v13137_v22 }
 0x962   :  { %8248 = vmatpush2.bf16.msra.mxu0 %v13138_v10  ;;  %8289 = vmatpush2.bf16.msra.mxu1 %v13139_v35 }
 0x963   :  { %8249 = vmatprep.subr.bf16.mxu0 %v13140_v5  ;;  %8290 = vmatprep.subr.bf16.mxu1 %v13141_v56 }
 0x966   :  { %8250 = vmatpush2.bf16.msra.mxu0 %v12222_v20  ;;  %8291 = vmatpush2.bf16.msra.mxu1 %v12224_v46  ;;  %v13150_v20 = vld [vmem:[#allocation122_spill] sm:$0xff] }
 0x967   :  { %8251 = vmatprep.subr.bf16.mxu0 %v12228_v62  ;;  %8292 = vmatprep.subr.bf16.mxu1 %v13142_v26 }
 0x96a   :  { %8252 = vmatpush2.bf16.msra.mxu0 %v13143_v7  ;;  %8293 = vmatpush2.bf16.msra.mxu1 %v12236_v54 }
 0x96b   :  { %8253 = vmatprep.subr.bf16.mxu0 %v12240_v40  ;;  %8294 = vmatprep.subr.bf16.mxu1 %v12242_v4  ;;  %v13151_v4 = vld [vmem:[#allocation123_spill] sm:$0xff] }
 0x96e   :  { %8254 = vmatpush2.bf16.msra.mxu0 %v12246_v37  ;;  %8295 = vmatpush2.bf16.msra.mxu1 %v12248_v0 }
 0x96f   :  { %8255 = vmatprep.subr.bf16.mxu0 %v12252_v50  ;;  %8296 = vmatprep.subr.bf16.mxu1 %v12254_v51  ;;  %v13152_v51 = vld [vmem:[#allocation124_spill] sm:$0xff] }
 0x972   :  { %8256 = vmatpush2.bf16.msra.mxu0 %v12258_v32  ;;  %8297 = vmatpush2.bf16.msra.mxu1 %v12260_v53 }
 0x973   :  { %9657 = vmatprep.subr.bf16.mxu0 %v12332_v34 }
 0x9b5   :  { %v7644_v6 = vpop.f32.mrf.mxu0  ;;  %v7685_v60 = vpop.f32.mrf.mxu1 }
 0x9b6   :  { %v7781_v55 = vadd.f32 %v7644_v6, %v13144_v18  ;;  %v7783_v8 = vadd.f32 %v7685_v60, %v13145_v15  ;;  %v13153_v6 = vld [vmem:[#allocation115_spill] sm:$0xff] }
 0x9b7   :  { %v7646_v25 = vpop.f32.mrf.mxu0  ;;  %v7687_v63 = vpop.f32.mrf.mxu1 }
 0x9b8   :  { %v9559_v17 = vmul.f32 -1.442695, %v7781_v55  ;;  %v7782_v49 = vadd.f32 %v7646_v25, %v13146_v36  ;;  %v7784_v57 = vadd.f32 %v7687_v63, %v13147_v52  ;;  %v9561_v38 = vmul.f32 -1.442695, %v7783_v8  ;;  %v9747_v36 = vld [vmem:[#allocation16 + $0x30] sm:$0xff]   ;;  %v9748_v52 = vld [vmem:[#allocation16 + $0x28] sm:$0xff]  }
 0x9b9   :  { %v7648_v28 = vpop.f32.mrf.mxu0  ;;  %v7689_v33 = vpop.f32.mrf.mxu1 }
 0x9ba   :  { %9965 = vpow2.f32 %v9559_v17  ;;  %v9560_v24 = vmul.f32 -1.442695, %v7782_v49  ;;  %v9746_v49 = vld [vmem:[#allocation3] sm:$0xff]   ;;  %v9751_v33 = vld [vmem:[#allocation16 + $0x10] sm:$0xff]  }
 0x9bb   :  { %v7649_v29 = vpop.f32.mrf.mxu0  ;;  %v7690_v42 = vpop.f32.mrf.mxu1  ;;  %v9750_v28 = vld [vmem:[#allocation16 + $0x18] sm:$0xff]  }
 0x9bc   :  { %9967 = vpow2.f32 %v9560_v24  ;;  %v9752_v24 = vld [vmem:[#allocation16 + $0x8] sm:$0xff]   ;;  %v9753_v29 = vld [vmem:[#allocation16] sm:$0xff]  }
 0x9bd   :  { %9969 = vpow2.f32 %v9561_v38  ;;  %v9755_v42 = vld [vmem:[#allocation3 + $0x10] sm:$0xff]  }
 0x9be   :  { %9971 = vtanh.f32 %v7784_v57  ;;  %v9749_v57 = vld [vmem:[#allocation16 + $0x20] sm:$0xff]  }
 0x9c7   :  { %v9966_v2 = vpop.eup %9965 }
 0x9c8   :  { %v7794_v43 = vadd.f32 1.0, %v9966_v2 }
 0x9c9   :  { %v9968_v21 = vpop.eup %9967 }
 0x9ca   :  { %9973 = vrcp.f32 %v7794_v43  ;;  %v7795_v59 = vadd.f32 1.0, %v9968_v21  ;;  %v9970_v61 = vpop.eup %9969 }
 0x9cb   :  { %v9972_v47 = vpop.eup %9971  ;;  %v7796_v48 = vadd.f32 1.0, %v9970_v61 }
 0x9cc   :  { %9975 = vrcp.f32 %v7795_v59 }
 0x9cd   :  { %9977 = vrcp.f32 %v7796_v48 }
 0x9d7   :  { %v9974_v19 = vpop.eup %9973 }
 0x9d8   :  { %v7805_v58 = vmul.f32 %v9974_v19, %v9972_v47 }
 0x9d9   :  { %v9976_v9 = vpop.eup %9975 }
 0x9da   :  { %v7804_v27 = vmul.f32 %v9976_v9, %v13148_v16  ;;  %v9978_v12 = vpop.eup %9977 }
 0x9dc   :  { %v7806_v23 = vadd.f32 %v7805_v58, %v7804_v27 }
 0x9de   :  { %9979 = vtanh.f32 %v7806_v23 }
 0x9eb   :  { %v9980_v3 = vpop.eup %9979 }
 0x9ec   :  { %v7808_v39 = vmul.f32 %v9980_v3, %v9978_v12 }
 0x9ee   :  { %v7840_v17 = vpack.c.bf16 %v7808_v39, %v7808_v39 }
 0x9f5   :  { %v7726_v30 = vpop.f32.mrf.mxu0  ;;  %v7767_v44 = vpop.f32.mrf.mxu1 }
 0x9f6   :  { %v7809_v45 = vadd.f32 %v7726_v30, %v13149_v31  ;;  %v7811_v37 = vadd.f32 %v7767_v44, %v13151_v4 }
 0x9f7   :  { %v7728_v14 = vpop.f32.mrf.mxu0  ;;  %v7769_v1 = vpop.f32.mrf.mxu1 }
 0x9f8   :  { %v9562_v41 = vmul.f32 -1.442695, %v7809_v45  ;;  %v7810_v46 = vadd.f32 %v7728_v14, %v13150_v20  ;;  %v9564_v0 = vmul.f32 -1.442695, %v7811_v37  ;;  %v7812_v11 = vadd.f32 %v7769_v1, %v13152_v51  ;;  %v8508_v14 = vld [vmem:[#allocation8 + $0x10] sm:$0xff] }
 0x9f9   :  { %v7730_v62 = vpop.f32.mrf.mxu0  ;;  %v7771_v32 = vpop.f32.mrf.mxu1 }
 0x9fa   :  { %9981 = vpow2.f32 %v9562_v41  ;;  %v9563_v53 = vmul.f32 -1.442695, %v7810_v46  ;;  %v8506_v62 = vld [vmem:[#allocation8] sm:$0xff] }
 0x9fb   :  { %v7731_v54 = vpop.f32.mrf.mxu0  ;;  %v7772_v40 = vpop.f32.mrf.mxu1 }
 0x9fc   :  { %9983 = vpow2.f32 %v9563_v53 }
 0x9fd   :  { %9985 = vpow2.f32 %v9564_v0  ;;  %v8509_v0 = vld [vmem:[#allocation8 + $0x18] sm:$0xff] }
 0xa07   :  { %v9982_v50 = vpop.eup %9981 }
 0xa08   :  { %v7822_v13 = vadd.f32 1.0, %v9982_v50 }
 0xa09   :  { %v9984_v22 = vpop.eup %9983 }
 0xa0a   :  { %9987 = vrcp.f32 %v7822_v13  ;;  %v7823_v10 = vadd.f32 1.0, %v9984_v22  ;;  %v9986_v35 = vpop.eup %9985 }
 0xa0b   :  { %9989 = vtanh.f32 %v7812_v11  ;;  %v7824_v7 = vadd.f32 1.0, %v9986_v35 }
 0xa0c   :  { %9991 = vrcp.f32 %v7823_v10  ;;  %v8507_v10 = vld [vmem:[#allocation8 + $0x8] sm:$0xff] }
 0xa0d   :  { %9993 = vrcp.f32 %v7824_v7 }
 0xa17   :  { %v9988_v5 = vpop.eup %9987 }
 0xa18   :  { %v9990_v56 = vpop.eup %9989 }
 0xa19   :  { %v9992_v26 = vpop.eup %9991  ;;  %v7833_v18 = vmul.f32 %v9990_v56, %v9988_v5 }
 0xa1a   :  { %v7832_v60 = vmul.f32 %v9992_v26, %v13153_v6  ;;  %v9994_v15 = vpop.eup %9993 }
 0xa1c   :  { %v12345_v55 = vadd.f32 %v7833_v18, %v7832_v60 }
 0xa1e   :  { %9995 = vtanh.f32 %v12345_v55 }
 0xa2b   :  { %v9996_v8 = vpop.eup %9995 }
 0xa2c   :  { %v7836_v25 = vmul.f32 %v9996_v8, %v9994_v15  ;;  %v8512_v8 = vld [vmem:[#allocation8 + $0x30] sm:$0xff] }
 0xa2e   :  { %v7837_v63 = vpack.c.bf16 %v7836_v25, %v7836_v25 }
 0xa30   :  { %7839 = vst [vmem:[#allocation3 + $0x18] sm:$0xf] %v7837_v63  ;;  %8257 = vmatprep.mubr.bf16.mxu0 %v7837_v63  ;;  %8298 = vmatprep.mubr.bf16.mxu1 %v7837_v63 }
 0xa31   :  { %8258 = vmatmul.mubr.bf16.vlgmr.msra.gmra.mxu0 %v7840_v17  ;;  %8299 = vmatmul.mubr.bf16.vlgmr.msra.gmra.mxu1 %v7840_v17  ;;  %v8510_v17 = vld [vmem:[#allocation8 + $0x20] sm:$0xff] }
 0xa32   :  { %9658 = vmatpush3.bf16.msra.mxu0 %v12332_v34  ;;  %9673 = vmatprep.mubr.bf16.mxu0 %v9746_v49  ;;  %v9754_v34 = vld [vmem:[#allocation3 + $0x8] sm:$0xff]  }
 0xa33   :  { %9659 = vmatprep.subr.bf16.mxu0 %v9747_v36 }
 0xa36   :  { %9660 = vmatpush3.bf16.msra.mxu0 %v9747_v36 }
 0xa37   :  { %9661 = vmatprep.subr.bf16.mxu0 %v9748_v52 }
 0xa3a   :  { %9662 = vmatpush3.bf16.msra.mxu0 %v9748_v52 }
 0xa3b   :  { %9663 = vmatprep.subr.bf16.mxu0 %v9749_v57 }
 0xa3e   :  { %9664 = vmatpush3.bf16.msra.mxu0 %v9749_v57  ;;  %v8513_v57 = vld [vmem:[#allocation8 + $0x38] sm:$0xff] }
 0xa3f   :  { %9665 = vmatprep.subr.bf16.mxu0 %v9750_v28 }
 0xa42   :  { %9666 = vmatpush3.bf16.msra.mxu0 %v9750_v28 }
 0xa43   :  { %9667 = vmatprep.subr.bf16.mxu0 %v9751_v33 }
 0xa46   :  { %9668 = vmatpush3.bf16.msra.mxu0 %v9751_v33 }
 0xa47   :  { %9669 = vmatprep.subr.bf16.mxu0 %v9752_v24 }
 0xa4a   :  { %9670 = vmatpush3.bf16.msra.mxu0 %v9752_v24 }
 0xa4b   :  { %9671 = vmatprep.subr.bf16.mxu0 %v9753_v29 }
 0xa4e   :  { %9672 = vmatpush3.bf16.msra.mxu0 %v9753_v29  ;;  %v8511_v29 = vld [vmem:[#allocation8 + $0x28] sm:$0xff] }
 0xa51   :  { %9674 = vmatmul.mubr.bf16.vlgmr.msra.gmra.mxu0 %v9754_v34 }
 0xa52   :  { %9677 = vmatprep.mubr.bf16.mxu0 %v9755_v42 }
 0xaf1   :  { %v8259_v38 = vpop.f32.mrf.mxu0  ;;  %v8300_v2 = vpop.f32.mrf.mxu1 }
 0xaf2   :  { %v8260_v43 = vadd.f32 %v8259_v38, %v13149_v31  ;;  %v8301_v27 = vadd.f32 %v8300_v2, %v13151_v4  ;;  %v9632_v31 = vld [vmem:[%s12369_s6] ss:$0 sm:$0xff]  ;;  %s10156_s6 = smov [#allocation17]  }
 0xaf3   :  { %v8261_v21 = vpop.f32.mrf.mxu0  ;;  %v8302_v59 = vpop.f32.mrf.mxu1  ;;  %s8539_s9 = sshll.u32 %s10156_s6, 4  ;;  %s8540_s9 = int_to_ptr.vmem [resolvable:$true] %s8539_s9 }
 0xaf4   :  { %v9629_v61 = vmul.f32 -1.442695, %v8260_v43  ;;  %v8262_v47 = vadd.f32 %v8261_v21, %v13150_v20  ;;  %v9631_v23 = vmul.f32 -1.442695, %v8301_v27  ;;  %v8303_v3 = vadd.f32 %v8302_v59, %v13152_v51  ;;  %s10113_s10 = scalar_lea.vmem %s8540_s9, 1024  ;;  %p10118_p12 = scmp.lt.s32.totalorder %s8540_s9, %s8540_s9 }
 0xaf5   :  { %v8263_v19 = vpop.f32.mrf.mxu0  ;;  %v8304_v58 = vpop.f32.mrf.mxu1  ;;  %p10114_p11 = scmp.ne.s32.totalorder %s8540_s9, %s10113_s10  ;;  %p10119_p13 = scmp.lt.s32.totalorder %s10113_s10, %s10113_s10 }
 0xaf6   :  { %9997 = vpow2.f32 %v9629_v61  ;;  %v9630_v9 = vmul.f32 -1.442695, %v8262_v47 }
 0xaf7   :  { %v8264_v48 = vpop.f32.mrf.mxu0  ;;  %v8305_v16 = vpop.f32.mrf.mxu1  ;;  %p10120_p0 = por %p10119_p13, %p10118_p12 }
 0xaf8   :  { %9999 = vpow2.f32 %v9630_v9 }
 0xaf9   :  { %10001 = vpow2.f32 %v9631_v23  ;;  %p10121_p1 = pnand %p10120_p0, %p10114_p11 }
 0xb03   :  { %v9998_v12 = vpop.eup %9997 }
 0xb04   :  { %v8316_v39 = vadd.f32 1.0, %v9998_v12 }
 0xb05   :  { %v10000_v30 = vpop.eup %9999 }
 0xb06   :  { %10003 = vrcp.f32 %v8316_v39  ;;  %v8317_v44 = vadd.f32 1.0, %v10000_v30  ;;  %v10002_v1 = vpop.eup %10001 }
 0xb07   :  { %10005 = vtanh.f32 %v8303_v3  ;;  %v8318_v4 = vadd.f32 1.0, %v10002_v1 }
 0xb08   :  { %10007 = vrcp.f32 %v8317_v44 }
 0xb09   :  { %10009 = vrcp.f32 %v8318_v4 }
 0xb11   :  { %v9675_v45 = vpop.f32.mrf.mxu0 }
 0xb12   :  { %v8484_v41 = vadd.f32 %v9675_v45, %v9632_v31 }
 0xb13   :  { %v10004_v20 = vpop.eup %10003  ;;  %v8475_v46 = vpop.f32.mrf.mxu0 }
 0xb14   :  { %v10006_v32 = vpop.eup %10005  ;;  %v8516_v53 = vadd.f32 %v8508_v14, %v8484_v41  ;;  %v8476_v54 = vadd.f32 %v9632_v31, %v8475_v46 }
 0xb15   :  { %v10008_v40 = vpop.eup %10007  ;;  %v9676_v37 = vpop.f32.mrf.mxu0  ;;  %v8327_v51 = vmul.f32 %v10006_v32, %v10004_v20 }
 0xb16   :  { %v8326_v50 = vmul.f32 %v10008_v40, %v12345_v55  ;;  %8524 = vst [vmem:[#allocation17 + $0x10] sm:$0xff] %v8516_v53  ;;  %v8514_v11 = vadd.f32 %v8506_v62, %v8476_v54  ;;  %v8487_v13 = vadd.f32 %v9676_v37, %v9632_v31  ;;  %v10010_v7 = vpop.eup %10009 }
 0xb17   :  { %v8478_v22 = vpop.f32.mrf.mxu0 }
 0xb18   :  { %v8328_v35 = vadd.f32 %v8327_v51, %v8326_v50  ;;  %8522 = vst [vmem:[#allocation17] sm:$0xff] %v8514_v11  ;;  %v8517_v5 = vadd.f32 %v8509_v0, %v8487_v13  ;;  %v8479_v56 = vadd.f32 %v9632_v31, %v8478_v22 }
 0xb1a   :  { %10011 = vtanh.f32 %v8328_v35  ;;  %8525 = vst [vmem:[#allocation17 + $0x18] sm:$0xff] %v8517_v5  ;;  %v8515_v26 = vadd.f32 %v8507_v10, %v8479_v56 }
 0xb1c   :  { %8523 = vst [vmem:[#allocation17 + $0x8] sm:$0xff] %v8515_v26 }
 0xb27   :  { %v10012_v6 = vpop.eup %10011 }
 0xb28   :  { %v8330_v60 = vmul.f32 %v10012_v6, %v10010_v7 }
 0xb2a   :  { %v8331_v18 = vpack.c.bf16 %v8330_v60, %v8330_v60 }
 0xb2c   :  { %8333 = vst [vmem:[#allocation3 + $0x1c] sm:$0xf] %v8331_v18 }
 0xb33   :  { %v9756_v55 = vld [vmem:[#allocation3 + $0x18] sm:$0xff]  }
 0xb34   :  { %9678 = vmatmul.mubr.bf16.gmra.mxu0 %v9756_v55 }
 0xbf4   :  { %v9679_v15 = vpop.f32.mrf.mxu0 }
 0xbf5   :  { %v8500_v25 = vadd.f32 %v9679_v15, %v9632_v31 }
 0xbf6   :  { %v8491_v63 = vpop.f32.mrf.mxu0 }
 0xbf7   :  { %v8520_v36 = vadd.f32 %v8512_v8, %v8500_v25  ;;  %v8492_v49 = vadd.f32 %v9632_v31, %v8491_v63 }
 0xbf8   :  { %v9680_v52 = vpop.f32.mrf.mxu0 }
 0xbf9   :  { %8528 = vst [vmem:[#allocation17 + $0x30] sm:$0xff] %v8520_v36  ;;  %v8518_v28 = vadd.f32 %v8510_v17, %v8492_v49  ;;  %v8503_v33 = vadd.f32 %v9680_v52, %v9632_v31 }
 0xbfa   :  { %v8494_v24 = vpop.f32.mrf.mxu0 }
 0xbfb   :  { %8526 = vst [vmem:[#allocation17 + $0x20] sm:$0xff] %v8518_v28  ;;  %v8521_v34 = vadd.f32 %v8513_v57, %v8503_v33  ;;  %v8495_v42 = vadd.f32 %v9632_v31, %v8494_v24 }
 0xbfd   :  { %8529 = vst [vmem:[#allocation17 + $0x38] sm:$0xff] %v8521_v34  ;;  %v8519_v38 = vadd.f32 %v8511_v29, %v8495_v42 }
 0xbff   :  { %8527 = vst [vmem:[#allocation17 + $0x28] sm:$0xff] %v8519_v38 }
 0xc00   :  { %10124 = shalt.err (!%p10121_p1)
}
 0xc01   :  { %8545 = dma.vmem_to_hbm [thread:$0]  %s8540_s9, 1024, %s12370_s7, [#allocation10], %s10148_s17, %s10148_s17, %s10149_s18  }
 0xc02   :  { %10139 = dma.done.wait [#allocation10], 1024  }
 0xc03   :  { %10140 = vsyncadd [#allocation10], 4294966272 }
 0xc04   :  { %8549 = vsyncpa [#allocation9], 1 }
 0xc05   :  { %8550 = vsyncpa [#allocation12], 1 }
 0xc06   :  { %8551 = vsyncpa [#allocation15], 1 }
 0xc07   :  { %8552 = vsyncpa [#allocation10], 1 }

</bundles_post_ra>
